<compile_context>
chip_gen: v5e
topology: v5e:2x2
jax: 0.10.0
libtpu: 0.0.40
codegen_flags: <defaults>
</compile_context>

<pallas_src>
import jax
import jax.numpy as jnp
from jax.experimental import pallas as pl
from jax.experimental.pallas import tpu as pltpu

IN_FEATURES = 196608   # = 3 * 256 * 256, from Linear(196608, 10)
OUT_FEATURES = 10

K_TILE = 16384         # 196608 / 16384 = 12 K-blocks
N_SPLIT = 2            # parallel split of the K reduction (2 TCs on v7x)


def _linear_kernel(x_ref, w_ref, o_ref, acc_ref):
    """One (split, K-tile) step of   partial[p] = x @ W_t[half_p].

    x_ref : (B, K_TILE)        f32
    w_ref : (K_TILE, N)        f32   (pre-transposed weight slice)
    o_ref : (1, B, N)          f32   (partial sum for split p)
    acc_ref: VMEM scratch (B, N) f32, persists across the K grid axis.
    """
    k = pl.program_id(1)

    @pl.when(k == 0)
    def _():
        acc_ref[...] = jnp.zeros_like(acc_ref)

    acc_ref[...] += jnp.dot(
        x_ref[...], w_ref[...], preferred_element_type=jnp.float32
    )

    @pl.when(k == pl.num_programs(1) - 1)
    def _():
        o_ref[0] = acc_ref[...].astype(o_ref.dtype)


@jax.jit
def zhuzhu_forward(x, w_t, bias):
    """x: [B, 196608] f32, w_t: [196608, 10] f32 (pre-transposed), bias: [10]."""
    b_dim, k_dim = x.shape
    n_dim = w_t.shape[1]
    assert k_dim == IN_FEATURES and n_dim == OUT_FEATURES
    assert k_dim % (K_TILE * N_SPLIT) == 0

    n_k = k_dim // K_TILE // N_SPLIT      # K-blocks per parallel split (6)

    cost = pl.CostEstimate(
        flops=2 * b_dim * k_dim * n_dim,
        transcendentals=0,
        bytes_accessed=4 * (x.size + w_t.size + N_SPLIT * b_dim * n_dim),
    )

    partials = pl.pallas_call(
        _linear_kernel,
        out_shape=jax.ShapeDtypeStruct((N_SPLIT, b_dim, n_dim), jnp.float32),
        grid_spec=pltpu.PrefetchScalarGridSpec(
            num_scalar_prefetch=0,
            grid=(N_SPLIT, n_k),
            in_specs=[
                # x: batch block == full batch dim (legal), K tiled.
                pl.BlockSpec((b_dim, K_TILE), lambda p, k: (0, p * n_k + k)),
                # weight: K tiled, N block == full 10 (legal, no lane pad in HBM).
                pl.BlockSpec((K_TILE, n_dim), lambda p, k: (p * n_k + k, 0)),
            ],
            out_specs=pl.BlockSpec(
                (1, b_dim, n_dim), lambda p, k: (p, 0, 0)
            ),
            scratch_shapes=[pltpu.VMEM((b_dim, n_dim), jnp.float32)],
        ),
        compiler_params=pltpu.CompilerParams(
            dimension_semantics=("parallel", "arbitrary"),
            vmem_limit_bytes=40 * 1024 * 1024,
        ),
        cost_estimate=cost,
    )(x, w_t)

    # Combine the two partial K-sums and add the bias (tiny epilogue).
    return jnp.sum(partials, axis=0) + bias[None, :]


def prepare_weight(weight):
    """One-time layout prep (hoisted out of the per-call forward)."""
    return jnp.asarray(weight.T)  # [in_features, out_features]


def init_params(key):
    """Deterministic init matching PyTorch Linear shapes (uniform +-1/sqrt(K))."""
    kw, kb = jax.random.split(key)
    bound = 1.0 / (IN_FEATURES ** 0.5)
    weight = jax.random.uniform(
        kw, (OUT_FEATURES, IN_FEATURES), jnp.float32, -bound, bound
    )
    bias = jax.random.uniform(kb, (OUT_FEATURES,), jnp.float32, -bound, bound)
    return weight, bias


if __name__ == "__main__":
    key = jax.random.PRNGKey(0)
    k_x, k_p = jax.random.split(key)

    batch = 2
    x = jax.random.normal(k_x, (batch, IN_FEATURES), jnp.float32)
    weight, bias = init_params(k_p)

    w_t = prepare_weight(weight)          # done once, outside the jitted forward

    out = zhuzhu_forward(x, w_t, bias)
    out = jax.block_until_ready(out)

    # Reference check against plain JAX.
    ref = x @ weight.T + bias
    assert out.shape == (batch, OUT_FEATURES), out.shape
    assert jnp.allclose(out, ref, atol=1e-3, rtol=1e-3), (
        float(jnp.max(jnp.abs(out - ref)))
    )

    print("KERNEL_OK")
</pallas_src>

<mosaic_0001>
module attributes {stable_mosaic.version = 11 : i64} {
  func.func @_linear_kernel(%arg0: i32, %arg1: i32, %arg2: memref<2x16384xf32, #tpu.memory_space<vmem>>, %arg3: memref<16384x10xf32, #tpu.memory_space<vmem>>, %arg4: memref<1x2x10xf32, #tpu.memory_space<vmem>>, %arg5: memref<2x10xf32, #tpu.memory_space<vmem>>) attributes {dimension_semantics = [#tpu.dimension_semantics<parallel>, #tpu.dimension_semantics<arbitrary>], iteration_bounds = array<i64: 2, 6>, scalar_prefetch = 0 : i64, scratch_operands = 1 : i64, tpu.core_type = #tpu.core_type<tc>, window_params = [{transform_indices = @transform_0, window_bounds = array<i64: 2, 16384>}, {transform_indices = @transform_1, window_bounds = array<i64: 16384, 10>}, {transform_indices = @transform_2, window_bounds = array<i64: 1, 2, 10>}]} {
    %c0_i32 = arith.constant 0 : i32
    %0 = arith.cmpi eq, %arg1, %c0_i32 : i32
    %1 = arith.extui %0 : i1 to i32
    %c0_i32_0 = arith.constant 0 : i32
    %2 = arith.cmpi ne, %1, %c0_i32_0 : i32
    scf.if %2 {
      %cst_9 = arith.constant 0.000000e+00 : f32
      %12 = vector.broadcast %cst_9 : f32 to vector<2x10xf32>
      %c0_10 = arith.constant 0 : index
      %c0_11 = arith.constant 0 : index
      %13 = vector.load %arg5[%c0_10, %c0_11] : memref<2x10xf32, #tpu.memory_space<vmem>>, vector<2x10xf32>
      tpu.vector_store %arg5[%c0_10, %c0_11], %12 {strides = array<i32>} : memref<2x10xf32, #tpu.memory_space<vmem>>, vector<2x10xf32>,
    } else {
    }
    %c0 = arith.constant 0 : index
    %c0_1 = arith.constant 0 : index
    %3 = vector.load %arg5[%c0, %c0_1] : memref<2x10xf32, #tpu.memory_space<vmem>>, vector<2x10xf32>
    %c0_2 = arith.constant 0 : index
    %c0_3 = arith.constant 0 : index
    %4 = vector.load %arg2[%c0_2, %c0_3] : memref<2x16384xf32, #tpu.memory_space<vmem>>, vector<2x16384xf32>
    %c0_4 = arith.constant 0 : index
    %c0_5 = arith.constant 0 : index
    %5 = vector.load %arg3[%c0_4, %c0_5] : memref<16384x10xf32, #tpu.memory_space<vmem>>, vector<16384x10xf32>
    %cst = arith.constant dense<0.000000e+00> : vector<2x10xf32>
    %6 = tpu.matmul %4, %5, %cst {dimension_numbers = #tpu.dot_dimension_numbers<[1], [0], [0], [1], [0, 0, 1, 1], [], []>} : vector<2x16384xf32>, vector<16384x10xf32>, vector<2x10xf32> -> vector<2x10xf32>
    %7 = arith.addf %3, %6 : vector<2x10xf32>
    %c0_6 = arith.constant 0 : index
    %c0_7 = arith.constant 0 : index
    %8 = vector.load %arg5[%c0_6, %c0_7] : memref<2x10xf32, #tpu.memory_space<vmem>>, vector<2x10xf32>
    tpu.vector_store %arg5[%c0_6, %c0_7], %7 {strides = array<i32>} : memref<2x10xf32, #tpu.memory_space<vmem>>, vector<2x10xf32>,
    %c5_i32 = arith.constant 5 : i32
    %9 = arith.cmpi eq, %arg1, %c5_i32 : i32
    %10 = arith.extui %9 : i1 to i32
    %c0_i32_8 = arith.constant 0 : i32
    %11 = arith.cmpi ne, %10, %c0_i32_8 : i32
    scf.if %11 {
      %c0_9 = arith.constant 0 : index
      %c0_10 = arith.constant 0 : index
      %12 = vector.load %arg5[%c0_9, %c0_10] : memref<2x10xf32, #tpu.memory_space<vmem>>, vector<2x10xf32>
      %c0_11 = arith.constant 0 : index
      %c0_12 = arith.constant 0 : index
      %c0_13 = arith.constant 0 : index
      %13 = vector.load %arg4[%c0_11, %c0_12, %c0_13] : memref<1x2x10xf32, #tpu.memory_space<vmem>>, vector<1x2x10xf32>
      %14 = vector.shape_cast %13 : vector<1x2x10xf32> to vector<2x10xf32>
      %15 = vector.shape_cast %12 : vector<2x10xf32> to vector<1x2x10xf32>
      tpu.vector_store %arg4[%c0_11, %c0_12, %c0_13], %15 {strides = array<i32>} : memref<1x2x10xf32, #tpu.memory_space<vmem>>, vector<1x2x10xf32>,
    } else {
    }
    return
  }
  func.func @transform_0(%arg0: i32, %arg1: i32) -> (i32, i32) {
    %c6_i32 = arith.constant 6 : i32
    %0 = arith.muli %arg0, %c6_i32 : i32
    %1 = arith.addi %0, %arg1 : i32
    %c0_i32 = arith.constant 0 : i32
    %c0_i32_0 = arith.constant 0 : i32
    return %c0_i32, %1 : i32, i32
  }
  func.func @transform_1(%arg0: i32, %arg1: i32) -> (i32, i32) {
    %c6_i32 = arith.constant 6 : i32
    %0 = arith.muli %arg0, %c6_i32 : i32
    %1 = arith.addi %0, %arg1 : i32
    %c0_i32 = arith.constant 0 : i32
    %c0_i32_0 = arith.constant 0 : i32
    return %1, %c0_i32 : i32, i32
  }
  func.func @transform_2(%arg0: i32, %arg1: i32) -> (i32, i32, i32) {
    %c0_i32 = arith.constant 0 : i32
    %c0_i32_0 = arith.constant 0 : i32
    %c0_i32_1 = arith.constant 0 : i32
    return %arg0, %c0_i32, %c0_i32_0 : i32, i32, i32
  }
}

</mosaic_0001>

<bundles_post_ra>
// kernel: zhuzhu_forward.1
= control target key start
LH: loop header
LB: loop body
LE: loop exit
PB: predicated region body
PF: predicated region fallthrough
CT: control target
= control target key end

     0   :  { %7 = vsyncpa [#allocation4], 0  ;;  %s7700_s0 = inlined_call_operand.vmem [shape: f32[2,196608], index: 0, kind: input, shape index: {}]   ;;  %s7701_s1 = inlined_call_operand.hbm [shape: f32[196608,10], index: 1, kind: input, shape index: {}]   ;;  %s7702_s2 = inlined_call_operand.vmem [shape: f32[2,2,10], index: 2, kind: output, shape index: {}]  }
   0x1   :  { %9 = vsyncpa [#allocation4 + $0x1], 0  ;;  %s5495_s9 = smov 0   ;;  %s5497_s10 = smov 0  }
   0x2   :  { %s5499_s11 = smov 0   ;;  %s5501_s12 = smov 0  }
   0x3   :  { %s5503_s13 = smov 0   ;;  %s5505_s14 = smov 0  }
   0x4   :  { %s5507_s15 = smov 0   ;;  %s5509_s16 = smov 0  }
   0x5 LB: > { %s5288_s17 = sadd.s32 4294967295, %s5475_s16   ;;  %s24_s18 = sadd.s32 1, %s5467_s14  ;;  %s5475_s16 = sphi %s5509_s16, %s15_s16   ;;  %s5471_s15 = sphi %s5507_s15, %s7711_s15   ;;  %s5467_s14 = sphi %s5505_s14, %s7710_s14   ;;  %s5463_s13 = sphi %s5503_s13, %s7709_s13   ;;  %s5459_s12 = sphi %s5501_s12, %s7708_s12   ;;  %s5455_s11 = sphi %s5499_s11, %s7707_s11   ;;  %s5451_s10 = sphi %s5497_s10, %s7706_s10   ;;  %s5447_s9 = sphi %s5495_s9, %s7705_s9  }
   0x6   : > { %p25_p0 = scmp.ge.s32.totalorder %s24_s18, 6  ;;  %s27_s19 = sadd.s32 1, %s5471_s15 }
   0x7   : > { %s61_s20 = smul.u32 6, %s5471_s15  ;;  %s68_s21 = sadd.s32 1, %s5455_s11 }
   0x8   : > { %s7713_s18 = smov (%p25_p0, %s24_s18), 0  ;;  %s7715_s19 = smov (!%p25_p0, %s27_s19), %s5471_s15 }
   0x9   : > { %s62_s22 = sadd.s32 %s5467_s14, %s61_s20  ;;  %p75_p1 = scmp.ne.s32.totalorder %s5455_s11, %s5451_s10 }
   0xa   : > { %p29_p2 = scmp.ge.s32.totalorder %s7715_s19, 2  ;;  %p76_p3 = scmp.eq.s32.totalorder %s5475_s16, 0 }
   0xb   : > { %p81_p4 = scmp.ne.s32.totalorder %s5451_s10, %s5447_s9  ;;  %p82_p5 = scmp.eq.s32.totalorder %s5288_s17, 0 }
   0xc   : > { %s7717_s19 = smov (%p29_p2, %s7715_s19), 0  ;;  %p5548_p6 = por %p76_p3, %p75_p1 }
   0xd   : > { %p5552_p7 = por %p82_p5, %p81_p4  ;;  %s63_s25 = smul.u32 6, %s7717_s19 }
   0xe   : > { %p5311_p8 = scmp.lt.s32.totalorder %s5475_s16, 12  ;;  %s144_s26 = sand.u32 1, %s5455_s11  }
   0xf   : > { %s64_s27 = sadd.s32 %s63_s25, %s7713_s18  ;;  %s5292_s29 = sshll.u32 %s144_s26, 14 }
  0x10   : > { %s65_s28 = ssub.s32 %s62_s22, %s64_s27  ;;  %s5304_s30 = sshll.u32 %s62_s22, 14 }
  0x11   : > { %p66_p9 = scmp.eq.s32.totalorder %s65_s28, 0  ;;  %s148_s3 = scalar_lea.vmem [#allocation3], %s5292_s29 }
  0x12   : > { %s158_s4 = sshll.u32 %s148_s3, 4  ;;  %s155_s8 = scalar_lea.hbm %s7701_s1, %s5304_s30  ;;  %s159_s4 = int_to_ptr.vmem [resolvable:$true] %s158_s4 }
  0x13   : > { %s5561_s5 = scalar_select %p66_p9, %s5455_s11, %s68_s21  }
  0x14   : > { %s156_s9 = sshll.u32 %s155_s8, 4  ;;  %p5308_p10 = pnand %p5311_p8, %p5548_p6  ;;  %s157_s9 = int_to_ptr.hbm [resolvable:$true] %s156_s9 }
  0x15   : > { %s145_s17 = scalar_lea.sflag [#allocation4], %s144_s26  ;;  %s5477_s20 = smov 128  }
  0x16   : > { %s5478_s25 = smov 8   ;;  %p5295_p11 = scmp.ge.s32.totalorder %s5475_s16, 1 }
  0x17   : > { %5310 = dma.hbm_to_vmem [thread:$0]  (!%p5308_p10), %s157_s9, 262144, %s159_s4, %s145_s17, %s5477_s20, %s5477_s20, %s5478_s25  }
  0x18   : > { %p166_p12 = scmp.lt.s32.totalorder %s5475_s16, 13 }
  0x1a   : > { %p167_p13 = pnand %p5295_p11, %p166_p12 }
  0x1b   : > { %s172_s21 = sand.u32 (!%p167_p13), 1, %s5451_s10  }
  0x1c   : > { %170 = sbr.rel (%p167_p13) target bundleno = 1280 (0x500), region = 28  ;;  %s5296_s22 = sshll.u32 (!%p167_p13), %s172_s21, 14 }
  0x1d   : > { %s173_s27 = scalar_lea.sflag (!%p167_p13), [#allocation4], %s172_s21  ;;  %s5573_s28 = scalar_lea.vmem (!%p167_p13), [#allocation3], %s5296_s22 }
  0x21   : > { %5442 = dma.done.wait (%p5552_p7), %s173_s27, 262144  }
  0x22   : > { %5444 = vsyncadd (%p5552_p7), %s173_s27, 4294705152  ;;  %s204_s23 = smul.u32 6, %s5463_s13  ;;  %p217_p0 = scmp.lt.s32.totalorder %s5463_s13, 1 }
  0x23   : > { %p5300_p2 = scmp.ne.s32.totalorder %s5459_s12, 0 }
  0x24   : > { %s205_s26 = sadd.s32 %s5459_s12, %s204_s23  ;;  %s7719_s13 = smov (!%p217_p0, %s5463_s13), 1 }
  0x25   : > { %s5297_s29 = sshll.u32 %s205_s26, 7  ;;  %s5299_s30 = sshll.u32 %s7719_s13, 1 }
  0x26   : > { %p207_p1 = scmp.lt.s32.totalorder %s5297_s29, 1535  ;;  %s5586_s7 = scalar_lea.vmem %s7702_s2, %s5299_s30 }
  0x27   : > { %224 = sbr.rel (%p5300_p2) target bundleno = 46 (0x2e), region = 36 }
  0x28   : > { %s7721_s29 = smov (!%p207_p1, %s5297_s29), 1535 }
  0x29   : > { %s5298_s3 = sshll.u32 %s7721_s29, 1 }
  0x2a   : > { %s5591_s9 = scalar_lea.vmem %s7700_s0, %s5298_s3 }
  0x2c   : > { %vm225_vm0 = vcmask 74752   ;;  %v5479_v0 = vmov 0.0  }
  0x2d   : > { %226 = vst.msk [vmem:[#allocation2] sm:$0x3] %vm225_vm0, %v5479_v0 }
  0x2e PF: > { %v275_v1 = vld [vmem:[%s5573_s28 + $0x78] sm:$0xff]  ;;  %v274_v3 = vld [vmem:[%s5573_s28 + $0x70] sm:$0xff]  ;;  %v273_v7 = vld [vmem:[%s5573_s28 + $0x68] sm:$0xff]  ;;  %vm5190_vm1 = vcmask 74752   ;;  %p5301_p3 = scmp.ne.s32.totalorder %s5459_s12, 5 }
  0x2f   : > { %v307_v2 = vld [vmem:[%s5573_s28 + $0x178] sm:$0xff]  ;;  %2629 = vmatpush.msra.mxu0 %v275_v1  ;;  %v306_v5 = vld [vmem:[%s5573_s28 + $0x170] sm:$0xff]  ;;  %v305_v9 = vld [vmem:[%s5573_s28 + $0x168] sm:$0xff] }
  0x30   : > { %2669 = vmatpush.msra.mxu2 %v307_v2  ;;  %v291_v4 = vld [vmem:[%s5573_s28 + $0xf8] sm:$0xff]  ;;  %v290_v8 = vld [vmem:[%s5573_s28 + $0xf0] sm:$0xff]  ;;  %v289_v11 = vld [vmem:[%s5573_s28 + $0xe8] sm:$0xff] }
  0x31   : > { %v323_v6 = vld [vmem:[%s5573_s28 + $0x1f8] sm:$0xff]  ;;  %2649 = vmatpush.msra.mxu1 %v291_v4  ;;  %2630 = vmatpush.msra.mxu0 %v274_v3  ;;  %v322_v10 = vld [vmem:[%s5573_s28 + $0x1f0] sm:$0xff]  ;;  %v272_v12 = vld [vmem:[%s5573_s28 + $0x60] sm:$0xff] }
  0x32   : > { %2689 = vmatpush.msra.mxu3 %v323_v6  ;;  %2670 = vmatpush.msra.mxu2 %v306_v5  ;;  %v304_v13 = vld [vmem:[%s5573_s28 + $0x160] sm:$0xff]  ;;  %v321_v14 = vld [vmem:[%s5573_s28 + $0x1e8] sm:$0xff]  ;;  %v271_v17 = vld [vmem:[%s5573_s28 + $0x58] sm:$0xff] }
  0x33   : > { %2650 = vmatpush.msra.mxu1 %v290_v8  ;;  %2631 = vmatpush.msra.mxu0 %v273_v7  ;;  %v288_v15 = vld [vmem:[%s5573_s28 + $0xe0] sm:$0xff]  ;;  %v303_v18 = vld [vmem:[%s5573_s28 + $0x158] sm:$0xff]  ;;  %v270_v21 = vld [vmem:[%s5573_s28 + $0x50] sm:$0xff] }
  0x34   : > { %2690 = vmatpush.msra.mxu3 %v322_v10  ;;  %2671 = vmatpush.msra.mxu2 %v305_v9  ;;  %v320_v16 = vld [vmem:[%s5573_s28 + $0x1e0] sm:$0xff]  ;;  %v287_v19 = vld [vmem:[%s5573_s28 + $0xd8] sm:$0xff]  ;;  %v302_v22 = vld [vmem:[%s5573_s28 + $0x150] sm:$0xff] }
  0x35   : > { %2651 = vmatpush.msra.mxu1 %v289_v11  ;;  %2632 = vmatpush.msra.mxu0 %v272_v12  ;;  %v319_v20 = vld [vmem:[%s5573_s28 + $0x1d8] sm:$0xff]  ;;  %v286_v23 = vld [vmem:[%s5573_s28 + $0xd0] sm:$0xff]  ;;  %v269_v25 = vld [vmem:[%s5573_s28 + $0x48] sm:$0xff] }
  0x36   : > { %2691 = vmatpush.msra.mxu3 %v321_v14  ;;  %2672 = vmatpush.msra.mxu2 %v304_v13  ;;  %v318_v24 = vld [vmem:[%s5573_s28 + $0x1d0] sm:$0xff]  ;;  %v301_v26 = vld [vmem:[%s5573_s28 + $0x148] sm:$0xff]  ;;  %v268_v29 = vld [vmem:[%s5573_s28 + $0x40] sm:$0xff] }
  0x37   : > { %2652 = vmatpush.msra.mxu1 %v288_v15  ;;  %2633 = vmatpush.msra.mxu0 %v271_v17  ;;  %v285_v27 = vld [vmem:[%s5573_s28 + $0xc8] sm:$0xff]  ;;  %v300_v30 = vld [vmem:[%s5573_s28 + $0x140] sm:$0xff]  ;;  %v267_v33 = vld [vmem:[%s5573_s28 + $0x38] sm:$0xff] }
  0x38   : > { %2692 = vmatpush.msra.mxu3 %v320_v16  ;;  %2673 = vmatpush.msra.mxu2 %v303_v18  ;;  %v317_v28 = vld [vmem:[%s5573_s28 + $0x1c8] sm:$0xff]  ;;  %v284_v31 = vld [vmem:[%s5573_s28 + $0xc0] sm:$0xff]  ;;  %v299_v34 = vld [vmem:[%s5573_s28 + $0x138] sm:$0xff] }
  0x39   : > { %2653 = vmatpush.msra.mxu1 %v287_v19  ;;  %2634 = vmatpush.msra.mxu0 %v270_v21  ;;  %v316_v32 = vld [vmem:[%s5573_s28 + $0x1c0] sm:$0xff]  ;;  %v283_v35 = vld [vmem:[%s5573_s28 + $0xb8] sm:$0xff]  ;;  %v266_v37 = vld [vmem:[%s5573_s28 + $0x30] sm:$0xff] }
  0x3a   : > { %2693 = vmatpush.msra.mxu3 %v319_v20  ;;  %2674 = vmatpush.msra.mxu2 %v302_v22  ;;  %v315_v36 = vld [vmem:[%s5573_s28 + $0x1b8] sm:$0xff]  ;;  %v298_v38 = vld [vmem:[%s5573_s28 + $0x130] sm:$0xff]  ;;  %v265_v41 = vld [vmem:[%s5573_s28 + $0x28] sm:$0xff] }
  0x3b   : > { %2654 = vmatpush.msra.mxu1 %v286_v23  ;;  %2635 = vmatpush.msra.mxu0 %v269_v25  ;;  %v282_v39 = vld [vmem:[%s5573_s28 + $0xb0] sm:$0xff]  ;;  %v297_v42 = vld [vmem:[%s5573_s28 + $0x128] sm:$0xff]  ;;  %v264_v45 = vld [vmem:[%s5573_s28 + $0x20] sm:$0xff] }
  0x3c   : > { %2694 = vmatpush.msra.mxu3 %v318_v24  ;;  %2675 = vmatpush.msra.mxu2 %v301_v26  ;;  %v314_v40 = vld [vmem:[%s5573_s28 + $0x1b0] sm:$0xff]  ;;  %v281_v43 = vld [vmem:[%s5573_s28 + $0xa8] sm:$0xff]  ;;  %v296_v46 = vld [vmem:[%s5573_s28 + $0x120] sm:$0xff] }
  0x3d   : > { %2655 = vmatpush.msra.mxu1 %v285_v27  ;;  %2636 = vmatpush.msra.mxu0 %v268_v29  ;;  %v313_v44 = vld [vmem:[%s5573_s28 + $0x1a8] sm:$0xff]  ;;  %v280_v47 = vld [vmem:[%s5573_s28 + $0xa0] sm:$0xff]  ;;  %v263_v49 = vld [vmem:[%s5573_s28 + $0x18] sm:$0xff] }
  0x3e   : > { %2695 = vmatpush.msra.mxu3 %v317_v28  ;;  %2676 = vmatpush.msra.mxu2 %v300_v30  ;;  %v312_v48 = vld [vmem:[%s5573_s28 + $0x1a0] sm:$0xff]  ;;  %v295_v50 = vld [vmem:[%s5573_s28 + $0x118] sm:$0xff]  ;;  %v262_v53 = vld [vmem:[%s5573_s28 + $0x10] sm:$0xff] }
  0x3f   : > { %2656 = vmatpush.msra.mxu1 %v284_v31  ;;  %2637 = vmatpush.msra.mxu0 %v267_v33  ;;  %v279_v51 = vld [vmem:[%s5573_s28 + $0x98] sm:$0xff]  ;;  %v294_v54 = vld [vmem:[%s5573_s28 + $0x110] sm:$0xff]  ;;  %v261_v57 = vld [vmem:[%s5573_s28 + $0x8] sm:$0xff] }
  0x40   : > { %2696 = vmatpush.msra.mxu3 %v316_v32  ;;  %2677 = vmatpush.msra.mxu2 %v299_v34  ;;  %v311_v52 = vld [vmem:[%s5573_s28 + $0x198] sm:$0xff]  ;;  %v278_v55 = vld [vmem:[%s5573_s28 + $0x90] sm:$0xff]  ;;  %v293_v58 = vld [vmem:[%s5573_s28 + $0x108] sm:$0xff] }
  0x41   : > { %2657 = vmatpush.msra.mxu1 %v283_v35  ;;  %2638 = vmatpush.msra.mxu0 %v266_v37  ;;  %v310_v56 = vld [vmem:[%s5573_s28 + $0x190] sm:$0xff]  ;;  %v277_v59 = vld [vmem:[%s5573_s28 + $0x88] sm:$0xff]  ;;  %v260_v61 = vld [vmem:[%s5573_s28] sm:$0xff] }
  0x42   : > { %2697 = vmatpush.msra.mxu3 %v315_v36  ;;  %2678 = vmatpush.msra.mxu2 %v298_v38  ;;  %v309_v60 = vld [vmem:[%s5573_s28 + $0x188] sm:$0xff]  ;;  %v292_v62 = vld [vmem:[%s5573_s28 + $0x100] sm:$0xff]  ;;  %v339_v63 = vld [vmem:[%s5573_s28 + $0x278] sm:$0xff] }
  0x43   : > { %2658 = vmatpush.msra.mxu1 %v282_v39  ;;  %2639 = vmatpush.msra.mxu0 %v265_v41  ;;  %v371_v0 = vld [vmem:[%s5573_s28 + $0x378] sm:$0xff]  ;;  %v276_v1 = vld [vmem:[%s5573_s28 + $0x80] sm:$0xff]  ;;  %v338_v3 = vld [vmem:[%s5573_s28 + $0x270] sm:$0xff] }
  0x44   : > { %2698 = vmatpush.msra.mxu3 %v314_v40  ;;  %2679 = vmatpush.msra.mxu2 %v297_v42  ;;  %v308_v2 = vld [vmem:[%s5573_s28 + $0x180] sm:$0xff]  ;;  %v355_v4 = vld [vmem:[%s5573_s28 + $0x2f8] sm:$0xff]  ;;  %v370_v5 = vld [vmem:[%s5573_s28 + $0x370] sm:$0xff] }
  0x45   : > { %2659 = vmatpush.msra.mxu1 %v281_v43  ;;  %2640 = vmatpush.msra.mxu0 %v264_v45  ;;  %v387_v6 = vld [vmem:[%s5573_s28 + $0x3f8] sm:$0xff]  ;;  %v337_v7 = vld [vmem:[%s5573_s28 + $0x268] sm:$0xff]  ;;  %v354_v8 = vld [vmem:[%s5573_s28 + $0x2f0] sm:$0xff] }
  0x46   : > { %2699 = vmatpush.msra.mxu3 %v313_v44  ;;  %2680 = vmatpush.msra.mxu2 %v296_v46  ;;  %v369_v9 = vld [vmem:[%s5573_s28 + $0x368] sm:$0xff]  ;;  %v386_v10 = vld [vmem:[%s5573_s28 + $0x3f0] sm:$0xff]  ;;  %v336_v11 = vld [vmem:[%s5573_s28 + $0x260] sm:$0xff] }
  0x47   : > { %2660 = vmatpush.msra.mxu1 %v280_v47  ;;  %2641 = vmatpush.msra.mxu0 %v263_v49  ;;  %v353_v12 = vld [vmem:[%s5573_s28 + $0x2e8] sm:$0xff]  ;;  %v368_v13 = vld [vmem:[%s5573_s28 + $0x360] sm:$0xff]  ;;  %v335_v15 = vld [vmem:[%s5573_s28 + $0x258] sm:$0xff] }
  0x48   : > { %2700 = vmatpush.msra.mxu3 %v312_v48  ;;  %2681 = vmatpush.msra.mxu2 %v295_v50  ;;  %v385_v14 = vld [vmem:[%s5573_s28 + $0x3e8] sm:$0xff]  ;;  %v352_v16 = vld [vmem:[%s5573_s28 + $0x2e0] sm:$0xff]  ;;  %v367_v17 = vld [vmem:[%s5573_s28 + $0x358] sm:$0xff] }
  0x49   : > { %2661 = vmatpush.msra.mxu1 %v279_v51  ;;  %2642 = vmatpush.msra.mxu0 %v262_v53  ;;  %v384_v18 = vld [vmem:[%s5573_s28 + $0x3e0] sm:$0xff]  ;;  %v334_v19 = vld [vmem:[%s5573_s28 + $0x250] sm:$0xff]  ;;  %v351_v20 = vld [vmem:[%s5573_s28 + $0x2d8] sm:$0xff] }
  0x4a   : > { %2701 = vmatpush.msra.mxu3 %v311_v52  ;;  %2682 = vmatpush.msra.mxu2 %v294_v54  ;;  %v366_v21 = vld [vmem:[%s5573_s28 + $0x350] sm:$0xff]  ;;  %v383_v22 = vld [vmem:[%s5573_s28 + $0x3d8] sm:$0xff]  ;;  %v333_v24 = vld [vmem:[%s5573_s28 + $0x248] sm:$0xff] }
  0x4b   : > { %2662 = vmatpush.msra.mxu1 %v278_v55  ;;  %2643 = vmatpush.msra.mxu0 %v261_v57  ;;  %v228_v23 = vld [vmem:[%s5591_s9] sm:$0xff]  ;;  %v365_v26 = vld [vmem:[%s5573_s28 + $0x348] sm:$0xff]  ;;  %v332_v28 = vld [vmem:[%s5573_s28 + $0x240] sm:$0xff] }
  0x4c   : > { %2702 = vmatpush.msra.mxu3 %v310_v56  ;;  %2683 = vmatpush.msra.mxu2 %v293_v58  ;;  %v350_v25 = vld [vmem:[%s5573_s28 + $0x2d0] sm:$0xff]  ;;  %2340 = vst [vmem:[#allocation1] ss:$4 sm:$0xff] %v228_v23  ;;  %v349_v29 = vld [vmem:[%s5573_s28 + $0x2c8] sm:$0xff]  ;;  %v364_v30 = vld [vmem:[%s5573_s28 + $0x340] sm:$0xff] }
  0x4d   : > { %2663 = vmatpush.msra.mxu1 %v277_v59  ;;  %2644 = vmatpush.msra.mxu0 %v260_v61  ;;  %v382_v27 = vld [vmem:[%s5573_s28 + $0x3d0] sm:$0xff]  ;;  %v381_v31 = vld [vmem:[%s5573_s28 + $0x3c8] sm:$0xff]  ;;  %v331_v32 = vld [vmem:[%s5573_s28 + $0x238] sm:$0xff] }
  0x4e   : > { %2703 = vmatpush.msra.mxu3 %v309_v60  ;;  %2684 = vmatpush.msra.mxu2 %v292_v62  ;;  %v348_v33 = vld [vmem:[%s5573_s28 + $0x2c0] sm:$0xff]  ;;  %v363_v34 = vld [vmem:[%s5573_s28 + $0x338] sm:$0xff]  ;;  %v330_v37 = vld [vmem:[%s5573_s28 + $0x230] sm:$0xff] }
  0x4f   : > { %2709 = vmatpush.msrb.mxu0 %v339_v63  ;;  %2664 = vmatpush.msra.mxu1 %v276_v1  ;;  %v380_v35 = vld [vmem:[%s5573_s28 + $0x3c0] sm:$0xff]  ;;  %v347_v38 = vld [vmem:[%s5573_s28 + $0x2b8] sm:$0xff]  ;;  %v362_v39 = vld [vmem:[%s5573_s28 + $0x330] sm:$0xff] }
  0x50   : > { %2749 = vmatpush.msrb.mxu2 %v371_v0  ;;  %2704 = vmatpush.msra.mxu3 %v308_v2  ;;  %v229_v36 = vld [vmem:[%s5591_s9 + $0x8] sm:$0xff]  ;;  %v329_v41 = vld [vmem:[%s5573_s28 + $0x228] sm:$0xff]  ;;  %v346_v42 = vld [vmem:[%s5573_s28 + $0x2b0] sm:$0xff] }
  0x51   : > { %2710 = vmatpush.msrb.mxu0 %v338_v3  ;;  %2729 = vmatpush.msrb.mxu1 %v355_v4  ;;  %2342 = vst [vmem:[#allocation1 + $0x20] ss:$4 sm:$0xff] %v229_v36  ;;  %v379_v40 = vld [vmem:[%s5573_s28 + $0x3b8] sm:$0xff]  ;;  %v361_v43 = vld [vmem:[%s5573_s28 + $0x328] sm:$0xff]  ;;  %v378_v44 = vld [vmem:[%s5573_s28 + $0x3b0] sm:$0xff] }
  0x52   : > { %2750 = vmatpush.msrb.mxu2 %v370_v5  ;;  %2769 = vmatpush.msrb.mxu3 %v387_v6  ;;  %v328_v45 = vld [vmem:[%s5573_s28 + $0x220] sm:$0xff]  ;;  %v345_v46 = vld [vmem:[%s5573_s28 + $0x2a8] sm:$0xff]  ;;  %v327_v49 = vld [vmem:[%s5573_s28 + $0x218] sm:$0xff] }
  0x53   : > { %2711 = vmatpush.msrb.mxu0 %v337_v7  ;;  %2730 = vmatpush.msrb.mxu1 %v354_v8  ;;  %v360_v47 = vld [vmem:[%s5573_s28 + $0x320] sm:$0xff]  ;;  %v377_v48 = vld [vmem:[%s5573_s28 + $0x3a8] sm:$0xff]  ;;  %v359_v51 = vld [vmem:[%s5573_s28 + $0x318] sm:$0xff] }
  0x54   : > { %2751 = vmatpush.msrb.mxu2 %v369_v9  ;;  %2770 = vmatpush.msrb.mxu3 %v386_v10  ;;  %v344_v50 = vld [vmem:[%s5573_s28 + $0x2a0] sm:$0xff]  ;;  %v326_v53 = vld [vmem:[%s5573_s28 + $0x210] sm:$0xff]  ;;  %v343_v54 = vld [vmem:[%s5573_s28 + $0x298] sm:$0xff] }
  0x55   : > { %2712 = vmatpush.msrb.mxu0 %v336_v11  ;;  %2731 = vmatpush.msrb.mxu1 %v353_v12  ;;  %v376_v52 = vld [vmem:[%s5573_s28 + $0x3a0] sm:$0xff]  ;;  %v358_v55 = vld [vmem:[%s5573_s28 + $0x310] sm:$0xff]  ;;  %v375_v56 = vld [vmem:[%s5573_s28 + $0x398] sm:$0xff] }
  0x56   : > { %2752 = vmatpush.msrb.mxu2 %v368_v13  ;;  %2771 = vmatpush.msrb.mxu3 %v385_v14  ;;  %v325_v57 = vld [vmem:[%s5573_s28 + $0x208] sm:$0xff]  ;;  %v342_v58 = vld [vmem:[%s5573_s28 + $0x290] sm:$0xff]  ;;  %v324_v62 = vld [vmem:[%s5573_s28 + $0x200] sm:$0xff] }
  0x57   : > { %2713 = vmatpush.msrb.mxu0 %v335_v15  ;;  %2732 = vmatpush.msrb.mxu1 %v352_v16  ;;  %v357_v59 = vld [vmem:[%s5573_s28 + $0x308] sm:$0xff]  ;;  %v374_v60 = vld [vmem:[%s5573_s28 + $0x390] sm:$0xff]  ;;  %v356_v0 = vld [vmem:[%s5573_s28 + $0x300] sm:$0xff] }
  0x58   : > { %2753 = vmatpush.msrb.mxu2 %v367_v17  ;;  %2772 = vmatpush.msrb.mxu3 %v384_v18  ;;  %v2345_v61 = vld.sshfl [vmem:[#allocation1 + $0x10] sm:$0xff pattern:$0x73625140]  ;;  %v2343_v2 = vld.sshfl [vmem:[#allocation1] sm:$0xff pattern:$0x73625140] }
  0x59   : > { %2714 = vmatpush.msrb.mxu0 %v334_v19  ;;  %2733 = vmatpush.msrb.mxu1 %v351_v20  ;;  %v341_v63 = vld [vmem:[%s5573_s28 + $0x288] sm:$0xff]  ;;  %v403_v4 = vld [vmem:[%s5573_s28 + $0x478] sm:$0xff]  ;;  %v340_v6 = vld [vmem:[%s5573_s28 + $0x280] sm:$0xff] }
  0x5a   : > { %2754 = vmatpush.msrb.mxu2 %v366_v21  ;;  %2773 = vmatpush.msrb.mxu3 %v383_v22  ;;  %v373_v1 = vld [vmem:[%s5573_s28 + $0x388] sm:$0xff]  ;;  %v435_v5 = vld [vmem:[%s5573_s28 + $0x578] sm:$0xff]  ;;  %v372_v7 = vld [vmem:[%s5573_s28 + $0x380] sm:$0xff] }
  0x5b   : > { %2715 = vmatpush.msrb.mxu0 %v333_v24  ;;  %2734 = vmatpush.msrb.mxu1 %v350_v25  ;;  %v2346_v3 = vld.sshfl [vmem:[#allocation1 + $0x18] sm:$0xff pattern:$0x73625140]  ;;  %v2344_v8 = vld.sshfl [vmem:[#allocation1 + $0x8] sm:$0xff pattern:$0x73625140] }
  0x5c   : > { %2755 = vmatpush.msrb.mxu2 %v365_v26  ;;  %2774 = vmatpush.msrb.mxu3 %v382_v27  ;;  %v402_v9 = vld [vmem:[%s5573_s28 + $0x470] sm:$0xff]  ;;  %v419_v10 = vld [vmem:[%s5573_s28 + $0x4f8] sm:$0xff]  ;;  %v401_v13 = vld [vmem:[%s5573_s28 + $0x468] sm:$0xff] }
  0x5d   : > { %2716 = vmatpush.msrb.mxu0 %v332_v28  ;;  %2735 = vmatpush.msrb.mxu1 %v349_v29  ;;  %v434_v11 = vld [vmem:[%s5573_s28 + $0x570] sm:$0xff]  ;;  %v451_v12 = vld [vmem:[%s5573_s28 + $0x5f8] sm:$0xff]  ;;  %v433_v15 = vld [vmem:[%s5573_s28 + $0x568] sm:$0xff] }
  0x5e   : > { %2756 = vmatpush.msrb.mxu2 %v364_v30  ;;  %2775 = vmatpush.msrb.mxu3 %v381_v31  ;;  %v418_v14 = vld [vmem:[%s5573_s28 + $0x4f0] sm:$0xff]  ;;  %v230_v17 = vld [vmem:[%s5591_s9 + $0x10] sm:$0xff]  ;;  %v399_v25 = vld [vmem:[%s5573_s28 + $0x458] sm:$0xff] }
  0x5f   : > { %2717 = vmatpush.msrb.mxu0 %v331_v32  ;;  %2736 = vmatpush.msrb.mxu1 %v348_v33  ;;  %v450_v16 = vld [vmem:[%s5573_s28 + $0x5f0] sm:$0xff]  ;;  %v2349_v18 = vld.sshfl [vmem:[#allocation1 + $0x30] sm:$0xff pattern:$0x73625140]  ;;  %2351 = vst [vmem:[#allocation1] ss:$4 sm:$0xff] %v230_v17 }
  0x60   : > { %2757 = vmatpush.msrb.mxu2 %v363_v34  ;;  %2776 = vmatpush.msrb.mxu3 %v380_v35  ;;  %v400_v19 = vld [vmem:[%s5573_s28 + $0x460] sm:$0xff]  ;;  %v417_v20 = vld [vmem:[%s5573_s28 + $0x4e8] sm:$0xff]  ;;  %v2347_v23 = vld.sshfl [vmem:[#allocation1 + $0x20] sm:$0xff pattern:$0x73625140] }
  0x61   : > { %2718 = vmatpush.msrb.mxu0 %v330_v37  ;;  %2737 = vmatpush.msrb.mxu1 %v347_v38  ;;  %v432_v21 = vld [vmem:[%s5573_s28 + $0x560] sm:$0xff]  ;;  %v449_v22 = vld [vmem:[%s5573_s28 + $0x5e8] sm:$0xff]  ;;  %v431_v27 = vld [vmem:[%s5573_s28 + $0x558] sm:$0xff] }
  0x62   : > { %2758 = vmatpush.msrb.mxu2 %v362_v39  ;;  %2777 = vmatpush.msrb.mxu3 %v379_v40  ;;  %v2350_v24 = vld.sshfl [vmem:[#allocation1 + $0x38] sm:$0xff pattern:$0x73625140]  ;;  %v416_v26 = vld [vmem:[%s5573_s28 + $0x4e0] sm:$0xff]  ;;  %v415_v31 = vld [vmem:[%s5573_s28 + $0x4d8] sm:$0xff] }
  0x63   : > { %2719 = vmatpush.msrb.mxu0 %v329_v41  ;;  %2738 = vmatpush.msrb.mxu1 %v346_v42  ;;  %v448_v28 = vld [vmem:[%s5573_s28 + $0x5e0] sm:$0xff]  ;;  %v398_v30 = vld [vmem:[%s5573_s28 + $0x450] sm:$0xff]  ;;  %v447_v33 = vld [vmem:[%s5573_s28 + $0x5d8] sm:$0xff] }
  0x64   : > { %2759 = vmatpush.msrb.mxu2 %v361_v43  ;;  %2778 = vmatpush.msrb.mxu3 %v378_v44  ;;  %v2348_v29 = vld.sshfl [vmem:[#allocation1 + $0x28] sm:$0xff pattern:$0x73625140]  ;;  %v430_v32 = vld [vmem:[%s5573_s28 + $0x550] sm:$0xff]  ;;  %v397_v34 = vld [vmem:[%s5573_s28 + $0x448] sm:$0xff] }
  0x65   : > { %2720 = vmatpush.msrb.mxu0 %v328_v45  ;;  %2739 = vmatpush.msrb.mxu1 %v345_v46  ;;  %v414_v35 = vld [vmem:[%s5573_s28 + $0x4d0] sm:$0xff]  ;;  %v429_v36 = vld [vmem:[%s5573_s28 + $0x548] sm:$0xff]  ;;  %v396_v38 = vld [vmem:[%s5573_s28 + $0x440] sm:$0xff] }
  0x66   : > { %2760 = vmatpush.msrb.mxu2 %v360_v47  ;;  %2779 = vmatpush.msrb.mxu3 %v377_v48  ;;  %v446_v37 = vld [vmem:[%s5573_s28 + $0x5d0] sm:$0xff]  ;;  %v413_v39 = vld [vmem:[%s5573_s28 + $0x4c8] sm:$0xff]  ;;  %v428_v40 = vld [vmem:[%s5573_s28 + $0x540] sm:$0xff] }
  0x67   : > { %2721 = vmatpush.msrb.mxu0 %v327_v49  ;;  %2740 = vmatpush.msrb.mxu1 %v344_v50  ;;  %v445_v41 = vld [vmem:[%s5573_s28 + $0x5c8] sm:$0xff]  ;;  %v395_v42 = vld [vmem:[%s5573_s28 + $0x438] sm:$0xff]  ;;  %v412_v43 = vld [vmem:[%s5573_s28 + $0x4c0] sm:$0xff] }
  0x68   : > { %2761 = vmatpush.msrb.mxu2 %v359_v51  ;;  %2780 = vmatpush.msrb.mxu3 %v376_v52  ;;  %v427_v44 = vld [vmem:[%s5573_s28 + $0x538] sm:$0xff]  ;;  %v444_v45 = vld [vmem:[%s5573_s28 + $0x5c0] sm:$0xff]  ;;  %v394_v46 = vld [vmem:[%s5573_s28 + $0x430] sm:$0xff] }
  0x69   : > { %2722 = vmatpush.msrb.mxu0 %v326_v53  ;;  %2741 = vmatpush.msrb.mxu1 %v343_v54  ;;  %v411_v47 = vld [vmem:[%s5573_s28 + $0x4b8] sm:$0xff]  ;;  %v426_v48 = vld [vmem:[%s5573_s28 + $0x530] sm:$0xff]  ;;  %v393_v50 = vld [vmem:[%s5573_s28 + $0x428] sm:$0xff] }
  0x6a   : > { %2762 = vmatpush.msrb.mxu2 %v358_v55  ;;  %2781 = vmatpush.msrb.mxu3 %v375_v56  ;;  %v443_v49 = vld [vmem:[%s5573_s28 + $0x5b8] sm:$0xff]  ;;  %v410_v51 = vld [vmem:[%s5573_s28 + $0x4b0] sm:$0xff]  ;;  %v425_v52 = vld [vmem:[%s5573_s28 + $0x528] sm:$0xff] }
  0x6b   : > { %2723 = vmatpush.msrb.mxu0 %v325_v57  ;;  %2742 = vmatpush.msrb.mxu1 %v342_v58  ;;  %v442_v53 = vld [vmem:[%s5573_s28 + $0x5b0] sm:$0xff]  ;;  %v392_v54 = vld [vmem:[%s5573_s28 + $0x420] sm:$0xff]  ;;  %v409_v55 = vld [vmem:[%s5573_s28 + $0x4a8] sm:$0xff] }
  0x6c   : > { %2763 = vmatpush.msrb.mxu2 %v357_v59  ;;  %2782 = vmatpush.msrb.mxu3 %v374_v60  ;;  %v424_v56 = vld [vmem:[%s5573_s28 + $0x520] sm:$0xff]  ;;  %v441_v57 = vld [vmem:[%s5573_s28 + $0x5a8] sm:$0xff]  ;;  %v391_v58 = vld [vmem:[%s5573_s28 + $0x418] sm:$0xff] }
  0x6d   : > { %2685 = vmatmul.f32.vlgmr.msra.gmra.mxu2 %v2345_v61  ;;  %2724 = vmatpush.msrb.mxu0 %v324_v62  ;;  %v408_v59 = vld [vmem:[%s5573_s28 + $0x4a0] sm:$0xff]  ;;  %v423_v60 = vld [vmem:[%s5573_s28 + $0x518] sm:$0xff]  ;;  %v390_v62 = vld [vmem:[%s5573_s28 + $0x410] sm:$0xff] }
  0x6e   : > { %2743 = vmatpush.msrb.mxu1 %v341_v63  ;;  %2764 = vmatpush.msrb.mxu2 %v356_v0  ;;  %v440_v61 = vld [vmem:[%s5573_s28 + $0x5a0] sm:$0xff]  ;;  %v407_v63 = vld [vmem:[%s5573_s28 + $0x498] sm:$0xff]  ;;  %v422_v0 = vld [vmem:[%s5573_s28 + $0x510] sm:$0xff] }
  0x6f   : > { %2783 = vmatpush.msrb.mxu3 %v373_v1  ;;  %2645 = vmatmul.f32.vlgmr.msra.gmra.mxu0 %v2343_v2  ;;  %v439_v1 = vld [vmem:[%s5573_s28 + $0x598] sm:$0xff]  ;;  %v389_v2 = vld [vmem:[%s5573_s28 + $0x408] sm:$0xff] }
  0x70   : > { %2705 = vmatmul.f32.vlgmr.msra.gmra.mxu3 %v2346_v3  ;;  %2789 = vmatpush.msra.mxu0 %v403_v4  ;;  %v406_v3 = vld [vmem:[%s5573_s28 + $0x490] sm:$0xff]  ;;  %v2354_v17 = vld.sshfl [vmem:[#allocation1 + $0x8] sm:$0xff pattern:$0x73625140] }
  0x71   : > { %2829 = vmatpush.msra.mxu2 %v435_v5  ;;  %2744 = vmatpush.msrb.mxu1 %v340_v6  ;;  %v231_v4 = vld [vmem:[%s5591_s9 + $0x18] sm:$0xff] }
  0x72   : > { %2784 = vmatpush.msrb.mxu3 %v372_v7  ;;  %2665 = vmatmul.f32.vlgmr.msra.gmra.mxu1 %v2344_v8  ;;  %v421_v5 = vld [vmem:[%s5573_s28 + $0x508] sm:$0xff]  ;;  %v438_v6 = vld [vmem:[%s5573_s28 + $0x590] sm:$0xff]  ;;  %2352 = vst [vmem:[#allocation1 + $0x20] ss:$4 sm:$0xff] %v231_v4  ;;  %v388_v7 = vld [vmem:[%s5573_s28 + $0x400] sm:$0xff] }
  0x73   : > { %2790 = vmatpush.msra.mxu0 %v402_v9  ;;  %2809 = vmatpush.msra.mxu1 %v419_v10  ;;  %v405_v8 = vld [vmem:[%s5573_s28 + $0x488] sm:$0xff]  ;;  %v420_v9 = vld [vmem:[%s5573_s28 + $0x500] sm:$0xff]  ;;  %v471_v4 = vld [vmem:[%s5573_s28 + $0x698] sm:$0xff] }
  0x74   : > { %2830 = vmatpush.msra.mxu2 %v434_v11  ;;  %2849 = vmatpush.msra.mxu3 %v451_v12  ;;  %v437_v10 = vld [vmem:[%s5573_s28 + $0x588] sm:$0xff]  ;;  %v2353_v11 = vld.sshfl [vmem:[#allocation1] sm:$0xff pattern:$0x73625140] }
  0x75   : > { %2791 = vmatpush.msra.mxu0 %v401_v13  ;;  %2810 = vmatpush.msra.mxu1 %v418_v14  ;;  %v2355_v12 = vld.sshfl [vmem:[#allocation1 + $0x10] sm:$0xff pattern:$0x73625140]  ;;  %v467_v13 = vld [vmem:[%s5573_s28 + $0x678] sm:$0xff] }
  0x76   : > { %2831 = vmatpush.msra.mxu2 %v433_v15  ;;  %2850 = vmatpush.msra.mxu3 %v450_v16  ;;  %v499_v14 = vld [vmem:[%s5573_s28 + $0x778] sm:$0xff]  ;;  %v404_v15 = vld [vmem:[%s5573_s28 + $0x480] sm:$0xff] }
  0x77   : > { %2765 = vmatmul.f32.vlgmr.msrb.gmra.mxu2 %v2349_v18  ;;  %2792 = vmatpush.msra.mxu0 %v400_v19  ;;  %v436_v16 = vld [vmem:[%s5573_s28 + $0x580] sm:$0xff]  ;;  %v2356_v18 = vld.sshfl [vmem:[#allocation1 + $0x18] sm:$0xff pattern:$0x73625140] }
  0x78   : > { %2811 = vmatpush.msra.mxu1 %v417_v20  ;;  %2832 = vmatpush.msra.mxu2 %v432_v21  ;;  %v466_v19 = vld [vmem:[%s5573_s28 + $0x670] sm:$0xff]  ;;  %v483_v20 = vld [vmem:[%s5573_s28 + $0x6f8] sm:$0xff] }
  0x79   : > { %2851 = vmatpush.msra.mxu3 %v449_v22  ;;  %2725 = vmatmul.f32.vlgmr.msrb.gmra.mxu0 %v2347_v23  ;;  %v498_v21 = vld [vmem:[%s5573_s28 + $0x770] sm:$0xff]  ;;  %v515_v22 = vld [vmem:[%s5573_s28 + $0x7f8] sm:$0xff]  ;;  %v465_v23 = vld [vmem:[%s5573_s28 + $0x668] sm:$0xff] }
  0x7a   : > { %2785 = vmatmul.f32.vlgmr.msrb.gmra.mxu3 %v2350_v24  ;;  %2793 = vmatpush.msra.mxu0 %v399_v25  ;;  %v482_v24 = vld [vmem:[%s5573_s28 + $0x6f0] sm:$0xff]  ;;  %v497_v25 = vld [vmem:[%s5573_s28 + $0x768] sm:$0xff] }
  0x7b   : > { %2812 = vmatpush.msra.mxu1 %v416_v26  ;;  %2833 = vmatpush.msra.mxu2 %v431_v27  ;;  %v514_v26 = vld [vmem:[%s5573_s28 + $0x7f0] sm:$0xff]  ;;  %v464_v27 = vld [vmem:[%s5573_s28 + $0x660] sm:$0xff] }
  0x7c   : > { %2852 = vmatpush.msra.mxu3 %v448_v28  ;;  %2745 = vmatmul.f32.vlgmr.msrb.gmra.mxu1 %v2348_v29  ;;  %v481_v28 = vld [vmem:[%s5573_s28 + $0x6e8] sm:$0xff]  ;;  %v496_v29 = vld [vmem:[%s5573_s28 + $0x760] sm:$0xff] }
  0x7d   : > { %2794 = vmatpush.msra.mxu0 %v398_v30  ;;  %2813 = vmatpush.msra.mxu1 %v415_v31  ;;  %v513_v30 = vld [vmem:[%s5573_s28 + $0x7e8] sm:$0xff]  ;;  %v463_v31 = vld [vmem:[%s5573_s28 + $0x658] sm:$0xff] }
  0x7e   : > { %2834 = vmatpush.msra.mxu2 %v430_v32  ;;  %2853 = vmatpush.msra.mxu3 %v447_v33  ;;  %v480_v32 = vld [vmem:[%s5573_s28 + $0x6e0] sm:$0xff]  ;;  %v495_v33 = vld [vmem:[%s5573_s28 + $0x758] sm:$0xff] }
  0x7f   : > { %2795 = vmatpush.msra.mxu0 %v397_v34  ;;  %2814 = vmatpush.msra.mxu1 %v414_v35  ;;  %v512_v34 = vld [vmem:[%s5573_s28 + $0x7e0] sm:$0xff]  ;;  %v462_v35 = vld [vmem:[%s5573_s28 + $0x650] sm:$0xff] }
  0x80   : > { %2835 = vmatpush.msra.mxu2 %v429_v36  ;;  %2854 = vmatpush.msra.mxu3 %v446_v37  ;;  %v479_v36 = vld [vmem:[%s5573_s28 + $0x6d8] sm:$0xff]  ;;  %v494_v37 = vld [vmem:[%s5573_s28 + $0x750] sm:$0xff] }
  0x81   : > { %2796 = vmatpush.msra.mxu0 %v396_v38  ;;  %2815 = vmatpush.msra.mxu1 %v413_v39  ;;  %v511_v38 = vld [vmem:[%s5573_s28 + $0x7d8] sm:$0xff]  ;;  %v461_v39 = vld [vmem:[%s5573_s28 + $0x648] sm:$0xff] }
  0x82   : > { %2836 = vmatpush.msra.mxu2 %v428_v40  ;;  %2855 = vmatpush.msra.mxu3 %v445_v41  ;;  %v478_v40 = vld [vmem:[%s5573_s28 + $0x6d0] sm:$0xff]  ;;  %v493_v41 = vld [vmem:[%s5573_s28 + $0x748] sm:$0xff] }
  0x83   : > { %2797 = vmatpush.msra.mxu0 %v395_v42  ;;  %2816 = vmatpush.msra.mxu1 %v412_v43  ;;  %v510_v42 = vld [vmem:[%s5573_s28 + $0x7d0] sm:$0xff]  ;;  %v460_v43 = vld [vmem:[%s5573_s28 + $0x640] sm:$0xff] }
  0x84   : > { %2837 = vmatpush.msra.mxu2 %v427_v44  ;;  %2856 = vmatpush.msra.mxu3 %v444_v45  ;;  %v477_v44 = vld [vmem:[%s5573_s28 + $0x6c8] sm:$0xff]  ;;  %v492_v45 = vld [vmem:[%s5573_s28 + $0x740] sm:$0xff] }
  0x85   : > { %2798 = vmatpush.msra.mxu0 %v394_v46  ;;  %2817 = vmatpush.msra.mxu1 %v411_v47  ;;  %v509_v46 = vld [vmem:[%s5573_s28 + $0x7c8] sm:$0xff]  ;;  %v459_v47 = vld [vmem:[%s5573_s28 + $0x638] sm:$0xff] }
  0x86   : > { %2838 = vmatpush.msra.mxu2 %v426_v48  ;;  %2857 = vmatpush.msra.mxu3 %v443_v49  ;;  %v476_v48 = vld [vmem:[%s5573_s28 + $0x6c0] sm:$0xff]  ;;  %v491_v49 = vld [vmem:[%s5573_s28 + $0x738] sm:$0xff] }
  0x87   : > { %2799 = vmatpush.msra.mxu0 %v393_v50  ;;  %2818 = vmatpush.msra.mxu1 %v410_v51  ;;  %v508_v50 = vld [vmem:[%s5573_s28 + $0x7c0] sm:$0xff]  ;;  %v458_v51 = vld [vmem:[%s5573_s28 + $0x630] sm:$0xff] }
  0x88   : > { %2839 = vmatpush.msra.mxu2 %v425_v52  ;;  %2858 = vmatpush.msra.mxu3 %v442_v53  ;;  %v475_v52 = vld [vmem:[%s5573_s28 + $0x6b8] sm:$0xff]  ;;  %v490_v53 = vld [vmem:[%s5573_s28 + $0x730] sm:$0xff] }
  0x89   : > { %2800 = vmatpush.msra.mxu0 %v392_v54  ;;  %2819 = vmatpush.msra.mxu1 %v409_v55  ;;  %v507_v54 = vld [vmem:[%s5573_s28 + $0x7b8] sm:$0xff]  ;;  %v457_v55 = vld [vmem:[%s5573_s28 + $0x628] sm:$0xff] }
  0x8a   : > { %2840 = vmatpush.msra.mxu2 %v424_v56  ;;  %2859 = vmatpush.msra.mxu3 %v441_v57  ;;  %v474_v56 = vld [vmem:[%s5573_s28 + $0x6b0] sm:$0xff]  ;;  %v489_v57 = vld [vmem:[%s5573_s28 + $0x728] sm:$0xff] }
  0x8b   : > { %2801 = vmatpush.msra.mxu0 %v391_v58  ;;  %2820 = vmatpush.msra.mxu1 %v408_v59  ;;  %v506_v58 = vld [vmem:[%s5573_s28 + $0x7b0] sm:$0xff]  ;;  %v456_v59 = vld [vmem:[%s5573_s28 + $0x620] sm:$0xff] }
  0x8c   : > { %2841 = vmatpush.msra.mxu2 %v423_v60  ;;  %2860 = vmatpush.msra.mxu3 %v440_v61  ;;  %v473_v60 = vld [vmem:[%s5573_s28 + $0x6a8] sm:$0xff]  ;;  %v488_v61 = vld [vmem:[%s5573_s28 + $0x720] sm:$0xff] }
  0x8d   : > { %2802 = vmatpush.msra.mxu0 %v390_v62  ;;  %2821 = vmatpush.msra.mxu1 %v407_v63  ;;  %v505_v62 = vld [vmem:[%s5573_s28 + $0x7a8] sm:$0xff]  ;;  %v455_v63 = vld [vmem:[%s5573_s28 + $0x618] sm:$0xff] }
  0x8e   : > { %2842 = vmatpush.msra.mxu2 %v422_v0  ;;  %2861 = vmatpush.msra.mxu3 %v439_v1  ;;  %v472_v0 = vld [vmem:[%s5573_s28 + $0x6a0] sm:$0xff]  ;;  %v487_v1 = vld [vmem:[%s5573_s28 + $0x718] sm:$0xff] }
  0x8f   : > { %2803 = vmatpush.msra.mxu0 %v389_v2  ;;  %2822 = vmatpush.msra.mxu1 %v406_v3  ;;  %v504_v2 = vld [vmem:[%s5573_s28 + $0x7a0] sm:$0xff]  ;;  %v454_v3 = vld [vmem:[%s5573_s28 + $0x610] sm:$0xff] }
  0x90   : > { %2843 = vmatpush.msra.mxu2 %v421_v5  ;;  %2862 = vmatpush.msra.mxu3 %v438_v6  ;;  %v486_v5 = vld [vmem:[%s5573_s28 + $0x710] sm:$0xff]  ;;  %v503_v6 = vld [vmem:[%s5573_s28 + $0x798] sm:$0xff] }
  0x91   : > { %2804 = vmatpush.msra.mxu0 %v388_v7  ;;  %2823 = vmatpush.msra.mxu1 %v405_v8  ;;  %v453_v7 = vld [vmem:[%s5573_s28 + $0x608] sm:$0xff]  ;;  %v470_v8 = vld [vmem:[%s5573_s28 + $0x690] sm:$0xff] }
  0x92   : > { %2844 = vmatpush.msra.mxu2 %v420_v9  ;;  %2863 = vmatpush.msra.mxu3 %v437_v10  ;;  %v232_v9 = vld [vmem:[%s5591_s9 + $0x20] sm:$0xff]  ;;  %v485_v10 = vld [vmem:[%s5573_s28 + $0x708] sm:$0xff] }
  0x93   : > { %2805 = vmatmul.f32.vlgmr.msra.gmra.mxu0 %v2353_v11  ;;  %2845 = vmatmul.f32.vlgmr.msra.gmra.mxu2 %v2355_v12  ;;  %v502_v11 = vld [vmem:[%s5573_s28 + $0x790] sm:$0xff]  ;;  %2361 = vst [vmem:[#allocation1] ss:$4 sm:$0xff] %v232_v9  ;;  %v452_v12 = vld [vmem:[%s5573_s28 + $0x600] sm:$0xff]  ;;  %v535_v9 = vld [vmem:[%s5573_s28 + $0x898] sm:$0xff] }
  0x94   : > { %2869 = vmatpush.msrb.mxu0 %v467_v13  ;;  %2909 = vmatpush.msrb.mxu2 %v499_v14  ;;  %v469_v13 = vld [vmem:[%s5573_s28 + $0x688] sm:$0xff]  ;;  %v484_v14 = vld [vmem:[%s5573_s28 + $0x700] sm:$0xff] }
  0x95   : > { %2824 = vmatpush.msra.mxu1 %v404_v15  ;;  %2864 = vmatpush.msra.mxu3 %v436_v16  ;;  %v501_v15 = vld [vmem:[%s5573_s28 + $0x788] sm:$0xff]  ;;  %v2357_v16 = vld.sshfl [vmem:[#allocation1 + $0x20] sm:$0xff pattern:$0x73625140] }
  0x96   : > { %2825 = vmatmul.f32.vlgmr.msra.gmra.mxu1 %v2354_v17  ;;  %2865 = vmatmul.f32.vlgmr.msra.gmra.mxu3 %v2356_v18  ;;  %v2359_v17 = vld.sshfl [vmem:[#allocation1 + $0x30] sm:$0xff pattern:$0x73625140]  ;;  %v531_v18 = vld [vmem:[%s5573_s28 + $0x878] sm:$0xff] }
  0x97   : > { %2870 = vmatpush.msrb.mxu0 %v466_v19  ;;  %2889 = vmatpush.msrb.mxu1 %v483_v20  ;;  %v563_v19 = vld [vmem:[%s5573_s28 + $0x978] sm:$0xff]  ;;  %v468_v20 = vld [vmem:[%s5573_s28 + $0x680] sm:$0xff] }
  0x98   : > { %2910 = vmatpush.msrb.mxu2 %v498_v21  ;;  %2929 = vmatpush.msrb.mxu3 %v515_v22  ;;  %v500_v21 = vld [vmem:[%s5573_s28 + $0x780] sm:$0xff] }
  0x99   : > { %2871 = vmatpush.msrb.mxu0 %v465_v23  ;;  %2890 = vmatpush.msrb.mxu1 %v482_v24  ;;  %v2358_v22 = vld.sshfl [vmem:[#allocation1 + $0x28] sm:$0xff pattern:$0x73625140]  ;;  %v2360_v23 = vld.sshfl [vmem:[#allocation1 + $0x38] sm:$0xff pattern:$0x73625140] }
  0x9a   : > { %2911 = vmatpush.msrb.mxu2 %v497_v25  ;;  %2930 = vmatpush.msrb.mxu3 %v514_v26  ;;  %v530_v24 = vld [vmem:[%s5573_s28 + $0x870] sm:$0xff]  ;;  %v547_v25 = vld [vmem:[%s5573_s28 + $0x8f8] sm:$0xff] }
  0x9b   : > { %2872 = vmatpush.msrb.mxu0 %v464_v27  ;;  %2891 = vmatpush.msrb.mxu1 %v481_v28  ;;  %v562_v26 = vld [vmem:[%s5573_s28 + $0x970] sm:$0xff]  ;;  %v579_v27 = vld [vmem:[%s5573_s28 + $0x9f8] sm:$0xff]  ;;  %v529_v28 = vld [vmem:[%s5573_s28 + $0x868] sm:$0xff] }
  0x9c   : > { %2912 = vmatpush.msrb.mxu2 %v496_v29  ;;  %2931 = vmatpush.msrb.mxu3 %v513_v30  ;;  %v546_v29 = vld [vmem:[%s5573_s28 + $0x8f0] sm:$0xff]  ;;  %v561_v30 = vld [vmem:[%s5573_s28 + $0x968] sm:$0xff] }
  0x9d   : > { %2873 = vmatpush.msrb.mxu0 %v463_v31  ;;  %2892 = vmatpush.msrb.mxu1 %v480_v32  ;;  %v578_v31 = vld [vmem:[%s5573_s28 + $0x9f0] sm:$0xff]  ;;  %v528_v32 = vld [vmem:[%s5573_s28 + $0x860] sm:$0xff] }
  0x9e   : > { %2913 = vmatpush.msrb.mxu2 %v495_v33  ;;  %2932 = vmatpush.msrb.mxu3 %v512_v34  ;;  %v545_v33 = vld [vmem:[%s5573_s28 + $0x8e8] sm:$0xff]  ;;  %v560_v34 = vld [vmem:[%s5573_s28 + $0x960] sm:$0xff] }
  0x9f   : > { %2874 = vmatpush.msrb.mxu0 %v462_v35  ;;  %2893 = vmatpush.msrb.mxu1 %v479_v36  ;;  %v577_v35 = vld [vmem:[%s5573_s28 + $0x9e8] sm:$0xff]  ;;  %v527_v36 = vld [vmem:[%s5573_s28 + $0x858] sm:$0xff] }
  0xa0   : > { %2914 = vmatpush.msrb.mxu2 %v494_v37  ;;  %2933 = vmatpush.msrb.mxu3 %v511_v38  ;;  %v544_v37 = vld [vmem:[%s5573_s28 + $0x8e0] sm:$0xff]  ;;  %v559_v38 = vld [vmem:[%s5573_s28 + $0x958] sm:$0xff] }
  0xa1   : > { %2875 = vmatpush.msrb.mxu0 %v461_v39  ;;  %2894 = vmatpush.msrb.mxu1 %v478_v40  ;;  %v576_v39 = vld [vmem:[%s5573_s28 + $0x9e0] sm:$0xff]  ;;  %v526_v40 = vld [vmem:[%s5573_s28 + $0x850] sm:$0xff] }
  0xa2   : > { %2915 = vmatpush.msrb.mxu2 %v493_v41  ;;  %2934 = vmatpush.msrb.mxu3 %v510_v42  ;;  %v543_v41 = vld [vmem:[%s5573_s28 + $0x8d8] sm:$0xff]  ;;  %v558_v42 = vld [vmem:[%s5573_s28 + $0x950] sm:$0xff] }
  0xa3   : > { %2876 = vmatpush.msrb.mxu0 %v460_v43  ;;  %2895 = vmatpush.msrb.mxu1 %v477_v44  ;;  %v575_v43 = vld [vmem:[%s5573_s28 + $0x9d8] sm:$0xff]  ;;  %v525_v44 = vld [vmem:[%s5573_s28 + $0x848] sm:$0xff] }
  0xa4   : > { %2916 = vmatpush.msrb.mxu2 %v492_v45  ;;  %2935 = vmatpush.msrb.mxu3 %v509_v46  ;;  %v542_v45 = vld [vmem:[%s5573_s28 + $0x8d0] sm:$0xff]  ;;  %v557_v46 = vld [vmem:[%s5573_s28 + $0x948] sm:$0xff] }
  0xa5   : > { %2877 = vmatpush.msrb.mxu0 %v459_v47  ;;  %2896 = vmatpush.msrb.mxu1 %v476_v48  ;;  %v574_v47 = vld [vmem:[%s5573_s28 + $0x9d0] sm:$0xff]  ;;  %v524_v48 = vld [vmem:[%s5573_s28 + $0x840] sm:$0xff] }
  0xa6   : > { %2917 = vmatpush.msrb.mxu2 %v491_v49  ;;  %2936 = vmatpush.msrb.mxu3 %v508_v50  ;;  %v541_v49 = vld [vmem:[%s5573_s28 + $0x8c8] sm:$0xff]  ;;  %v556_v50 = vld [vmem:[%s5573_s28 + $0x940] sm:$0xff] }
  0xa7   : > { %2878 = vmatpush.msrb.mxu0 %v458_v51  ;;  %2897 = vmatpush.msrb.mxu1 %v475_v52  ;;  %v573_v51 = vld [vmem:[%s5573_s28 + $0x9c8] sm:$0xff]  ;;  %v523_v52 = vld [vmem:[%s5573_s28 + $0x838] sm:$0xff] }
  0xa8   : > { %2918 = vmatpush.msrb.mxu2 %v490_v53  ;;  %2937 = vmatpush.msrb.mxu3 %v507_v54  ;;  %v540_v53 = vld [vmem:[%s5573_s28 + $0x8c0] sm:$0xff]  ;;  %v555_v54 = vld [vmem:[%s5573_s28 + $0x938] sm:$0xff] }
  0xa9   : > { %2879 = vmatpush.msrb.mxu0 %v457_v55  ;;  %2898 = vmatpush.msrb.mxu1 %v474_v56  ;;  %v572_v55 = vld [vmem:[%s5573_s28 + $0x9c0] sm:$0xff]  ;;  %v522_v56 = vld [vmem:[%s5573_s28 + $0x830] sm:$0xff] }
  0xaa   : > { %2919 = vmatpush.msrb.mxu2 %v489_v57  ;;  %2938 = vmatpush.msrb.mxu3 %v506_v58  ;;  %v539_v57 = vld [vmem:[%s5573_s28 + $0x8b8] sm:$0xff]  ;;  %v554_v58 = vld [vmem:[%s5573_s28 + $0x930] sm:$0xff] }
  0xab   : > { %2880 = vmatpush.msrb.mxu0 %v456_v59  ;;  %2899 = vmatpush.msrb.mxu1 %v473_v60  ;;  %v571_v59 = vld [vmem:[%s5573_s28 + $0x9b8] sm:$0xff]  ;;  %v521_v60 = vld [vmem:[%s5573_s28 + $0x828] sm:$0xff] }
  0xac   : > { %2920 = vmatpush.msrb.mxu2 %v488_v61  ;;  %2939 = vmatpush.msrb.mxu3 %v505_v62  ;;  %v538_v61 = vld [vmem:[%s5573_s28 + $0x8b0] sm:$0xff]  ;;  %v553_v62 = vld [vmem:[%s5573_s28 + $0x928] sm:$0xff] }
  0xad   : > { %2881 = vmatpush.msrb.mxu0 %v455_v63  ;;  %2900 = vmatpush.msrb.mxu1 %v472_v0  ;;  %v570_v63 = vld [vmem:[%s5573_s28 + $0x9b0] sm:$0xff]  ;;  %v520_v0 = vld [vmem:[%s5573_s28 + $0x820] sm:$0xff] }
  0xae   : > { %2921 = vmatpush.msrb.mxu2 %v487_v1  ;;  %2940 = vmatpush.msrb.mxu3 %v504_v2  ;;  %v537_v1 = vld [vmem:[%s5573_s28 + $0x8a8] sm:$0xff]  ;;  %v552_v2 = vld [vmem:[%s5573_s28 + $0x920] sm:$0xff] }
  0xaf   : > { %2882 = vmatpush.msrb.mxu0 %v454_v3  ;;  %2901 = vmatpush.msrb.mxu1 %v471_v4  ;;  %v569_v3 = vld [vmem:[%s5573_s28 + $0x9a8] sm:$0xff]  ;;  %v519_v4 = vld [vmem:[%s5573_s28 + $0x818] sm:$0xff] }
  0xb0   : > { %2922 = vmatpush.msrb.mxu2 %v486_v5  ;;  %2941 = vmatpush.msrb.mxu3 %v503_v6  ;;  %v536_v5 = vld [vmem:[%s5573_s28 + $0x8a0] sm:$0xff]  ;;  %v551_v6 = vld [vmem:[%s5573_s28 + $0x918] sm:$0xff] }
  0xb1   : > { %2883 = vmatpush.msrb.mxu0 %v453_v7  ;;  %2902 = vmatpush.msrb.mxu1 %v470_v8  ;;  %v568_v7 = vld [vmem:[%s5573_s28 + $0x9a0] sm:$0xff]  ;;  %v518_v8 = vld [vmem:[%s5573_s28 + $0x810] sm:$0xff] }
  0xb2   : > { %2923 = vmatpush.msrb.mxu2 %v485_v10  ;;  %2942 = vmatpush.msrb.mxu3 %v502_v11  ;;  %v550_v10 = vld [vmem:[%s5573_s28 + $0x910] sm:$0xff]  ;;  %v567_v11 = vld [vmem:[%s5573_s28 + $0x998] sm:$0xff] }
  0xb3   : > { %2884 = vmatpush.msrb.mxu0 %v452_v12  ;;  %2903 = vmatpush.msrb.mxu1 %v469_v13  ;;  %v517_v12 = vld [vmem:[%s5573_s28 + $0x808] sm:$0xff]  ;;  %v534_v13 = vld [vmem:[%s5573_s28 + $0x890] sm:$0xff] }
  0xb4   : > { %2924 = vmatpush.msrb.mxu2 %v484_v14  ;;  %2943 = vmatpush.msrb.mxu3 %v501_v15  ;;  %v233_v14 = vld [vmem:[%s5591_s9 + $0x28] sm:$0xff]  ;;  %v549_v15 = vld [vmem:[%s5573_s28 + $0x908] sm:$0xff] }
  0xb5   : > { %2885 = vmatmul.f32.vlgmr.msrb.gmra.mxu0 %v2357_v16  ;;  %2925 = vmatmul.f32.vlgmr.msrb.gmra.mxu2 %v2359_v17  ;;  %v566_v16 = vld [vmem:[%s5573_s28 + $0x990] sm:$0xff]  ;;  %2362 = vst [vmem:[#allocation1 + $0x20] ss:$4 sm:$0xff] %v233_v14  ;;  %v516_v17 = vld [vmem:[%s5573_s28 + $0x800] sm:$0xff]  ;;  %v599_v14 = vld [vmem:[%s5573_s28 + $0xa98] sm:$0xff] }
  0xb6   : > { %2949 = vmatpush.msra.mxu0 %v531_v18  ;;  %2989 = vmatpush.msra.mxu2 %v563_v19  ;;  %v533_v18 = vld [vmem:[%s5573_s28 + $0x888] sm:$0xff]  ;;  %v548_v19 = vld [vmem:[%s5573_s28 + $0x900] sm:$0xff] }
  0xb7   : > { %2904 = vmatpush.msrb.mxu1 %v468_v20  ;;  %2944 = vmatpush.msrb.mxu3 %v500_v21  ;;  %v565_v20 = vld [vmem:[%s5573_s28 + $0x988] sm:$0xff]  ;;  %v2363_v21 = vld.sshfl [vmem:[#allocation1] sm:$0xff pattern:$0x73625140] }
  0xb8   : > { %2905 = vmatmul.f32.vlgmr.msrb.gmra.mxu1 %v2358_v22  ;;  %2945 = vmatmul.f32.vlgmr.msrb.gmra.mxu3 %v2360_v23  ;;  %v2365_v22 = vld.sshfl [vmem:[#allocation1 + $0x10] sm:$0xff pattern:$0x73625140]  ;;  %v595_v23 = vld [vmem:[%s5573_s28 + $0xa78] sm:$0xff] }
  0xb9   : > { %2950 = vmatpush.msra.mxu0 %v530_v24  ;;  %2969 = vmatpush.msra.mxu1 %v547_v25  ;;  %v627_v24 = vld [vmem:[%s5573_s28 + $0xb78] sm:$0xff]  ;;  %v532_v25 = vld [vmem:[%s5573_s28 + $0x880] sm:$0xff] }
  0xba   : > { %2990 = vmatpush.msra.mxu2 %v562_v26  ;;  %3009 = vmatpush.msra.mxu3 %v579_v27  ;;  %v564_v26 = vld [vmem:[%s5573_s28 + $0x980] sm:$0xff] }
  0xbb   : > { %2951 = vmatpush.msra.mxu0 %v529_v28  ;;  %2970 = vmatpush.msra.mxu1 %v546_v29  ;;  %v2364_v27 = vld.sshfl [vmem:[#allocation1 + $0x8] sm:$0xff pattern:$0x73625140]  ;;  %v2366_v28 = vld.sshfl [vmem:[#allocation1 + $0x18] sm:$0xff pattern:$0x73625140] }
  0xbc   : > { %2991 = vmatpush.msra.mxu2 %v561_v30  ;;  %3010 = vmatpush.msra.mxu3 %v578_v31  ;;  %v594_v29 = vld [vmem:[%s5573_s28 + $0xa70] sm:$0xff]  ;;  %v611_v30 = vld [vmem:[%s5573_s28 + $0xaf8] sm:$0xff] }
  0xbd   : > { %2952 = vmatpush.msra.mxu0 %v528_v32  ;;  %2971 = vmatpush.msra.mxu1 %v545_v33  ;;  %v626_v31 = vld [vmem:[%s5573_s28 + $0xb70] sm:$0xff]  ;;  %v643_v32 = vld [vmem:[%s5573_s28 + $0xbf8] sm:$0xff]  ;;  %v593_v33 = vld [vmem:[%s5573_s28 + $0xa68] sm:$0xff] }
  0xbe   : > { %2992 = vmatpush.msra.mxu2 %v560_v34  ;;  %3011 = vmatpush.msra.mxu3 %v577_v35  ;;  %v610_v34 = vld [vmem:[%s5573_s28 + $0xaf0] sm:$0xff]  ;;  %v625_v35 = vld [vmem:[%s5573_s28 + $0xb68] sm:$0xff] }
  0xbf   : > { %2953 = vmatpush.msra.mxu0 %v527_v36  ;;  %2972 = vmatpush.msra.mxu1 %v544_v37  ;;  %v642_v36 = vld [vmem:[%s5573_s28 + $0xbf0] sm:$0xff]  ;;  %v592_v37 = vld [vmem:[%s5573_s28 + $0xa60] sm:$0xff] }
  0xc0   : > { %2993 = vmatpush.msra.mxu2 %v559_v38  ;;  %3012 = vmatpush.msra.mxu3 %v576_v39  ;;  %v609_v38 = vld [vmem:[%s5573_s28 + $0xae8] sm:$0xff]  ;;  %v624_v39 = vld [vmem:[%s5573_s28 + $0xb60] sm:$0xff] }
  0xc1   : > { %2954 = vmatpush.msra.mxu0 %v526_v40  ;;  %2973 = vmatpush.msra.mxu1 %v543_v41  ;;  %v641_v40 = vld [vmem:[%s5573_s28 + $0xbe8] sm:$0xff]  ;;  %v591_v41 = vld [vmem:[%s5573_s28 + $0xa58] sm:$0xff] }
  0xc2   : > { %2994 = vmatpush.msra.mxu2 %v558_v42  ;;  %3013 = vmatpush.msra.mxu3 %v575_v43  ;;  %v608_v42 = vld [vmem:[%s5573_s28 + $0xae0] sm:$0xff]  ;;  %v623_v43 = vld [vmem:[%s5573_s28 + $0xb58] sm:$0xff] }
  0xc3   : > { %2955 = vmatpush.msra.mxu0 %v525_v44  ;;  %2974 = vmatpush.msra.mxu1 %v542_v45  ;;  %v640_v44 = vld [vmem:[%s5573_s28 + $0xbe0] sm:$0xff]  ;;  %v590_v45 = vld [vmem:[%s5573_s28 + $0xa50] sm:$0xff] }
  0xc4   : > { %2995 = vmatpush.msra.mxu2 %v557_v46  ;;  %3014 = vmatpush.msra.mxu3 %v574_v47  ;;  %v607_v46 = vld [vmem:[%s5573_s28 + $0xad8] sm:$0xff]  ;;  %v622_v47 = vld [vmem:[%s5573_s28 + $0xb50] sm:$0xff] }
  0xc5   : > { %2956 = vmatpush.msra.mxu0 %v524_v48  ;;  %2975 = vmatpush.msra.mxu1 %v541_v49  ;;  %v639_v48 = vld [vmem:[%s5573_s28 + $0xbd8] sm:$0xff]  ;;  %v589_v49 = vld [vmem:[%s5573_s28 + $0xa48] sm:$0xff] }
  0xc6   : > { %2996 = vmatpush.msra.mxu2 %v556_v50  ;;  %3015 = vmatpush.msra.mxu3 %v573_v51  ;;  %v606_v50 = vld [vmem:[%s5573_s28 + $0xad0] sm:$0xff]  ;;  %v621_v51 = vld [vmem:[%s5573_s28 + $0xb48] sm:$0xff] }
  0xc7   : > { %2957 = vmatpush.msra.mxu0 %v523_v52  ;;  %2976 = vmatpush.msra.mxu1 %v540_v53  ;;  %v638_v52 = vld [vmem:[%s5573_s28 + $0xbd0] sm:$0xff]  ;;  %v588_v53 = vld [vmem:[%s5573_s28 + $0xa40] sm:$0xff] }
  0xc8   : > { %2997 = vmatpush.msra.mxu2 %v555_v54  ;;  %3016 = vmatpush.msra.mxu3 %v572_v55  ;;  %v605_v54 = vld [vmem:[%s5573_s28 + $0xac8] sm:$0xff]  ;;  %v620_v55 = vld [vmem:[%s5573_s28 + $0xb40] sm:$0xff] }
  0xc9   : > { %2958 = vmatpush.msra.mxu0 %v522_v56  ;;  %2977 = vmatpush.msra.mxu1 %v539_v57  ;;  %v637_v56 = vld [vmem:[%s5573_s28 + $0xbc8] sm:$0xff]  ;;  %v587_v57 = vld [vmem:[%s5573_s28 + $0xa38] sm:$0xff] }
  0xca   : > { %2998 = vmatpush.msra.mxu2 %v554_v58  ;;  %3017 = vmatpush.msra.mxu3 %v571_v59  ;;  %v604_v58 = vld [vmem:[%s5573_s28 + $0xac0] sm:$0xff]  ;;  %v619_v59 = vld [vmem:[%s5573_s28 + $0xb38] sm:$0xff] }
  0xcb   : > { %2959 = vmatpush.msra.mxu0 %v521_v60  ;;  %2978 = vmatpush.msra.mxu1 %v538_v61  ;;  %v636_v60 = vld [vmem:[%s5573_s28 + $0xbc0] sm:$0xff]  ;;  %v586_v61 = vld [vmem:[%s5573_s28 + $0xa30] sm:$0xff] }
  0xcc   : > { %2999 = vmatpush.msra.mxu2 %v553_v62  ;;  %3018 = vmatpush.msra.mxu3 %v570_v63  ;;  %v603_v62 = vld [vmem:[%s5573_s28 + $0xab8] sm:$0xff]  ;;  %v618_v63 = vld [vmem:[%s5573_s28 + $0xb30] sm:$0xff] }
  0xcd   : > { %2960 = vmatpush.msra.mxu0 %v520_v0  ;;  %2979 = vmatpush.msra.mxu1 %v537_v1  ;;  %v635_v0 = vld [vmem:[%s5573_s28 + $0xbb8] sm:$0xff]  ;;  %v585_v1 = vld [vmem:[%s5573_s28 + $0xa28] sm:$0xff] }
  0xce   : > { %3000 = vmatpush.msra.mxu2 %v552_v2  ;;  %3019 = vmatpush.msra.mxu3 %v569_v3  ;;  %v602_v2 = vld [vmem:[%s5573_s28 + $0xab0] sm:$0xff]  ;;  %v617_v3 = vld [vmem:[%s5573_s28 + $0xb28] sm:$0xff] }
  0xcf   : > { %2961 = vmatpush.msra.mxu0 %v519_v4  ;;  %2980 = vmatpush.msra.mxu1 %v536_v5  ;;  %v634_v4 = vld [vmem:[%s5573_s28 + $0xbb0] sm:$0xff]  ;;  %v584_v5 = vld [vmem:[%s5573_s28 + $0xa20] sm:$0xff] }
  0xd0   : > { %3001 = vmatpush.msra.mxu2 %v551_v6  ;;  %3020 = vmatpush.msra.mxu3 %v568_v7  ;;  %v601_v6 = vld [vmem:[%s5573_s28 + $0xaa8] sm:$0xff]  ;;  %v616_v7 = vld [vmem:[%s5573_s28 + $0xb20] sm:$0xff] }
  0xd1   : > { %2962 = vmatpush.msra.mxu0 %v518_v8  ;;  %2981 = vmatpush.msra.mxu1 %v535_v9  ;;  %v633_v8 = vld [vmem:[%s5573_s28 + $0xba8] sm:$0xff]  ;;  %v583_v9 = vld [vmem:[%s5573_s28 + $0xa18] sm:$0xff] }
  0xd2   : > { %3002 = vmatpush.msra.mxu2 %v550_v10  ;;  %3021 = vmatpush.msra.mxu3 %v567_v11  ;;  %v600_v10 = vld [vmem:[%s5573_s28 + $0xaa0] sm:$0xff]  ;;  %v615_v11 = vld [vmem:[%s5573_s28 + $0xb18] sm:$0xff] }
  0xd3   : > { %2963 = vmatpush.msra.mxu0 %v517_v12  ;;  %2982 = vmatpush.msra.mxu1 %v534_v13  ;;  %v632_v12 = vld [vmem:[%s5573_s28 + $0xba0] sm:$0xff]  ;;  %v582_v13 = vld [vmem:[%s5573_s28 + $0xa10] sm:$0xff] }
  0xd4   : > { %3003 = vmatpush.msra.mxu2 %v549_v15  ;;  %3022 = vmatpush.msra.mxu3 %v566_v16  ;;  %v614_v15 = vld [vmem:[%s5573_s28 + $0xb10] sm:$0xff]  ;;  %v631_v16 = vld [vmem:[%s5573_s28 + $0xb98] sm:$0xff] }
  0xd5   : > { %2964 = vmatpush.msra.mxu0 %v516_v17  ;;  %2983 = vmatpush.msra.mxu1 %v533_v18  ;;  %v581_v17 = vld [vmem:[%s5573_s28 + $0xa08] sm:$0xff]  ;;  %v598_v18 = vld [vmem:[%s5573_s28 + $0xa90] sm:$0xff] }
  0xd6   : > { %3004 = vmatpush.msra.mxu2 %v548_v19  ;;  %3023 = vmatpush.msra.mxu3 %v565_v20  ;;  %v234_v19 = vld [vmem:[%s5591_s9 + $0x30] sm:$0xff] }
  0xd7   : > { %2965 = vmatmul.f32.vlgmr.msra.gmra.mxu0 %v2363_v21  ;;  %3005 = vmatmul.f32.vlgmr.msra.gmra.mxu2 %v2365_v22  ;;  %v613_v20 = vld [vmem:[%s5573_s28 + $0xb08] sm:$0xff]  ;;  %v630_v21 = vld [vmem:[%s5573_s28 + $0xb90] sm:$0xff]  ;;  %2371 = vst [vmem:[#allocation1] ss:$4 sm:$0xff] %v234_v19  ;;  %v580_v22 = vld [vmem:[%s5573_s28 + $0xa00] sm:$0xff] }
  0xd8   : > { %3029 = vmatpush.msrb.mxu0 %v595_v23  ;;  %3069 = vmatpush.msrb.mxu2 %v627_v24  ;;  %v597_v23 = vld [vmem:[%s5573_s28 + $0xa88] sm:$0xff]  ;;  %v612_v24 = vld [vmem:[%s5573_s28 + $0xb00] sm:$0xff]  ;;  %v663_v19 = vld [vmem:[%s5573_s28 + $0xc98] sm:$0xff] }
  0xd9   : > { %2984 = vmatpush.msra.mxu1 %v532_v25  ;;  %3024 = vmatpush.msra.mxu3 %v564_v26  ;;  %v629_v25 = vld [vmem:[%s5573_s28 + $0xb88] sm:$0xff]  ;;  %v2367_v26 = vld.sshfl [vmem:[#allocation1 + $0x20] sm:$0xff pattern:$0x73625140] }
  0xda   : > { %2985 = vmatmul.f32.vlgmr.msra.gmra.mxu1 %v2364_v27  ;;  %3025 = vmatmul.f32.vlgmr.msra.gmra.mxu3 %v2366_v28  ;;  %v2369_v27 = vld.sshfl [vmem:[#allocation1 + $0x30] sm:$0xff pattern:$0x73625140]  ;;  %v659_v28 = vld [vmem:[%s5573_s28 + $0xc78] sm:$0xff] }
  0xdb   : > { %3030 = vmatpush.msrb.mxu0 %v594_v29  ;;  %3049 = vmatpush.msrb.mxu1 %v611_v30  ;;  %v691_v29 = vld [vmem:[%s5573_s28 + $0xd78] sm:$0xff]  ;;  %v596_v30 = vld [vmem:[%s5573_s28 + $0xa80] sm:$0xff] }
  0xdc   : > { %3070 = vmatpush.msrb.mxu2 %v626_v31  ;;  %3089 = vmatpush.msrb.mxu3 %v643_v32  ;;  %v628_v31 = vld [vmem:[%s5573_s28 + $0xb80] sm:$0xff] }
  0xdd   : > { %3031 = vmatpush.msrb.mxu0 %v593_v33  ;;  %3050 = vmatpush.msrb.mxu1 %v610_v34  ;;  %v2368_v32 = vld.sshfl [vmem:[#allocation1 + $0x28] sm:$0xff pattern:$0x73625140]  ;;  %v2370_v33 = vld.sshfl [vmem:[#allocation1 + $0x38] sm:$0xff pattern:$0x73625140] }
  0xde   : > { %3071 = vmatpush.msrb.mxu2 %v625_v35  ;;  %3090 = vmatpush.msrb.mxu3 %v642_v36  ;;  %v658_v34 = vld [vmem:[%s5573_s28 + $0xc70] sm:$0xff]  ;;  %v675_v35 = vld [vmem:[%s5573_s28 + $0xcf8] sm:$0xff] }
  0xdf   : > { %3032 = vmatpush.msrb.mxu0 %v592_v37  ;;  %3051 = vmatpush.msrb.mxu1 %v609_v38  ;;  %v690_v36 = vld [vmem:[%s5573_s28 + $0xd70] sm:$0xff]  ;;  %v707_v37 = vld [vmem:[%s5573_s28 + $0xdf8] sm:$0xff]  ;;  %v657_v38 = vld [vmem:[%s5573_s28 + $0xc68] sm:$0xff] }
  0xe0   : > { %3072 = vmatpush.msrb.mxu2 %v624_v39  ;;  %3091 = vmatpush.msrb.mxu3 %v641_v40  ;;  %v674_v39 = vld [vmem:[%s5573_s28 + $0xcf0] sm:$0xff]  ;;  %v689_v40 = vld [vmem:[%s5573_s28 + $0xd68] sm:$0xff] }
  0xe1   : > { %3033 = vmatpush.msrb.mxu0 %v591_v41  ;;  %3052 = vmatpush.msrb.mxu1 %v608_v42  ;;  %v706_v41 = vld [vmem:[%s5573_s28 + $0xdf0] sm:$0xff]  ;;  %v656_v42 = vld [vmem:[%s5573_s28 + $0xc60] sm:$0xff] }
  0xe2   : > { %3073 = vmatpush.msrb.mxu2 %v623_v43  ;;  %3092 = vmatpush.msrb.mxu3 %v640_v44  ;;  %v673_v43 = vld [vmem:[%s5573_s28 + $0xce8] sm:$0xff]  ;;  %v688_v44 = vld [vmem:[%s5573_s28 + $0xd60] sm:$0xff] }
  0xe3   : > { %3034 = vmatpush.msrb.mxu0 %v590_v45  ;;  %3053 = vmatpush.msrb.mxu1 %v607_v46  ;;  %v705_v45 = vld [vmem:[%s5573_s28 + $0xde8] sm:$0xff]  ;;  %v655_v46 = vld [vmem:[%s5573_s28 + $0xc58] sm:$0xff] }
  0xe4   : > { %3074 = vmatpush.msrb.mxu2 %v622_v47  ;;  %3093 = vmatpush.msrb.mxu3 %v639_v48  ;;  %v672_v47 = vld [vmem:[%s5573_s28 + $0xce0] sm:$0xff]  ;;  %v687_v48 = vld [vmem:[%s5573_s28 + $0xd58] sm:$0xff] }
  0xe5   : > { %3035 = vmatpush.msrb.mxu0 %v589_v49  ;;  %3054 = vmatpush.msrb.mxu1 %v606_v50  ;;  %v704_v49 = vld [vmem:[%s5573_s28 + $0xde0] sm:$0xff]  ;;  %v654_v50 = vld [vmem:[%s5573_s28 + $0xc50] sm:$0xff] }
  0xe6   : > { %3075 = vmatpush.msrb.mxu2 %v621_v51  ;;  %3094 = vmatpush.msrb.mxu3 %v638_v52  ;;  %v671_v51 = vld [vmem:[%s5573_s28 + $0xcd8] sm:$0xff]  ;;  %v686_v52 = vld [vmem:[%s5573_s28 + $0xd50] sm:$0xff] }
  0xe7   : > { %3036 = vmatpush.msrb.mxu0 %v588_v53  ;;  %3055 = vmatpush.msrb.mxu1 %v605_v54  ;;  %v703_v53 = vld [vmem:[%s5573_s28 + $0xdd8] sm:$0xff]  ;;  %v653_v54 = vld [vmem:[%s5573_s28 + $0xc48] sm:$0xff] }
  0xe8   : > { %3076 = vmatpush.msrb.mxu2 %v620_v55  ;;  %3095 = vmatpush.msrb.mxu3 %v637_v56  ;;  %v670_v55 = vld [vmem:[%s5573_s28 + $0xcd0] sm:$0xff]  ;;  %v685_v56 = vld [vmem:[%s5573_s28 + $0xd48] sm:$0xff] }
  0xe9   : > { %3037 = vmatpush.msrb.mxu0 %v587_v57  ;;  %3056 = vmatpush.msrb.mxu1 %v604_v58  ;;  %v702_v57 = vld [vmem:[%s5573_s28 + $0xdd0] sm:$0xff]  ;;  %v652_v58 = vld [vmem:[%s5573_s28 + $0xc40] sm:$0xff] }
  0xea   : > { %3077 = vmatpush.msrb.mxu2 %v619_v59  ;;  %3096 = vmatpush.msrb.mxu3 %v636_v60  ;;  %v669_v59 = vld [vmem:[%s5573_s28 + $0xcc8] sm:$0xff]  ;;  %v684_v60 = vld [vmem:[%s5573_s28 + $0xd40] sm:$0xff] }
  0xeb   : > { %3038 = vmatpush.msrb.mxu0 %v586_v61  ;;  %3057 = vmatpush.msrb.mxu1 %v603_v62  ;;  %v701_v61 = vld [vmem:[%s5573_s28 + $0xdc8] sm:$0xff]  ;;  %v651_v62 = vld [vmem:[%s5573_s28 + $0xc38] sm:$0xff] }
  0xec   : > { %3078 = vmatpush.msrb.mxu2 %v618_v63  ;;  %3097 = vmatpush.msrb.mxu3 %v635_v0  ;;  %v668_v63 = vld [vmem:[%s5573_s28 + $0xcc0] sm:$0xff]  ;;  %v683_v0 = vld [vmem:[%s5573_s28 + $0xd38] sm:$0xff] }
  0xed   : > { %3039 = vmatpush.msrb.mxu0 %v585_v1  ;;  %3058 = vmatpush.msrb.mxu1 %v602_v2  ;;  %v700_v1 = vld [vmem:[%s5573_s28 + $0xdc0] sm:$0xff]  ;;  %v650_v2 = vld [vmem:[%s5573_s28 + $0xc30] sm:$0xff] }
  0xee   : > { %3079 = vmatpush.msrb.mxu2 %v617_v3  ;;  %3098 = vmatpush.msrb.mxu3 %v634_v4  ;;  %v667_v3 = vld [vmem:[%s5573_s28 + $0xcb8] sm:$0xff]  ;;  %v682_v4 = vld [vmem:[%s5573_s28 + $0xd30] sm:$0xff] }
  0xef   : > { %3040 = vmatpush.msrb.mxu0 %v584_v5  ;;  %3059 = vmatpush.msrb.mxu1 %v601_v6  ;;  %v699_v5 = vld [vmem:[%s5573_s28 + $0xdb8] sm:$0xff]  ;;  %v649_v6 = vld [vmem:[%s5573_s28 + $0xc28] sm:$0xff] }
  0xf0   : > { %3080 = vmatpush.msrb.mxu2 %v616_v7  ;;  %3099 = vmatpush.msrb.mxu3 %v633_v8  ;;  %v666_v7 = vld [vmem:[%s5573_s28 + $0xcb0] sm:$0xff]  ;;  %v681_v8 = vld [vmem:[%s5573_s28 + $0xd28] sm:$0xff] }
  0xf1   : > { %3041 = vmatpush.msrb.mxu0 %v583_v9  ;;  %3060 = vmatpush.msrb.mxu1 %v600_v10  ;;  %v698_v9 = vld [vmem:[%s5573_s28 + $0xdb0] sm:$0xff]  ;;  %v648_v10 = vld [vmem:[%s5573_s28 + $0xc20] sm:$0xff] }
  0xf2   : > { %3081 = vmatpush.msrb.mxu2 %v615_v11  ;;  %3100 = vmatpush.msrb.mxu3 %v632_v12  ;;  %v665_v11 = vld [vmem:[%s5573_s28 + $0xca8] sm:$0xff]  ;;  %v680_v12 = vld [vmem:[%s5573_s28 + $0xd20] sm:$0xff] }
  0xf3   : > { %3042 = vmatpush.msrb.mxu0 %v582_v13  ;;  %3061 = vmatpush.msrb.mxu1 %v599_v14  ;;  %v697_v13 = vld [vmem:[%s5573_s28 + $0xda8] sm:$0xff]  ;;  %v647_v14 = vld [vmem:[%s5573_s28 + $0xc18] sm:$0xff] }
  0xf4   : > { %3082 = vmatpush.msrb.mxu2 %v614_v15  ;;  %3101 = vmatpush.msrb.mxu3 %v631_v16  ;;  %v664_v15 = vld [vmem:[%s5573_s28 + $0xca0] sm:$0xff]  ;;  %v679_v16 = vld [vmem:[%s5573_s28 + $0xd18] sm:$0xff] }
  0xf5   : > { %3043 = vmatpush.msrb.mxu0 %v581_v17  ;;  %3062 = vmatpush.msrb.mxu1 %v598_v18  ;;  %v696_v17 = vld [vmem:[%s5573_s28 + $0xda0] sm:$0xff]  ;;  %v646_v18 = vld [vmem:[%s5573_s28 + $0xc10] sm:$0xff] }
  0xf6   : > { %3083 = vmatpush.msrb.mxu2 %v613_v20  ;;  %3102 = vmatpush.msrb.mxu3 %v630_v21  ;;  %v678_v20 = vld [vmem:[%s5573_s28 + $0xd10] sm:$0xff]  ;;  %v695_v21 = vld [vmem:[%s5573_s28 + $0xd98] sm:$0xff] }
  0xf7   : > { %3044 = vmatpush.msrb.mxu0 %v580_v22  ;;  %3063 = vmatpush.msrb.mxu1 %v597_v23  ;;  %v645_v22 = vld [vmem:[%s5573_s28 + $0xc08] sm:$0xff]  ;;  %v662_v23 = vld [vmem:[%s5573_s28 + $0xc90] sm:$0xff] }
  0xf8   : > { %3084 = vmatpush.msrb.mxu2 %v612_v24  ;;  %3103 = vmatpush.msrb.mxu3 %v629_v25  ;;  %v235_v24 = vld [vmem:[%s5591_s9 + $0x38] sm:$0xff] }
  0xf9   : > { %3045 = vmatmul.f32.vlgmr.msrb.gmra.mxu0 %v2367_v26  ;;  %3085 = vmatmul.f32.vlgmr.msrb.gmra.mxu2 %v2369_v27  ;;  %v677_v25 = vld [vmem:[%s5573_s28 + $0xd08] sm:$0xff]  ;;  %v694_v26 = vld [vmem:[%s5573_s28 + $0xd90] sm:$0xff]  ;;  %2372 = vst [vmem:[#allocation1 + $0x20] ss:$4 sm:$0xff] %v235_v24  ;;  %v644_v27 = vld [vmem:[%s5573_s28 + $0xc00] sm:$0xff] }
  0xfa   : > { %3109 = vmatpush.msra.mxu0 %v659_v28  ;;  %3149 = vmatpush.msra.mxu2 %v691_v29  ;;  %v661_v28 = vld [vmem:[%s5573_s28 + $0xc88] sm:$0xff]  ;;  %v676_v29 = vld [vmem:[%s5573_s28 + $0xd00] sm:$0xff]  ;;  %v727_v24 = vld [vmem:[%s5573_s28 + $0xe98] sm:$0xff] }
  0xfb   : > { %3064 = vmatpush.msrb.mxu1 %v596_v30  ;;  %3104 = vmatpush.msrb.mxu3 %v628_v31  ;;  %v693_v30 = vld [vmem:[%s5573_s28 + $0xd88] sm:$0xff]  ;;  %v2373_v31 = vld.sshfl [vmem:[#allocation1] sm:$0xff pattern:$0x73625140] }
  0xfc   : > { %3065 = vmatmul.f32.vlgmr.msrb.gmra.mxu1 %v2368_v32  ;;  %3105 = vmatmul.f32.vlgmr.msrb.gmra.mxu3 %v2370_v33  ;;  %v2375_v32 = vld.sshfl [vmem:[#allocation1 + $0x10] sm:$0xff pattern:$0x73625140]  ;;  %v723_v33 = vld [vmem:[%s5573_s28 + $0xe78] sm:$0xff] }
  0xfd   : > { %3110 = vmatpush.msra.mxu0 %v658_v34  ;;  %3129 = vmatpush.msra.mxu1 %v675_v35  ;;  %v755_v34 = vld [vmem:[%s5573_s28 + $0xf78] sm:$0xff]  ;;  %v660_v35 = vld [vmem:[%s5573_s28 + $0xc80] sm:$0xff] }
  0xfe   : > { %3150 = vmatpush.msra.mxu2 %v690_v36  ;;  %3169 = vmatpush.msra.mxu3 %v707_v37  ;;  %v692_v36 = vld [vmem:[%s5573_s28 + $0xd80] sm:$0xff] }
  0xff   : > { %3111 = vmatpush.msra.mxu0 %v657_v38  ;;  %3130 = vmatpush.msra.mxu1 %v674_v39  ;;  %v2374_v37 = vld.sshfl [vmem:[#allocation1 + $0x8] sm:$0xff pattern:$0x73625140]  ;;  %v2376_v38 = vld.sshfl [vmem:[#allocation1 + $0x18] sm:$0xff pattern:$0x73625140] }
 0x100   : > { %3151 = vmatpush.msra.mxu2 %v689_v40  ;;  %3170 = vmatpush.msra.mxu3 %v706_v41  ;;  %v722_v39 = vld [vmem:[%s5573_s28 + $0xe70] sm:$0xff]  ;;  %v739_v40 = vld [vmem:[%s5573_s28 + $0xef8] sm:$0xff] }
 0x101   : > { %3112 = vmatpush.msra.mxu0 %v656_v42  ;;  %3131 = vmatpush.msra.mxu1 %v673_v43  ;;  %v754_v41 = vld [vmem:[%s5573_s28 + $0xf70] sm:$0xff]  ;;  %v771_v42 = vld [vmem:[%s5573_s28 + $0xff8] sm:$0xff]  ;;  %v721_v43 = vld [vmem:[%s5573_s28 + $0xe68] sm:$0xff] }
 0x102   : > { %3152 = vmatpush.msra.mxu2 %v688_v44  ;;  %3171 = vmatpush.msra.mxu3 %v705_v45  ;;  %v738_v44 = vld [vmem:[%s5573_s28 + $0xef0] sm:$0xff]  ;;  %v753_v45 = vld [vmem:[%s5573_s28 + $0xf68] sm:$0xff] }
 0x103   : > { %3113 = vmatpush.msra.mxu0 %v655_v46  ;;  %3132 = vmatpush.msra.mxu1 %v672_v47  ;;  %v770_v46 = vld [vmem:[%s5573_s28 + $0xff0] sm:$0xff]  ;;  %v720_v47 = vld [vmem:[%s5573_s28 + $0xe60] sm:$0xff] }
 0x104   : > { %3153 = vmatpush.msra.mxu2 %v687_v48  ;;  %3172 = vmatpush.msra.mxu3 %v704_v49  ;;  %v737_v48 = vld [vmem:[%s5573_s28 + $0xee8] sm:$0xff]  ;;  %v752_v49 = vld [vmem:[%s5573_s28 + $0xf60] sm:$0xff] }
 0x105   : > { %3114 = vmatpush.msra.mxu0 %v654_v50  ;;  %3133 = vmatpush.msra.mxu1 %v671_v51  ;;  %v769_v50 = vld [vmem:[%s5573_s28 + $0xfe8] sm:$0xff]  ;;  %v719_v51 = vld [vmem:[%s5573_s28 + $0xe58] sm:$0xff] }
 0x106   : > { %3154 = vmatpush.msra.mxu2 %v686_v52  ;;  %3173 = vmatpush.msra.mxu3 %v703_v53  ;;  %v736_v52 = vld [vmem:[%s5573_s28 + $0xee0] sm:$0xff]  ;;  %v751_v53 = vld [vmem:[%s5573_s28 + $0xf58] sm:$0xff] }
 0x107   : > { %3115 = vmatpush.msra.mxu0 %v653_v54  ;;  %3134 = vmatpush.msra.mxu1 %v670_v55  ;;  %v768_v54 = vld [vmem:[%s5573_s28 + $0xfe0] sm:$0xff]  ;;  %v718_v55 = vld [vmem:[%s5573_s28 + $0xe50] sm:$0xff] }
 0x108   : > { %3155 = vmatpush.msra.mxu2 %v685_v56  ;;  %3174 = vmatpush.msra.mxu3 %v702_v57  ;;  %v735_v56 = vld [vmem:[%s5573_s28 + $0xed8] sm:$0xff]  ;;  %v750_v57 = vld [vmem:[%s5573_s28 + $0xf50] sm:$0xff] }
 0x109   : > { %3116 = vmatpush.msra.mxu0 %v652_v58  ;;  %3135 = vmatpush.msra.mxu1 %v669_v59  ;;  %v767_v58 = vld [vmem:[%s5573_s28 + $0xfd8] sm:$0xff]  ;;  %v717_v59 = vld [vmem:[%s5573_s28 + $0xe48] sm:$0xff] }
 0x10a   : > { %3156 = vmatpush.msra.mxu2 %v684_v60  ;;  %3175 = vmatpush.msra.mxu3 %v701_v61  ;;  %v734_v60 = vld [vmem:[%s5573_s28 + $0xed0] sm:$0xff]  ;;  %v749_v61 = vld [vmem:[%s5573_s28 + $0xf48] sm:$0xff] }
 0x10b   : > { %3117 = vmatpush.msra.mxu0 %v651_v62  ;;  %3136 = vmatpush.msra.mxu1 %v668_v63  ;;  %v766_v62 = vld [vmem:[%s5573_s28 + $0xfd0] sm:$0xff]  ;;  %v716_v63 = vld [vmem:[%s5573_s28 + $0xe40] sm:$0xff] }
 0x10c   : > { %3157 = vmatpush.msra.mxu2 %v683_v0  ;;  %3176 = vmatpush.msra.mxu3 %v700_v1  ;;  %v733_v0 = vld [vmem:[%s5573_s28 + $0xec8] sm:$0xff]  ;;  %v748_v1 = vld [vmem:[%s5573_s28 + $0xf40] sm:$0xff] }
 0x10d   : > { %3118 = vmatpush.msra.mxu0 %v650_v2  ;;  %3137 = vmatpush.msra.mxu1 %v667_v3  ;;  %v765_v2 = vld [vmem:[%s5573_s28 + $0xfc8] sm:$0xff]  ;;  %v715_v3 = vld [vmem:[%s5573_s28 + $0xe38] sm:$0xff] }
 0x10e   : > { %3158 = vmatpush.msra.mxu2 %v682_v4  ;;  %3177 = vmatpush.msra.mxu3 %v699_v5  ;;  %v732_v4 = vld [vmem:[%s5573_s28 + $0xec0] sm:$0xff]  ;;  %v747_v5 = vld [vmem:[%s5573_s28 + $0xf38] sm:$0xff] }
 0x10f   : > { %3119 = vmatpush.msra.mxu0 %v649_v6  ;;  %3138 = vmatpush.msra.mxu1 %v666_v7  ;;  %v764_v6 = vld [vmem:[%s5573_s28 + $0xfc0] sm:$0xff]  ;;  %v714_v7 = vld [vmem:[%s5573_s28 + $0xe30] sm:$0xff] }
 0x110   : > { %3159 = vmatpush.msra.mxu2 %v681_v8  ;;  %3178 = vmatpush.msra.mxu3 %v698_v9  ;;  %v731_v8 = vld [vmem:[%s5573_s28 + $0xeb8] sm:$0xff]  ;;  %v746_v9 = vld [vmem:[%s5573_s28 + $0xf30] sm:$0xff] }
 0x111   : > { %3120 = vmatpush.msra.mxu0 %v648_v10  ;;  %3139 = vmatpush.msra.mxu1 %v665_v11  ;;  %v763_v10 = vld [vmem:[%s5573_s28 + $0xfb8] sm:$0xff]  ;;  %v713_v11 = vld [vmem:[%s5573_s28 + $0xe28] sm:$0xff] }
 0x112   : > { %3160 = vmatpush.msra.mxu2 %v680_v12  ;;  %3179 = vmatpush.msra.mxu3 %v697_v13  ;;  %v730_v12 = vld [vmem:[%s5573_s28 + $0xeb0] sm:$0xff]  ;;  %v745_v13 = vld [vmem:[%s5573_s28 + $0xf28] sm:$0xff] }
 0x113   : > { %3121 = vmatpush.msra.mxu0 %v647_v14  ;;  %3140 = vmatpush.msra.mxu1 %v664_v15  ;;  %v762_v14 = vld [vmem:[%s5573_s28 + $0xfb0] sm:$0xff]  ;;  %v712_v15 = vld [vmem:[%s5573_s28 + $0xe20] sm:$0xff] }
 0x114   : > { %3161 = vmatpush.msra.mxu2 %v679_v16  ;;  %3180 = vmatpush.msra.mxu3 %v696_v17  ;;  %v729_v16 = vld [vmem:[%s5573_s28 + $0xea8] sm:$0xff]  ;;  %v744_v17 = vld [vmem:[%s5573_s28 + $0xf20] sm:$0xff] }
 0x115   : > { %3122 = vmatpush.msra.mxu0 %v646_v18  ;;  %3141 = vmatpush.msra.mxu1 %v663_v19  ;;  %v761_v18 = vld [vmem:[%s5573_s28 + $0xfa8] sm:$0xff]  ;;  %v711_v19 = vld [vmem:[%s5573_s28 + $0xe18] sm:$0xff] }
 0x116   : > { %3162 = vmatpush.msra.mxu2 %v678_v20  ;;  %3181 = vmatpush.msra.mxu3 %v695_v21  ;;  %v728_v20 = vld [vmem:[%s5573_s28 + $0xea0] sm:$0xff]  ;;  %v743_v21 = vld [vmem:[%s5573_s28 + $0xf18] sm:$0xff] }
 0x117   : > { %3123 = vmatpush.msra.mxu0 %v645_v22  ;;  %3142 = vmatpush.msra.mxu1 %v662_v23  ;;  %v760_v22 = vld [vmem:[%s5573_s28 + $0xfa0] sm:$0xff]  ;;  %v710_v23 = vld [vmem:[%s5573_s28 + $0xe10] sm:$0xff] }
 0x118   : > { %3163 = vmatpush.msra.mxu2 %v677_v25  ;;  %3182 = vmatpush.msra.mxu3 %v694_v26  ;;  %v742_v25 = vld [vmem:[%s5573_s28 + $0xf10] sm:$0xff]  ;;  %v759_v26 = vld [vmem:[%s5573_s28 + $0xf98] sm:$0xff] }
 0x119   : > { %3124 = vmatpush.msra.mxu0 %v644_v27  ;;  %3143 = vmatpush.msra.mxu1 %v661_v28  ;;  %v709_v27 = vld [vmem:[%s5573_s28 + $0xe08] sm:$0xff]  ;;  %v726_v28 = vld [vmem:[%s5573_s28 + $0xe90] sm:$0xff] }
 0x11a   : > { %3164 = vmatpush.msra.mxu2 %v676_v29  ;;  %3183 = vmatpush.msra.mxu3 %v693_v30  ;;  %v236_v29 = vld [vmem:[%s5591_s9 + $0x40] sm:$0xff]  ;;  %v741_v30 = vld [vmem:[%s5573_s28 + $0xf08] sm:$0xff] }
 0x11b   : > { %3125 = vmatmul.f32.vlgmr.msra.gmra.mxu0 %v2373_v31  ;;  %3165 = vmatmul.f32.vlgmr.msra.gmra.mxu2 %v2375_v32  ;;  %v758_v31 = vld [vmem:[%s5573_s28 + $0xf90] sm:$0xff]  ;;  %2381 = vst [vmem:[#allocation1] ss:$4 sm:$0xff] %v236_v29  ;;  %v708_v32 = vld [vmem:[%s5573_s28 + $0xe00] sm:$0xff]  ;;  %v791_v29 = vld [vmem:[%s5573_s28 + $0x1098] sm:$0xff] }
 0x11c   : > { %3189 = vmatpush.msrb.mxu0 %v723_v33  ;;  %3229 = vmatpush.msrb.mxu2 %v755_v34  ;;  %v725_v33 = vld [vmem:[%s5573_s28 + $0xe88] sm:$0xff]  ;;  %v740_v34 = vld [vmem:[%s5573_s28 + $0xf00] sm:$0xff] }
 0x11d   : > { %3144 = vmatpush.msra.mxu1 %v660_v35  ;;  %3184 = vmatpush.msra.mxu3 %v692_v36  ;;  %v757_v35 = vld [vmem:[%s5573_s28 + $0xf88] sm:$0xff]  ;;  %v2377_v36 = vld.sshfl [vmem:[#allocation1 + $0x20] sm:$0xff pattern:$0x73625140] }
 0x11e   : > { %3145 = vmatmul.f32.vlgmr.msra.gmra.mxu1 %v2374_v37  ;;  %3185 = vmatmul.f32.vlgmr.msra.gmra.mxu3 %v2376_v38  ;;  %v2379_v37 = vld.sshfl [vmem:[#allocation1 + $0x30] sm:$0xff pattern:$0x73625140]  ;;  %v787_v38 = vld [vmem:[%s5573_s28 + $0x1078] sm:$0xff] }
 0x11f   : > { %3190 = vmatpush.msrb.mxu0 %v722_v39  ;;  %3209 = vmatpush.msrb.mxu1 %v739_v40  ;;  %v819_v39 = vld [vmem:[%s5573_s28 + $0x1178] sm:$0xff]  ;;  %v724_v40 = vld [vmem:[%s5573_s28 + $0xe80] sm:$0xff] }
 0x120   : > { %3230 = vmatpush.msrb.mxu2 %v754_v41  ;;  %3249 = vmatpush.msrb.mxu3 %v771_v42  ;;  %v756_v41 = vld [vmem:[%s5573_s28 + $0xf80] sm:$0xff] }
 0x121   : > { %3191 = vmatpush.msrb.mxu0 %v721_v43  ;;  %3210 = vmatpush.msrb.mxu1 %v738_v44  ;;  %v2378_v42 = vld.sshfl [vmem:[#allocation1 + $0x28] sm:$0xff pattern:$0x73625140]  ;;  %v2380_v43 = vld.sshfl [vmem:[#allocation1 + $0x38] sm:$0xff pattern:$0x73625140] }
 0x122   : > { %3231 = vmatpush.msrb.mxu2 %v753_v45  ;;  %3250 = vmatpush.msrb.mxu3 %v770_v46  ;;  %v786_v44 = vld [vmem:[%s5573_s28 + $0x1070] sm:$0xff]  ;;  %v803_v45 = vld [vmem:[%s5573_s28 + $0x10f8] sm:$0xff] }
 0x123   : > { %3192 = vmatpush.msrb.mxu0 %v720_v47  ;;  %3211 = vmatpush.msrb.mxu1 %v737_v48  ;;  %v818_v46 = vld [vmem:[%s5573_s28 + $0x1170] sm:$0xff]  ;;  %v835_v47 = vld [vmem:[%s5573_s28 + $0x11f8] sm:$0xff]  ;;  %v785_v48 = vld [vmem:[%s5573_s28 + $0x1068] sm:$0xff] }
 0x124   : > { %3232 = vmatpush.msrb.mxu2 %v752_v49  ;;  %3251 = vmatpush.msrb.mxu3 %v769_v50  ;;  %v802_v49 = vld [vmem:[%s5573_s28 + $0x10f0] sm:$0xff]  ;;  %v817_v50 = vld [vmem:[%s5573_s28 + $0x1168] sm:$0xff] }
 0x125   : > { %3193 = vmatpush.msrb.mxu0 %v719_v51  ;;  %3212 = vmatpush.msrb.mxu1 %v736_v52  ;;  %v834_v51 = vld [vmem:[%s5573_s28 + $0x11f0] sm:$0xff]  ;;  %v784_v52 = vld [vmem:[%s5573_s28 + $0x1060] sm:$0xff] }
 0x126   : > { %3233 = vmatpush.msrb.mxu2 %v751_v53  ;;  %3252 = vmatpush.msrb.mxu3 %v768_v54  ;;  %v801_v53 = vld [vmem:[%s5573_s28 + $0x10e8] sm:$0xff]  ;;  %v816_v54 = vld [vmem:[%s5573_s28 + $0x1160] sm:$0xff] }
 0x127   : > { %3194 = vmatpush.msrb.mxu0 %v718_v55  ;;  %3213 = vmatpush.msrb.mxu1 %v735_v56  ;;  %v833_v55 = vld [vmem:[%s5573_s28 + $0x11e8] sm:$0xff]  ;;  %v783_v56 = vld [vmem:[%s5573_s28 + $0x1058] sm:$0xff] }
 0x128   : > { %3234 = vmatpush.msrb.mxu2 %v750_v57  ;;  %3253 = vmatpush.msrb.mxu3 %v767_v58  ;;  %v800_v57 = vld [vmem:[%s5573_s28 + $0x10e0] sm:$0xff]  ;;  %v815_v58 = vld [vmem:[%s5573_s28 + $0x1158] sm:$0xff] }
 0x129   : > { %3195 = vmatpush.msrb.mxu0 %v717_v59  ;;  %3214 = vmatpush.msrb.mxu1 %v734_v60  ;;  %v832_v59 = vld [vmem:[%s5573_s28 + $0x11e0] sm:$0xff]  ;;  %v782_v60 = vld [vmem:[%s5573_s28 + $0x1050] sm:$0xff] }
 0x12a   : > { %3235 = vmatpush.msrb.mxu2 %v749_v61  ;;  %3254 = vmatpush.msrb.mxu3 %v766_v62  ;;  %v799_v61 = vld [vmem:[%s5573_s28 + $0x10d8] sm:$0xff]  ;;  %v814_v62 = vld [vmem:[%s5573_s28 + $0x1150] sm:$0xff] }
 0x12b   : > { %3196 = vmatpush.msrb.mxu0 %v716_v63  ;;  %3215 = vmatpush.msrb.mxu1 %v733_v0  ;;  %v831_v63 = vld [vmem:[%s5573_s28 + $0x11d8] sm:$0xff]  ;;  %v781_v0 = vld [vmem:[%s5573_s28 + $0x1048] sm:$0xff] }
 0x12c   : > { %3236 = vmatpush.msrb.mxu2 %v748_v1  ;;  %3255 = vmatpush.msrb.mxu3 %v765_v2  ;;  %v798_v1 = vld [vmem:[%s5573_s28 + $0x10d0] sm:$0xff]  ;;  %v813_v2 = vld [vmem:[%s5573_s28 + $0x1148] sm:$0xff] }
 0x12d   : > { %3197 = vmatpush.msrb.mxu0 %v715_v3  ;;  %3216 = vmatpush.msrb.mxu1 %v732_v4  ;;  %v830_v3 = vld [vmem:[%s5573_s28 + $0x11d0] sm:$0xff]  ;;  %v780_v4 = vld [vmem:[%s5573_s28 + $0x1040] sm:$0xff] }
 0x12e   : > { %3237 = vmatpush.msrb.mxu2 %v747_v5  ;;  %3256 = vmatpush.msrb.mxu3 %v764_v6  ;;  %v797_v5 = vld [vmem:[%s5573_s28 + $0x10c8] sm:$0xff]  ;;  %v812_v6 = vld [vmem:[%s5573_s28 + $0x1140] sm:$0xff] }
 0x12f   : > { %3198 = vmatpush.msrb.mxu0 %v714_v7  ;;  %3217 = vmatpush.msrb.mxu1 %v731_v8  ;;  %v829_v7 = vld [vmem:[%s5573_s28 + $0x11c8] sm:$0xff]  ;;  %v779_v8 = vld [vmem:[%s5573_s28 + $0x1038] sm:$0xff] }
 0x130   : > { %3238 = vmatpush.msrb.mxu2 %v746_v9  ;;  %3257 = vmatpush.msrb.mxu3 %v763_v10  ;;  %v796_v9 = vld [vmem:[%s5573_s28 + $0x10c0] sm:$0xff]  ;;  %v811_v10 = vld [vmem:[%s5573_s28 + $0x1138] sm:$0xff] }
 0x131   : > { %3199 = vmatpush.msrb.mxu0 %v713_v11  ;;  %3218 = vmatpush.msrb.mxu1 %v730_v12  ;;  %v828_v11 = vld [vmem:[%s5573_s28 + $0x11c0] sm:$0xff]  ;;  %v778_v12 = vld [vmem:[%s5573_s28 + $0x1030] sm:$0xff] }
 0x132   : > { %3239 = vmatpush.msrb.mxu2 %v745_v13  ;;  %3258 = vmatpush.msrb.mxu3 %v762_v14  ;;  %v795_v13 = vld [vmem:[%s5573_s28 + $0x10b8] sm:$0xff]  ;;  %v810_v14 = vld [vmem:[%s5573_s28 + $0x1130] sm:$0xff] }
 0x133   : > { %3200 = vmatpush.msrb.mxu0 %v712_v15  ;;  %3219 = vmatpush.msrb.mxu1 %v729_v16  ;;  %v827_v15 = vld [vmem:[%s5573_s28 + $0x11b8] sm:$0xff]  ;;  %v777_v16 = vld [vmem:[%s5573_s28 + $0x1028] sm:$0xff] }
 0x134   : > { %3240 = vmatpush.msrb.mxu2 %v744_v17  ;;  %3259 = vmatpush.msrb.mxu3 %v761_v18  ;;  %v794_v17 = vld [vmem:[%s5573_s28 + $0x10b0] sm:$0xff]  ;;  %v809_v18 = vld [vmem:[%s5573_s28 + $0x1128] sm:$0xff] }
 0x135   : > { %3201 = vmatpush.msrb.mxu0 %v711_v19  ;;  %3220 = vmatpush.msrb.mxu1 %v728_v20  ;;  %v826_v19 = vld [vmem:[%s5573_s28 + $0x11b0] sm:$0xff]  ;;  %v776_v20 = vld [vmem:[%s5573_s28 + $0x1020] sm:$0xff] }
 0x136   : > { %3241 = vmatpush.msrb.mxu2 %v743_v21  ;;  %3260 = vmatpush.msrb.mxu3 %v760_v22  ;;  %v793_v21 = vld [vmem:[%s5573_s28 + $0x10a8] sm:$0xff]  ;;  %v808_v22 = vld [vmem:[%s5573_s28 + $0x1120] sm:$0xff] }
 0x137   : > { %3202 = vmatpush.msrb.mxu0 %v710_v23  ;;  %3221 = vmatpush.msrb.mxu1 %v727_v24  ;;  %v825_v23 = vld [vmem:[%s5573_s28 + $0x11a8] sm:$0xff]  ;;  %v775_v24 = vld [vmem:[%s5573_s28 + $0x1018] sm:$0xff] }
 0x138   : > { %3242 = vmatpush.msrb.mxu2 %v742_v25  ;;  %3261 = vmatpush.msrb.mxu3 %v759_v26  ;;  %v792_v25 = vld [vmem:[%s5573_s28 + $0x10a0] sm:$0xff]  ;;  %v807_v26 = vld [vmem:[%s5573_s28 + $0x1118] sm:$0xff] }
 0x139   : > { %3203 = vmatpush.msrb.mxu0 %v709_v27  ;;  %3222 = vmatpush.msrb.mxu1 %v726_v28  ;;  %v824_v27 = vld [vmem:[%s5573_s28 + $0x11a0] sm:$0xff]  ;;  %v774_v28 = vld [vmem:[%s5573_s28 + $0x1010] sm:$0xff] }
 0x13a   : > { %3243 = vmatpush.msrb.mxu2 %v741_v30  ;;  %3262 = vmatpush.msrb.mxu3 %v758_v31  ;;  %v806_v30 = vld [vmem:[%s5573_s28 + $0x1110] sm:$0xff]  ;;  %v823_v31 = vld [vmem:[%s5573_s28 + $0x1198] sm:$0xff] }
 0x13b   : > { %3204 = vmatpush.msrb.mxu0 %v708_v32  ;;  %3223 = vmatpush.msrb.mxu1 %v725_v33  ;;  %v773_v32 = vld [vmem:[%s5573_s28 + $0x1008] sm:$0xff]  ;;  %v790_v33 = vld [vmem:[%s5573_s28 + $0x1090] sm:$0xff] }
 0x13c   : > { %3244 = vmatpush.msrb.mxu2 %v740_v34  ;;  %3263 = vmatpush.msrb.mxu3 %v757_v35  ;;  %v237_v34 = vld [vmem:[%s5591_s9 + $0x48] sm:$0xff]  ;;  %v805_v35 = vld [vmem:[%s5573_s28 + $0x1108] sm:$0xff] }
 0x13d   : > { %3205 = vmatmul.f32.vlgmr.msrb.gmra.mxu0 %v2377_v36  ;;  %3245 = vmatmul.f32.vlgmr.msrb.gmra.mxu2 %v2379_v37  ;;  %v822_v36 = vld [vmem:[%s5573_s28 + $0x1190] sm:$0xff]  ;;  %2382 = vst [vmem:[#allocation1 + $0x20] ss:$4 sm:$0xff] %v237_v34  ;;  %v772_v37 = vld [vmem:[%s5573_s28 + $0x1000] sm:$0xff]  ;;  %v855_v34 = vld [vmem:[%s5573_s28 + $0x1298] sm:$0xff] }
 0x13e   : > { %3269 = vmatpush.msra.mxu0 %v787_v38  ;;  %3309 = vmatpush.msra.mxu2 %v819_v39  ;;  %v789_v38 = vld [vmem:[%s5573_s28 + $0x1088] sm:$0xff]  ;;  %v804_v39 = vld [vmem:[%s5573_s28 + $0x1100] sm:$0xff] }
 0x13f   : > { %3224 = vmatpush.msrb.mxu1 %v724_v40  ;;  %3264 = vmatpush.msrb.mxu3 %v756_v41  ;;  %v821_v40 = vld [vmem:[%s5573_s28 + $0x1188] sm:$0xff]  ;;  %v2383_v41 = vld.sshfl [vmem:[#allocation1] sm:$0xff pattern:$0x73625140] }
 0x140   : > { %3225 = vmatmul.f32.vlgmr.msrb.gmra.mxu1 %v2378_v42  ;;  %3265 = vmatmul.f32.vlgmr.msrb.gmra.mxu3 %v2380_v43  ;;  %v2385_v42 = vld.sshfl [vmem:[#allocation1 + $0x10] sm:$0xff pattern:$0x73625140]  ;;  %v851_v43 = vld [vmem:[%s5573_s28 + $0x1278] sm:$0xff] }
 0x141   : > { %3270 = vmatpush.msra.mxu0 %v786_v44  ;;  %3289 = vmatpush.msra.mxu1 %v803_v45  ;;  %v883_v44 = vld [vmem:[%s5573_s28 + $0x1378] sm:$0xff]  ;;  %v788_v45 = vld [vmem:[%s5573_s28 + $0x1080] sm:$0xff] }
 0x142   : > { %3310 = vmatpush.msra.mxu2 %v818_v46  ;;  %3329 = vmatpush.msra.mxu3 %v835_v47  ;;  %v820_v46 = vld [vmem:[%s5573_s28 + $0x1180] sm:$0xff] }
 0x143   : > { %3271 = vmatpush.msra.mxu0 %v785_v48  ;;  %3290 = vmatpush.msra.mxu1 %v802_v49  ;;  %v2384_v47 = vld.sshfl [vmem:[#allocation1 + $0x8] sm:$0xff pattern:$0x73625140]  ;;  %v2386_v48 = vld.sshfl [vmem:[#allocation1 + $0x18] sm:$0xff pattern:$0x73625140] }
 0x144   : > { %3311 = vmatpush.msra.mxu2 %v817_v50  ;;  %3330 = vmatpush.msra.mxu3 %v834_v51  ;;  %v850_v49 = vld [vmem:[%s5573_s28 + $0x1270] sm:$0xff]  ;;  %v867_v50 = vld [vmem:[%s5573_s28 + $0x12f8] sm:$0xff] }
 0x145   : > { %3272 = vmatpush.msra.mxu0 %v784_v52  ;;  %3291 = vmatpush.msra.mxu1 %v801_v53  ;;  %v882_v51 = vld [vmem:[%s5573_s28 + $0x1370] sm:$0xff]  ;;  %v899_v52 = vld [vmem:[%s5573_s28 + $0x13f8] sm:$0xff]  ;;  %v849_v53 = vld [vmem:[%s5573_s28 + $0x1268] sm:$0xff] }
 0x146   : > { %3312 = vmatpush.msra.mxu2 %v816_v54  ;;  %3331 = vmatpush.msra.mxu3 %v833_v55  ;;  %v866_v54 = vld [vmem:[%s5573_s28 + $0x12f0] sm:$0xff]  ;;  %v881_v55 = vld [vmem:[%s5573_s28 + $0x1368] sm:$0xff] }
 0x147   : > { %3273 = vmatpush.msra.mxu0 %v783_v56  ;;  %3292 = vmatpush.msra.mxu1 %v800_v57  ;;  %v898_v56 = vld [vmem:[%s5573_s28 + $0x13f0] sm:$0xff]  ;;  %v848_v57 = vld [vmem:[%s5573_s28 + $0x1260] sm:$0xff] }
 0x148   : > { %3313 = vmatpush.msra.mxu2 %v815_v58  ;;  %3332 = vmatpush.msra.mxu3 %v832_v59  ;;  %v865_v58 = vld [vmem:[%s5573_s28 + $0x12e8] sm:$0xff]  ;;  %v880_v59 = vld [vmem:[%s5573_s28 + $0x1360] sm:$0xff] }
 0x149   : > { %3274 = vmatpush.msra.mxu0 %v782_v60  ;;  %3293 = vmatpush.msra.mxu1 %v799_v61  ;;  %v897_v60 = vld [vmem:[%s5573_s28 + $0x13e8] sm:$0xff]  ;;  %v847_v61 = vld [vmem:[%s5573_s28 + $0x1258] sm:$0xff] }
 0x14a   : > { %3314 = vmatpush.msra.mxu2 %v814_v62  ;;  %3333 = vmatpush.msra.mxu3 %v831_v63  ;;  %v864_v62 = vld [vmem:[%s5573_s28 + $0x12e0] sm:$0xff]  ;;  %v879_v63 = vld [vmem:[%s5573_s28 + $0x1358] sm:$0xff] }
 0x14b   : > { %3275 = vmatpush.msra.mxu0 %v781_v0  ;;  %3294 = vmatpush.msra.mxu1 %v798_v1  ;;  %v896_v0 = vld [vmem:[%s5573_s28 + $0x13e0] sm:$0xff]  ;;  %v846_v1 = vld [vmem:[%s5573_s28 + $0x1250] sm:$0xff] }
 0x14c   : > { %3315 = vmatpush.msra.mxu2 %v813_v2  ;;  %3334 = vmatpush.msra.mxu3 %v830_v3  ;;  %v863_v2 = vld [vmem:[%s5573_s28 + $0x12d8] sm:$0xff]  ;;  %v878_v3 = vld [vmem:[%s5573_s28 + $0x1350] sm:$0xff] }
 0x14d   : > { %3276 = vmatpush.msra.mxu0 %v780_v4  ;;  %3295 = vmatpush.msra.mxu1 %v797_v5  ;;  %v895_v4 = vld [vmem:[%s5573_s28 + $0x13d8] sm:$0xff]  ;;  %v845_v5 = vld [vmem:[%s5573_s28 + $0x1248] sm:$0xff] }
 0x14e   : > { %3316 = vmatpush.msra.mxu2 %v812_v6  ;;  %3335 = vmatpush.msra.mxu3 %v829_v7  ;;  %v862_v6 = vld [vmem:[%s5573_s28 + $0x12d0] sm:$0xff]  ;;  %v877_v7 = vld [vmem:[%s5573_s28 + $0x1348] sm:$0xff] }
 0x14f   : > { %3277 = vmatpush.msra.mxu0 %v779_v8  ;;  %3296 = vmatpush.msra.mxu1 %v796_v9  ;;  %v894_v8 = vld [vmem:[%s5573_s28 + $0x13d0] sm:$0xff]  ;;  %v844_v9 = vld [vmem:[%s5573_s28 + $0x1240] sm:$0xff] }
 0x150   : > { %3317 = vmatpush.msra.mxu2 %v811_v10  ;;  %3336 = vmatpush.msra.mxu3 %v828_v11  ;;  %v861_v10 = vld [vmem:[%s5573_s28 + $0x12c8] sm:$0xff]  ;;  %v876_v11 = vld [vmem:[%s5573_s28 + $0x1340] sm:$0xff] }
 0x151   : > { %3278 = vmatpush.msra.mxu0 %v778_v12  ;;  %3297 = vmatpush.msra.mxu1 %v795_v13  ;;  %v893_v12 = vld [vmem:[%s5573_s28 + $0x13c8] sm:$0xff]  ;;  %v843_v13 = vld [vmem:[%s5573_s28 + $0x1238] sm:$0xff] }
 0x152   : > { %3318 = vmatpush.msra.mxu2 %v810_v14  ;;  %3337 = vmatpush.msra.mxu3 %v827_v15  ;;  %v860_v14 = vld [vmem:[%s5573_s28 + $0x12c0] sm:$0xff]  ;;  %v875_v15 = vld [vmem:[%s5573_s28 + $0x1338] sm:$0xff] }
 0x153   : > { %3279 = vmatpush.msra.mxu0 %v777_v16  ;;  %3298 = vmatpush.msra.mxu1 %v794_v17  ;;  %v892_v16 = vld [vmem:[%s5573_s28 + $0x13c0] sm:$0xff]  ;;  %v842_v17 = vld [vmem:[%s5573_s28 + $0x1230] sm:$0xff] }
 0x154   : > { %3319 = vmatpush.msra.mxu2 %v809_v18  ;;  %3338 = vmatpush.msra.mxu3 %v826_v19  ;;  %v859_v18 = vld [vmem:[%s5573_s28 + $0x12b8] sm:$0xff]  ;;  %v874_v19 = vld [vmem:[%s5573_s28 + $0x1330] sm:$0xff] }
 0x155   : > { %3280 = vmatpush.msra.mxu0 %v776_v20  ;;  %3299 = vmatpush.msra.mxu1 %v793_v21  ;;  %v891_v20 = vld [vmem:[%s5573_s28 + $0x13b8] sm:$0xff]  ;;  %v841_v21 = vld [vmem:[%s5573_s28 + $0x1228] sm:$0xff] }
 0x156   : > { %3320 = vmatpush.msra.mxu2 %v808_v22  ;;  %3339 = vmatpush.msra.mxu3 %v825_v23  ;;  %v858_v22 = vld [vmem:[%s5573_s28 + $0x12b0] sm:$0xff]  ;;  %v873_v23 = vld [vmem:[%s5573_s28 + $0x1328] sm:$0xff] }
 0x157   : > { %3281 = vmatpush.msra.mxu0 %v775_v24  ;;  %3300 = vmatpush.msra.mxu1 %v792_v25  ;;  %v890_v24 = vld [vmem:[%s5573_s28 + $0x13b0] sm:$0xff]  ;;  %v840_v25 = vld [vmem:[%s5573_s28 + $0x1220] sm:$0xff] }
 0x158   : > { %3321 = vmatpush.msra.mxu2 %v807_v26  ;;  %3340 = vmatpush.msra.mxu3 %v824_v27  ;;  %v857_v26 = vld [vmem:[%s5573_s28 + $0x12a8] sm:$0xff]  ;;  %v872_v27 = vld [vmem:[%s5573_s28 + $0x1320] sm:$0xff] }
 0x159   : > { %3282 = vmatpush.msra.mxu0 %v774_v28  ;;  %3301 = vmatpush.msra.mxu1 %v791_v29  ;;  %v889_v28 = vld [vmem:[%s5573_s28 + $0x13a8] sm:$0xff]  ;;  %v839_v29 = vld [vmem:[%s5573_s28 + $0x1218] sm:$0xff] }
 0x15a   : > { %3322 = vmatpush.msra.mxu2 %v806_v30  ;;  %3341 = vmatpush.msra.mxu3 %v823_v31  ;;  %v856_v30 = vld [vmem:[%s5573_s28 + $0x12a0] sm:$0xff]  ;;  %v871_v31 = vld [vmem:[%s5573_s28 + $0x1318] sm:$0xff] }
 0x15b   : > { %3283 = vmatpush.msra.mxu0 %v773_v32  ;;  %3302 = vmatpush.msra.mxu1 %v790_v33  ;;  %v888_v32 = vld [vmem:[%s5573_s28 + $0x13a0] sm:$0xff]  ;;  %v838_v33 = vld [vmem:[%s5573_s28 + $0x1210] sm:$0xff] }
 0x15c   : > { %3323 = vmatpush.msra.mxu2 %v805_v35  ;;  %3342 = vmatpush.msra.mxu3 %v822_v36  ;;  %v870_v35 = vld [vmem:[%s5573_s28 + $0x1310] sm:$0xff]  ;;  %v887_v36 = vld [vmem:[%s5573_s28 + $0x1398] sm:$0xff] }
 0x15d   : > { %3284 = vmatpush.msra.mxu0 %v772_v37  ;;  %3303 = vmatpush.msra.mxu1 %v789_v38  ;;  %v837_v37 = vld [vmem:[%s5573_s28 + $0x1208] sm:$0xff]  ;;  %v854_v38 = vld [vmem:[%s5573_s28 + $0x1290] sm:$0xff] }
 0x15e   : > { %3324 = vmatpush.msra.mxu2 %v804_v39  ;;  %3343 = vmatpush.msra.mxu3 %v821_v40  ;;  %v238_v39 = vld [vmem:[%s5591_s9 + $0x50] sm:$0xff] }
 0x15f   : > { %3285 = vmatmul.f32.vlgmr.msra.gmra.mxu0 %v2383_v41  ;;  %3325 = vmatmul.f32.vlgmr.msra.gmra.mxu2 %v2385_v42  ;;  %v869_v40 = vld [vmem:[%s5573_s28 + $0x1308] sm:$0xff]  ;;  %v886_v41 = vld [vmem:[%s5573_s28 + $0x1390] sm:$0xff]  ;;  %2391 = vst [vmem:[#allocation1] ss:$4 sm:$0xff] %v238_v39  ;;  %v836_v42 = vld [vmem:[%s5573_s28 + $0x1200] sm:$0xff] }
 0x160   : > { %3349 = vmatpush.msrb.mxu0 %v851_v43  ;;  %3389 = vmatpush.msrb.mxu2 %v883_v44  ;;  %v853_v43 = vld [vmem:[%s5573_s28 + $0x1288] sm:$0xff]  ;;  %v868_v44 = vld [vmem:[%s5573_s28 + $0x1300] sm:$0xff]  ;;  %v919_v39 = vld [vmem:[%s5573_s28 + $0x1498] sm:$0xff] }
 0x161   : > { %3304 = vmatpush.msra.mxu1 %v788_v45  ;;  %3344 = vmatpush.msra.mxu3 %v820_v46  ;;  %v885_v45 = vld [vmem:[%s5573_s28 + $0x1388] sm:$0xff]  ;;  %v2387_v46 = vld.sshfl [vmem:[#allocation1 + $0x20] sm:$0xff pattern:$0x73625140] }
 0x162   : > { %3305 = vmatmul.f32.vlgmr.msra.gmra.mxu1 %v2384_v47  ;;  %3345 = vmatmul.f32.vlgmr.msra.gmra.mxu3 %v2386_v48  ;;  %v2389_v47 = vld.sshfl [vmem:[#allocation1 + $0x30] sm:$0xff pattern:$0x73625140]  ;;  %v915_v48 = vld [vmem:[%s5573_s28 + $0x1478] sm:$0xff] }
 0x163   : > { %3350 = vmatpush.msrb.mxu0 %v850_v49  ;;  %3369 = vmatpush.msrb.mxu1 %v867_v50  ;;  %v947_v49 = vld [vmem:[%s5573_s28 + $0x1578] sm:$0xff]  ;;  %v852_v50 = vld [vmem:[%s5573_s28 + $0x1280] sm:$0xff] }
 0x164   : > { %3390 = vmatpush.msrb.mxu2 %v882_v51  ;;  %3409 = vmatpush.msrb.mxu3 %v899_v52  ;;  %v884_v51 = vld [vmem:[%s5573_s28 + $0x1380] sm:$0xff] }
 0x165   : > { %3351 = vmatpush.msrb.mxu0 %v849_v53  ;;  %3370 = vmatpush.msrb.mxu1 %v866_v54  ;;  %v2388_v52 = vld.sshfl [vmem:[#allocation1 + $0x28] sm:$0xff pattern:$0x73625140]  ;;  %v2390_v53 = vld.sshfl [vmem:[#allocation1 + $0x38] sm:$0xff pattern:$0x73625140] }
 0x166   : > { %3391 = vmatpush.msrb.mxu2 %v881_v55  ;;  %3410 = vmatpush.msrb.mxu3 %v898_v56  ;;  %v914_v54 = vld [vmem:[%s5573_s28 + $0x1470] sm:$0xff]  ;;  %v931_v55 = vld [vmem:[%s5573_s28 + $0x14f8] sm:$0xff] }
 0x167   : > { %3352 = vmatpush.msrb.mxu0 %v848_v57  ;;  %3371 = vmatpush.msrb.mxu1 %v865_v58  ;;  %v946_v56 = vld [vmem:[%s5573_s28 + $0x1570] sm:$0xff]  ;;  %v963_v57 = vld [vmem:[%s5573_s28 + $0x15f8] sm:$0xff]  ;;  %v913_v58 = vld [vmem:[%s5573_s28 + $0x1468] sm:$0xff] }
 0x168   : > { %3392 = vmatpush.msrb.mxu2 %v880_v59  ;;  %3411 = vmatpush.msrb.mxu3 %v897_v60  ;;  %v930_v59 = vld [vmem:[%s5573_s28 + $0x14f0] sm:$0xff]  ;;  %v945_v60 = vld [vmem:[%s5573_s28 + $0x1568] sm:$0xff] }
 0x169   : > { %3353 = vmatpush.msrb.mxu0 %v847_v61  ;;  %3372 = vmatpush.msrb.mxu1 %v864_v62  ;;  %v962_v61 = vld [vmem:[%s5573_s28 + $0x15f0] sm:$0xff]  ;;  %v912_v62 = vld [vmem:[%s5573_s28 + $0x1460] sm:$0xff] }
 0x16a   : > { %3393 = vmatpush.msrb.mxu2 %v879_v63  ;;  %3412 = vmatpush.msrb.mxu3 %v896_v0  ;;  %v929_v63 = vld [vmem:[%s5573_s28 + $0x14e8] sm:$0xff]  ;;  %v944_v0 = vld [vmem:[%s5573_s28 + $0x1560] sm:$0xff] }
 0x16b   : > { %3354 = vmatpush.msrb.mxu0 %v846_v1  ;;  %3373 = vmatpush.msrb.mxu1 %v863_v2  ;;  %v961_v1 = vld [vmem:[%s5573_s28 + $0x15e8] sm:$0xff]  ;;  %v911_v2 = vld [vmem:[%s5573_s28 + $0x1458] sm:$0xff] }
 0x16c   : > { %3394 = vmatpush.msrb.mxu2 %v878_v3  ;;  %3413 = vmatpush.msrb.mxu3 %v895_v4  ;;  %v928_v3 = vld [vmem:[%s5573_s28 + $0x14e0] sm:$0xff]  ;;  %v943_v4 = vld [vmem:[%s5573_s28 + $0x1558] sm:$0xff] }
 0x16d   : > { %3355 = vmatpush.msrb.mxu0 %v845_v5  ;;  %3374 = vmatpush.msrb.mxu1 %v862_v6  ;;  %v960_v5 = vld [vmem:[%s5573_s28 + $0x15e0] sm:$0xff]  ;;  %v910_v6 = vld [vmem:[%s5573_s28 + $0x1450] sm:$0xff] }
 0x16e   : > { %3395 = vmatpush.msrb.mxu2 %v877_v7  ;;  %3414 = vmatpush.msrb.mxu3 %v894_v8  ;;  %v927_v7 = vld [vmem:[%s5573_s28 + $0x14d8] sm:$0xff]  ;;  %v942_v8 = vld [vmem:[%s5573_s28 + $0x1550] sm:$0xff] }
 0x16f   : > { %3356 = vmatpush.msrb.mxu0 %v844_v9  ;;  %3375 = vmatpush.msrb.mxu1 %v861_v10  ;;  %v959_v9 = vld [vmem:[%s5573_s28 + $0x15d8] sm:$0xff]  ;;  %v909_v10 = vld [vmem:[%s5573_s28 + $0x1448] sm:$0xff] }
 0x170   : > { %3396 = vmatpush.msrb.mxu2 %v876_v11  ;;  %3415 = vmatpush.msrb.mxu3 %v893_v12  ;;  %v926_v11 = vld [vmem:[%s5573_s28 + $0x14d0] sm:$0xff]  ;;  %v941_v12 = vld [vmem:[%s5573_s28 + $0x1548] sm:$0xff] }
 0x171   : > { %3357 = vmatpush.msrb.mxu0 %v843_v13  ;;  %3376 = vmatpush.msrb.mxu1 %v860_v14  ;;  %v958_v13 = vld [vmem:[%s5573_s28 + $0x15d0] sm:$0xff]  ;;  %v908_v14 = vld [vmem:[%s5573_s28 + $0x1440] sm:$0xff] }
 0x172   : > { %3397 = vmatpush.msrb.mxu2 %v875_v15  ;;  %3416 = vmatpush.msrb.mxu3 %v892_v16  ;;  %v925_v15 = vld [vmem:[%s5573_s28 + $0x14c8] sm:$0xff]  ;;  %v940_v16 = vld [vmem:[%s5573_s28 + $0x1540] sm:$0xff] }
 0x173   : > { %3358 = vmatpush.msrb.mxu0 %v842_v17  ;;  %3377 = vmatpush.msrb.mxu1 %v859_v18  ;;  %v957_v17 = vld [vmem:[%s5573_s28 + $0x15c8] sm:$0xff]  ;;  %v907_v18 = vld [vmem:[%s5573_s28 + $0x1438] sm:$0xff] }
 0x174   : > { %3398 = vmatpush.msrb.mxu2 %v874_v19  ;;  %3417 = vmatpush.msrb.mxu3 %v891_v20  ;;  %v924_v19 = vld [vmem:[%s5573_s28 + $0x14c0] sm:$0xff]  ;;  %v939_v20 = vld [vmem:[%s5573_s28 + $0x1538] sm:$0xff] }
 0x175   : > { %3359 = vmatpush.msrb.mxu0 %v841_v21  ;;  %3378 = vmatpush.msrb.mxu1 %v858_v22  ;;  %v956_v21 = vld [vmem:[%s5573_s28 + $0x15c0] sm:$0xff]  ;;  %v906_v22 = vld [vmem:[%s5573_s28 + $0x1430] sm:$0xff] }
 0x176   : > { %3399 = vmatpush.msrb.mxu2 %v873_v23  ;;  %3418 = vmatpush.msrb.mxu3 %v890_v24  ;;  %v923_v23 = vld [vmem:[%s5573_s28 + $0x14b8] sm:$0xff]  ;;  %v938_v24 = vld [vmem:[%s5573_s28 + $0x1530] sm:$0xff] }
 0x177   : > { %3360 = vmatpush.msrb.mxu0 %v840_v25  ;;  %3379 = vmatpush.msrb.mxu1 %v857_v26  ;;  %v955_v25 = vld [vmem:[%s5573_s28 + $0x15b8] sm:$0xff]  ;;  %v905_v26 = vld [vmem:[%s5573_s28 + $0x1428] sm:$0xff] }
 0x178   : > { %3400 = vmatpush.msrb.mxu2 %v872_v27  ;;  %3419 = vmatpush.msrb.mxu3 %v889_v28  ;;  %v922_v27 = vld [vmem:[%s5573_s28 + $0x14b0] sm:$0xff]  ;;  %v937_v28 = vld [vmem:[%s5573_s28 + $0x1528] sm:$0xff] }
 0x179   : > { %3361 = vmatpush.msrb.mxu0 %v839_v29  ;;  %3380 = vmatpush.msrb.mxu1 %v856_v30  ;;  %v954_v29 = vld [vmem:[%s5573_s28 + $0x15b0] sm:$0xff]  ;;  %v904_v30 = vld [vmem:[%s5573_s28 + $0x1420] sm:$0xff] }
 0x17a   : > { %3401 = vmatpush.msrb.mxu2 %v871_v31  ;;  %3420 = vmatpush.msrb.mxu3 %v888_v32  ;;  %v921_v31 = vld [vmem:[%s5573_s28 + $0x14a8] sm:$0xff]  ;;  %v936_v32 = vld [vmem:[%s5573_s28 + $0x1520] sm:$0xff] }
 0x17b   : > { %3362 = vmatpush.msrb.mxu0 %v838_v33  ;;  %3381 = vmatpush.msrb.mxu1 %v855_v34  ;;  %v953_v33 = vld [vmem:[%s5573_s28 + $0x15a8] sm:$0xff]  ;;  %v903_v34 = vld [vmem:[%s5573_s28 + $0x1418] sm:$0xff] }
 0x17c   : > { %3402 = vmatpush.msrb.mxu2 %v870_v35  ;;  %3421 = vmatpush.msrb.mxu3 %v887_v36  ;;  %v920_v35 = vld [vmem:[%s5573_s28 + $0x14a0] sm:$0xff]  ;;  %v935_v36 = vld [vmem:[%s5573_s28 + $0x1518] sm:$0xff] }
 0x17d   : > { %3363 = vmatpush.msrb.mxu0 %v837_v37  ;;  %3382 = vmatpush.msrb.mxu1 %v854_v38  ;;  %v952_v37 = vld [vmem:[%s5573_s28 + $0x15a0] sm:$0xff]  ;;  %v902_v38 = vld [vmem:[%s5573_s28 + $0x1410] sm:$0xff] }
 0x17e   : > { %3403 = vmatpush.msrb.mxu2 %v869_v40  ;;  %3422 = vmatpush.msrb.mxu3 %v886_v41  ;;  %v934_v40 = vld [vmem:[%s5573_s28 + $0x1510] sm:$0xff]  ;;  %v951_v41 = vld [vmem:[%s5573_s28 + $0x1598] sm:$0xff] }
 0x17f   : > { %3364 = vmatpush.msrb.mxu0 %v836_v42  ;;  %3383 = vmatpush.msrb.mxu1 %v853_v43  ;;  %v901_v42 = vld [vmem:[%s5573_s28 + $0x1408] sm:$0xff]  ;;  %v918_v43 = vld [vmem:[%s5573_s28 + $0x1490] sm:$0xff] }
 0x180   : > { %3404 = vmatpush.msrb.mxu2 %v868_v44  ;;  %3423 = vmatpush.msrb.mxu3 %v885_v45  ;;  %v239_v44 = vld [vmem:[%s5591_s9 + $0x58] sm:$0xff] }
 0x181   : > { %3365 = vmatmul.f32.vlgmr.msrb.gmra.mxu0 %v2387_v46  ;;  %3405 = vmatmul.f32.vlgmr.msrb.gmra.mxu2 %v2389_v47  ;;  %v933_v45 = vld [vmem:[%s5573_s28 + $0x1508] sm:$0xff]  ;;  %v950_v46 = vld [vmem:[%s5573_s28 + $0x1590] sm:$0xff]  ;;  %2392 = vst [vmem:[#allocation1 + $0x20] ss:$4 sm:$0xff] %v239_v44  ;;  %v900_v47 = vld [vmem:[%s5573_s28 + $0x1400] sm:$0xff] }
 0x182   : > { %3429 = vmatpush.msra.mxu0 %v915_v48  ;;  %3469 = vmatpush.msra.mxu2 %v947_v49  ;;  %v917_v48 = vld [vmem:[%s5573_s28 + $0x1488] sm:$0xff]  ;;  %v932_v49 = vld [vmem:[%s5573_s28 + $0x1500] sm:$0xff]  ;;  %v983_v44 = vld [vmem:[%s5573_s28 + $0x1698] sm:$0xff] }
 0x183   : > { %3384 = vmatpush.msrb.mxu1 %v852_v50  ;;  %3424 = vmatpush.msrb.mxu3 %v884_v51  ;;  %v949_v50 = vld [vmem:[%s5573_s28 + $0x1588] sm:$0xff]  ;;  %v2393_v51 = vld.sshfl [vmem:[#allocation1] sm:$0xff pattern:$0x73625140] }
 0x184   : > { %3385 = vmatmul.f32.vlgmr.msrb.gmra.mxu1 %v2388_v52  ;;  %3425 = vmatmul.f32.vlgmr.msrb.gmra.mxu3 %v2390_v53  ;;  %v2395_v52 = vld.sshfl [vmem:[#allocation1 + $0x10] sm:$0xff pattern:$0x73625140]  ;;  %v979_v53 = vld [vmem:[%s5573_s28 + $0x1678] sm:$0xff] }
 0x185   : > { %3430 = vmatpush.msra.mxu0 %v914_v54  ;;  %3449 = vmatpush.msra.mxu1 %v931_v55  ;;  %v1011_v54 = vld [vmem:[%s5573_s28 + $0x1778] sm:$0xff]  ;;  %v916_v55 = vld [vmem:[%s5573_s28 + $0x1480] sm:$0xff] }
 0x186   : > { %3470 = vmatpush.msra.mxu2 %v946_v56  ;;  %3489 = vmatpush.msra.mxu3 %v963_v57  ;;  %v948_v56 = vld [vmem:[%s5573_s28 + $0x1580] sm:$0xff] }
 0x187   : > { %3431 = vmatpush.msra.mxu0 %v913_v58  ;;  %3450 = vmatpush.msra.mxu1 %v930_v59  ;;  %v2394_v57 = vld.sshfl [vmem:[#allocation1 + $0x8] sm:$0xff pattern:$0x73625140]  ;;  %v2396_v58 = vld.sshfl [vmem:[#allocation1 + $0x18] sm:$0xff pattern:$0x73625140] }
 0x188   : > { %3471 = vmatpush.msra.mxu2 %v945_v60  ;;  %3490 = vmatpush.msra.mxu3 %v962_v61  ;;  %v978_v59 = vld [vmem:[%s5573_s28 + $0x1670] sm:$0xff]  ;;  %v995_v60 = vld [vmem:[%s5573_s28 + $0x16f8] sm:$0xff] }
 0x189   : > { %3432 = vmatpush.msra.mxu0 %v912_v62  ;;  %3451 = vmatpush.msra.mxu1 %v929_v63  ;;  %v1010_v61 = vld [vmem:[%s5573_s28 + $0x1770] sm:$0xff]  ;;  %v1027_v62 = vld [vmem:[%s5573_s28 + $0x17f8] sm:$0xff]  ;;  %v977_v63 = vld [vmem:[%s5573_s28 + $0x1668] sm:$0xff] }
 0x18a   : > { %3472 = vmatpush.msra.mxu2 %v944_v0  ;;  %3491 = vmatpush.msra.mxu3 %v961_v1  ;;  %v994_v0 = vld [vmem:[%s5573_s28 + $0x16f0] sm:$0xff]  ;;  %v1009_v1 = vld [vmem:[%s5573_s28 + $0x1768] sm:$0xff] }
 0x18b   : > { %3433 = vmatpush.msra.mxu0 %v911_v2  ;;  %3452 = vmatpush.msra.mxu1 %v928_v3  ;;  %v1026_v2 = vld [vmem:[%s5573_s28 + $0x17f0] sm:$0xff]  ;;  %v976_v3 = vld [vmem:[%s5573_s28 + $0x1660] sm:$0xff] }
 0x18c   : > { %3473 = vmatpush.msra.mxu2 %v943_v4  ;;  %3492 = vmatpush.msra.mxu3 %v960_v5  ;;  %v993_v4 = vld [vmem:[%s5573_s28 + $0x16e8] sm:$0xff]  ;;  %v1008_v5 = vld [vmem:[%s5573_s28 + $0x1760] sm:$0xff] }
 0x18d   : > { %3434 = vmatpush.msra.mxu0 %v910_v6  ;;  %3453 = vmatpush.msra.mxu1 %v927_v7  ;;  %v1025_v6 = vld [vmem:[%s5573_s28 + $0x17e8] sm:$0xff]  ;;  %v975_v7 = vld [vmem:[%s5573_s28 + $0x1658] sm:$0xff] }
 0x18e   : > { %3474 = vmatpush.msra.mxu2 %v942_v8  ;;  %3493 = vmatpush.msra.mxu3 %v959_v9  ;;  %v992_v8 = vld [vmem:[%s5573_s28 + $0x16e0] sm:$0xff]  ;;  %v1007_v9 = vld [vmem:[%s5573_s28 + $0x1758] sm:$0xff] }
 0x18f   : > { %3435 = vmatpush.msra.mxu0 %v909_v10  ;;  %3454 = vmatpush.msra.mxu1 %v926_v11  ;;  %v1024_v10 = vld [vmem:[%s5573_s28 + $0x17e0] sm:$0xff]  ;;  %v974_v11 = vld [vmem:[%s5573_s28 + $0x1650] sm:$0xff] }
 0x190   : > { %3475 = vmatpush.msra.mxu2 %v941_v12  ;;  %3494 = vmatpush.msra.mxu3 %v958_v13  ;;  %v991_v12 = vld [vmem:[%s5573_s28 + $0x16d8] sm:$0xff]  ;;  %v1006_v13 = vld [vmem:[%s5573_s28 + $0x1750] sm:$0xff] }
 0x191   : > { %3436 = vmatpush.msra.mxu0 %v908_v14  ;;  %3455 = vmatpush.msra.mxu1 %v925_v15  ;;  %v1023_v14 = vld [vmem:[%s5573_s28 + $0x17d8] sm:$0xff]  ;;  %v973_v15 = vld [vmem:[%s5573_s28 + $0x1648] sm:$0xff] }
 0x192   : > { %3476 = vmatpush.msra.mxu2 %v940_v16  ;;  %3495 = vmatpush.msra.mxu3 %v957_v17  ;;  %v990_v16 = vld [vmem:[%s5573_s28 + $0x16d0] sm:$0xff]  ;;  %v1005_v17 = vld [vmem:[%s5573_s28 + $0x1748] sm:$0xff] }
 0x193   : > { %3437 = vmatpush.msra.mxu0 %v907_v18  ;;  %3456 = vmatpush.msra.mxu1 %v924_v19  ;;  %v1022_v18 = vld [vmem:[%s5573_s28 + $0x17d0] sm:$0xff]  ;;  %v972_v19 = vld [vmem:[%s5573_s28 + $0x1640] sm:$0xff] }
 0x194   : > { %3477 = vmatpush.msra.mxu2 %v939_v20  ;;  %3496 = vmatpush.msra.mxu3 %v956_v21  ;;  %v989_v20 = vld [vmem:[%s5573_s28 + $0x16c8] sm:$0xff]  ;;  %v1004_v21 = vld [vmem:[%s5573_s28 + $0x1740] sm:$0xff] }
 0x195   : > { %3438 = vmatpush.msra.mxu0 %v906_v22  ;;  %3457 = vmatpush.msra.mxu1 %v923_v23  ;;  %v1021_v22 = vld [vmem:[%s5573_s28 + $0x17c8] sm:$0xff]  ;;  %v971_v23 = vld [vmem:[%s5573_s28 + $0x1638] sm:$0xff] }
 0x196   : > { %3478 = vmatpush.msra.mxu2 %v938_v24  ;;  %3497 = vmatpush.msra.mxu3 %v955_v25  ;;  %v988_v24 = vld [vmem:[%s5573_s28 + $0x16c0] sm:$0xff]  ;;  %v1003_v25 = vld [vmem:[%s5573_s28 + $0x1738] sm:$0xff] }
 0x197   : > { %3439 = vmatpush.msra.mxu0 %v905_v26  ;;  %3458 = vmatpush.msra.mxu1 %v922_v27  ;;  %v1020_v26 = vld [vmem:[%s5573_s28 + $0x17c0] sm:$0xff]  ;;  %v970_v27 = vld [vmem:[%s5573_s28 + $0x1630] sm:$0xff] }
 0x198   : > { %3479 = vmatpush.msra.mxu2 %v937_v28  ;;  %3498 = vmatpush.msra.mxu3 %v954_v29  ;;  %v987_v28 = vld [vmem:[%s5573_s28 + $0x16b8] sm:$0xff]  ;;  %v1002_v29 = vld [vmem:[%s5573_s28 + $0x1730] sm:$0xff] }
 0x199   : > { %3440 = vmatpush.msra.mxu0 %v904_v30  ;;  %3459 = vmatpush.msra.mxu1 %v921_v31  ;;  %v1019_v30 = vld [vmem:[%s5573_s28 + $0x17b8] sm:$0xff]  ;;  %v969_v31 = vld [vmem:[%s5573_s28 + $0x1628] sm:$0xff] }
 0x19a   : > { %3480 = vmatpush.msra.mxu2 %v936_v32  ;;  %3499 = vmatpush.msra.mxu3 %v953_v33  ;;  %v986_v32 = vld [vmem:[%s5573_s28 + $0x16b0] sm:$0xff]  ;;  %v1001_v33 = vld [vmem:[%s5573_s28 + $0x1728] sm:$0xff] }
 0x19b   : > { %3441 = vmatpush.msra.mxu0 %v903_v34  ;;  %3460 = vmatpush.msra.mxu1 %v920_v35  ;;  %v1018_v34 = vld [vmem:[%s5573_s28 + $0x17b0] sm:$0xff]  ;;  %v968_v35 = vld [vmem:[%s5573_s28 + $0x1620] sm:$0xff] }
 0x19c   : > { %3481 = vmatpush.msra.mxu2 %v935_v36  ;;  %3500 = vmatpush.msra.mxu3 %v952_v37  ;;  %v985_v36 = vld [vmem:[%s5573_s28 + $0x16a8] sm:$0xff]  ;;  %v1000_v37 = vld [vmem:[%s5573_s28 + $0x1720] sm:$0xff] }
 0x19d   : > { %3442 = vmatpush.msra.mxu0 %v902_v38  ;;  %3461 = vmatpush.msra.mxu1 %v919_v39  ;;  %v1017_v38 = vld [vmem:[%s5573_s28 + $0x17a8] sm:$0xff]  ;;  %v967_v39 = vld [vmem:[%s5573_s28 + $0x1618] sm:$0xff] }
 0x19e   : > { %3482 = vmatpush.msra.mxu2 %v934_v40  ;;  %3501 = vmatpush.msra.mxu3 %v951_v41  ;;  %v984_v40 = vld [vmem:[%s5573_s28 + $0x16a0] sm:$0xff]  ;;  %v999_v41 = vld [vmem:[%s5573_s28 + $0x1718] sm:$0xff] }
 0x19f   : > { %3443 = vmatpush.msra.mxu0 %v901_v42  ;;  %3462 = vmatpush.msra.mxu1 %v918_v43  ;;  %v1016_v42 = vld [vmem:[%s5573_s28 + $0x17a0] sm:$0xff]  ;;  %v966_v43 = vld [vmem:[%s5573_s28 + $0x1610] sm:$0xff] }
 0x1a0   : > { %3483 = vmatpush.msra.mxu2 %v933_v45  ;;  %3502 = vmatpush.msra.mxu3 %v950_v46  ;;  %v998_v45 = vld [vmem:[%s5573_s28 + $0x1710] sm:$0xff]  ;;  %v1015_v46 = vld [vmem:[%s5573_s28 + $0x1798] sm:$0xff] }
 0x1a1   : > { %3444 = vmatpush.msra.mxu0 %v900_v47  ;;  %3463 = vmatpush.msra.mxu1 %v917_v48  ;;  %v965_v47 = vld [vmem:[%s5573_s28 + $0x1608] sm:$0xff]  ;;  %v982_v48 = vld [vmem:[%s5573_s28 + $0x1690] sm:$0xff] }
 0x1a2   : > { %3484 = vmatpush.msra.mxu2 %v932_v49  ;;  %3503 = vmatpush.msra.mxu3 %v949_v50  ;;  %v240_v49 = vld [vmem:[%s5591_s9 + $0x60] sm:$0xff]  ;;  %v997_v50 = vld [vmem:[%s5573_s28 + $0x1708] sm:$0xff] }
 0x1a3   : > { %3445 = vmatmul.f32.vlgmr.msra.gmra.mxu0 %v2393_v51  ;;  %3485 = vmatmul.f32.vlgmr.msra.gmra.mxu2 %v2395_v52  ;;  %v1014_v51 = vld [vmem:[%s5573_s28 + $0x1790] sm:$0xff]  ;;  %2401 = vst [vmem:[#allocation1] ss:$4 sm:$0xff] %v240_v49  ;;  %v964_v52 = vld [vmem:[%s5573_s28 + $0x1600] sm:$0xff]  ;;  %v1047_v49 = vld [vmem:[%s5573_s28 + $0x1898] sm:$0xff] }
 0x1a4   : > { %3509 = vmatpush.msrb.mxu0 %v979_v53  ;;  %3549 = vmatpush.msrb.mxu2 %v1011_v54  ;;  %v981_v53 = vld [vmem:[%s5573_s28 + $0x1688] sm:$0xff]  ;;  %v996_v54 = vld [vmem:[%s5573_s28 + $0x1700] sm:$0xff] }
 0x1a5   : > { %3464 = vmatpush.msra.mxu1 %v916_v55  ;;  %3504 = vmatpush.msra.mxu3 %v948_v56  ;;  %v1013_v55 = vld [vmem:[%s5573_s28 + $0x1788] sm:$0xff]  ;;  %v2397_v56 = vld.sshfl [vmem:[#allocation1 + $0x20] sm:$0xff pattern:$0x73625140] }
 0x1a6   : > { %3465 = vmatmul.f32.vlgmr.msra.gmra.mxu1 %v2394_v57  ;;  %3505 = vmatmul.f32.vlgmr.msra.gmra.mxu3 %v2396_v58  ;;  %v2399_v57 = vld.sshfl [vmem:[#allocation1 + $0x30] sm:$0xff pattern:$0x73625140]  ;;  %v1043_v58 = vld [vmem:[%s5573_s28 + $0x1878] sm:$0xff] }
 0x1a7   : > { %3510 = vmatpush.msrb.mxu0 %v978_v59  ;;  %3529 = vmatpush.msrb.mxu1 %v995_v60  ;;  %v1075_v59 = vld [vmem:[%s5573_s28 + $0x1978] sm:$0xff]  ;;  %v980_v60 = vld [vmem:[%s5573_s28 + $0x1680] sm:$0xff] }
 0x1a8   : > { %3550 = vmatpush.msrb.mxu2 %v1010_v61  ;;  %3569 = vmatpush.msrb.mxu3 %v1027_v62  ;;  %v1012_v61 = vld [vmem:[%s5573_s28 + $0x1780] sm:$0xff] }
 0x1a9   : > { %3511 = vmatpush.msrb.mxu0 %v977_v63  ;;  %3530 = vmatpush.msrb.mxu1 %v994_v0  ;;  %v2398_v62 = vld.sshfl [vmem:[#allocation1 + $0x28] sm:$0xff pattern:$0x73625140]  ;;  %v2400_v63 = vld.sshfl [vmem:[#allocation1 + $0x38] sm:$0xff pattern:$0x73625140] }
 0x1aa   : > { %3551 = vmatpush.msrb.mxu2 %v1009_v1  ;;  %3570 = vmatpush.msrb.mxu3 %v1026_v2  ;;  %v1042_v0 = vld [vmem:[%s5573_s28 + $0x1870] sm:$0xff]  ;;  %v1059_v1 = vld [vmem:[%s5573_s28 + $0x18f8] sm:$0xff] }
 0x1ab   : > { %3512 = vmatpush.msrb.mxu0 %v976_v3  ;;  %3531 = vmatpush.msrb.mxu1 %v993_v4  ;;  %v1074_v2 = vld [vmem:[%s5573_s28 + $0x1970] sm:$0xff]  ;;  %v1091_v3 = vld [vmem:[%s5573_s28 + $0x19f8] sm:$0xff]  ;;  %v1041_v4 = vld [vmem:[%s5573_s28 + $0x1868] sm:$0xff] }
 0x1ac   : > { %3552 = vmatpush.msrb.mxu2 %v1008_v5  ;;  %3571 = vmatpush.msrb.mxu3 %v1025_v6  ;;  %v1058_v5 = vld [vmem:[%s5573_s28 + $0x18f0] sm:$0xff]  ;;  %v1073_v6 = vld [vmem:[%s5573_s28 + $0x1968] sm:$0xff] }
 0x1ad   : > { %3513 = vmatpush.msrb.mxu0 %v975_v7  ;;  %3532 = vmatpush.msrb.mxu1 %v992_v8  ;;  %v1090_v7 = vld [vmem:[%s5573_s28 + $0x19f0] sm:$0xff]  ;;  %v1040_v8 = vld [vmem:[%s5573_s28 + $0x1860] sm:$0xff] }
 0x1ae   : > { %3553 = vmatpush.msrb.mxu2 %v1007_v9  ;;  %3572 = vmatpush.msrb.mxu3 %v1024_v10  ;;  %v1057_v9 = vld [vmem:[%s5573_s28 + $0x18e8] sm:$0xff]  ;;  %v1072_v10 = vld [vmem:[%s5573_s28 + $0x1960] sm:$0xff] }
 0x1af   : > { %3514 = vmatpush.msrb.mxu0 %v974_v11  ;;  %3533 = vmatpush.msrb.mxu1 %v991_v12  ;;  %v1089_v11 = vld [vmem:[%s5573_s28 + $0x19e8] sm:$0xff]  ;;  %v1039_v12 = vld [vmem:[%s5573_s28 + $0x1858] sm:$0xff] }
 0x1b0   : > { %3554 = vmatpush.msrb.mxu2 %v1006_v13  ;;  %3573 = vmatpush.msrb.mxu3 %v1023_v14  ;;  %v1056_v13 = vld [vmem:[%s5573_s28 + $0x18e0] sm:$0xff]  ;;  %v1071_v14 = vld [vmem:[%s5573_s28 + $0x1958] sm:$0xff] }
 0x1b1   : > { %3515 = vmatpush.msrb.mxu0 %v973_v15  ;;  %3534 = vmatpush.msrb.mxu1 %v990_v16  ;;  %v1088_v15 = vld [vmem:[%s5573_s28 + $0x19e0] sm:$0xff]  ;;  %v1038_v16 = vld [vmem:[%s5573_s28 + $0x1850] sm:$0xff] }
 0x1b2   : > { %3555 = vmatpush.msrb.mxu2 %v1005_v17  ;;  %3574 = vmatpush.msrb.mxu3 %v1022_v18  ;;  %v1055_v17 = vld [vmem:[%s5573_s28 + $0x18d8] sm:$0xff]  ;;  %v1070_v18 = vld [vmem:[%s5573_s28 + $0x1950] sm:$0xff] }
 0x1b3   : > { %3516 = vmatpush.msrb.mxu0 %v972_v19  ;;  %3535 = vmatpush.msrb.mxu1 %v989_v20  ;;  %v1087_v19 = vld [vmem:[%s5573_s28 + $0x19d8] sm:$0xff]  ;;  %v1037_v20 = vld [vmem:[%s5573_s28 + $0x1848] sm:$0xff] }
 0x1b4   : > { %3556 = vmatpush.msrb.mxu2 %v1004_v21  ;;  %3575 = vmatpush.msrb.mxu3 %v1021_v22  ;;  %v1054_v21 = vld [vmem:[%s5573_s28 + $0x18d0] sm:$0xff]  ;;  %v1069_v22 = vld [vmem:[%s5573_s28 + $0x1948] sm:$0xff] }
 0x1b5   : > { %3517 = vmatpush.msrb.mxu0 %v971_v23  ;;  %3536 = vmatpush.msrb.mxu1 %v988_v24  ;;  %v1086_v23 = vld [vmem:[%s5573_s28 + $0x19d0] sm:$0xff]  ;;  %v1036_v24 = vld [vmem:[%s5573_s28 + $0x1840] sm:$0xff] }
 0x1b6   : > { %3557 = vmatpush.msrb.mxu2 %v1003_v25  ;;  %3576 = vmatpush.msrb.mxu3 %v1020_v26  ;;  %v1053_v25 = vld [vmem:[%s5573_s28 + $0x18c8] sm:$0xff]  ;;  %v1068_v26 = vld [vmem:[%s5573_s28 + $0x1940] sm:$0xff] }
 0x1b7   : > { %3518 = vmatpush.msrb.mxu0 %v970_v27  ;;  %3537 = vmatpush.msrb.mxu1 %v987_v28  ;;  %v1085_v27 = vld [vmem:[%s5573_s28 + $0x19c8] sm:$0xff]  ;;  %v1035_v28 = vld [vmem:[%s5573_s28 + $0x1838] sm:$0xff] }
 0x1b8   : > { %3558 = vmatpush.msrb.mxu2 %v1002_v29  ;;  %3577 = vmatpush.msrb.mxu3 %v1019_v30  ;;  %v1052_v29 = vld [vmem:[%s5573_s28 + $0x18c0] sm:$0xff]  ;;  %v1067_v30 = vld [vmem:[%s5573_s28 + $0x1938] sm:$0xff] }
 0x1b9   : > { %3519 = vmatpush.msrb.mxu0 %v969_v31  ;;  %3538 = vmatpush.msrb.mxu1 %v986_v32  ;;  %v1084_v31 = vld [vmem:[%s5573_s28 + $0x19c0] sm:$0xff]  ;;  %v1034_v32 = vld [vmem:[%s5573_s28 + $0x1830] sm:$0xff] }
 0x1ba   : > { %3559 = vmatpush.msrb.mxu2 %v1001_v33  ;;  %3578 = vmatpush.msrb.mxu3 %v1018_v34  ;;  %v1051_v33 = vld [vmem:[%s5573_s28 + $0x18b8] sm:$0xff]  ;;  %v1066_v34 = vld [vmem:[%s5573_s28 + $0x1930] sm:$0xff] }
 0x1bb   : > { %3520 = vmatpush.msrb.mxu0 %v968_v35  ;;  %3539 = vmatpush.msrb.mxu1 %v985_v36  ;;  %v1083_v35 = vld [vmem:[%s5573_s28 + $0x19b8] sm:$0xff]  ;;  %v1033_v36 = vld [vmem:[%s5573_s28 + $0x1828] sm:$0xff] }
 0x1bc   : > { %3560 = vmatpush.msrb.mxu2 %v1000_v37  ;;  %3579 = vmatpush.msrb.mxu3 %v1017_v38  ;;  %v1050_v37 = vld [vmem:[%s5573_s28 + $0x18b0] sm:$0xff]  ;;  %v1065_v38 = vld [vmem:[%s5573_s28 + $0x1928] sm:$0xff] }
 0x1bd   : > { %3521 = vmatpush.msrb.mxu0 %v967_v39  ;;  %3540 = vmatpush.msrb.mxu1 %v984_v40  ;;  %v1082_v39 = vld [vmem:[%s5573_s28 + $0x19b0] sm:$0xff]  ;;  %v1032_v40 = vld [vmem:[%s5573_s28 + $0x1820] sm:$0xff] }
 0x1be   : > { %3561 = vmatpush.msrb.mxu2 %v999_v41  ;;  %3580 = vmatpush.msrb.mxu3 %v1016_v42  ;;  %v1049_v41 = vld [vmem:[%s5573_s28 + $0x18a8] sm:$0xff]  ;;  %v1064_v42 = vld [vmem:[%s5573_s28 + $0x1920] sm:$0xff] }
 0x1bf   : > { %3522 = vmatpush.msrb.mxu0 %v966_v43  ;;  %3541 = vmatpush.msrb.mxu1 %v983_v44  ;;  %v1081_v43 = vld [vmem:[%s5573_s28 + $0x19a8] sm:$0xff]  ;;  %v1031_v44 = vld [vmem:[%s5573_s28 + $0x1818] sm:$0xff] }
 0x1c0   : > { %3562 = vmatpush.msrb.mxu2 %v998_v45  ;;  %3581 = vmatpush.msrb.mxu3 %v1015_v46  ;;  %v1048_v45 = vld [vmem:[%s5573_s28 + $0x18a0] sm:$0xff]  ;;  %v1063_v46 = vld [vmem:[%s5573_s28 + $0x1918] sm:$0xff] }
 0x1c1   : > { %3523 = vmatpush.msrb.mxu0 %v965_v47  ;;  %3542 = vmatpush.msrb.mxu1 %v982_v48  ;;  %v1080_v47 = vld [vmem:[%s5573_s28 + $0x19a0] sm:$0xff]  ;;  %v1030_v48 = vld [vmem:[%s5573_s28 + $0x1810] sm:$0xff] }
 0x1c2   : > { %3563 = vmatpush.msrb.mxu2 %v997_v50  ;;  %3582 = vmatpush.msrb.mxu3 %v1014_v51  ;;  %v1062_v50 = vld [vmem:[%s5573_s28 + $0x1910] sm:$0xff]  ;;  %v1079_v51 = vld [vmem:[%s5573_s28 + $0x1998] sm:$0xff] }
 0x1c3   : > { %3524 = vmatpush.msrb.mxu0 %v964_v52  ;;  %3543 = vmatpush.msrb.mxu1 %v981_v53  ;;  %v1029_v52 = vld [vmem:[%s5573_s28 + $0x1808] sm:$0xff]  ;;  %v1046_v53 = vld [vmem:[%s5573_s28 + $0x1890] sm:$0xff] }
 0x1c4   : > { %3564 = vmatpush.msrb.mxu2 %v996_v54  ;;  %3583 = vmatpush.msrb.mxu3 %v1013_v55  ;;  %v241_v54 = vld [vmem:[%s5591_s9 + $0x68] sm:$0xff]  ;;  %v1061_v55 = vld [vmem:[%s5573_s28 + $0x1908] sm:$0xff] }
 0x1c5   : > { %3525 = vmatmul.f32.vlgmr.msrb.gmra.mxu0 %v2397_v56  ;;  %3565 = vmatmul.f32.vlgmr.msrb.gmra.mxu2 %v2399_v57  ;;  %v1078_v56 = vld [vmem:[%s5573_s28 + $0x1990] sm:$0xff]  ;;  %2402 = vst [vmem:[#allocation1 + $0x20] ss:$4 sm:$0xff] %v241_v54  ;;  %v1028_v57 = vld [vmem:[%s5573_s28 + $0x1800] sm:$0xff]  ;;  %v1111_v54 = vld [vmem:[%s5573_s28 + $0x1a98] sm:$0xff] }
 0x1c6   : > { %3589 = vmatpush.msra.mxu0 %v1043_v58  ;;  %3629 = vmatpush.msra.mxu2 %v1075_v59  ;;  %v1045_v58 = vld [vmem:[%s5573_s28 + $0x1888] sm:$0xff]  ;;  %v1060_v59 = vld [vmem:[%s5573_s28 + $0x1900] sm:$0xff] }
 0x1c7   : > { %3544 = vmatpush.msrb.mxu1 %v980_v60  ;;  %3584 = vmatpush.msrb.mxu3 %v1012_v61  ;;  %v1077_v60 = vld [vmem:[%s5573_s28 + $0x1988] sm:$0xff]  ;;  %v2403_v61 = vld.sshfl [vmem:[#allocation1] sm:$0xff pattern:$0x73625140] }
 0x1c8   : > { %3545 = vmatmul.f32.vlgmr.msrb.gmra.mxu1 %v2398_v62  ;;  %3585 = vmatmul.f32.vlgmr.msrb.gmra.mxu3 %v2400_v63  ;;  %v2405_v62 = vld.sshfl [vmem:[#allocation1 + $0x10] sm:$0xff pattern:$0x73625140]  ;;  %v1107_v63 = vld [vmem:[%s5573_s28 + $0x1a78] sm:$0xff] }
 0x1c9   : > { %3590 = vmatpush.msra.mxu0 %v1042_v0  ;;  %3609 = vmatpush.msra.mxu1 %v1059_v1  ;;  %v1139_v0 = vld [vmem:[%s5573_s28 + $0x1b78] sm:$0xff]  ;;  %v1044_v1 = vld [vmem:[%s5573_s28 + $0x1880] sm:$0xff] }
 0x1ca   : > { %3630 = vmatpush.msra.mxu2 %v1074_v2  ;;  %3649 = vmatpush.msra.mxu3 %v1091_v3  ;;  %v1076_v2 = vld [vmem:[%s5573_s28 + $0x1980] sm:$0xff] }
 0x1cb   : > { %3591 = vmatpush.msra.mxu0 %v1041_v4  ;;  %3610 = vmatpush.msra.mxu1 %v1058_v5  ;;  %v2404_v3 = vld.sshfl [vmem:[#allocation1 + $0x8] sm:$0xff pattern:$0x73625140]  ;;  %v2406_v4 = vld.sshfl [vmem:[#allocation1 + $0x18] sm:$0xff pattern:$0x73625140] }
 0x1cc   : > { %3631 = vmatpush.msra.mxu2 %v1073_v6  ;;  %3650 = vmatpush.msra.mxu3 %v1090_v7  ;;  %v1106_v5 = vld [vmem:[%s5573_s28 + $0x1a70] sm:$0xff]  ;;  %v1123_v6 = vld [vmem:[%s5573_s28 + $0x1af8] sm:$0xff] }
 0x1cd   : > { %3592 = vmatpush.msra.mxu0 %v1040_v8  ;;  %3611 = vmatpush.msra.mxu1 %v1057_v9  ;;  %v1138_v7 = vld [vmem:[%s5573_s28 + $0x1b70] sm:$0xff]  ;;  %v1155_v8 = vld [vmem:[%s5573_s28 + $0x1bf8] sm:$0xff]  ;;  %v1105_v9 = vld [vmem:[%s5573_s28 + $0x1a68] sm:$0xff] }
 0x1ce   : > { %3632 = vmatpush.msra.mxu2 %v1072_v10  ;;  %3651 = vmatpush.msra.mxu3 %v1089_v11  ;;  %v1122_v10 = vld [vmem:[%s5573_s28 + $0x1af0] sm:$0xff]  ;;  %v1137_v11 = vld [vmem:[%s5573_s28 + $0x1b68] sm:$0xff] }
 0x1cf   : > { %3593 = vmatpush.msra.mxu0 %v1039_v12  ;;  %3612 = vmatpush.msra.mxu1 %v1056_v13  ;;  %v1154_v12 = vld [vmem:[%s5573_s28 + $0x1bf0] sm:$0xff]  ;;  %v1104_v13 = vld [vmem:[%s5573_s28 + $0x1a60] sm:$0xff] }
 0x1d0   : > { %3633 = vmatpush.msra.mxu2 %v1071_v14  ;;  %3652 = vmatpush.msra.mxu3 %v1088_v15  ;;  %v1121_v14 = vld [vmem:[%s5573_s28 + $0x1ae8] sm:$0xff]  ;;  %v1136_v15 = vld [vmem:[%s5573_s28 + $0x1b60] sm:$0xff] }
 0x1d1   : > { %3594 = vmatpush.msra.mxu0 %v1038_v16  ;;  %3613 = vmatpush.msra.mxu1 %v1055_v17  ;;  %v1153_v16 = vld [vmem:[%s5573_s28 + $0x1be8] sm:$0xff]  ;;  %v1103_v17 = vld [vmem:[%s5573_s28 + $0x1a58] sm:$0xff] }
 0x1d2   : > { %3634 = vmatpush.msra.mxu2 %v1070_v18  ;;  %3653 = vmatpush.msra.mxu3 %v1087_v19  ;;  %v1120_v18 = vld [vmem:[%s5573_s28 + $0x1ae0] sm:$0xff]  ;;  %v1135_v19 = vld [vmem:[%s5573_s28 + $0x1b58] sm:$0xff] }
 0x1d3   : > { %3595 = vmatpush.msra.mxu0 %v1037_v20  ;;  %3614 = vmatpush.msra.mxu1 %v1054_v21  ;;  %v1152_v20 = vld [vmem:[%s5573_s28 + $0x1be0] sm:$0xff]  ;;  %v1102_v21 = vld [vmem:[%s5573_s28 + $0x1a50] sm:$0xff] }
 0x1d4   : > { %3635 = vmatpush.msra.mxu2 %v1069_v22  ;;  %3654 = vmatpush.msra.mxu3 %v1086_v23  ;;  %v1119_v22 = vld [vmem:[%s5573_s28 + $0x1ad8] sm:$0xff]  ;;  %v1134_v23 = vld [vmem:[%s5573_s28 + $0x1b50] sm:$0xff] }
 0x1d5   : > { %3596 = vmatpush.msra.mxu0 %v1036_v24  ;;  %3615 = vmatpush.msra.mxu1 %v1053_v25  ;;  %v1151_v24 = vld [vmem:[%s5573_s28 + $0x1bd8] sm:$0xff]  ;;  %v1101_v25 = vld [vmem:[%s5573_s28 + $0x1a48] sm:$0xff] }
 0x1d6   : > { %3636 = vmatpush.msra.mxu2 %v1068_v26  ;;  %3655 = vmatpush.msra.mxu3 %v1085_v27  ;;  %v1118_v26 = vld [vmem:[%s5573_s28 + $0x1ad0] sm:$0xff]  ;;  %v1133_v27 = vld [vmem:[%s5573_s28 + $0x1b48] sm:$0xff] }
 0x1d7   : > { %3597 = vmatpush.msra.mxu0 %v1035_v28  ;;  %3616 = vmatpush.msra.mxu1 %v1052_v29  ;;  %v1150_v28 = vld [vmem:[%s5573_s28 + $0x1bd0] sm:$0xff]  ;;  %v1100_v29 = vld [vmem:[%s5573_s28 + $0x1a40] sm:$0xff] }
 0x1d8   : > { %3637 = vmatpush.msra.mxu2 %v1067_v30  ;;  %3656 = vmatpush.msra.mxu3 %v1084_v31  ;;  %v1117_v30 = vld [vmem:[%s5573_s28 + $0x1ac8] sm:$0xff]  ;;  %v1132_v31 = vld [vmem:[%s5573_s28 + $0x1b40] sm:$0xff] }
 0x1d9   : > { %3598 = vmatpush.msra.mxu0 %v1034_v32  ;;  %3617 = vmatpush.msra.mxu1 %v1051_v33  ;;  %v1149_v32 = vld [vmem:[%s5573_s28 + $0x1bc8] sm:$0xff]  ;;  %v1099_v33 = vld [vmem:[%s5573_s28 + $0x1a38] sm:$0xff] }
 0x1da   : > { %3638 = vmatpush.msra.mxu2 %v1066_v34  ;;  %3657 = vmatpush.msra.mxu3 %v1083_v35  ;;  %v1116_v34 = vld [vmem:[%s5573_s28 + $0x1ac0] sm:$0xff]  ;;  %v1131_v35 = vld [vmem:[%s5573_s28 + $0x1b38] sm:$0xff] }
 0x1db   : > { %3599 = vmatpush.msra.mxu0 %v1033_v36  ;;  %3618 = vmatpush.msra.mxu1 %v1050_v37  ;;  %v1148_v36 = vld [vmem:[%s5573_s28 + $0x1bc0] sm:$0xff]  ;;  %v1098_v37 = vld [vmem:[%s5573_s28 + $0x1a30] sm:$0xff] }
 0x1dc   : > { %3639 = vmatpush.msra.mxu2 %v1065_v38  ;;  %3658 = vmatpush.msra.mxu3 %v1082_v39  ;;  %v1115_v38 = vld [vmem:[%s5573_s28 + $0x1ab8] sm:$0xff]  ;;  %v1130_v39 = vld [vmem:[%s5573_s28 + $0x1b30] sm:$0xff] }
 0x1dd   : > { %3600 = vmatpush.msra.mxu0 %v1032_v40  ;;  %3619 = vmatpush.msra.mxu1 %v1049_v41  ;;  %v1147_v40 = vld [vmem:[%s5573_s28 + $0x1bb8] sm:$0xff]  ;;  %v1097_v41 = vld [vmem:[%s5573_s28 + $0x1a28] sm:$0xff] }
 0x1de   : > { %3640 = vmatpush.msra.mxu2 %v1064_v42  ;;  %3659 = vmatpush.msra.mxu3 %v1081_v43  ;;  %v1114_v42 = vld [vmem:[%s5573_s28 + $0x1ab0] sm:$0xff]  ;;  %v1129_v43 = vld [vmem:[%s5573_s28 + $0x1b28] sm:$0xff] }
 0x1df   : > { %3601 = vmatpush.msra.mxu0 %v1031_v44  ;;  %3620 = vmatpush.msra.mxu1 %v1048_v45  ;;  %v1146_v44 = vld [vmem:[%s5573_s28 + $0x1bb0] sm:$0xff]  ;;  %v1096_v45 = vld [vmem:[%s5573_s28 + $0x1a20] sm:$0xff] }
 0x1e0   : > { %3641 = vmatpush.msra.mxu2 %v1063_v46  ;;  %3660 = vmatpush.msra.mxu3 %v1080_v47  ;;  %v1113_v46 = vld [vmem:[%s5573_s28 + $0x1aa8] sm:$0xff]  ;;  %v1128_v47 = vld [vmem:[%s5573_s28 + $0x1b20] sm:$0xff] }
 0x1e1   : > { %3602 = vmatpush.msra.mxu0 %v1030_v48  ;;  %3621 = vmatpush.msra.mxu1 %v1047_v49  ;;  %v1145_v48 = vld [vmem:[%s5573_s28 + $0x1ba8] sm:$0xff]  ;;  %v1095_v49 = vld [vmem:[%s5573_s28 + $0x1a18] sm:$0xff] }
 0x1e2   : > { %3642 = vmatpush.msra.mxu2 %v1062_v50  ;;  %3661 = vmatpush.msra.mxu3 %v1079_v51  ;;  %v1112_v50 = vld [vmem:[%s5573_s28 + $0x1aa0] sm:$0xff]  ;;  %v1127_v51 = vld [vmem:[%s5573_s28 + $0x1b18] sm:$0xff] }
 0x1e3   : > { %3603 = vmatpush.msra.mxu0 %v1029_v52  ;;  %3622 = vmatpush.msra.mxu1 %v1046_v53  ;;  %v1144_v52 = vld [vmem:[%s5573_s28 + $0x1ba0] sm:$0xff]  ;;  %v1094_v53 = vld [vmem:[%s5573_s28 + $0x1a10] sm:$0xff] }
 0x1e4   : > { %3643 = vmatpush.msra.mxu2 %v1061_v55  ;;  %3662 = vmatpush.msra.mxu3 %v1078_v56  ;;  %v1126_v55 = vld [vmem:[%s5573_s28 + $0x1b10] sm:$0xff]  ;;  %v1143_v56 = vld [vmem:[%s5573_s28 + $0x1b98] sm:$0xff] }
 0x1e5   : > { %3604 = vmatpush.msra.mxu0 %v1028_v57  ;;  %3623 = vmatpush.msra.mxu1 %v1045_v58  ;;  %v1093_v57 = vld [vmem:[%s5573_s28 + $0x1a08] sm:$0xff]  ;;  %v1110_v58 = vld [vmem:[%s5573_s28 + $0x1a90] sm:$0xff] }
 0x1e6   : > { %3644 = vmatpush.msra.mxu2 %v1060_v59  ;;  %3663 = vmatpush.msra.mxu3 %v1077_v60  ;;  %v242_v59 = vld [vmem:[%s5591_s9 + $0x70] sm:$0xff] }
 0x1e7   : > { %3605 = vmatmul.f32.vlgmr.msra.gmra.mxu0 %v2403_v61  ;;  %3645 = vmatmul.f32.vlgmr.msra.gmra.mxu2 %v2405_v62  ;;  %v1125_v60 = vld [vmem:[%s5573_s28 + $0x1b08] sm:$0xff]  ;;  %v1142_v61 = vld [vmem:[%s5573_s28 + $0x1b90] sm:$0xff]  ;;  %2411 = vst [vmem:[#allocation1] ss:$4 sm:$0xff] %v242_v59  ;;  %v1092_v62 = vld [vmem:[%s5573_s28 + $0x1a00] sm:$0xff] }
 0x1e8   : > { %3669 = vmatpush.msrb.mxu0 %v1107_v63  ;;  %3709 = vmatpush.msrb.mxu2 %v1139_v0  ;;  %v1109_v63 = vld [vmem:[%s5573_s28 + $0x1a88] sm:$0xff]  ;;  %v1124_v0 = vld [vmem:[%s5573_s28 + $0x1b00] sm:$0xff]  ;;  %v1175_v59 = vld [vmem:[%s5573_s28 + $0x1c98] sm:$0xff] }
 0x1e9   : > { %3624 = vmatpush.msra.mxu1 %v1044_v1  ;;  %3664 = vmatpush.msra.mxu3 %v1076_v2  ;;  %v1141_v1 = vld [vmem:[%s5573_s28 + $0x1b88] sm:$0xff]  ;;  %v2407_v2 = vld.sshfl [vmem:[#allocation1 + $0x20] sm:$0xff pattern:$0x73625140] }
 0x1ea   : > { %3625 = vmatmul.f32.vlgmr.msra.gmra.mxu1 %v2404_v3  ;;  %3665 = vmatmul.f32.vlgmr.msra.gmra.mxu3 %v2406_v4  ;;  %v2409_v3 = vld.sshfl [vmem:[#allocation1 + $0x30] sm:$0xff pattern:$0x73625140]  ;;  %v1171_v4 = vld [vmem:[%s5573_s28 + $0x1c78] sm:$0xff] }
 0x1eb   : > { %3670 = vmatpush.msrb.mxu0 %v1106_v5  ;;  %3689 = vmatpush.msrb.mxu1 %v1123_v6  ;;  %v1203_v5 = vld [vmem:[%s5573_s28 + $0x1d78] sm:$0xff]  ;;  %v1108_v6 = vld [vmem:[%s5573_s28 + $0x1a80] sm:$0xff] }
 0x1ec   : > { %3710 = vmatpush.msrb.mxu2 %v1138_v7  ;;  %3729 = vmatpush.msrb.mxu3 %v1155_v8  ;;  %v1140_v7 = vld [vmem:[%s5573_s28 + $0x1b80] sm:$0xff] }
 0x1ed   : > { %3671 = vmatpush.msrb.mxu0 %v1105_v9  ;;  %3690 = vmatpush.msrb.mxu1 %v1122_v10  ;;  %v2408_v8 = vld.sshfl [vmem:[#allocation1 + $0x28] sm:$0xff pattern:$0x73625140]  ;;  %v2410_v9 = vld.sshfl [vmem:[#allocation1 + $0x38] sm:$0xff pattern:$0x73625140] }
 0x1ee   : > { %3711 = vmatpush.msrb.mxu2 %v1137_v11  ;;  %3730 = vmatpush.msrb.mxu3 %v1154_v12  ;;  %v1170_v10 = vld [vmem:[%s5573_s28 + $0x1c70] sm:$0xff]  ;;  %v1187_v11 = vld [vmem:[%s5573_s28 + $0x1cf8] sm:$0xff] }
 0x1ef   : > { %3672 = vmatpush.msrb.mxu0 %v1104_v13  ;;  %3691 = vmatpush.msrb.mxu1 %v1121_v14  ;;  %v1202_v12 = vld [vmem:[%s5573_s28 + $0x1d70] sm:$0xff]  ;;  %v1219_v13 = vld [vmem:[%s5573_s28 + $0x1df8] sm:$0xff]  ;;  %v1169_v14 = vld [vmem:[%s5573_s28 + $0x1c68] sm:$0xff] }
 0x1f0   : > { %3712 = vmatpush.msrb.mxu2 %v1136_v15  ;;  %3731 = vmatpush.msrb.mxu3 %v1153_v16  ;;  %v1186_v15 = vld [vmem:[%s5573_s28 + $0x1cf0] sm:$0xff]  ;;  %v1201_v16 = vld [vmem:[%s5573_s28 + $0x1d68] sm:$0xff] }
 0x1f1   : > { %3673 = vmatpush.msrb.mxu0 %v1103_v17  ;;  %3692 = vmatpush.msrb.mxu1 %v1120_v18  ;;  %v1218_v17 = vld [vmem:[%s5573_s28 + $0x1df0] sm:$0xff]  ;;  %v1168_v18 = vld [vmem:[%s5573_s28 + $0x1c60] sm:$0xff] }
 0x1f2   : > { %3713 = vmatpush.msrb.mxu2 %v1135_v19  ;;  %3732 = vmatpush.msrb.mxu3 %v1152_v20  ;;  %v1185_v19 = vld [vmem:[%s5573_s28 + $0x1ce8] sm:$0xff]  ;;  %v1200_v20 = vld [vmem:[%s5573_s28 + $0x1d60] sm:$0xff] }
 0x1f3   : > { %3674 = vmatpush.msrb.mxu0 %v1102_v21  ;;  %3693 = vmatpush.msrb.mxu1 %v1119_v22  ;;  %v1217_v21 = vld [vmem:[%s5573_s28 + $0x1de8] sm:$0xff]  ;;  %v1167_v22 = vld [vmem:[%s5573_s28 + $0x1c58] sm:$0xff] }
 0x1f4   : > { %3714 = vmatpush.msrb.mxu2 %v1134_v23  ;;  %3733 = vmatpush.msrb.mxu3 %v1151_v24  ;;  %v1184_v23 = vld [vmem:[%s5573_s28 + $0x1ce0] sm:$0xff]  ;;  %v1199_v24 = vld [vmem:[%s5573_s28 + $0x1d58] sm:$0xff] }
 0x1f5   : > { %3675 = vmatpush.msrb.mxu0 %v1101_v25  ;;  %3694 = vmatpush.msrb.mxu1 %v1118_v26  ;;  %v1216_v25 = vld [vmem:[%s5573_s28 + $0x1de0] sm:$0xff]  ;;  %v1166_v26 = vld [vmem:[%s5573_s28 + $0x1c50] sm:$0xff] }
 0x1f6   : > { %3715 = vmatpush.msrb.mxu2 %v1133_v27  ;;  %3734 = vmatpush.msrb.mxu3 %v1150_v28  ;;  %v1183_v27 = vld [vmem:[%s5573_s28 + $0x1cd8] sm:$0xff]  ;;  %v1198_v28 = vld [vmem:[%s5573_s28 + $0x1d50] sm:$0xff] }
 0x1f7   : > { %3676 = vmatpush.msrb.mxu0 %v1100_v29  ;;  %3695 = vmatpush.msrb.mxu1 %v1117_v30  ;;  %v1215_v29 = vld [vmem:[%s5573_s28 + $0x1dd8] sm:$0xff]  ;;  %v1165_v30 = vld [vmem:[%s5573_s28 + $0x1c48] sm:$0xff] }
 0x1f8   : > { %3716 = vmatpush.msrb.mxu2 %v1132_v31  ;;  %3735 = vmatpush.msrb.mxu3 %v1149_v32  ;;  %v1182_v31 = vld [vmem:[%s5573_s28 + $0x1cd0] sm:$0xff]  ;;  %v1197_v32 = vld [vmem:[%s5573_s28 + $0x1d48] sm:$0xff] }
 0x1f9   : > { %3677 = vmatpush.msrb.mxu0 %v1099_v33  ;;  %3696 = vmatpush.msrb.mxu1 %v1116_v34  ;;  %v1214_v33 = vld [vmem:[%s5573_s28 + $0x1dd0] sm:$0xff]  ;;  %v1164_v34 = vld [vmem:[%s5573_s28 + $0x1c40] sm:$0xff] }
 0x1fa   : > { %3717 = vmatpush.msrb.mxu2 %v1131_v35  ;;  %3736 = vmatpush.msrb.mxu3 %v1148_v36  ;;  %v1181_v35 = vld [vmem:[%s5573_s28 + $0x1cc8] sm:$0xff]  ;;  %v1196_v36 = vld [vmem:[%s5573_s28 + $0x1d40] sm:$0xff] }
 0x1fb   : > { %3678 = vmatpush.msrb.mxu0 %v1098_v37  ;;  %3697 = vmatpush.msrb.mxu1 %v1115_v38  ;;  %v1213_v37 = vld [vmem:[%s5573_s28 + $0x1dc8] sm:$0xff]  ;;  %v1163_v38 = vld [vmem:[%s5573_s28 + $0x1c38] sm:$0xff] }
 0x1fc   : > { %3718 = vmatpush.msrb.mxu2 %v1130_v39  ;;  %3737 = vmatpush.msrb.mxu3 %v1147_v40  ;;  %v1180_v39 = vld [vmem:[%s5573_s28 + $0x1cc0] sm:$0xff]  ;;  %v1195_v40 = vld [vmem:[%s5573_s28 + $0x1d38] sm:$0xff] }
 0x1fd   : > { %3679 = vmatpush.msrb.mxu0 %v1097_v41  ;;  %3698 = vmatpush.msrb.mxu1 %v1114_v42  ;;  %v1212_v41 = vld [vmem:[%s5573_s28 + $0x1dc0] sm:$0xff]  ;;  %v1162_v42 = vld [vmem:[%s5573_s28 + $0x1c30] sm:$0xff] }
 0x1fe   : > { %3719 = vmatpush.msrb.mxu2 %v1129_v43  ;;  %3738 = vmatpush.msrb.mxu3 %v1146_v44  ;;  %v1179_v43 = vld [vmem:[%s5573_s28 + $0x1cb8] sm:$0xff]  ;;  %v1194_v44 = vld [vmem:[%s5573_s28 + $0x1d30] sm:$0xff] }
 0x1ff   : > { %3680 = vmatpush.msrb.mxu0 %v1096_v45  ;;  %3699 = vmatpush.msrb.mxu1 %v1113_v46  ;;  %v1211_v45 = vld [vmem:[%s5573_s28 + $0x1db8] sm:$0xff]  ;;  %v1161_v46 = vld [vmem:[%s5573_s28 + $0x1c28] sm:$0xff] }
 0x200   : > { %3720 = vmatpush.msrb.mxu2 %v1128_v47  ;;  %3739 = vmatpush.msrb.mxu3 %v1145_v48  ;;  %v1178_v47 = vld [vmem:[%s5573_s28 + $0x1cb0] sm:$0xff]  ;;  %v1193_v48 = vld [vmem:[%s5573_s28 + $0x1d28] sm:$0xff] }
 0x201   : > { %3681 = vmatpush.msrb.mxu0 %v1095_v49  ;;  %3700 = vmatpush.msrb.mxu1 %v1112_v50  ;;  %v1210_v49 = vld [vmem:[%s5573_s28 + $0x1db0] sm:$0xff]  ;;  %v1160_v50 = vld [vmem:[%s5573_s28 + $0x1c20] sm:$0xff] }
 0x202   : > { %3721 = vmatpush.msrb.mxu2 %v1127_v51  ;;  %3740 = vmatpush.msrb.mxu3 %v1144_v52  ;;  %v1177_v51 = vld [vmem:[%s5573_s28 + $0x1ca8] sm:$0xff]  ;;  %v1192_v52 = vld [vmem:[%s5573_s28 + $0x1d20] sm:$0xff] }
 0x203   : > { %3682 = vmatpush.msrb.mxu0 %v1094_v53  ;;  %3701 = vmatpush.msrb.mxu1 %v1111_v54  ;;  %v1209_v53 = vld [vmem:[%s5573_s28 + $0x1da8] sm:$0xff]  ;;  %v1159_v54 = vld [vmem:[%s5573_s28 + $0x1c18] sm:$0xff] }
 0x204   : > { %3722 = vmatpush.msrb.mxu2 %v1126_v55  ;;  %3741 = vmatpush.msrb.mxu3 %v1143_v56  ;;  %v1176_v55 = vld [vmem:[%s5573_s28 + $0x1ca0] sm:$0xff]  ;;  %v1191_v56 = vld [vmem:[%s5573_s28 + $0x1d18] sm:$0xff] }
 0x205   : > { %3683 = vmatpush.msrb.mxu0 %v1093_v57  ;;  %3702 = vmatpush.msrb.mxu1 %v1110_v58  ;;  %v1208_v57 = vld [vmem:[%s5573_s28 + $0x1da0] sm:$0xff]  ;;  %v1158_v58 = vld [vmem:[%s5573_s28 + $0x1c10] sm:$0xff] }
 0x206   : > { %3723 = vmatpush.msrb.mxu2 %v1125_v60  ;;  %3742 = vmatpush.msrb.mxu3 %v1142_v61  ;;  %v1190_v60 = vld [vmem:[%s5573_s28 + $0x1d10] sm:$0xff]  ;;  %v1207_v61 = vld [vmem:[%s5573_s28 + $0x1d98] sm:$0xff] }
 0x207   : > { %3684 = vmatpush.msrb.mxu0 %v1092_v62  ;;  %3703 = vmatpush.msrb.mxu1 %v1109_v63  ;;  %v1157_v62 = vld [vmem:[%s5573_s28 + $0x1c08] sm:$0xff]  ;;  %v1174_v63 = vld [vmem:[%s5573_s28 + $0x1c90] sm:$0xff] }
 0x208   : > { %3724 = vmatpush.msrb.mxu2 %v1124_v0  ;;  %3743 = vmatpush.msrb.mxu3 %v1141_v1  ;;  %v243_v0 = vld [vmem:[%s5591_s9 + $0x78] sm:$0xff] }
 0x209   : > { %3685 = vmatmul.f32.vlgmr.msrb.gmra.mxu0 %v2407_v2  ;;  %3725 = vmatmul.f32.vlgmr.msrb.gmra.mxu2 %v2409_v3  ;;  %v1189_v1 = vld [vmem:[%s5573_s28 + $0x1d08] sm:$0xff]  ;;  %v1206_v2 = vld [vmem:[%s5573_s28 + $0x1d90] sm:$0xff]  ;;  %2412 = vst [vmem:[#allocation1 + $0x20] ss:$4 sm:$0xff] %v243_v0  ;;  %v1156_v3 = vld [vmem:[%s5573_s28 + $0x1c00] sm:$0xff] }
 0x20a   : > { %3749 = vmatpush.msra.mxu0 %v1171_v4  ;;  %3789 = vmatpush.msra.mxu2 %v1203_v5  ;;  %v1173_v4 = vld [vmem:[%s5573_s28 + $0x1c88] sm:$0xff]  ;;  %v1188_v5 = vld [vmem:[%s5573_s28 + $0x1d00] sm:$0xff]  ;;  %v1239_v0 = vld [vmem:[%s5573_s28 + $0x1e98] sm:$0xff] }
 0x20b   : > { %3704 = vmatpush.msrb.mxu1 %v1108_v6  ;;  %3744 = vmatpush.msrb.mxu3 %v1140_v7  ;;  %v1205_v6 = vld [vmem:[%s5573_s28 + $0x1d88] sm:$0xff]  ;;  %v2413_v7 = vld.sshfl [vmem:[#allocation1] sm:$0xff pattern:$0x73625140] }
 0x20c   : > { %3705 = vmatmul.f32.vlgmr.msrb.gmra.mxu1 %v2408_v8  ;;  %3745 = vmatmul.f32.vlgmr.msrb.gmra.mxu3 %v2410_v9  ;;  %v2415_v8 = vld.sshfl [vmem:[#allocation1 + $0x10] sm:$0xff pattern:$0x73625140]  ;;  %v1235_v9 = vld [vmem:[%s5573_s28 + $0x1e78] sm:$0xff] }
 0x20d   : > { %3750 = vmatpush.msra.mxu0 %v1170_v10  ;;  %3769 = vmatpush.msra.mxu1 %v1187_v11  ;;  %v1267_v10 = vld [vmem:[%s5573_s28 + $0x1f78] sm:$0xff]  ;;  %v1172_v11 = vld [vmem:[%s5573_s28 + $0x1c80] sm:$0xff] }
 0x20e   : > { %3790 = vmatpush.msra.mxu2 %v1202_v12  ;;  %3809 = vmatpush.msra.mxu3 %v1219_v13  ;;  %v1204_v12 = vld [vmem:[%s5573_s28 + $0x1d80] sm:$0xff] }
 0x20f   : > { %3751 = vmatpush.msra.mxu0 %v1169_v14  ;;  %3770 = vmatpush.msra.mxu1 %v1186_v15  ;;  %v2414_v13 = vld.sshfl [vmem:[#allocation1 + $0x8] sm:$0xff pattern:$0x73625140]  ;;  %v2416_v14 = vld.sshfl [vmem:[#allocation1 + $0x18] sm:$0xff pattern:$0x73625140] }
 0x210   : > { %3791 = vmatpush.msra.mxu2 %v1201_v16  ;;  %3810 = vmatpush.msra.mxu3 %v1218_v17  ;;  %v1234_v15 = vld [vmem:[%s5573_s28 + $0x1e70] sm:$0xff]  ;;  %v1251_v16 = vld [vmem:[%s5573_s28 + $0x1ef8] sm:$0xff] }
 0x211   : > { %3752 = vmatpush.msra.mxu0 %v1168_v18  ;;  %3771 = vmatpush.msra.mxu1 %v1185_v19  ;;  %v1266_v17 = vld [vmem:[%s5573_s28 + $0x1f70] sm:$0xff]  ;;  %v1283_v18 = vld [vmem:[%s5573_s28 + $0x1ff8] sm:$0xff]  ;;  %v1233_v19 = vld [vmem:[%s5573_s28 + $0x1e68] sm:$0xff] }
 0x212   : > { %3792 = vmatpush.msra.mxu2 %v1200_v20  ;;  %3811 = vmatpush.msra.mxu3 %v1217_v21  ;;  %v1250_v20 = vld [vmem:[%s5573_s28 + $0x1ef0] sm:$0xff]  ;;  %v1265_v21 = vld [vmem:[%s5573_s28 + $0x1f68] sm:$0xff] }
 0x213   : > { %3753 = vmatpush.msra.mxu0 %v1167_v22  ;;  %3772 = vmatpush.msra.mxu1 %v1184_v23  ;;  %v1282_v22 = vld [vmem:[%s5573_s28 + $0x1ff0] sm:$0xff]  ;;  %v1232_v23 = vld [vmem:[%s5573_s28 + $0x1e60] sm:$0xff] }
 0x214   : > { %3793 = vmatpush.msra.mxu2 %v1199_v24  ;;  %3812 = vmatpush.msra.mxu3 %v1216_v25  ;;  %v1249_v24 = vld [vmem:[%s5573_s28 + $0x1ee8] sm:$0xff]  ;;  %v1264_v25 = vld [vmem:[%s5573_s28 + $0x1f60] sm:$0xff] }
 0x215   : > { %3754 = vmatpush.msra.mxu0 %v1166_v26  ;;  %3773 = vmatpush.msra.mxu1 %v1183_v27  ;;  %v1281_v26 = vld [vmem:[%s5573_s28 + $0x1fe8] sm:$0xff]  ;;  %v1231_v27 = vld [vmem:[%s5573_s28 + $0x1e58] sm:$0xff] }
 0x216   : > { %3794 = vmatpush.msra.mxu2 %v1198_v28  ;;  %3813 = vmatpush.msra.mxu3 %v1215_v29  ;;  %v1248_v28 = vld [vmem:[%s5573_s28 + $0x1ee0] sm:$0xff]  ;;  %v1263_v29 = vld [vmem:[%s5573_s28 + $0x1f58] sm:$0xff] }
 0x217   : > { %3755 = vmatpush.msra.mxu0 %v1165_v30  ;;  %3774 = vmatpush.msra.mxu1 %v1182_v31  ;;  %v1280_v30 = vld [vmem:[%s5573_s28 + $0x1fe0] sm:$0xff]  ;;  %v1230_v31 = vld [vmem:[%s5573_s28 + $0x1e50] sm:$0xff] }
 0x218   : > { %3795 = vmatpush.msra.mxu2 %v1197_v32  ;;  %3814 = vmatpush.msra.mxu3 %v1214_v33  ;;  %v1247_v32 = vld [vmem:[%s5573_s28 + $0x1ed8] sm:$0xff]  ;;  %v1262_v33 = vld [vmem:[%s5573_s28 + $0x1f50] sm:$0xff] }
 0x219   : > { %3756 = vmatpush.msra.mxu0 %v1164_v34  ;;  %3775 = vmatpush.msra.mxu1 %v1181_v35  ;;  %v1279_v34 = vld [vmem:[%s5573_s28 + $0x1fd8] sm:$0xff]  ;;  %v1229_v35 = vld [vmem:[%s5573_s28 + $0x1e48] sm:$0xff] }
 0x21a   : > { %3796 = vmatpush.msra.mxu2 %v1196_v36  ;;  %3815 = vmatpush.msra.mxu3 %v1213_v37  ;;  %v1246_v36 = vld [vmem:[%s5573_s28 + $0x1ed0] sm:$0xff]  ;;  %v1261_v37 = vld [vmem:[%s5573_s28 + $0x1f48] sm:$0xff] }
 0x21b   : > { %3757 = vmatpush.msra.mxu0 %v1163_v38  ;;  %3776 = vmatpush.msra.mxu1 %v1180_v39  ;;  %v1278_v38 = vld [vmem:[%s5573_s28 + $0x1fd0] sm:$0xff]  ;;  %v1228_v39 = vld [vmem:[%s5573_s28 + $0x1e40] sm:$0xff] }
 0x21c   : > { %3797 = vmatpush.msra.mxu2 %v1195_v40  ;;  %3816 = vmatpush.msra.mxu3 %v1212_v41  ;;  %v1245_v40 = vld [vmem:[%s5573_s28 + $0x1ec8] sm:$0xff]  ;;  %v1260_v41 = vld [vmem:[%s5573_s28 + $0x1f40] sm:$0xff] }
 0x21d   : > { %3758 = vmatpush.msra.mxu0 %v1162_v42  ;;  %3777 = vmatpush.msra.mxu1 %v1179_v43  ;;  %v1277_v42 = vld [vmem:[%s5573_s28 + $0x1fc8] sm:$0xff]  ;;  %v1227_v43 = vld [vmem:[%s5573_s28 + $0x1e38] sm:$0xff] }
 0x21e   : > { %3798 = vmatpush.msra.mxu2 %v1194_v44  ;;  %3817 = vmatpush.msra.mxu3 %v1211_v45  ;;  %v1244_v44 = vld [vmem:[%s5573_s28 + $0x1ec0] sm:$0xff]  ;;  %v1259_v45 = vld [vmem:[%s5573_s28 + $0x1f38] sm:$0xff] }
 0x21f   : > { %3759 = vmatpush.msra.mxu0 %v1161_v46  ;;  %3778 = vmatpush.msra.mxu1 %v1178_v47  ;;  %v1276_v46 = vld [vmem:[%s5573_s28 + $0x1fc0] sm:$0xff]  ;;  %v1226_v47 = vld [vmem:[%s5573_s28 + $0x1e30] sm:$0xff] }
 0x220   : > { %3799 = vmatpush.msra.mxu2 %v1193_v48  ;;  %3818 = vmatpush.msra.mxu3 %v1210_v49  ;;  %v1243_v48 = vld [vmem:[%s5573_s28 + $0x1eb8] sm:$0xff]  ;;  %v1258_v49 = vld [vmem:[%s5573_s28 + $0x1f30] sm:$0xff] }
 0x221   : > { %3760 = vmatpush.msra.mxu0 %v1160_v50  ;;  %3779 = vmatpush.msra.mxu1 %v1177_v51  ;;  %v1275_v50 = vld [vmem:[%s5573_s28 + $0x1fb8] sm:$0xff]  ;;  %v1225_v51 = vld [vmem:[%s5573_s28 + $0x1e28] sm:$0xff] }
 0x222   : > { %3800 = vmatpush.msra.mxu2 %v1192_v52  ;;  %3819 = vmatpush.msra.mxu3 %v1209_v53  ;;  %v1242_v52 = vld [vmem:[%s5573_s28 + $0x1eb0] sm:$0xff]  ;;  %v1257_v53 = vld [vmem:[%s5573_s28 + $0x1f28] sm:$0xff] }
 0x223   : > { %3761 = vmatpush.msra.mxu0 %v1159_v54  ;;  %3780 = vmatpush.msra.mxu1 %v1176_v55  ;;  %v1274_v54 = vld [vmem:[%s5573_s28 + $0x1fb0] sm:$0xff]  ;;  %v1224_v55 = vld [vmem:[%s5573_s28 + $0x1e20] sm:$0xff] }
 0x224   : > { %3801 = vmatpush.msra.mxu2 %v1191_v56  ;;  %3820 = vmatpush.msra.mxu3 %v1208_v57  ;;  %v1241_v56 = vld [vmem:[%s5573_s28 + $0x1ea8] sm:$0xff]  ;;  %v1256_v57 = vld [vmem:[%s5573_s28 + $0x1f20] sm:$0xff] }
 0x225   : > { %3762 = vmatpush.msra.mxu0 %v1158_v58  ;;  %3781 = vmatpush.msra.mxu1 %v1175_v59  ;;  %v1273_v58 = vld [vmem:[%s5573_s28 + $0x1fa8] sm:$0xff]  ;;  %v1223_v59 = vld [vmem:[%s5573_s28 + $0x1e18] sm:$0xff] }
 0x226   : > { %3802 = vmatpush.msra.mxu2 %v1190_v60  ;;  %3821 = vmatpush.msra.mxu3 %v1207_v61  ;;  %v1240_v60 = vld [vmem:[%s5573_s28 + $0x1ea0] sm:$0xff]  ;;  %v1255_v61 = vld [vmem:[%s5573_s28 + $0x1f18] sm:$0xff] }
 0x227   : > { %3763 = vmatpush.msra.mxu0 %v1157_v62  ;;  %3782 = vmatpush.msra.mxu1 %v1174_v63  ;;  %v1272_v62 = vld [vmem:[%s5573_s28 + $0x1fa0] sm:$0xff]  ;;  %v1222_v63 = vld [vmem:[%s5573_s28 + $0x1e10] sm:$0xff] }
 0x228   : > { %3803 = vmatpush.msra.mxu2 %v1189_v1  ;;  %3822 = vmatpush.msra.mxu3 %v1206_v2  ;;  %v1254_v1 = vld [vmem:[%s5573_s28 + $0x1f10] sm:$0xff]  ;;  %v1271_v2 = vld [vmem:[%s5573_s28 + $0x1f98] sm:$0xff] }
 0x229   : > { %3764 = vmatpush.msra.mxu0 %v1156_v3  ;;  %3783 = vmatpush.msra.mxu1 %v1173_v4  ;;  %v1221_v3 = vld [vmem:[%s5573_s28 + $0x1e08] sm:$0xff]  ;;  %v1238_v4 = vld [vmem:[%s5573_s28 + $0x1e90] sm:$0xff] }
 0x22a   : > { %3804 = vmatpush.msra.mxu2 %v1188_v5  ;;  %3823 = vmatpush.msra.mxu3 %v1205_v6  ;;  %v244_v5 = vld [vmem:[%s5591_s9 + $0x80] sm:$0xff]  ;;  %v1253_v6 = vld [vmem:[%s5573_s28 + $0x1f08] sm:$0xff] }
 0x22b   : > { %3765 = vmatmul.f32.vlgmr.msra.gmra.mxu0 %v2413_v7  ;;  %3805 = vmatmul.f32.vlgmr.msra.gmra.mxu2 %v2415_v8  ;;  %v1270_v7 = vld [vmem:[%s5573_s28 + $0x1f90] sm:$0xff]  ;;  %2421 = vst [vmem:[#allocation1] ss:$4 sm:$0xff] %v244_v5  ;;  %v1220_v8 = vld [vmem:[%s5573_s28 + $0x1e00] sm:$0xff]  ;;  %v1303_v5 = vld [vmem:[%s5573_s28 + $0x2098] sm:$0xff] }
 0x22c   : > { %3829 = vmatpush.msrb.mxu0 %v1235_v9  ;;  %3869 = vmatpush.msrb.mxu2 %v1267_v10  ;;  %v1237_v9 = vld [vmem:[%s5573_s28 + $0x1e88] sm:$0xff]  ;;  %v1252_v10 = vld [vmem:[%s5573_s28 + $0x1f00] sm:$0xff] }
 0x22d   : > { %3784 = vmatpush.msra.mxu1 %v1172_v11  ;;  %3824 = vmatpush.msra.mxu3 %v1204_v12  ;;  %v1269_v11 = vld [vmem:[%s5573_s28 + $0x1f88] sm:$0xff]  ;;  %v2417_v12 = vld.sshfl [vmem:[#allocation1 + $0x20] sm:$0xff pattern:$0x73625140] }
 0x22e   : > { %3785 = vmatmul.f32.vlgmr.msra.gmra.mxu1 %v2414_v13  ;;  %3825 = vmatmul.f32.vlgmr.msra.gmra.mxu3 %v2416_v14  ;;  %v2419_v13 = vld.sshfl [vmem:[#allocation1 + $0x30] sm:$0xff pattern:$0x73625140]  ;;  %v1299_v14 = vld [vmem:[%s5573_s28 + $0x2078] sm:$0xff] }
 0x22f   : > { %3830 = vmatpush.msrb.mxu0 %v1234_v15  ;;  %3849 = vmatpush.msrb.mxu1 %v1251_v16  ;;  %v1331_v15 = vld [vmem:[%s5573_s28 + $0x2178] sm:$0xff]  ;;  %v1236_v16 = vld [vmem:[%s5573_s28 + $0x1e80] sm:$0xff] }
 0x230   : > { %3870 = vmatpush.msrb.mxu2 %v1266_v17  ;;  %3889 = vmatpush.msrb.mxu3 %v1283_v18  ;;  %v1268_v17 = vld [vmem:[%s5573_s28 + $0x1f80] sm:$0xff] }
 0x231   : > { %3831 = vmatpush.msrb.mxu0 %v1233_v19  ;;  %3850 = vmatpush.msrb.mxu1 %v1250_v20  ;;  %v2418_v18 = vld.sshfl [vmem:[#allocation1 + $0x28] sm:$0xff pattern:$0x73625140]  ;;  %v2420_v19 = vld.sshfl [vmem:[#allocation1 + $0x38] sm:$0xff pattern:$0x73625140] }
 0x232   : > { %3871 = vmatpush.msrb.mxu2 %v1265_v21  ;;  %3890 = vmatpush.msrb.mxu3 %v1282_v22  ;;  %v1298_v20 = vld [vmem:[%s5573_s28 + $0x2070] sm:$0xff]  ;;  %v1315_v21 = vld [vmem:[%s5573_s28 + $0x20f8] sm:$0xff] }
 0x233   : > { %3832 = vmatpush.msrb.mxu0 %v1232_v23  ;;  %3851 = vmatpush.msrb.mxu1 %v1249_v24  ;;  %v1330_v22 = vld [vmem:[%s5573_s28 + $0x2170] sm:$0xff]  ;;  %v1347_v23 = vld [vmem:[%s5573_s28 + $0x21f8] sm:$0xff]  ;;  %v1297_v24 = vld [vmem:[%s5573_s28 + $0x2068] sm:$0xff] }
 0x234   : > { %3872 = vmatpush.msrb.mxu2 %v1264_v25  ;;  %3891 = vmatpush.msrb.mxu3 %v1281_v26  ;;  %v1314_v25 = vld [vmem:[%s5573_s28 + $0x20f0] sm:$0xff]  ;;  %v1329_v26 = vld [vmem:[%s5573_s28 + $0x2168] sm:$0xff] }
 0x235   : > { %3833 = vmatpush.msrb.mxu0 %v1231_v27  ;;  %3852 = vmatpush.msrb.mxu1 %v1248_v28  ;;  %v1346_v27 = vld [vmem:[%s5573_s28 + $0x21f0] sm:$0xff]  ;;  %v1296_v28 = vld [vmem:[%s5573_s28 + $0x2060] sm:$0xff] }
 0x236   : > { %3873 = vmatpush.msrb.mxu2 %v1263_v29  ;;  %3892 = vmatpush.msrb.mxu3 %v1280_v30  ;;  %v1313_v29 = vld [vmem:[%s5573_s28 + $0x20e8] sm:$0xff]  ;;  %v1328_v30 = vld [vmem:[%s5573_s28 + $0x2160] sm:$0xff] }
 0x237   : > { %3834 = vmatpush.msrb.mxu0 %v1230_v31  ;;  %3853 = vmatpush.msrb.mxu1 %v1247_v32  ;;  %v1345_v31 = vld [vmem:[%s5573_s28 + $0x21e8] sm:$0xff]  ;;  %v1295_v32 = vld [vmem:[%s5573_s28 + $0x2058] sm:$0xff] }
 0x238   : > { %3874 = vmatpush.msrb.mxu2 %v1262_v33  ;;  %3893 = vmatpush.msrb.mxu3 %v1279_v34  ;;  %v1312_v33 = vld [vmem:[%s5573_s28 + $0x20e0] sm:$0xff]  ;;  %v1327_v34 = vld [vmem:[%s5573_s28 + $0x2158] sm:$0xff] }
 0x239   : > { %3835 = vmatpush.msrb.mxu0 %v1229_v35  ;;  %3854 = vmatpush.msrb.mxu1 %v1246_v36  ;;  %v1344_v35 = vld [vmem:[%s5573_s28 + $0x21e0] sm:$0xff]  ;;  %v1294_v36 = vld [vmem:[%s5573_s28 + $0x2050] sm:$0xff] }
 0x23a   : > { %3875 = vmatpush.msrb.mxu2 %v1261_v37  ;;  %3894 = vmatpush.msrb.mxu3 %v1278_v38  ;;  %v1311_v37 = vld [vmem:[%s5573_s28 + $0x20d8] sm:$0xff]  ;;  %v1326_v38 = vld [vmem:[%s5573_s28 + $0x2150] sm:$0xff] }
 0x23b   : > { %3836 = vmatpush.msrb.mxu0 %v1228_v39  ;;  %3855 = vmatpush.msrb.mxu1 %v1245_v40  ;;  %v1343_v39 = vld [vmem:[%s5573_s28 + $0x21d8] sm:$0xff]  ;;  %v1293_v40 = vld [vmem:[%s5573_s28 + $0x2048] sm:$0xff] }
 0x23c   : > { %3876 = vmatpush.msrb.mxu2 %v1260_v41  ;;  %3895 = vmatpush.msrb.mxu3 %v1277_v42  ;;  %v1310_v41 = vld [vmem:[%s5573_s28 + $0x20d0] sm:$0xff]  ;;  %v1325_v42 = vld [vmem:[%s5573_s28 + $0x2148] sm:$0xff] }
 0x23d   : > { %3837 = vmatpush.msrb.mxu0 %v1227_v43  ;;  %3856 = vmatpush.msrb.mxu1 %v1244_v44  ;;  %v1342_v43 = vld [vmem:[%s5573_s28 + $0x21d0] sm:$0xff]  ;;  %v1292_v44 = vld [vmem:[%s5573_s28 + $0x2040] sm:$0xff] }
 0x23e   : > { %3877 = vmatpush.msrb.mxu2 %v1259_v45  ;;  %3896 = vmatpush.msrb.mxu3 %v1276_v46  ;;  %v1309_v45 = vld [vmem:[%s5573_s28 + $0x20c8] sm:$0xff]  ;;  %v1324_v46 = vld [vmem:[%s5573_s28 + $0x2140] sm:$0xff] }
 0x23f   : > { %3838 = vmatpush.msrb.mxu0 %v1226_v47  ;;  %3857 = vmatpush.msrb.mxu1 %v1243_v48  ;;  %v1341_v47 = vld [vmem:[%s5573_s28 + $0x21c8] sm:$0xff]  ;;  %v1291_v48 = vld [vmem:[%s5573_s28 + $0x2038] sm:$0xff] }
 0x240   : > { %3878 = vmatpush.msrb.mxu2 %v1258_v49  ;;  %3897 = vmatpush.msrb.mxu3 %v1275_v50  ;;  %v1308_v49 = vld [vmem:[%s5573_s28 + $0x20c0] sm:$0xff]  ;;  %v1323_v50 = vld [vmem:[%s5573_s28 + $0x2138] sm:$0xff] }
 0x241   : > { %3839 = vmatpush.msrb.mxu0 %v1225_v51  ;;  %3858 = vmatpush.msrb.mxu1 %v1242_v52  ;;  %v1340_v51 = vld [vmem:[%s5573_s28 + $0x21c0] sm:$0xff]  ;;  %v1290_v52 = vld [vmem:[%s5573_s28 + $0x2030] sm:$0xff] }
 0x242   : > { %3879 = vmatpush.msrb.mxu2 %v1257_v53  ;;  %3898 = vmatpush.msrb.mxu3 %v1274_v54  ;;  %v1307_v53 = vld [vmem:[%s5573_s28 + $0x20b8] sm:$0xff]  ;;  %v1322_v54 = vld [vmem:[%s5573_s28 + $0x2130] sm:$0xff] }
 0x243   : > { %3840 = vmatpush.msrb.mxu0 %v1224_v55  ;;  %3859 = vmatpush.msrb.mxu1 %v1241_v56  ;;  %v1339_v55 = vld [vmem:[%s5573_s28 + $0x21b8] sm:$0xff]  ;;  %v1289_v56 = vld [vmem:[%s5573_s28 + $0x2028] sm:$0xff] }
 0x244   : > { %3880 = vmatpush.msrb.mxu2 %v1256_v57  ;;  %3899 = vmatpush.msrb.mxu3 %v1273_v58  ;;  %v1306_v57 = vld [vmem:[%s5573_s28 + $0x20b0] sm:$0xff]  ;;  %v1321_v58 = vld [vmem:[%s5573_s28 + $0x2128] sm:$0xff] }
 0x245   : > { %3841 = vmatpush.msrb.mxu0 %v1223_v59  ;;  %3860 = vmatpush.msrb.mxu1 %v1240_v60  ;;  %v1338_v59 = vld [vmem:[%s5573_s28 + $0x21b0] sm:$0xff]  ;;  %v1288_v60 = vld [vmem:[%s5573_s28 + $0x2020] sm:$0xff] }
 0x246   : > { %3881 = vmatpush.msrb.mxu2 %v1255_v61  ;;  %3900 = vmatpush.msrb.mxu3 %v1272_v62  ;;  %v1305_v61 = vld [vmem:[%s5573_s28 + $0x20a8] sm:$0xff]  ;;  %v1320_v62 = vld [vmem:[%s5573_s28 + $0x2120] sm:$0xff] }
 0x247   : > { %3842 = vmatpush.msrb.mxu0 %v1222_v63  ;;  %3861 = vmatpush.msrb.mxu1 %v1239_v0  ;;  %v1337_v63 = vld [vmem:[%s5573_s28 + $0x21a8] sm:$0xff]  ;;  %v1287_v0 = vld [vmem:[%s5573_s28 + $0x2018] sm:$0xff] }
 0x248   : > { %3882 = vmatpush.msrb.mxu2 %v1254_v1  ;;  %3901 = vmatpush.msrb.mxu3 %v1271_v2  ;;  %v1304_v1 = vld [vmem:[%s5573_s28 + $0x20a0] sm:$0xff]  ;;  %v1319_v2 = vld [vmem:[%s5573_s28 + $0x2118] sm:$0xff] }
 0x249   : > { %3843 = vmatpush.msrb.mxu0 %v1221_v3  ;;  %3862 = vmatpush.msrb.mxu1 %v1238_v4  ;;  %v1336_v3 = vld [vmem:[%s5573_s28 + $0x21a0] sm:$0xff]  ;;  %v1286_v4 = vld [vmem:[%s5573_s28 + $0x2010] sm:$0xff] }
 0x24a   : > { %3883 = vmatpush.msrb.mxu2 %v1253_v6  ;;  %3902 = vmatpush.msrb.mxu3 %v1270_v7  ;;  %v1318_v6 = vld [vmem:[%s5573_s28 + $0x2110] sm:$0xff]  ;;  %v1335_v7 = vld [vmem:[%s5573_s28 + $0x2198] sm:$0xff] }
 0x24b   : > { %3844 = vmatpush.msrb.mxu0 %v1220_v8  ;;  %3863 = vmatpush.msrb.mxu1 %v1237_v9  ;;  %v1285_v8 = vld [vmem:[%s5573_s28 + $0x2008] sm:$0xff]  ;;  %v1302_v9 = vld [vmem:[%s5573_s28 + $0x2090] sm:$0xff] }
 0x24c   : > { %3884 = vmatpush.msrb.mxu2 %v1252_v10  ;;  %3903 = vmatpush.msrb.mxu3 %v1269_v11  ;;  %v245_v10 = vld [vmem:[%s5591_s9 + $0x88] sm:$0xff]  ;;  %v1317_v11 = vld [vmem:[%s5573_s28 + $0x2108] sm:$0xff] }
 0x24d   : > { %3845 = vmatmul.f32.vlgmr.msrb.gmra.mxu0 %v2417_v12  ;;  %3885 = vmatmul.f32.vlgmr.msrb.gmra.mxu2 %v2419_v13  ;;  %v1334_v12 = vld [vmem:[%s5573_s28 + $0x2190] sm:$0xff]  ;;  %2422 = vst [vmem:[#allocation1 + $0x20] ss:$4 sm:$0xff] %v245_v10  ;;  %v1284_v13 = vld [vmem:[%s5573_s28 + $0x2000] sm:$0xff]  ;;  %v1367_v10 = vld [vmem:[%s5573_s28 + $0x2298] sm:$0xff] }
 0x24e   : > { %3909 = vmatpush.msra.mxu0 %v1299_v14  ;;  %3949 = vmatpush.msra.mxu2 %v1331_v15  ;;  %v1301_v14 = vld [vmem:[%s5573_s28 + $0x2088] sm:$0xff]  ;;  %v1316_v15 = vld [vmem:[%s5573_s28 + $0x2100] sm:$0xff] }
 0x24f   : > { %3864 = vmatpush.msrb.mxu1 %v1236_v16  ;;  %3904 = vmatpush.msrb.mxu3 %v1268_v17  ;;  %v1333_v16 = vld [vmem:[%s5573_s28 + $0x2188] sm:$0xff]  ;;  %v2423_v17 = vld.sshfl [vmem:[#allocation1] sm:$0xff pattern:$0x73625140] }
 0x250   : > { %3865 = vmatmul.f32.vlgmr.msrb.gmra.mxu1 %v2418_v18  ;;  %3905 = vmatmul.f32.vlgmr.msrb.gmra.mxu3 %v2420_v19  ;;  %v2425_v18 = vld.sshfl [vmem:[#allocation1 + $0x10] sm:$0xff pattern:$0x73625140]  ;;  %v1363_v19 = vld [vmem:[%s5573_s28 + $0x2278] sm:$0xff] }
 0x251   : > { %3910 = vmatpush.msra.mxu0 %v1298_v20  ;;  %3929 = vmatpush.msra.mxu1 %v1315_v21  ;;  %v1395_v20 = vld [vmem:[%s5573_s28 + $0x2378] sm:$0xff]  ;;  %v1300_v21 = vld [vmem:[%s5573_s28 + $0x2080] sm:$0xff] }
 0x252   : > { %3950 = vmatpush.msra.mxu2 %v1330_v22  ;;  %3969 = vmatpush.msra.mxu3 %v1347_v23  ;;  %v1332_v22 = vld [vmem:[%s5573_s28 + $0x2180] sm:$0xff] }
 0x253   : > { %3911 = vmatpush.msra.mxu0 %v1297_v24  ;;  %3930 = vmatpush.msra.mxu1 %v1314_v25  ;;  %v2424_v23 = vld.sshfl [vmem:[#allocation1 + $0x8] sm:$0xff pattern:$0x73625140]  ;;  %v2426_v24 = vld.sshfl [vmem:[#allocation1 + $0x18] sm:$0xff pattern:$0x73625140] }
 0x254   : > { %3951 = vmatpush.msra.mxu2 %v1329_v26  ;;  %3970 = vmatpush.msra.mxu3 %v1346_v27  ;;  %v1362_v25 = vld [vmem:[%s5573_s28 + $0x2270] sm:$0xff]  ;;  %v1379_v26 = vld [vmem:[%s5573_s28 + $0x22f8] sm:$0xff] }
 0x255   : > { %3912 = vmatpush.msra.mxu0 %v1296_v28  ;;  %3931 = vmatpush.msra.mxu1 %v1313_v29  ;;  %v1394_v27 = vld [vmem:[%s5573_s28 + $0x2370] sm:$0xff]  ;;  %v1411_v28 = vld [vmem:[%s5573_s28 + $0x23f8] sm:$0xff]  ;;  %v1361_v29 = vld [vmem:[%s5573_s28 + $0x2268] sm:$0xff] }
 0x256   : > { %3952 = vmatpush.msra.mxu2 %v1328_v30  ;;  %3971 = vmatpush.msra.mxu3 %v1345_v31  ;;  %v1378_v30 = vld [vmem:[%s5573_s28 + $0x22f0] sm:$0xff]  ;;  %v1393_v31 = vld [vmem:[%s5573_s28 + $0x2368] sm:$0xff] }
 0x257   : > { %3913 = vmatpush.msra.mxu0 %v1295_v32  ;;  %3932 = vmatpush.msra.mxu1 %v1312_v33  ;;  %v1410_v32 = vld [vmem:[%s5573_s28 + $0x23f0] sm:$0xff]  ;;  %v1360_v33 = vld [vmem:[%s5573_s28 + $0x2260] sm:$0xff] }
 0x258   : > { %3953 = vmatpush.msra.mxu2 %v1327_v34  ;;  %3972 = vmatpush.msra.mxu3 %v1344_v35  ;;  %v1377_v34 = vld [vmem:[%s5573_s28 + $0x22e8] sm:$0xff]  ;;  %v1392_v35 = vld [vmem:[%s5573_s28 + $0x2360] sm:$0xff] }
 0x259   : > { %3914 = vmatpush.msra.mxu0 %v1294_v36  ;;  %3933 = vmatpush.msra.mxu1 %v1311_v37  ;;  %v1409_v36 = vld [vmem:[%s5573_s28 + $0x23e8] sm:$0xff]  ;;  %v1359_v37 = vld [vmem:[%s5573_s28 + $0x2258] sm:$0xff] }
 0x25a   : > { %3954 = vmatpush.msra.mxu2 %v1326_v38  ;;  %3973 = vmatpush.msra.mxu3 %v1343_v39  ;;  %v1376_v38 = vld [vmem:[%s5573_s28 + $0x22e0] sm:$0xff]  ;;  %v1391_v39 = vld [vmem:[%s5573_s28 + $0x2358] sm:$0xff] }
 0x25b   : > { %3915 = vmatpush.msra.mxu0 %v1293_v40  ;;  %3934 = vmatpush.msra.mxu1 %v1310_v41  ;;  %v1408_v40 = vld [vmem:[%s5573_s28 + $0x23e0] sm:$0xff]  ;;  %v1358_v41 = vld [vmem:[%s5573_s28 + $0x2250] sm:$0xff] }
 0x25c   : > { %3955 = vmatpush.msra.mxu2 %v1325_v42  ;;  %3974 = vmatpush.msra.mxu3 %v1342_v43  ;;  %v1375_v42 = vld [vmem:[%s5573_s28 + $0x22d8] sm:$0xff]  ;;  %v1390_v43 = vld [vmem:[%s5573_s28 + $0x2350] sm:$0xff] }
 0x25d   : > { %3916 = vmatpush.msra.mxu0 %v1292_v44  ;;  %3935 = vmatpush.msra.mxu1 %v1309_v45  ;;  %v1407_v44 = vld [vmem:[%s5573_s28 + $0x23d8] sm:$0xff]  ;;  %v1357_v45 = vld [vmem:[%s5573_s28 + $0x2248] sm:$0xff] }
 0x25e   : > { %3956 = vmatpush.msra.mxu2 %v1324_v46  ;;  %3975 = vmatpush.msra.mxu3 %v1341_v47  ;;  %v1374_v46 = vld [vmem:[%s5573_s28 + $0x22d0] sm:$0xff]  ;;  %v1389_v47 = vld [vmem:[%s5573_s28 + $0x2348] sm:$0xff] }
 0x25f   : > { %3917 = vmatpush.msra.mxu0 %v1291_v48  ;;  %3936 = vmatpush.msra.mxu1 %v1308_v49  ;;  %v1406_v48 = vld [vmem:[%s5573_s28 + $0x23d0] sm:$0xff]  ;;  %v1356_v49 = vld [vmem:[%s5573_s28 + $0x2240] sm:$0xff] }
 0x260   : > { %3957 = vmatpush.msra.mxu2 %v1323_v50  ;;  %3976 = vmatpush.msra.mxu3 %v1340_v51  ;;  %v1373_v50 = vld [vmem:[%s5573_s28 + $0x22c8] sm:$0xff]  ;;  %v1388_v51 = vld [vmem:[%s5573_s28 + $0x2340] sm:$0xff] }
 0x261   : > { %3918 = vmatpush.msra.mxu0 %v1290_v52  ;;  %3937 = vmatpush.msra.mxu1 %v1307_v53  ;;  %v1405_v52 = vld [vmem:[%s5573_s28 + $0x23c8] sm:$0xff]  ;;  %v1355_v53 = vld [vmem:[%s5573_s28 + $0x2238] sm:$0xff] }
 0x262   : > { %3958 = vmatpush.msra.mxu2 %v1322_v54  ;;  %3977 = vmatpush.msra.mxu3 %v1339_v55  ;;  %v1372_v54 = vld [vmem:[%s5573_s28 + $0x22c0] sm:$0xff]  ;;  %v1387_v55 = vld [vmem:[%s5573_s28 + $0x2338] sm:$0xff] }
 0x263   : > { %3919 = vmatpush.msra.mxu0 %v1289_v56  ;;  %3938 = vmatpush.msra.mxu1 %v1306_v57  ;;  %v1404_v56 = vld [vmem:[%s5573_s28 + $0x23c0] sm:$0xff]  ;;  %v1354_v57 = vld [vmem:[%s5573_s28 + $0x2230] sm:$0xff] }
 0x264   : > { %3959 = vmatpush.msra.mxu2 %v1321_v58  ;;  %3978 = vmatpush.msra.mxu3 %v1338_v59  ;;  %v1371_v58 = vld [vmem:[%s5573_s28 + $0x22b8] sm:$0xff]  ;;  %v1386_v59 = vld [vmem:[%s5573_s28 + $0x2330] sm:$0xff] }
 0x265   : > { %3920 = vmatpush.msra.mxu0 %v1288_v60  ;;  %3939 = vmatpush.msra.mxu1 %v1305_v61  ;;  %v1403_v60 = vld [vmem:[%s5573_s28 + $0x23b8] sm:$0xff]  ;;  %v1353_v61 = vld [vmem:[%s5573_s28 + $0x2228] sm:$0xff] }
 0x266   : > { %3960 = vmatpush.msra.mxu2 %v1320_v62  ;;  %3979 = vmatpush.msra.mxu3 %v1337_v63  ;;  %v1370_v62 = vld [vmem:[%s5573_s28 + $0x22b0] sm:$0xff]  ;;  %v1385_v63 = vld [vmem:[%s5573_s28 + $0x2328] sm:$0xff] }
 0x267   : > { %3921 = vmatpush.msra.mxu0 %v1287_v0  ;;  %3940 = vmatpush.msra.mxu1 %v1304_v1  ;;  %v1402_v0 = vld [vmem:[%s5573_s28 + $0x23b0] sm:$0xff]  ;;  %v1352_v1 = vld [vmem:[%s5573_s28 + $0x2220] sm:$0xff] }
 0x268   : > { %3961 = vmatpush.msra.mxu2 %v1319_v2  ;;  %3980 = vmatpush.msra.mxu3 %v1336_v3  ;;  %v1369_v2 = vld [vmem:[%s5573_s28 + $0x22a8] sm:$0xff]  ;;  %v1384_v3 = vld [vmem:[%s5573_s28 + $0x2320] sm:$0xff] }
 0x269   : > { %3922 = vmatpush.msra.mxu0 %v1286_v4  ;;  %3941 = vmatpush.msra.mxu1 %v1303_v5  ;;  %v1401_v4 = vld [vmem:[%s5573_s28 + $0x23a8] sm:$0xff]  ;;  %v1351_v5 = vld [vmem:[%s5573_s28 + $0x2218] sm:$0xff] }
 0x26a   : > { %3962 = vmatpush.msra.mxu2 %v1318_v6  ;;  %3981 = vmatpush.msra.mxu3 %v1335_v7  ;;  %v1368_v6 = vld [vmem:[%s5573_s28 + $0x22a0] sm:$0xff]  ;;  %v1383_v7 = vld [vmem:[%s5573_s28 + $0x2318] sm:$0xff] }
 0x26b   : > { %3923 = vmatpush.msra.mxu0 %v1285_v8  ;;  %3942 = vmatpush.msra.mxu1 %v1302_v9  ;;  %v1400_v8 = vld [vmem:[%s5573_s28 + $0x23a0] sm:$0xff]  ;;  %v1350_v9 = vld [vmem:[%s5573_s28 + $0x2210] sm:$0xff] }
 0x26c   : > { %3963 = vmatpush.msra.mxu2 %v1317_v11  ;;  %3982 = vmatpush.msra.mxu3 %v1334_v12  ;;  %v1382_v11 = vld [vmem:[%s5573_s28 + $0x2310] sm:$0xff]  ;;  %v1399_v12 = vld [vmem:[%s5573_s28 + $0x2398] sm:$0xff] }
 0x26d   : > { %3924 = vmatpush.msra.mxu0 %v1284_v13  ;;  %3943 = vmatpush.msra.mxu1 %v1301_v14  ;;  %v1349_v13 = vld [vmem:[%s5573_s28 + $0x2208] sm:$0xff]  ;;  %v1366_v14 = vld [vmem:[%s5573_s28 + $0x2290] sm:$0xff] }
 0x26e   : > { %3964 = vmatpush.msra.mxu2 %v1316_v15  ;;  %3983 = vmatpush.msra.mxu3 %v1333_v16  ;;  %v246_v15 = vld [vmem:[%s5591_s9 + $0x90] sm:$0xff] }
 0x26f   : > { %3925 = vmatmul.f32.vlgmr.msra.gmra.mxu0 %v2423_v17  ;;  %3965 = vmatmul.f32.vlgmr.msra.gmra.mxu2 %v2425_v18  ;;  %v1381_v16 = vld [vmem:[%s5573_s28 + $0x2308] sm:$0xff]  ;;  %v1398_v17 = vld [vmem:[%s5573_s28 + $0x2390] sm:$0xff]  ;;  %2431 = vst [vmem:[#allocation1] ss:$4 sm:$0xff] %v246_v15  ;;  %v1348_v18 = vld [vmem:[%s5573_s28 + $0x2200] sm:$0xff] }
 0x270   : > { %3989 = vmatpush.msrb.mxu0 %v1363_v19  ;;  %4029 = vmatpush.msrb.mxu2 %v1395_v20  ;;  %v1365_v19 = vld [vmem:[%s5573_s28 + $0x2288] sm:$0xff]  ;;  %v1380_v20 = vld [vmem:[%s5573_s28 + $0x2300] sm:$0xff]  ;;  %v1431_v15 = vld [vmem:[%s5573_s28 + $0x2498] sm:$0xff] }
 0x271   : > { %3944 = vmatpush.msra.mxu1 %v1300_v21  ;;  %3984 = vmatpush.msra.mxu3 %v1332_v22  ;;  %v1397_v21 = vld [vmem:[%s5573_s28 + $0x2388] sm:$0xff]  ;;  %v2427_v22 = vld.sshfl [vmem:[#allocation1 + $0x20] sm:$0xff pattern:$0x73625140] }
 0x272   : > { %3945 = vmatmul.f32.vlgmr.msra.gmra.mxu1 %v2424_v23  ;;  %3985 = vmatmul.f32.vlgmr.msra.gmra.mxu3 %v2426_v24  ;;  %v2429_v23 = vld.sshfl [vmem:[#allocation1 + $0x30] sm:$0xff pattern:$0x73625140]  ;;  %v1427_v24 = vld [vmem:[%s5573_s28 + $0x2478] sm:$0xff] }
 0x273   : > { %3990 = vmatpush.msrb.mxu0 %v1362_v25  ;;  %4009 = vmatpush.msrb.mxu1 %v1379_v26  ;;  %v1459_v25 = vld [vmem:[%s5573_s28 + $0x2578] sm:$0xff]  ;;  %v1364_v26 = vld [vmem:[%s5573_s28 + $0x2280] sm:$0xff] }
 0x274   : > { %4030 = vmatpush.msrb.mxu2 %v1394_v27  ;;  %4049 = vmatpush.msrb.mxu3 %v1411_v28  ;;  %v1396_v27 = vld [vmem:[%s5573_s28 + $0x2380] sm:$0xff] }
 0x275   : > { %3991 = vmatpush.msrb.mxu0 %v1361_v29  ;;  %4010 = vmatpush.msrb.mxu1 %v1378_v30  ;;  %v2428_v28 = vld.sshfl [vmem:[#allocation1 + $0x28] sm:$0xff pattern:$0x73625140]  ;;  %v2430_v29 = vld.sshfl [vmem:[#allocation1 + $0x38] sm:$0xff pattern:$0x73625140] }
 0x276   : > { %4031 = vmatpush.msrb.mxu2 %v1393_v31  ;;  %4050 = vmatpush.msrb.mxu3 %v1410_v32  ;;  %v1426_v30 = vld [vmem:[%s5573_s28 + $0x2470] sm:$0xff]  ;;  %v1443_v31 = vld [vmem:[%s5573_s28 + $0x24f8] sm:$0xff] }
 0x277   : > { %3992 = vmatpush.msrb.mxu0 %v1360_v33  ;;  %4011 = vmatpush.msrb.mxu1 %v1377_v34  ;;  %v1458_v32 = vld [vmem:[%s5573_s28 + $0x2570] sm:$0xff]  ;;  %v1475_v33 = vld [vmem:[%s5573_s28 + $0x25f8] sm:$0xff]  ;;  %v1425_v34 = vld [vmem:[%s5573_s28 + $0x2468] sm:$0xff] }
 0x278   : > { %4032 = vmatpush.msrb.mxu2 %v1392_v35  ;;  %4051 = vmatpush.msrb.mxu3 %v1409_v36  ;;  %v1442_v35 = vld [vmem:[%s5573_s28 + $0x24f0] sm:$0xff]  ;;  %v1457_v36 = vld [vmem:[%s5573_s28 + $0x2568] sm:$0xff] }
 0x279   : > { %3993 = vmatpush.msrb.mxu0 %v1359_v37  ;;  %4012 = vmatpush.msrb.mxu1 %v1376_v38  ;;  %v1474_v37 = vld [vmem:[%s5573_s28 + $0x25f0] sm:$0xff]  ;;  %v1424_v38 = vld [vmem:[%s5573_s28 + $0x2460] sm:$0xff] }
 0x27a   : > { %4033 = vmatpush.msrb.mxu2 %v1391_v39  ;;  %4052 = vmatpush.msrb.mxu3 %v1408_v40  ;;  %v1441_v39 = vld [vmem:[%s5573_s28 + $0x24e8] sm:$0xff]  ;;  %v1456_v40 = vld [vmem:[%s5573_s28 + $0x2560] sm:$0xff] }
 0x27b   : > { %3994 = vmatpush.msrb.mxu0 %v1358_v41  ;;  %4013 = vmatpush.msrb.mxu1 %v1375_v42  ;;  %v1473_v41 = vld [vmem:[%s5573_s28 + $0x25e8] sm:$0xff]  ;;  %v1423_v42 = vld [vmem:[%s5573_s28 + $0x2458] sm:$0xff] }
 0x27c   : > { %4034 = vmatpush.msrb.mxu2 %v1390_v43  ;;  %4053 = vmatpush.msrb.mxu3 %v1407_v44  ;;  %v1440_v43 = vld [vmem:[%s5573_s28 + $0x24e0] sm:$0xff]  ;;  %v1455_v44 = vld [vmem:[%s5573_s28 + $0x2558] sm:$0xff] }
 0x27d   : > { %3995 = vmatpush.msrb.mxu0 %v1357_v45  ;;  %4014 = vmatpush.msrb.mxu1 %v1374_v46  ;;  %v1472_v45 = vld [vmem:[%s5573_s28 + $0x25e0] sm:$0xff]  ;;  %v1422_v46 = vld [vmem:[%s5573_s28 + $0x2450] sm:$0xff] }
 0x27e   : > { %4035 = vmatpush.msrb.mxu2 %v1389_v47  ;;  %4054 = vmatpush.msrb.mxu3 %v1406_v48  ;;  %v1439_v47 = vld [vmem:[%s5573_s28 + $0x24d8] sm:$0xff]  ;;  %v1454_v48 = vld [vmem:[%s5573_s28 + $0x2550] sm:$0xff] }
 0x27f   : > { %3996 = vmatpush.msrb.mxu0 %v1356_v49  ;;  %4015 = vmatpush.msrb.mxu1 %v1373_v50  ;;  %v1471_v49 = vld [vmem:[%s5573_s28 + $0x25d8] sm:$0xff]  ;;  %v1421_v50 = vld [vmem:[%s5573_s28 + $0x2448] sm:$0xff] }
 0x280   : > { %4036 = vmatpush.msrb.mxu2 %v1388_v51  ;;  %4055 = vmatpush.msrb.mxu3 %v1405_v52  ;;  %v1438_v51 = vld [vmem:[%s5573_s28 + $0x24d0] sm:$0xff]  ;;  %v1453_v52 = vld [vmem:[%s5573_s28 + $0x2548] sm:$0xff] }
 0x281   : > { %3997 = vmatpush.msrb.mxu0 %v1355_v53  ;;  %4016 = vmatpush.msrb.mxu1 %v1372_v54  ;;  %v1470_v53 = vld [vmem:[%s5573_s28 + $0x25d0] sm:$0xff]  ;;  %v1420_v54 = vld [vmem:[%s5573_s28 + $0x2440] sm:$0xff] }
 0x282   : > { %4037 = vmatpush.msrb.mxu2 %v1387_v55  ;;  %4056 = vmatpush.msrb.mxu3 %v1404_v56  ;;  %v1437_v55 = vld [vmem:[%s5573_s28 + $0x24c8] sm:$0xff]  ;;  %v1452_v56 = vld [vmem:[%s5573_s28 + $0x2540] sm:$0xff] }
 0x283   : > { %3998 = vmatpush.msrb.mxu0 %v1354_v57  ;;  %4017 = vmatpush.msrb.mxu1 %v1371_v58  ;;  %v1469_v57 = vld [vmem:[%s5573_s28 + $0x25c8] sm:$0xff]  ;;  %v1419_v58 = vld [vmem:[%s5573_s28 + $0x2438] sm:$0xff] }
 0x284   : > { %4038 = vmatpush.msrb.mxu2 %v1386_v59  ;;  %4057 = vmatpush.msrb.mxu3 %v1403_v60  ;;  %v1436_v59 = vld [vmem:[%s5573_s28 + $0x24c0] sm:$0xff]  ;;  %v1451_v60 = vld [vmem:[%s5573_s28 + $0x2538] sm:$0xff] }
 0x285   : > { %3999 = vmatpush.msrb.mxu0 %v1353_v61  ;;  %4018 = vmatpush.msrb.mxu1 %v1370_v62  ;;  %v1468_v61 = vld [vmem:[%s5573_s28 + $0x25c0] sm:$0xff]  ;;  %v1418_v62 = vld [vmem:[%s5573_s28 + $0x2430] sm:$0xff] }
 0x286   : > { %4039 = vmatpush.msrb.mxu2 %v1385_v63  ;;  %4058 = vmatpush.msrb.mxu3 %v1402_v0  ;;  %v1435_v63 = vld [vmem:[%s5573_s28 + $0x24b8] sm:$0xff]  ;;  %v1450_v0 = vld [vmem:[%s5573_s28 + $0x2530] sm:$0xff] }
 0x287   : > { %4000 = vmatpush.msrb.mxu0 %v1352_v1  ;;  %4019 = vmatpush.msrb.mxu1 %v1369_v2  ;;  %v1467_v1 = vld [vmem:[%s5573_s28 + $0x25b8] sm:$0xff]  ;;  %v1417_v2 = vld [vmem:[%s5573_s28 + $0x2428] sm:$0xff] }
 0x288   : > { %4040 = vmatpush.msrb.mxu2 %v1384_v3  ;;  %4059 = vmatpush.msrb.mxu3 %v1401_v4  ;;  %v1434_v3 = vld [vmem:[%s5573_s28 + $0x24b0] sm:$0xff]  ;;  %v1449_v4 = vld [vmem:[%s5573_s28 + $0x2528] sm:$0xff] }
 0x289   : > { %4001 = vmatpush.msrb.mxu0 %v1351_v5  ;;  %4020 = vmatpush.msrb.mxu1 %v1368_v6  ;;  %v1466_v5 = vld [vmem:[%s5573_s28 + $0x25b0] sm:$0xff]  ;;  %v1416_v6 = vld [vmem:[%s5573_s28 + $0x2420] sm:$0xff] }
 0x28a   : > { %4041 = vmatpush.msrb.mxu2 %v1383_v7  ;;  %4060 = vmatpush.msrb.mxu3 %v1400_v8  ;;  %v1433_v7 = vld [vmem:[%s5573_s28 + $0x24a8] sm:$0xff]  ;;  %v1448_v8 = vld [vmem:[%s5573_s28 + $0x2520] sm:$0xff] }
 0x28b   : > { %4002 = vmatpush.msrb.mxu0 %v1350_v9  ;;  %4021 = vmatpush.msrb.mxu1 %v1367_v10  ;;  %v1465_v9 = vld [vmem:[%s5573_s28 + $0x25a8] sm:$0xff]  ;;  %v1415_v10 = vld [vmem:[%s5573_s28 + $0x2418] sm:$0xff] }
 0x28c   : > { %4042 = vmatpush.msrb.mxu2 %v1382_v11  ;;  %4061 = vmatpush.msrb.mxu3 %v1399_v12  ;;  %v1432_v11 = vld [vmem:[%s5573_s28 + $0x24a0] sm:$0xff]  ;;  %v1447_v12 = vld [vmem:[%s5573_s28 + $0x2518] sm:$0xff] }
 0x28d   : > { %4003 = vmatpush.msrb.mxu0 %v1349_v13  ;;  %4022 = vmatpush.msrb.mxu1 %v1366_v14  ;;  %v1464_v13 = vld [vmem:[%s5573_s28 + $0x25a0] sm:$0xff]  ;;  %v1414_v14 = vld [vmem:[%s5573_s28 + $0x2410] sm:$0xff] }
 0x28e   : > { %4043 = vmatpush.msrb.mxu2 %v1381_v16  ;;  %4062 = vmatpush.msrb.mxu3 %v1398_v17  ;;  %v1446_v16 = vld [vmem:[%s5573_s28 + $0x2510] sm:$0xff]  ;;  %v1463_v17 = vld [vmem:[%s5573_s28 + $0x2598] sm:$0xff] }
 0x28f   : > { %4004 = vmatpush.msrb.mxu0 %v1348_v18  ;;  %4023 = vmatpush.msrb.mxu1 %v1365_v19  ;;  %v1413_v18 = vld [vmem:[%s5573_s28 + $0x2408] sm:$0xff]  ;;  %v1430_v19 = vld [vmem:[%s5573_s28 + $0x2490] sm:$0xff] }
 0x290   : > { %4044 = vmatpush.msrb.mxu2 %v1380_v20  ;;  %4063 = vmatpush.msrb.mxu3 %v1397_v21  ;;  %v247_v20 = vld [vmem:[%s5591_s9 + $0x98] sm:$0xff] }
 0x291   : > { %4005 = vmatmul.f32.vlgmr.msrb.gmra.mxu0 %v2427_v22  ;;  %4045 = vmatmul.f32.vlgmr.msrb.gmra.mxu2 %v2429_v23  ;;  %v1445_v21 = vld [vmem:[%s5573_s28 + $0x2508] sm:$0xff]  ;;  %v1462_v22 = vld [vmem:[%s5573_s28 + $0x2590] sm:$0xff]  ;;  %2432 = vst [vmem:[#allocation1 + $0x20] ss:$4 sm:$0xff] %v247_v20  ;;  %v1412_v23 = vld [vmem:[%s5573_s28 + $0x2400] sm:$0xff] }
 0x292   : > { %4069 = vmatpush.msra.mxu0 %v1427_v24  ;;  %4109 = vmatpush.msra.mxu2 %v1459_v25  ;;  %v1429_v24 = vld [vmem:[%s5573_s28 + $0x2488] sm:$0xff]  ;;  %v1444_v25 = vld [vmem:[%s5573_s28 + $0x2500] sm:$0xff]  ;;  %v1495_v20 = vld [vmem:[%s5573_s28 + $0x2698] sm:$0xff] }
 0x293   : > { %4024 = vmatpush.msrb.mxu1 %v1364_v26  ;;  %4064 = vmatpush.msrb.mxu3 %v1396_v27  ;;  %v1461_v26 = vld [vmem:[%s5573_s28 + $0x2588] sm:$0xff]  ;;  %v2433_v27 = vld.sshfl [vmem:[#allocation1] sm:$0xff pattern:$0x73625140] }
 0x294   : > { %4025 = vmatmul.f32.vlgmr.msrb.gmra.mxu1 %v2428_v28  ;;  %4065 = vmatmul.f32.vlgmr.msrb.gmra.mxu3 %v2430_v29  ;;  %v2435_v28 = vld.sshfl [vmem:[#allocation1 + $0x10] sm:$0xff pattern:$0x73625140]  ;;  %v1491_v29 = vld [vmem:[%s5573_s28 + $0x2678] sm:$0xff] }
 0x295   : > { %4070 = vmatpush.msra.mxu0 %v1426_v30  ;;  %4089 = vmatpush.msra.mxu1 %v1443_v31  ;;  %v1523_v30 = vld [vmem:[%s5573_s28 + $0x2778] sm:$0xff]  ;;  %v1428_v31 = vld [vmem:[%s5573_s28 + $0x2480] sm:$0xff] }
 0x296   : > { %4110 = vmatpush.msra.mxu2 %v1458_v32  ;;  %4129 = vmatpush.msra.mxu3 %v1475_v33  ;;  %v1460_v32 = vld [vmem:[%s5573_s28 + $0x2580] sm:$0xff] }
 0x297   : > { %4071 = vmatpush.msra.mxu0 %v1425_v34  ;;  %4090 = vmatpush.msra.mxu1 %v1442_v35  ;;  %v2434_v33 = vld.sshfl [vmem:[#allocation1 + $0x8] sm:$0xff pattern:$0x73625140]  ;;  %v2436_v34 = vld.sshfl [vmem:[#allocation1 + $0x18] sm:$0xff pattern:$0x73625140] }
 0x298   : > { %4111 = vmatpush.msra.mxu2 %v1457_v36  ;;  %4130 = vmatpush.msra.mxu3 %v1474_v37  ;;  %v1490_v35 = vld [vmem:[%s5573_s28 + $0x2670] sm:$0xff]  ;;  %v1507_v36 = vld [vmem:[%s5573_s28 + $0x26f8] sm:$0xff] }
 0x299   : > { %4072 = vmatpush.msra.mxu0 %v1424_v38  ;;  %4091 = vmatpush.msra.mxu1 %v1441_v39  ;;  %v1522_v37 = vld [vmem:[%s5573_s28 + $0x2770] sm:$0xff]  ;;  %v1539_v38 = vld [vmem:[%s5573_s28 + $0x27f8] sm:$0xff]  ;;  %v1489_v39 = vld [vmem:[%s5573_s28 + $0x2668] sm:$0xff] }
 0x29a   : > { %4112 = vmatpush.msra.mxu2 %v1456_v40  ;;  %4131 = vmatpush.msra.mxu3 %v1473_v41  ;;  %v1506_v40 = vld [vmem:[%s5573_s28 + $0x26f0] sm:$0xff]  ;;  %v1521_v41 = vld [vmem:[%s5573_s28 + $0x2768] sm:$0xff] }
 0x29b   : > { %4073 = vmatpush.msra.mxu0 %v1423_v42  ;;  %4092 = vmatpush.msra.mxu1 %v1440_v43  ;;  %v1538_v42 = vld [vmem:[%s5573_s28 + $0x27f0] sm:$0xff]  ;;  %v1488_v43 = vld [vmem:[%s5573_s28 + $0x2660] sm:$0xff] }
 0x29c   : > { %4113 = vmatpush.msra.mxu2 %v1455_v44  ;;  %4132 = vmatpush.msra.mxu3 %v1472_v45  ;;  %v1505_v44 = vld [vmem:[%s5573_s28 + $0x26e8] sm:$0xff]  ;;  %v1520_v45 = vld [vmem:[%s5573_s28 + $0x2760] sm:$0xff] }
 0x29d   : > { %4074 = vmatpush.msra.mxu0 %v1422_v46  ;;  %4093 = vmatpush.msra.mxu1 %v1439_v47  ;;  %v1537_v46 = vld [vmem:[%s5573_s28 + $0x27e8] sm:$0xff]  ;;  %v1487_v47 = vld [vmem:[%s5573_s28 + $0x2658] sm:$0xff] }
 0x29e   : > { %4114 = vmatpush.msra.mxu2 %v1454_v48  ;;  %4133 = vmatpush.msra.mxu3 %v1471_v49  ;;  %v1504_v48 = vld [vmem:[%s5573_s28 + $0x26e0] sm:$0xff]  ;;  %v1519_v49 = vld [vmem:[%s5573_s28 + $0x2758] sm:$0xff] }
 0x29f   : > { %4075 = vmatpush.msra.mxu0 %v1421_v50  ;;  %4094 = vmatpush.msra.mxu1 %v1438_v51  ;;  %v1536_v50 = vld [vmem:[%s5573_s28 + $0x27e0] sm:$0xff]  ;;  %v1486_v51 = vld [vmem:[%s5573_s28 + $0x2650] sm:$0xff] }
 0x2a0   : > { %4115 = vmatpush.msra.mxu2 %v1453_v52  ;;  %4134 = vmatpush.msra.mxu3 %v1470_v53  ;;  %v1503_v52 = vld [vmem:[%s5573_s28 + $0x26d8] sm:$0xff]  ;;  %v1518_v53 = vld [vmem:[%s5573_s28 + $0x2750] sm:$0xff] }
 0x2a1   : > { %4076 = vmatpush.msra.mxu0 %v1420_v54  ;;  %4095 = vmatpush.msra.mxu1 %v1437_v55  ;;  %v1535_v54 = vld [vmem:[%s5573_s28 + $0x27d8] sm:$0xff]  ;;  %v1485_v55 = vld [vmem:[%s5573_s28 + $0x2648] sm:$0xff] }
 0x2a2   : > { %4116 = vmatpush.msra.mxu2 %v1452_v56  ;;  %4135 = vmatpush.msra.mxu3 %v1469_v57  ;;  %v1502_v56 = vld [vmem:[%s5573_s28 + $0x26d0] sm:$0xff]  ;;  %v1517_v57 = vld [vmem:[%s5573_s28 + $0x2748] sm:$0xff] }
 0x2a3   : > { %4077 = vmatpush.msra.mxu0 %v1419_v58  ;;  %4096 = vmatpush.msra.mxu1 %v1436_v59  ;;  %v1534_v58 = vld [vmem:[%s5573_s28 + $0x27d0] sm:$0xff]  ;;  %v1484_v59 = vld [vmem:[%s5573_s28 + $0x2640] sm:$0xff] }
 0x2a4   : > { %4117 = vmatpush.msra.mxu2 %v1451_v60  ;;  %4136 = vmatpush.msra.mxu3 %v1468_v61  ;;  %v1501_v60 = vld [vmem:[%s5573_s28 + $0x26c8] sm:$0xff]  ;;  %v1516_v61 = vld [vmem:[%s5573_s28 + $0x2740] sm:$0xff] }
 0x2a5   : > { %4078 = vmatpush.msra.mxu0 %v1418_v62  ;;  %4097 = vmatpush.msra.mxu1 %v1435_v63  ;;  %v1533_v62 = vld [vmem:[%s5573_s28 + $0x27c8] sm:$0xff]  ;;  %v1483_v63 = vld [vmem:[%s5573_s28 + $0x2638] sm:$0xff] }
 0x2a6   : > { %4118 = vmatpush.msra.mxu2 %v1450_v0  ;;  %4137 = vmatpush.msra.mxu3 %v1467_v1  ;;  %v1500_v0 = vld [vmem:[%s5573_s28 + $0x26c0] sm:$0xff]  ;;  %v1515_v1 = vld [vmem:[%s5573_s28 + $0x2738] sm:$0xff] }
 0x2a7   : > { %4079 = vmatpush.msra.mxu0 %v1417_v2  ;;  %4098 = vmatpush.msra.mxu1 %v1434_v3  ;;  %v1532_v2 = vld [vmem:[%s5573_s28 + $0x27c0] sm:$0xff]  ;;  %v1482_v3 = vld [vmem:[%s5573_s28 + $0x2630] sm:$0xff] }
 0x2a8   : > { %4119 = vmatpush.msra.mxu2 %v1449_v4  ;;  %4138 = vmatpush.msra.mxu3 %v1466_v5  ;;  %v1499_v4 = vld [vmem:[%s5573_s28 + $0x26b8] sm:$0xff]  ;;  %v1514_v5 = vld [vmem:[%s5573_s28 + $0x2730] sm:$0xff] }
 0x2a9   : > { %4080 = vmatpush.msra.mxu0 %v1416_v6  ;;  %4099 = vmatpush.msra.mxu1 %v1433_v7  ;;  %v1531_v6 = vld [vmem:[%s5573_s28 + $0x27b8] sm:$0xff]  ;;  %v1481_v7 = vld [vmem:[%s5573_s28 + $0x2628] sm:$0xff] }
 0x2aa   : > { %4120 = vmatpush.msra.mxu2 %v1448_v8  ;;  %4139 = vmatpush.msra.mxu3 %v1465_v9  ;;  %v1498_v8 = vld [vmem:[%s5573_s28 + $0x26b0] sm:$0xff]  ;;  %v1513_v9 = vld [vmem:[%s5573_s28 + $0x2728] sm:$0xff] }
 0x2ab   : > { %4081 = vmatpush.msra.mxu0 %v1415_v10  ;;  %4100 = vmatpush.msra.mxu1 %v1432_v11  ;;  %v1530_v10 = vld [vmem:[%s5573_s28 + $0x27b0] sm:$0xff]  ;;  %v1480_v11 = vld [vmem:[%s5573_s28 + $0x2620] sm:$0xff] }
 0x2ac   : > { %4121 = vmatpush.msra.mxu2 %v1447_v12  ;;  %4140 = vmatpush.msra.mxu3 %v1464_v13  ;;  %v1497_v12 = vld [vmem:[%s5573_s28 + $0x26a8] sm:$0xff]  ;;  %v1512_v13 = vld [vmem:[%s5573_s28 + $0x2720] sm:$0xff] }
 0x2ad   : > { %4082 = vmatpush.msra.mxu0 %v1414_v14  ;;  %4101 = vmatpush.msra.mxu1 %v1431_v15  ;;  %v1529_v14 = vld [vmem:[%s5573_s28 + $0x27a8] sm:$0xff]  ;;  %v1479_v15 = vld [vmem:[%s5573_s28 + $0x2618] sm:$0xff] }
 0x2ae   : > { %4122 = vmatpush.msra.mxu2 %v1446_v16  ;;  %4141 = vmatpush.msra.mxu3 %v1463_v17  ;;  %v1496_v16 = vld [vmem:[%s5573_s28 + $0x26a0] sm:$0xff]  ;;  %v1511_v17 = vld [vmem:[%s5573_s28 + $0x2718] sm:$0xff] }
 0x2af   : > { %4083 = vmatpush.msra.mxu0 %v1413_v18  ;;  %4102 = vmatpush.msra.mxu1 %v1430_v19  ;;  %v1528_v18 = vld [vmem:[%s5573_s28 + $0x27a0] sm:$0xff]  ;;  %v1478_v19 = vld [vmem:[%s5573_s28 + $0x2610] sm:$0xff] }
 0x2b0   : > { %4123 = vmatpush.msra.mxu2 %v1445_v21  ;;  %4142 = vmatpush.msra.mxu3 %v1462_v22  ;;  %v1510_v21 = vld [vmem:[%s5573_s28 + $0x2710] sm:$0xff]  ;;  %v1527_v22 = vld [vmem:[%s5573_s28 + $0x2798] sm:$0xff] }
 0x2b1   : > { %4084 = vmatpush.msra.mxu0 %v1412_v23  ;;  %4103 = vmatpush.msra.mxu1 %v1429_v24  ;;  %v1477_v23 = vld [vmem:[%s5573_s28 + $0x2608] sm:$0xff]  ;;  %v1494_v24 = vld [vmem:[%s5573_s28 + $0x2690] sm:$0xff] }
 0x2b2   : > { %4124 = vmatpush.msra.mxu2 %v1444_v25  ;;  %4143 = vmatpush.msra.mxu3 %v1461_v26  ;;  %v248_v25 = vld [vmem:[%s5591_s9 + $0xa0] sm:$0xff]  ;;  %v1509_v26 = vld [vmem:[%s5573_s28 + $0x2708] sm:$0xff] }
 0x2b3   : > { %4085 = vmatmul.f32.vlgmr.msra.gmra.mxu0 %v2433_v27  ;;  %4125 = vmatmul.f32.vlgmr.msra.gmra.mxu2 %v2435_v28  ;;  %v1526_v27 = vld [vmem:[%s5573_s28 + $0x2790] sm:$0xff]  ;;  %2441 = vst [vmem:[#allocation1] ss:$4 sm:$0xff] %v248_v25  ;;  %v1476_v28 = vld [vmem:[%s5573_s28 + $0x2600] sm:$0xff]  ;;  %v1559_v25 = vld [vmem:[%s5573_s28 + $0x2898] sm:$0xff] }
 0x2b4   : > { %4149 = vmatpush.msrb.mxu0 %v1491_v29  ;;  %4189 = vmatpush.msrb.mxu2 %v1523_v30  ;;  %v1493_v29 = vld [vmem:[%s5573_s28 + $0x2688] sm:$0xff]  ;;  %v1508_v30 = vld [vmem:[%s5573_s28 + $0x2700] sm:$0xff] }
 0x2b5   : > { %4104 = vmatpush.msra.mxu1 %v1428_v31  ;;  %4144 = vmatpush.msra.mxu3 %v1460_v32  ;;  %v1525_v31 = vld [vmem:[%s5573_s28 + $0x2788] sm:$0xff]  ;;  %v2437_v32 = vld.sshfl [vmem:[#allocation1 + $0x20] sm:$0xff pattern:$0x73625140] }
 0x2b6   : > { %4105 = vmatmul.f32.vlgmr.msra.gmra.mxu1 %v2434_v33  ;;  %4145 = vmatmul.f32.vlgmr.msra.gmra.mxu3 %v2436_v34  ;;  %v2439_v33 = vld.sshfl [vmem:[#allocation1 + $0x30] sm:$0xff pattern:$0x73625140]  ;;  %v1555_v34 = vld [vmem:[%s5573_s28 + $0x2878] sm:$0xff] }
 0x2b7   : > { %4150 = vmatpush.msrb.mxu0 %v1490_v35  ;;  %4169 = vmatpush.msrb.mxu1 %v1507_v36  ;;  %v1587_v35 = vld [vmem:[%s5573_s28 + $0x2978] sm:$0xff]  ;;  %v1492_v36 = vld [vmem:[%s5573_s28 + $0x2680] sm:$0xff] }
 0x2b8   : > { %4190 = vmatpush.msrb.mxu2 %v1522_v37  ;;  %4209 = vmatpush.msrb.mxu3 %v1539_v38  ;;  %v1524_v37 = vld [vmem:[%s5573_s28 + $0x2780] sm:$0xff] }
 0x2b9   : > { %4151 = vmatpush.msrb.mxu0 %v1489_v39  ;;  %4170 = vmatpush.msrb.mxu1 %v1506_v40  ;;  %v2438_v38 = vld.sshfl [vmem:[#allocation1 + $0x28] sm:$0xff pattern:$0x73625140]  ;;  %v2440_v39 = vld.sshfl [vmem:[#allocation1 + $0x38] sm:$0xff pattern:$0x73625140] }
 0x2ba   : > { %4191 = vmatpush.msrb.mxu2 %v1521_v41  ;;  %4210 = vmatpush.msrb.mxu3 %v1538_v42  ;;  %v1554_v40 = vld [vmem:[%s5573_s28 + $0x2870] sm:$0xff]  ;;  %v1571_v41 = vld [vmem:[%s5573_s28 + $0x28f8] sm:$0xff] }
 0x2bb   : > { %4152 = vmatpush.msrb.mxu0 %v1488_v43  ;;  %4171 = vmatpush.msrb.mxu1 %v1505_v44  ;;  %v1586_v42 = vld [vmem:[%s5573_s28 + $0x2970] sm:$0xff]  ;;  %v1603_v43 = vld [vmem:[%s5573_s28 + $0x29f8] sm:$0xff]  ;;  %v1553_v44 = vld [vmem:[%s5573_s28 + $0x2868] sm:$0xff] }
 0x2bc   : > { %4192 = vmatpush.msrb.mxu2 %v1520_v45  ;;  %4211 = vmatpush.msrb.mxu3 %v1537_v46  ;;  %v1570_v45 = vld [vmem:[%s5573_s28 + $0x28f0] sm:$0xff]  ;;  %v1585_v46 = vld [vmem:[%s5573_s28 + $0x2968] sm:$0xff] }
 0x2bd   : > { %4153 = vmatpush.msrb.mxu0 %v1487_v47  ;;  %4172 = vmatpush.msrb.mxu1 %v1504_v48  ;;  %v1602_v47 = vld [vmem:[%s5573_s28 + $0x29f0] sm:$0xff]  ;;  %v1552_v48 = vld [vmem:[%s5573_s28 + $0x2860] sm:$0xff] }
 0x2be   : > { %4193 = vmatpush.msrb.mxu2 %v1519_v49  ;;  %4212 = vmatpush.msrb.mxu3 %v1536_v50  ;;  %v1569_v49 = vld [vmem:[%s5573_s28 + $0x28e8] sm:$0xff]  ;;  %v1584_v50 = vld [vmem:[%s5573_s28 + $0x2960] sm:$0xff] }
 0x2bf   : > { %4154 = vmatpush.msrb.mxu0 %v1486_v51  ;;  %4173 = vmatpush.msrb.mxu1 %v1503_v52  ;;  %v1601_v51 = vld [vmem:[%s5573_s28 + $0x29e8] sm:$0xff]  ;;  %v1551_v52 = vld [vmem:[%s5573_s28 + $0x2858] sm:$0xff] }
 0x2c0   : > { %4194 = vmatpush.msrb.mxu2 %v1518_v53  ;;  %4213 = vmatpush.msrb.mxu3 %v1535_v54  ;;  %v1568_v53 = vld [vmem:[%s5573_s28 + $0x28e0] sm:$0xff]  ;;  %v1583_v54 = vld [vmem:[%s5573_s28 + $0x2958] sm:$0xff] }
 0x2c1   : > { %4155 = vmatpush.msrb.mxu0 %v1485_v55  ;;  %4174 = vmatpush.msrb.mxu1 %v1502_v56  ;;  %v1600_v55 = vld [vmem:[%s5573_s28 + $0x29e0] sm:$0xff]  ;;  %v1550_v56 = vld [vmem:[%s5573_s28 + $0x2850] sm:$0xff] }
 0x2c2   : > { %4195 = vmatpush.msrb.mxu2 %v1517_v57  ;;  %4214 = vmatpush.msrb.mxu3 %v1534_v58  ;;  %v1567_v57 = vld [vmem:[%s5573_s28 + $0x28d8] sm:$0xff]  ;;  %v1582_v58 = vld [vmem:[%s5573_s28 + $0x2950] sm:$0xff] }
 0x2c3   : > { %4156 = vmatpush.msrb.mxu0 %v1484_v59  ;;  %4175 = vmatpush.msrb.mxu1 %v1501_v60  ;;  %v1599_v59 = vld [vmem:[%s5573_s28 + $0x29d8] sm:$0xff]  ;;  %v1549_v60 = vld [vmem:[%s5573_s28 + $0x2848] sm:$0xff] }
 0x2c4   : > { %4196 = vmatpush.msrb.mxu2 %v1516_v61  ;;  %4215 = vmatpush.msrb.mxu3 %v1533_v62  ;;  %v1566_v61 = vld [vmem:[%s5573_s28 + $0x28d0] sm:$0xff]  ;;  %v1581_v62 = vld [vmem:[%s5573_s28 + $0x2948] sm:$0xff] }
 0x2c5   : > { %4157 = vmatpush.msrb.mxu0 %v1483_v63  ;;  %4176 = vmatpush.msrb.mxu1 %v1500_v0  ;;  %v1598_v63 = vld [vmem:[%s5573_s28 + $0x29d0] sm:$0xff]  ;;  %v1548_v0 = vld [vmem:[%s5573_s28 + $0x2840] sm:$0xff] }
 0x2c6   : > { %4197 = vmatpush.msrb.mxu2 %v1515_v1  ;;  %4216 = vmatpush.msrb.mxu3 %v1532_v2  ;;  %v1565_v1 = vld [vmem:[%s5573_s28 + $0x28c8] sm:$0xff]  ;;  %v1580_v2 = vld [vmem:[%s5573_s28 + $0x2940] sm:$0xff] }
 0x2c7   : > { %4158 = vmatpush.msrb.mxu0 %v1482_v3  ;;  %4177 = vmatpush.msrb.mxu1 %v1499_v4  ;;  %v1597_v3 = vld [vmem:[%s5573_s28 + $0x29c8] sm:$0xff]  ;;  %v1547_v4 = vld [vmem:[%s5573_s28 + $0x2838] sm:$0xff] }
 0x2c8   : > { %4198 = vmatpush.msrb.mxu2 %v1514_v5  ;;  %4217 = vmatpush.msrb.mxu3 %v1531_v6  ;;  %v1564_v5 = vld [vmem:[%s5573_s28 + $0x28c0] sm:$0xff]  ;;  %v1579_v6 = vld [vmem:[%s5573_s28 + $0x2938] sm:$0xff] }
 0x2c9   : > { %4159 = vmatpush.msrb.mxu0 %v1481_v7  ;;  %4178 = vmatpush.msrb.mxu1 %v1498_v8  ;;  %v1596_v7 = vld [vmem:[%s5573_s28 + $0x29c0] sm:$0xff]  ;;  %v1546_v8 = vld [vmem:[%s5573_s28 + $0x2830] sm:$0xff] }
 0x2ca   : > { %4199 = vmatpush.msrb.mxu2 %v1513_v9  ;;  %4218 = vmatpush.msrb.mxu3 %v1530_v10  ;;  %v1563_v9 = vld [vmem:[%s5573_s28 + $0x28b8] sm:$0xff]  ;;  %v1578_v10 = vld [vmem:[%s5573_s28 + $0x2930] sm:$0xff] }
 0x2cb   : > { %4160 = vmatpush.msrb.mxu0 %v1480_v11  ;;  %4179 = vmatpush.msrb.mxu1 %v1497_v12  ;;  %v1595_v11 = vld [vmem:[%s5573_s28 + $0x29b8] sm:$0xff]  ;;  %v1545_v12 = vld [vmem:[%s5573_s28 + $0x2828] sm:$0xff] }
 0x2cc   : > { %4200 = vmatpush.msrb.mxu2 %v1512_v13  ;;  %4219 = vmatpush.msrb.mxu3 %v1529_v14  ;;  %v1562_v13 = vld [vmem:[%s5573_s28 + $0x28b0] sm:$0xff]  ;;  %v1577_v14 = vld [vmem:[%s5573_s28 + $0x2928] sm:$0xff] }
 0x2cd   : > { %4161 = vmatpush.msrb.mxu0 %v1479_v15  ;;  %4180 = vmatpush.msrb.mxu1 %v1496_v16  ;;  %v1594_v15 = vld [vmem:[%s5573_s28 + $0x29b0] sm:$0xff]  ;;  %v1544_v16 = vld [vmem:[%s5573_s28 + $0x2820] sm:$0xff] }
 0x2ce   : > { %4201 = vmatpush.msrb.mxu2 %v1511_v17  ;;  %4220 = vmatpush.msrb.mxu3 %v1528_v18  ;;  %v1561_v17 = vld [vmem:[%s5573_s28 + $0x28a8] sm:$0xff]  ;;  %v1576_v18 = vld [vmem:[%s5573_s28 + $0x2920] sm:$0xff] }
 0x2cf   : > { %4162 = vmatpush.msrb.mxu0 %v1478_v19  ;;  %4181 = vmatpush.msrb.mxu1 %v1495_v20  ;;  %v1593_v19 = vld [vmem:[%s5573_s28 + $0x29a8] sm:$0xff]  ;;  %v1543_v20 = vld [vmem:[%s5573_s28 + $0x2818] sm:$0xff] }
 0x2d0   : > { %4202 = vmatpush.msrb.mxu2 %v1510_v21  ;;  %4221 = vmatpush.msrb.mxu3 %v1527_v22  ;;  %v1560_v21 = vld [vmem:[%s5573_s28 + $0x28a0] sm:$0xff]  ;;  %v1575_v22 = vld [vmem:[%s5573_s28 + $0x2918] sm:$0xff] }
 0x2d1   : > { %4163 = vmatpush.msrb.mxu0 %v1477_v23  ;;  %4182 = vmatpush.msrb.mxu1 %v1494_v24  ;;  %v1592_v23 = vld [vmem:[%s5573_s28 + $0x29a0] sm:$0xff]  ;;  %v1542_v24 = vld [vmem:[%s5573_s28 + $0x2810] sm:$0xff] }
 0x2d2   : > { %4203 = vmatpush.msrb.mxu2 %v1509_v26  ;;  %4222 = vmatpush.msrb.mxu3 %v1526_v27  ;;  %v1574_v26 = vld [vmem:[%s5573_s28 + $0x2910] sm:$0xff]  ;;  %v1591_v27 = vld [vmem:[%s5573_s28 + $0x2998] sm:$0xff] }
 0x2d3   : > { %4164 = vmatpush.msrb.mxu0 %v1476_v28  ;;  %4183 = vmatpush.msrb.mxu1 %v1493_v29  ;;  %v1541_v28 = vld [vmem:[%s5573_s28 + $0x2808] sm:$0xff]  ;;  %v1558_v29 = vld [vmem:[%s5573_s28 + $0x2890] sm:$0xff] }
 0x2d4   : > { %4204 = vmatpush.msrb.mxu2 %v1508_v30  ;;  %4223 = vmatpush.msrb.mxu3 %v1525_v31  ;;  %v249_v30 = vld [vmem:[%s5591_s9 + $0xa8] sm:$0xff]  ;;  %v1573_v31 = vld [vmem:[%s5573_s28 + $0x2908] sm:$0xff] }
 0x2d5   : > { %4165 = vmatmul.f32.vlgmr.msrb.gmra.mxu0 %v2437_v32  ;;  %4205 = vmatmul.f32.vlgmr.msrb.gmra.mxu2 %v2439_v33  ;;  %v1590_v32 = vld [vmem:[%s5573_s28 + $0x2990] sm:$0xff]  ;;  %2442 = vst [vmem:[#allocation1 + $0x20] ss:$4 sm:$0xff] %v249_v30  ;;  %v1540_v33 = vld [vmem:[%s5573_s28 + $0x2800] sm:$0xff]  ;;  %v1623_v30 = vld [vmem:[%s5573_s28 + $0x2a98] sm:$0xff] }
 0x2d6   : > { %4229 = vmatpush.msra.mxu0 %v1555_v34  ;;  %4269 = vmatpush.msra.mxu2 %v1587_v35  ;;  %v1557_v34 = vld [vmem:[%s5573_s28 + $0x2888] sm:$0xff]  ;;  %v1572_v35 = vld [vmem:[%s5573_s28 + $0x2900] sm:$0xff] }
 0x2d7   : > { %4184 = vmatpush.msrb.mxu1 %v1492_v36  ;;  %4224 = vmatpush.msrb.mxu3 %v1524_v37  ;;  %v1589_v36 = vld [vmem:[%s5573_s28 + $0x2988] sm:$0xff]  ;;  %v2443_v37 = vld.sshfl [vmem:[#allocation1] sm:$0xff pattern:$0x73625140] }
 0x2d8   : > { %4185 = vmatmul.f32.vlgmr.msrb.gmra.mxu1 %v2438_v38  ;;  %4225 = vmatmul.f32.vlgmr.msrb.gmra.mxu3 %v2440_v39  ;;  %v2445_v38 = vld.sshfl [vmem:[#allocation1 + $0x10] sm:$0xff pattern:$0x73625140]  ;;  %v1619_v39 = vld [vmem:[%s5573_s28 + $0x2a78] sm:$0xff] }
 0x2d9   : > { %4230 = vmatpush.msra.mxu0 %v1554_v40  ;;  %4249 = vmatpush.msra.mxu1 %v1571_v41  ;;  %v1651_v40 = vld [vmem:[%s5573_s28 + $0x2b78] sm:$0xff]  ;;  %v1556_v41 = vld [vmem:[%s5573_s28 + $0x2880] sm:$0xff] }
 0x2da   : > { %4270 = vmatpush.msra.mxu2 %v1586_v42  ;;  %4289 = vmatpush.msra.mxu3 %v1603_v43  ;;  %v1588_v42 = vld [vmem:[%s5573_s28 + $0x2980] sm:$0xff] }
 0x2db   : > { %4231 = vmatpush.msra.mxu0 %v1553_v44  ;;  %4250 = vmatpush.msra.mxu1 %v1570_v45  ;;  %v2444_v43 = vld.sshfl [vmem:[#allocation1 + $0x8] sm:$0xff pattern:$0x73625140]  ;;  %v2446_v44 = vld.sshfl [vmem:[#allocation1 + $0x18] sm:$0xff pattern:$0x73625140] }
 0x2dc   : > { %4271 = vmatpush.msra.mxu2 %v1585_v46  ;;  %4290 = vmatpush.msra.mxu3 %v1602_v47  ;;  %v1618_v45 = vld [vmem:[%s5573_s28 + $0x2a70] sm:$0xff]  ;;  %v1635_v46 = vld [vmem:[%s5573_s28 + $0x2af8] sm:$0xff] }
 0x2dd   : > { %4232 = vmatpush.msra.mxu0 %v1552_v48  ;;  %4251 = vmatpush.msra.mxu1 %v1569_v49  ;;  %v1650_v47 = vld [vmem:[%s5573_s28 + $0x2b70] sm:$0xff]  ;;  %v1667_v48 = vld [vmem:[%s5573_s28 + $0x2bf8] sm:$0xff]  ;;  %v1617_v49 = vld [vmem:[%s5573_s28 + $0x2a68] sm:$0xff] }
 0x2de   : > { %4272 = vmatpush.msra.mxu2 %v1584_v50  ;;  %4291 = vmatpush.msra.mxu3 %v1601_v51  ;;  %v1634_v50 = vld [vmem:[%s5573_s28 + $0x2af0] sm:$0xff]  ;;  %v1649_v51 = vld [vmem:[%s5573_s28 + $0x2b68] sm:$0xff] }
 0x2df   : > { %4233 = vmatpush.msra.mxu0 %v1551_v52  ;;  %4252 = vmatpush.msra.mxu1 %v1568_v53  ;;  %v1666_v52 = vld [vmem:[%s5573_s28 + $0x2bf0] sm:$0xff]  ;;  %v1616_v53 = vld [vmem:[%s5573_s28 + $0x2a60] sm:$0xff] }
 0x2e0   : > { %4273 = vmatpush.msra.mxu2 %v1583_v54  ;;  %4292 = vmatpush.msra.mxu3 %v1600_v55  ;;  %v1633_v54 = vld [vmem:[%s5573_s28 + $0x2ae8] sm:$0xff]  ;;  %v1648_v55 = vld [vmem:[%s5573_s28 + $0x2b60] sm:$0xff] }
 0x2e1   : > { %4234 = vmatpush.msra.mxu0 %v1550_v56  ;;  %4253 = vmatpush.msra.mxu1 %v1567_v57  ;;  %v1665_v56 = vld [vmem:[%s5573_s28 + $0x2be8] sm:$0xff]  ;;  %v1615_v57 = vld [vmem:[%s5573_s28 + $0x2a58] sm:$0xff] }
 0x2e2   : > { %4274 = vmatpush.msra.mxu2 %v1582_v58  ;;  %4293 = vmatpush.msra.mxu3 %v1599_v59  ;;  %v1632_v58 = vld [vmem:[%s5573_s28 + $0x2ae0] sm:$0xff]  ;;  %v1647_v59 = vld [vmem:[%s5573_s28 + $0x2b58] sm:$0xff] }
 0x2e3   : > { %4235 = vmatpush.msra.mxu0 %v1549_v60  ;;  %4254 = vmatpush.msra.mxu1 %v1566_v61  ;;  %v1664_v60 = vld [vmem:[%s5573_s28 + $0x2be0] sm:$0xff]  ;;  %v1614_v61 = vld [vmem:[%s5573_s28 + $0x2a50] sm:$0xff] }
 0x2e4   : > { %4275 = vmatpush.msra.mxu2 %v1581_v62  ;;  %4294 = vmatpush.msra.mxu3 %v1598_v63  ;;  %v1631_v62 = vld [vmem:[%s5573_s28 + $0x2ad8] sm:$0xff]  ;;  %v1646_v63 = vld [vmem:[%s5573_s28 + $0x2b50] sm:$0xff] }
 0x2e5   : > { %4236 = vmatpush.msra.mxu0 %v1548_v0  ;;  %4255 = vmatpush.msra.mxu1 %v1565_v1  ;;  %v1663_v0 = vld [vmem:[%s5573_s28 + $0x2bd8] sm:$0xff]  ;;  %v1613_v1 = vld [vmem:[%s5573_s28 + $0x2a48] sm:$0xff] }
 0x2e6   : > { %4276 = vmatpush.msra.mxu2 %v1580_v2  ;;  %4295 = vmatpush.msra.mxu3 %v1597_v3  ;;  %v1630_v2 = vld [vmem:[%s5573_s28 + $0x2ad0] sm:$0xff]  ;;  %v1645_v3 = vld [vmem:[%s5573_s28 + $0x2b48] sm:$0xff] }
 0x2e7   : > { %4237 = vmatpush.msra.mxu0 %v1547_v4  ;;  %4256 = vmatpush.msra.mxu1 %v1564_v5  ;;  %v1662_v4 = vld [vmem:[%s5573_s28 + $0x2bd0] sm:$0xff]  ;;  %v1612_v5 = vld [vmem:[%s5573_s28 + $0x2a40] sm:$0xff] }
 0x2e8   : > { %4277 = vmatpush.msra.mxu2 %v1579_v6  ;;  %4296 = vmatpush.msra.mxu3 %v1596_v7  ;;  %v1629_v6 = vld [vmem:[%s5573_s28 + $0x2ac8] sm:$0xff]  ;;  %v1644_v7 = vld [vmem:[%s5573_s28 + $0x2b40] sm:$0xff] }
 0x2e9   : > { %4238 = vmatpush.msra.mxu0 %v1546_v8  ;;  %4257 = vmatpush.msra.mxu1 %v1563_v9  ;;  %v1661_v8 = vld [vmem:[%s5573_s28 + $0x2bc8] sm:$0xff]  ;;  %v1611_v9 = vld [vmem:[%s5573_s28 + $0x2a38] sm:$0xff] }
 0x2ea   : > { %4278 = vmatpush.msra.mxu2 %v1578_v10  ;;  %4297 = vmatpush.msra.mxu3 %v1595_v11  ;;  %v1628_v10 = vld [vmem:[%s5573_s28 + $0x2ac0] sm:$0xff]  ;;  %v1643_v11 = vld [vmem:[%s5573_s28 + $0x2b38] sm:$0xff] }
 0x2eb   : > { %4239 = vmatpush.msra.mxu0 %v1545_v12  ;;  %4258 = vmatpush.msra.mxu1 %v1562_v13  ;;  %v1660_v12 = vld [vmem:[%s5573_s28 + $0x2bc0] sm:$0xff]  ;;  %v1610_v13 = vld [vmem:[%s5573_s28 + $0x2a30] sm:$0xff] }
 0x2ec   : > { %4279 = vmatpush.msra.mxu2 %v1577_v14  ;;  %4298 = vmatpush.msra.mxu3 %v1594_v15  ;;  %v1627_v14 = vld [vmem:[%s5573_s28 + $0x2ab8] sm:$0xff]  ;;  %v1642_v15 = vld [vmem:[%s5573_s28 + $0x2b30] sm:$0xff] }
 0x2ed   : > { %4240 = vmatpush.msra.mxu0 %v1544_v16  ;;  %4259 = vmatpush.msra.mxu1 %v1561_v17  ;;  %v1659_v16 = vld [vmem:[%s5573_s28 + $0x2bb8] sm:$0xff]  ;;  %v1609_v17 = vld [vmem:[%s5573_s28 + $0x2a28] sm:$0xff] }
 0x2ee   : > { %4280 = vmatpush.msra.mxu2 %v1576_v18  ;;  %4299 = vmatpush.msra.mxu3 %v1593_v19  ;;  %v1626_v18 = vld [vmem:[%s5573_s28 + $0x2ab0] sm:$0xff]  ;;  %v1641_v19 = vld [vmem:[%s5573_s28 + $0x2b28] sm:$0xff] }
 0x2ef   : > { %4241 = vmatpush.msra.mxu0 %v1543_v20  ;;  %4260 = vmatpush.msra.mxu1 %v1560_v21  ;;  %v1658_v20 = vld [vmem:[%s5573_s28 + $0x2bb0] sm:$0xff]  ;;  %v1608_v21 = vld [vmem:[%s5573_s28 + $0x2a20] sm:$0xff] }
 0x2f0   : > { %4281 = vmatpush.msra.mxu2 %v1575_v22  ;;  %4300 = vmatpush.msra.mxu3 %v1592_v23  ;;  %v1625_v22 = vld [vmem:[%s5573_s28 + $0x2aa8] sm:$0xff]  ;;  %v1640_v23 = vld [vmem:[%s5573_s28 + $0x2b20] sm:$0xff] }
 0x2f1   : > { %4242 = vmatpush.msra.mxu0 %v1542_v24  ;;  %4261 = vmatpush.msra.mxu1 %v1559_v25  ;;  %v1657_v24 = vld [vmem:[%s5573_s28 + $0x2ba8] sm:$0xff]  ;;  %v1607_v25 = vld [vmem:[%s5573_s28 + $0x2a18] sm:$0xff] }
 0x2f2   : > { %4282 = vmatpush.msra.mxu2 %v1574_v26  ;;  %4301 = vmatpush.msra.mxu3 %v1591_v27  ;;  %v1624_v26 = vld [vmem:[%s5573_s28 + $0x2aa0] sm:$0xff]  ;;  %v1639_v27 = vld [vmem:[%s5573_s28 + $0x2b18] sm:$0xff] }
 0x2f3   : > { %4243 = vmatpush.msra.mxu0 %v1541_v28  ;;  %4262 = vmatpush.msra.mxu1 %v1558_v29  ;;  %v1656_v28 = vld [vmem:[%s5573_s28 + $0x2ba0] sm:$0xff]  ;;  %v1606_v29 = vld [vmem:[%s5573_s28 + $0x2a10] sm:$0xff] }
 0x2f4   : > { %4283 = vmatpush.msra.mxu2 %v1573_v31  ;;  %4302 = vmatpush.msra.mxu3 %v1590_v32  ;;  %v1638_v31 = vld [vmem:[%s5573_s28 + $0x2b10] sm:$0xff]  ;;  %v1655_v32 = vld [vmem:[%s5573_s28 + $0x2b98] sm:$0xff] }
 0x2f5   : > { %4244 = vmatpush.msra.mxu0 %v1540_v33  ;;  %4263 = vmatpush.msra.mxu1 %v1557_v34  ;;  %v1605_v33 = vld [vmem:[%s5573_s28 + $0x2a08] sm:$0xff]  ;;  %v1622_v34 = vld [vmem:[%s5573_s28 + $0x2a90] sm:$0xff] }
 0x2f6   : > { %4284 = vmatpush.msra.mxu2 %v1572_v35  ;;  %4303 = vmatpush.msra.mxu3 %v1589_v36  ;;  %v250_v35 = vld [vmem:[%s5591_s9 + $0xb0] sm:$0xff] }
 0x2f7   : > { %4245 = vmatmul.f32.vlgmr.msra.gmra.mxu0 %v2443_v37  ;;  %4285 = vmatmul.f32.vlgmr.msra.gmra.mxu2 %v2445_v38  ;;  %v1637_v36 = vld [vmem:[%s5573_s28 + $0x2b08] sm:$0xff]  ;;  %v1654_v37 = vld [vmem:[%s5573_s28 + $0x2b90] sm:$0xff]  ;;  %2451 = vst [vmem:[#allocation1] ss:$4 sm:$0xff] %v250_v35  ;;  %v1604_v38 = vld [vmem:[%s5573_s28 + $0x2a00] sm:$0xff] }
 0x2f8   : > { %4309 = vmatpush.msrb.mxu0 %v1619_v39  ;;  %4349 = vmatpush.msrb.mxu2 %v1651_v40  ;;  %v1621_v39 = vld [vmem:[%s5573_s28 + $0x2a88] sm:$0xff]  ;;  %v1636_v40 = vld [vmem:[%s5573_s28 + $0x2b00] sm:$0xff]  ;;  %v1687_v35 = vld [vmem:[%s5573_s28 + $0x2c98] sm:$0xff] }
 0x2f9   : > { %4264 = vmatpush.msra.mxu1 %v1556_v41  ;;  %4304 = vmatpush.msra.mxu3 %v1588_v42  ;;  %v1653_v41 = vld [vmem:[%s5573_s28 + $0x2b88] sm:$0xff]  ;;  %v2447_v42 = vld.sshfl [vmem:[#allocation1 + $0x20] sm:$0xff pattern:$0x73625140] }
 0x2fa   : > { %4265 = vmatmul.f32.vlgmr.msra.gmra.mxu1 %v2444_v43  ;;  %4305 = vmatmul.f32.vlgmr.msra.gmra.mxu3 %v2446_v44  ;;  %v2449_v43 = vld.sshfl [vmem:[#allocation1 + $0x30] sm:$0xff pattern:$0x73625140]  ;;  %v1683_v44 = vld [vmem:[%s5573_s28 + $0x2c78] sm:$0xff] }
 0x2fb   : > { %4310 = vmatpush.msrb.mxu0 %v1618_v45  ;;  %4329 = vmatpush.msrb.mxu1 %v1635_v46  ;;  %v1715_v45 = vld [vmem:[%s5573_s28 + $0x2d78] sm:$0xff]  ;;  %v1620_v46 = vld [vmem:[%s5573_s28 + $0x2a80] sm:$0xff] }
 0x2fc   : > { %4350 = vmatpush.msrb.mxu2 %v1650_v47  ;;  %4369 = vmatpush.msrb.mxu3 %v1667_v48  ;;  %v1652_v47 = vld [vmem:[%s5573_s28 + $0x2b80] sm:$0xff] }
 0x2fd   : > { %4311 = vmatpush.msrb.mxu0 %v1617_v49  ;;  %4330 = vmatpush.msrb.mxu1 %v1634_v50  ;;  %v2448_v48 = vld.sshfl [vmem:[#allocation1 + $0x28] sm:$0xff pattern:$0x73625140]  ;;  %v2450_v49 = vld.sshfl [vmem:[#allocation1 + $0x38] sm:$0xff pattern:$0x73625140] }
 0x2fe   : > { %4351 = vmatpush.msrb.mxu2 %v1649_v51  ;;  %4370 = vmatpush.msrb.mxu3 %v1666_v52  ;;  %v1682_v50 = vld [vmem:[%s5573_s28 + $0x2c70] sm:$0xff]  ;;  %v1699_v51 = vld [vmem:[%s5573_s28 + $0x2cf8] sm:$0xff] }
 0x2ff   : > { %4312 = vmatpush.msrb.mxu0 %v1616_v53  ;;  %4331 = vmatpush.msrb.mxu1 %v1633_v54  ;;  %v1714_v52 = vld [vmem:[%s5573_s28 + $0x2d70] sm:$0xff]  ;;  %v1731_v53 = vld [vmem:[%s5573_s28 + $0x2df8] sm:$0xff]  ;;  %v1681_v54 = vld [vmem:[%s5573_s28 + $0x2c68] sm:$0xff] }
 0x300   : > { %4352 = vmatpush.msrb.mxu2 %v1648_v55  ;;  %4371 = vmatpush.msrb.mxu3 %v1665_v56  ;;  %v1698_v55 = vld [vmem:[%s5573_s28 + $0x2cf0] sm:$0xff]  ;;  %v1713_v56 = vld [vmem:[%s5573_s28 + $0x2d68] sm:$0xff] }
 0x301   : > { %4313 = vmatpush.msrb.mxu0 %v1615_v57  ;;  %4332 = vmatpush.msrb.mxu1 %v1632_v58  ;;  %v1730_v57 = vld [vmem:[%s5573_s28 + $0x2df0] sm:$0xff]  ;;  %v1680_v58 = vld [vmem:[%s5573_s28 + $0x2c60] sm:$0xff] }
 0x302   : > { %4353 = vmatpush.msrb.mxu2 %v1647_v59  ;;  %4372 = vmatpush.msrb.mxu3 %v1664_v60  ;;  %v1697_v59 = vld [vmem:[%s5573_s28 + $0x2ce8] sm:$0xff]  ;;  %v1712_v60 = vld [vmem:[%s5573_s28 + $0x2d60] sm:$0xff] }
 0x303   : > { %4314 = vmatpush.msrb.mxu0 %v1614_v61  ;;  %4333 = vmatpush.msrb.mxu1 %v1631_v62  ;;  %v1729_v61 = vld [vmem:[%s5573_s28 + $0x2de8] sm:$0xff]  ;;  %v1679_v62 = vld [vmem:[%s5573_s28 + $0x2c58] sm:$0xff] }
 0x304   : > { %4354 = vmatpush.msrb.mxu2 %v1646_v63  ;;  %4373 = vmatpush.msrb.mxu3 %v1663_v0  ;;  %v1696_v63 = vld [vmem:[%s5573_s28 + $0x2ce0] sm:$0xff]  ;;  %v1711_v0 = vld [vmem:[%s5573_s28 + $0x2d58] sm:$0xff] }
 0x305   : > { %4315 = vmatpush.msrb.mxu0 %v1613_v1  ;;  %4334 = vmatpush.msrb.mxu1 %v1630_v2  ;;  %v1728_v1 = vld [vmem:[%s5573_s28 + $0x2de0] sm:$0xff]  ;;  %v1678_v2 = vld [vmem:[%s5573_s28 + $0x2c50] sm:$0xff] }
 0x306   : > { %4355 = vmatpush.msrb.mxu2 %v1645_v3  ;;  %4374 = vmatpush.msrb.mxu3 %v1662_v4  ;;  %v1695_v3 = vld [vmem:[%s5573_s28 + $0x2cd8] sm:$0xff]  ;;  %v1710_v4 = vld [vmem:[%s5573_s28 + $0x2d50] sm:$0xff] }
 0x307   : > { %4316 = vmatpush.msrb.mxu0 %v1612_v5  ;;  %4335 = vmatpush.msrb.mxu1 %v1629_v6  ;;  %v1727_v5 = vld [vmem:[%s5573_s28 + $0x2dd8] sm:$0xff]  ;;  %v1677_v6 = vld [vmem:[%s5573_s28 + $0x2c48] sm:$0xff] }
 0x308   : > { %4356 = vmatpush.msrb.mxu2 %v1644_v7  ;;  %4375 = vmatpush.msrb.mxu3 %v1661_v8  ;;  %v1694_v7 = vld [vmem:[%s5573_s28 + $0x2cd0] sm:$0xff]  ;;  %v1709_v8 = vld [vmem:[%s5573_s28 + $0x2d48] sm:$0xff] }
 0x309   : > { %4317 = vmatpush.msrb.mxu0 %v1611_v9  ;;  %4336 = vmatpush.msrb.mxu1 %v1628_v10  ;;  %v1726_v9 = vld [vmem:[%s5573_s28 + $0x2dd0] sm:$0xff]  ;;  %v1676_v10 = vld [vmem:[%s5573_s28 + $0x2c40] sm:$0xff] }
 0x30a   : > { %4357 = vmatpush.msrb.mxu2 %v1643_v11  ;;  %4376 = vmatpush.msrb.mxu3 %v1660_v12  ;;  %v1693_v11 = vld [vmem:[%s5573_s28 + $0x2cc8] sm:$0xff]  ;;  %v1708_v12 = vld [vmem:[%s5573_s28 + $0x2d40] sm:$0xff] }
 0x30b   : > { %4318 = vmatpush.msrb.mxu0 %v1610_v13  ;;  %4337 = vmatpush.msrb.mxu1 %v1627_v14  ;;  %v1725_v13 = vld [vmem:[%s5573_s28 + $0x2dc8] sm:$0xff]  ;;  %v1675_v14 = vld [vmem:[%s5573_s28 + $0x2c38] sm:$0xff] }
 0x30c   : > { %4358 = vmatpush.msrb.mxu2 %v1642_v15  ;;  %4377 = vmatpush.msrb.mxu3 %v1659_v16  ;;  %v1692_v15 = vld [vmem:[%s5573_s28 + $0x2cc0] sm:$0xff]  ;;  %v1707_v16 = vld [vmem:[%s5573_s28 + $0x2d38] sm:$0xff] }
 0x30d   : > { %4319 = vmatpush.msrb.mxu0 %v1609_v17  ;;  %4338 = vmatpush.msrb.mxu1 %v1626_v18  ;;  %v1724_v17 = vld [vmem:[%s5573_s28 + $0x2dc0] sm:$0xff]  ;;  %v1674_v18 = vld [vmem:[%s5573_s28 + $0x2c30] sm:$0xff] }
 0x30e   : > { %4359 = vmatpush.msrb.mxu2 %v1641_v19  ;;  %4378 = vmatpush.msrb.mxu3 %v1658_v20  ;;  %v1691_v19 = vld [vmem:[%s5573_s28 + $0x2cb8] sm:$0xff]  ;;  %v1706_v20 = vld [vmem:[%s5573_s28 + $0x2d30] sm:$0xff] }
 0x30f   : > { %4320 = vmatpush.msrb.mxu0 %v1608_v21  ;;  %4339 = vmatpush.msrb.mxu1 %v1625_v22  ;;  %v1723_v21 = vld [vmem:[%s5573_s28 + $0x2db8] sm:$0xff]  ;;  %v1673_v22 = vld [vmem:[%s5573_s28 + $0x2c28] sm:$0xff] }
 0x310   : > { %4360 = vmatpush.msrb.mxu2 %v1640_v23  ;;  %4379 = vmatpush.msrb.mxu3 %v1657_v24  ;;  %v1690_v23 = vld [vmem:[%s5573_s28 + $0x2cb0] sm:$0xff]  ;;  %v1705_v24 = vld [vmem:[%s5573_s28 + $0x2d28] sm:$0xff] }
 0x311   : > { %4321 = vmatpush.msrb.mxu0 %v1607_v25  ;;  %4340 = vmatpush.msrb.mxu1 %v1624_v26  ;;  %v1722_v25 = vld [vmem:[%s5573_s28 + $0x2db0] sm:$0xff]  ;;  %v1672_v26 = vld [vmem:[%s5573_s28 + $0x2c20] sm:$0xff] }
 0x312   : > { %4361 = vmatpush.msrb.mxu2 %v1639_v27  ;;  %4380 = vmatpush.msrb.mxu3 %v1656_v28  ;;  %v1689_v27 = vld [vmem:[%s5573_s28 + $0x2ca8] sm:$0xff]  ;;  %v1704_v28 = vld [vmem:[%s5573_s28 + $0x2d20] sm:$0xff] }
 0x313   : > { %4322 = vmatpush.msrb.mxu0 %v1606_v29  ;;  %4341 = vmatpush.msrb.mxu1 %v1623_v30  ;;  %v1721_v29 = vld [vmem:[%s5573_s28 + $0x2da8] sm:$0xff]  ;;  %v1671_v30 = vld [vmem:[%s5573_s28 + $0x2c18] sm:$0xff] }
 0x314   : > { %4362 = vmatpush.msrb.mxu2 %v1638_v31  ;;  %4381 = vmatpush.msrb.mxu3 %v1655_v32  ;;  %v1688_v31 = vld [vmem:[%s5573_s28 + $0x2ca0] sm:$0xff]  ;;  %v1703_v32 = vld [vmem:[%s5573_s28 + $0x2d18] sm:$0xff] }
 0x315   : > { %4323 = vmatpush.msrb.mxu0 %v1605_v33  ;;  %4342 = vmatpush.msrb.mxu1 %v1622_v34  ;;  %v1720_v33 = vld [vmem:[%s5573_s28 + $0x2da0] sm:$0xff]  ;;  %v1670_v34 = vld [vmem:[%s5573_s28 + $0x2c10] sm:$0xff] }
 0x316   : > { %4363 = vmatpush.msrb.mxu2 %v1637_v36  ;;  %4382 = vmatpush.msrb.mxu3 %v1654_v37  ;;  %v1702_v36 = vld [vmem:[%s5573_s28 + $0x2d10] sm:$0xff]  ;;  %v1719_v37 = vld [vmem:[%s5573_s28 + $0x2d98] sm:$0xff] }
 0x317   : > { %4324 = vmatpush.msrb.mxu0 %v1604_v38  ;;  %4343 = vmatpush.msrb.mxu1 %v1621_v39  ;;  %v1669_v38 = vld [vmem:[%s5573_s28 + $0x2c08] sm:$0xff]  ;;  %v1686_v39 = vld [vmem:[%s5573_s28 + $0x2c90] sm:$0xff] }
 0x318   : > { %4364 = vmatpush.msrb.mxu2 %v1636_v40  ;;  %4383 = vmatpush.msrb.mxu3 %v1653_v41  ;;  %v251_v40 = vld [vmem:[%s5591_s9 + $0xb8] sm:$0xff] }
 0x319   : > { %4325 = vmatmul.f32.vlgmr.msrb.gmra.mxu0 %v2447_v42  ;;  %4365 = vmatmul.f32.vlgmr.msrb.gmra.mxu2 %v2449_v43  ;;  %v1701_v41 = vld [vmem:[%s5573_s28 + $0x2d08] sm:$0xff]  ;;  %v1718_v42 = vld [vmem:[%s5573_s28 + $0x2d90] sm:$0xff]  ;;  %2452 = vst [vmem:[#allocation1 + $0x20] ss:$4 sm:$0xff] %v251_v40  ;;  %v1668_v43 = vld [vmem:[%s5573_s28 + $0x2c00] sm:$0xff] }
 0x31a   : > { %4389 = vmatpush.msra.mxu0 %v1683_v44  ;;  %4429 = vmatpush.msra.mxu2 %v1715_v45  ;;  %v1685_v44 = vld [vmem:[%s5573_s28 + $0x2c88] sm:$0xff]  ;;  %v1700_v45 = vld [vmem:[%s5573_s28 + $0x2d00] sm:$0xff]  ;;  %v1751_v40 = vld [vmem:[%s5573_s28 + $0x2e98] sm:$0xff] }
 0x31b   : > { %4344 = vmatpush.msrb.mxu1 %v1620_v46  ;;  %4384 = vmatpush.msrb.mxu3 %v1652_v47  ;;  %v1717_v46 = vld [vmem:[%s5573_s28 + $0x2d88] sm:$0xff]  ;;  %v2453_v47 = vld.sshfl [vmem:[#allocation1] sm:$0xff pattern:$0x73625140] }
 0x31c   : > { %4345 = vmatmul.f32.vlgmr.msrb.gmra.mxu1 %v2448_v48  ;;  %4385 = vmatmul.f32.vlgmr.msrb.gmra.mxu3 %v2450_v49  ;;  %v2455_v48 = vld.sshfl [vmem:[#allocation1 + $0x10] sm:$0xff pattern:$0x73625140]  ;;  %v1747_v49 = vld [vmem:[%s5573_s28 + $0x2e78] sm:$0xff] }
 0x31d   : > { %4390 = vmatpush.msra.mxu0 %v1682_v50  ;;  %4409 = vmatpush.msra.mxu1 %v1699_v51  ;;  %v1779_v50 = vld [vmem:[%s5573_s28 + $0x2f78] sm:$0xff]  ;;  %v1684_v51 = vld [vmem:[%s5573_s28 + $0x2c80] sm:$0xff] }
 0x31e   : > { %4430 = vmatpush.msra.mxu2 %v1714_v52  ;;  %4449 = vmatpush.msra.mxu3 %v1731_v53  ;;  %v1716_v52 = vld [vmem:[%s5573_s28 + $0x2d80] sm:$0xff] }
 0x31f   : > { %4391 = vmatpush.msra.mxu0 %v1681_v54  ;;  %4410 = vmatpush.msra.mxu1 %v1698_v55  ;;  %v2454_v53 = vld.sshfl [vmem:[#allocation1 + $0x8] sm:$0xff pattern:$0x73625140]  ;;  %v2456_v54 = vld.sshfl [vmem:[#allocation1 + $0x18] sm:$0xff pattern:$0x73625140] }
 0x320   : > { %4431 = vmatpush.msra.mxu2 %v1713_v56  ;;  %4450 = vmatpush.msra.mxu3 %v1730_v57  ;;  %v1746_v55 = vld [vmem:[%s5573_s28 + $0x2e70] sm:$0xff]  ;;  %v1763_v56 = vld [vmem:[%s5573_s28 + $0x2ef8] sm:$0xff] }
 0x321   : > { %4392 = vmatpush.msra.mxu0 %v1680_v58  ;;  %4411 = vmatpush.msra.mxu1 %v1697_v59  ;;  %v1778_v57 = vld [vmem:[%s5573_s28 + $0x2f70] sm:$0xff]  ;;  %v1795_v58 = vld [vmem:[%s5573_s28 + $0x2ff8] sm:$0xff]  ;;  %v1745_v59 = vld [vmem:[%s5573_s28 + $0x2e68] sm:$0xff] }
 0x322   : > { %4432 = vmatpush.msra.mxu2 %v1712_v60  ;;  %4451 = vmatpush.msra.mxu3 %v1729_v61  ;;  %v1762_v60 = vld [vmem:[%s5573_s28 + $0x2ef0] sm:$0xff]  ;;  %v1777_v61 = vld [vmem:[%s5573_s28 + $0x2f68] sm:$0xff] }
 0x323   : > { %4393 = vmatpush.msra.mxu0 %v1679_v62  ;;  %4412 = vmatpush.msra.mxu1 %v1696_v63  ;;  %v1794_v62 = vld [vmem:[%s5573_s28 + $0x2ff0] sm:$0xff]  ;;  %v1744_v63 = vld [vmem:[%s5573_s28 + $0x2e60] sm:$0xff] }
 0x324   : > { %4433 = vmatpush.msra.mxu2 %v1711_v0  ;;  %4452 = vmatpush.msra.mxu3 %v1728_v1  ;;  %v1761_v0 = vld [vmem:[%s5573_s28 + $0x2ee8] sm:$0xff]  ;;  %v1776_v1 = vld [vmem:[%s5573_s28 + $0x2f60] sm:$0xff] }
 0x325   : > { %4394 = vmatpush.msra.mxu0 %v1678_v2  ;;  %4413 = vmatpush.msra.mxu1 %v1695_v3  ;;  %v1793_v2 = vld [vmem:[%s5573_s28 + $0x2fe8] sm:$0xff]  ;;  %v1743_v3 = vld [vmem:[%s5573_s28 + $0x2e58] sm:$0xff] }
 0x326   : > { %4434 = vmatpush.msra.mxu2 %v1710_v4  ;;  %4453 = vmatpush.msra.mxu3 %v1727_v5  ;;  %v1760_v4 = vld [vmem:[%s5573_s28 + $0x2ee0] sm:$0xff]  ;;  %v1775_v5 = vld [vmem:[%s5573_s28 + $0x2f58] sm:$0xff] }
 0x327   : > { %4395 = vmatpush.msra.mxu0 %v1677_v6  ;;  %4414 = vmatpush.msra.mxu1 %v1694_v7  ;;  %v1792_v6 = vld [vmem:[%s5573_s28 + $0x2fe0] sm:$0xff]  ;;  %v1742_v7 = vld [vmem:[%s5573_s28 + $0x2e50] sm:$0xff] }
 0x328   : > { %4435 = vmatpush.msra.mxu2 %v1709_v8  ;;  %4454 = vmatpush.msra.mxu3 %v1726_v9  ;;  %v1759_v8 = vld [vmem:[%s5573_s28 + $0x2ed8] sm:$0xff]  ;;  %v1774_v9 = vld [vmem:[%s5573_s28 + $0x2f50] sm:$0xff] }
 0x329   : > { %4396 = vmatpush.msra.mxu0 %v1676_v10  ;;  %4415 = vmatpush.msra.mxu1 %v1693_v11  ;;  %v1791_v10 = vld [vmem:[%s5573_s28 + $0x2fd8] sm:$0xff]  ;;  %v1741_v11 = vld [vmem:[%s5573_s28 + $0x2e48] sm:$0xff] }
 0x32a   : > { %4436 = vmatpush.msra.mxu2 %v1708_v12  ;;  %4455 = vmatpush.msra.mxu3 %v1725_v13  ;;  %v1758_v12 = vld [vmem:[%s5573_s28 + $0x2ed0] sm:$0xff]  ;;  %v1773_v13 = vld [vmem:[%s5573_s28 + $0x2f48] sm:$0xff] }
 0x32b   : > { %4397 = vmatpush.msra.mxu0 %v1675_v14  ;;  %4416 = vmatpush.msra.mxu1 %v1692_v15  ;;  %v1790_v14 = vld [vmem:[%s5573_s28 + $0x2fd0] sm:$0xff]  ;;  %v1740_v15 = vld [vmem:[%s5573_s28 + $0x2e40] sm:$0xff] }
 0x32c   : > { %4437 = vmatpush.msra.mxu2 %v1707_v16  ;;  %4456 = vmatpush.msra.mxu3 %v1724_v17  ;;  %v1757_v16 = vld [vmem:[%s5573_s28 + $0x2ec8] sm:$0xff]  ;;  %v1772_v17 = vld [vmem:[%s5573_s28 + $0x2f40] sm:$0xff] }
 0x32d   : > { %4398 = vmatpush.msra.mxu0 %v1674_v18  ;;  %4417 = vmatpush.msra.mxu1 %v1691_v19  ;;  %v1789_v18 = vld [vmem:[%s5573_s28 + $0x2fc8] sm:$0xff]  ;;  %v1739_v19 = vld [vmem:[%s5573_s28 + $0x2e38] sm:$0xff] }
 0x32e   : > { %4438 = vmatpush.msra.mxu2 %v1706_v20  ;;  %4457 = vmatpush.msra.mxu3 %v1723_v21  ;;  %v1756_v20 = vld [vmem:[%s5573_s28 + $0x2ec0] sm:$0xff]  ;;  %v1771_v21 = vld [vmem:[%s5573_s28 + $0x2f38] sm:$0xff] }
 0x32f   : > { %4399 = vmatpush.msra.mxu0 %v1673_v22  ;;  %4418 = vmatpush.msra.mxu1 %v1690_v23  ;;  %v1788_v22 = vld [vmem:[%s5573_s28 + $0x2fc0] sm:$0xff]  ;;  %v1738_v23 = vld [vmem:[%s5573_s28 + $0x2e30] sm:$0xff] }
 0x330   : > { %4439 = vmatpush.msra.mxu2 %v1705_v24  ;;  %4458 = vmatpush.msra.mxu3 %v1722_v25  ;;  %v1755_v24 = vld [vmem:[%s5573_s28 + $0x2eb8] sm:$0xff]  ;;  %v1770_v25 = vld [vmem:[%s5573_s28 + $0x2f30] sm:$0xff] }
 0x331   : > { %4400 = vmatpush.msra.mxu0 %v1672_v26  ;;  %4419 = vmatpush.msra.mxu1 %v1689_v27  ;;  %v1787_v26 = vld [vmem:[%s5573_s28 + $0x2fb8] sm:$0xff]  ;;  %v1737_v27 = vld [vmem:[%s5573_s28 + $0x2e28] sm:$0xff] }
 0x332   : > { %4440 = vmatpush.msra.mxu2 %v1704_v28  ;;  %4459 = vmatpush.msra.mxu3 %v1721_v29  ;;  %v1754_v28 = vld [vmem:[%s5573_s28 + $0x2eb0] sm:$0xff]  ;;  %v1769_v29 = vld [vmem:[%s5573_s28 + $0x2f28] sm:$0xff] }
 0x333   : > { %4401 = vmatpush.msra.mxu0 %v1671_v30  ;;  %4420 = vmatpush.msra.mxu1 %v1688_v31  ;;  %v1786_v30 = vld [vmem:[%s5573_s28 + $0x2fb0] sm:$0xff]  ;;  %v1736_v31 = vld [vmem:[%s5573_s28 + $0x2e20] sm:$0xff] }
 0x334   : > { %4441 = vmatpush.msra.mxu2 %v1703_v32  ;;  %4460 = vmatpush.msra.mxu3 %v1720_v33  ;;  %v1753_v32 = vld [vmem:[%s5573_s28 + $0x2ea8] sm:$0xff]  ;;  %v1768_v33 = vld [vmem:[%s5573_s28 + $0x2f20] sm:$0xff] }
 0x335   : > { %4402 = vmatpush.msra.mxu0 %v1670_v34  ;;  %4421 = vmatpush.msra.mxu1 %v1687_v35  ;;  %v1785_v34 = vld [vmem:[%s5573_s28 + $0x2fa8] sm:$0xff]  ;;  %v1735_v35 = vld [vmem:[%s5573_s28 + $0x2e18] sm:$0xff] }
 0x336   : > { %4442 = vmatpush.msra.mxu2 %v1702_v36  ;;  %4461 = vmatpush.msra.mxu3 %v1719_v37  ;;  %v1752_v36 = vld [vmem:[%s5573_s28 + $0x2ea0] sm:$0xff]  ;;  %v1767_v37 = vld [vmem:[%s5573_s28 + $0x2f18] sm:$0xff] }
 0x337   : > { %4403 = vmatpush.msra.mxu0 %v1669_v38  ;;  %4422 = vmatpush.msra.mxu1 %v1686_v39  ;;  %v1784_v38 = vld [vmem:[%s5573_s28 + $0x2fa0] sm:$0xff]  ;;  %v1734_v39 = vld [vmem:[%s5573_s28 + $0x2e10] sm:$0xff] }
 0x338   : > { %4443 = vmatpush.msra.mxu2 %v1701_v41  ;;  %4462 = vmatpush.msra.mxu3 %v1718_v42  ;;  %v1766_v41 = vld [vmem:[%s5573_s28 + $0x2f10] sm:$0xff]  ;;  %v1783_v42 = vld [vmem:[%s5573_s28 + $0x2f98] sm:$0xff] }
 0x339   : > { %4404 = vmatpush.msra.mxu0 %v1668_v43  ;;  %4423 = vmatpush.msra.mxu1 %v1685_v44  ;;  %v1733_v43 = vld [vmem:[%s5573_s28 + $0x2e08] sm:$0xff]  ;;  %v1750_v44 = vld [vmem:[%s5573_s28 + $0x2e90] sm:$0xff] }
 0x33a   : > { %4444 = vmatpush.msra.mxu2 %v1700_v45  ;;  %4463 = vmatpush.msra.mxu3 %v1717_v46  ;;  %v252_v45 = vld [vmem:[%s5591_s9 + $0xc0] sm:$0xff]  ;;  %v1765_v46 = vld [vmem:[%s5573_s28 + $0x2f08] sm:$0xff] }
 0x33b   : > { %4405 = vmatmul.f32.vlgmr.msra.gmra.mxu0 %v2453_v47  ;;  %4445 = vmatmul.f32.vlgmr.msra.gmra.mxu2 %v2455_v48  ;;  %v1782_v47 = vld [vmem:[%s5573_s28 + $0x2f90] sm:$0xff]  ;;  %2461 = vst [vmem:[#allocation1] ss:$4 sm:$0xff] %v252_v45  ;;  %v1732_v48 = vld [vmem:[%s5573_s28 + $0x2e00] sm:$0xff]  ;;  %v1831_v45 = vld [vmem:[%s5573_s28 + $0x3118] sm:$0xff] }
 0x33c   : > { %4469 = vmatpush.msrb.mxu0 %v1747_v49  ;;  %4509 = vmatpush.msrb.mxu2 %v1779_v50  ;;  %v1749_v49 = vld [vmem:[%s5573_s28 + $0x2e88] sm:$0xff]  ;;  %v1764_v50 = vld [vmem:[%s5573_s28 + $0x2f00] sm:$0xff] }
 0x33d   : > { %4424 = vmatpush.msra.mxu1 %v1684_v51  ;;  %4464 = vmatpush.msra.mxu3 %v1716_v52  ;;  %v1781_v51 = vld [vmem:[%s5573_s28 + $0x2f88] sm:$0xff]  ;;  %v2457_v52 = vld.sshfl [vmem:[#allocation1 + $0x20] sm:$0xff pattern:$0x73625140] }
 0x33e   : > { %4425 = vmatmul.f32.vlgmr.msra.gmra.mxu1 %v2454_v53  ;;  %4465 = vmatmul.f32.vlgmr.msra.gmra.mxu3 %v2456_v54  ;;  %v2459_v53 = vld.sshfl [vmem:[#allocation1 + $0x30] sm:$0xff pattern:$0x73625140]  ;;  %v1811_v54 = vld [vmem:[%s5573_s28 + $0x3078] sm:$0xff] }
 0x33f   : > { %4470 = vmatpush.msrb.mxu0 %v1746_v55  ;;  %4489 = vmatpush.msrb.mxu1 %v1763_v56  ;;  %v1843_v55 = vld [vmem:[%s5573_s28 + $0x3178] sm:$0xff]  ;;  %v1748_v56 = vld [vmem:[%s5573_s28 + $0x2e80] sm:$0xff] }
 0x340   : > { %4510 = vmatpush.msrb.mxu2 %v1778_v57  ;;  %4529 = vmatpush.msrb.mxu3 %v1795_v58  ;;  %v1780_v57 = vld [vmem:[%s5573_s28 + $0x2f80] sm:$0xff] }
 0x341   : > { %4471 = vmatpush.msrb.mxu0 %v1745_v59  ;;  %4490 = vmatpush.msrb.mxu1 %v1762_v60  ;;  %v2458_v58 = vld.sshfl [vmem:[#allocation1 + $0x28] sm:$0xff pattern:$0x73625140]  ;;  %v2460_v59 = vld.sshfl [vmem:[#allocation1 + $0x38] sm:$0xff pattern:$0x73625140] }
 0x342   : > { %4511 = vmatpush.msrb.mxu2 %v1777_v61  ;;  %4530 = vmatpush.msrb.mxu3 %v1794_v62  ;;  %v1810_v60 = vld [vmem:[%s5573_s28 + $0x3070] sm:$0xff]  ;;  %v1827_v61 = vld [vmem:[%s5573_s28 + $0x30f8] sm:$0xff] }
 0x343   : > { %4472 = vmatpush.msrb.mxu0 %v1744_v63  ;;  %4491 = vmatpush.msrb.mxu1 %v1761_v0  ;;  %v1842_v62 = vld [vmem:[%s5573_s28 + $0x3170] sm:$0xff]  ;;  %v1859_v63 = vld [vmem:[%s5573_s28 + $0x31f8] sm:$0xff]  ;;  %v1809_v0 = vld [vmem:[%s5573_s28 + $0x3068] sm:$0xff] }
 0x344   : > { %4512 = vmatpush.msrb.mxu2 %v1776_v1  ;;  %4531 = vmatpush.msrb.mxu3 %v1793_v2  ;;  %v1826_v1 = vld [vmem:[%s5573_s28 + $0x30f0] sm:$0xff]  ;;  %v1841_v2 = vld [vmem:[%s5573_s28 + $0x3168] sm:$0xff] }
 0x345   : > { %4473 = vmatpush.msrb.mxu0 %v1743_v3  ;;  %4492 = vmatpush.msrb.mxu1 %v1760_v4  ;;  %v1858_v3 = vld [vmem:[%s5573_s28 + $0x31f0] sm:$0xff]  ;;  %v1808_v4 = vld [vmem:[%s5573_s28 + $0x3060] sm:$0xff] }
 0x346   : > { %4513 = vmatpush.msrb.mxu2 %v1775_v5  ;;  %4532 = vmatpush.msrb.mxu3 %v1792_v6  ;;  %v1825_v5 = vld [vmem:[%s5573_s28 + $0x30e8] sm:$0xff]  ;;  %v1840_v6 = vld [vmem:[%s5573_s28 + $0x3160] sm:$0xff] }
 0x347   : > { %4474 = vmatpush.msrb.mxu0 %v1742_v7  ;;  %4493 = vmatpush.msrb.mxu1 %v1759_v8  ;;  %v1857_v7 = vld [vmem:[%s5573_s28 + $0x31e8] sm:$0xff]  ;;  %v1807_v8 = vld [vmem:[%s5573_s28 + $0x3058] sm:$0xff] }
 0x348   : > { %4514 = vmatpush.msrb.mxu2 %v1774_v9  ;;  %4533 = vmatpush.msrb.mxu3 %v1791_v10  ;;  %v1824_v9 = vld [vmem:[%s5573_s28 + $0x30e0] sm:$0xff]  ;;  %v1839_v10 = vld [vmem:[%s5573_s28 + $0x3158] sm:$0xff] }
 0x349   : > { %4475 = vmatpush.msrb.mxu0 %v1741_v11  ;;  %4494 = vmatpush.msrb.mxu1 %v1758_v12  ;;  %v1856_v11 = vld [vmem:[%s5573_s28 + $0x31e0] sm:$0xff]  ;;  %v1806_v12 = vld [vmem:[%s5573_s28 + $0x3050] sm:$0xff] }
 0x34a   : > { %4515 = vmatpush.msrb.mxu2 %v1773_v13  ;;  %4534 = vmatpush.msrb.mxu3 %v1790_v14  ;;  %v1823_v13 = vld [vmem:[%s5573_s28 + $0x30d8] sm:$0xff]  ;;  %v1838_v14 = vld [vmem:[%s5573_s28 + $0x3150] sm:$0xff] }
 0x34b   : > { %4476 = vmatpush.msrb.mxu0 %v1740_v15  ;;  %4495 = vmatpush.msrb.mxu1 %v1757_v16  ;;  %v1855_v15 = vld [vmem:[%s5573_s28 + $0x31d8] sm:$0xff]  ;;  %v1805_v16 = vld [vmem:[%s5573_s28 + $0x3048] sm:$0xff] }
 0x34c   : > { %4516 = vmatpush.msrb.mxu2 %v1772_v17  ;;  %4535 = vmatpush.msrb.mxu3 %v1789_v18  ;;  %v1822_v17 = vld [vmem:[%s5573_s28 + $0x30d0] sm:$0xff]  ;;  %v1837_v18 = vld [vmem:[%s5573_s28 + $0x3148] sm:$0xff] }
 0x34d   : > { %4477 = vmatpush.msrb.mxu0 %v1739_v19  ;;  %4496 = vmatpush.msrb.mxu1 %v1756_v20  ;;  %v1854_v19 = vld [vmem:[%s5573_s28 + $0x31d0] sm:$0xff]  ;;  %v1804_v20 = vld [vmem:[%s5573_s28 + $0x3040] sm:$0xff] }
 0x34e   : > { %4517 = vmatpush.msrb.mxu2 %v1771_v21  ;;  %4536 = vmatpush.msrb.mxu3 %v1788_v22  ;;  %v1821_v21 = vld [vmem:[%s5573_s28 + $0x30c8] sm:$0xff]  ;;  %v1836_v22 = vld [vmem:[%s5573_s28 + $0x3140] sm:$0xff] }
 0x34f   : > { %4478 = vmatpush.msrb.mxu0 %v1738_v23  ;;  %4497 = vmatpush.msrb.mxu1 %v1755_v24  ;;  %v1853_v23 = vld [vmem:[%s5573_s28 + $0x31c8] sm:$0xff]  ;;  %v1803_v24 = vld [vmem:[%s5573_s28 + $0x3038] sm:$0xff] }
 0x350   : > { %4518 = vmatpush.msrb.mxu2 %v1770_v25  ;;  %4537 = vmatpush.msrb.mxu3 %v1787_v26  ;;  %v1820_v25 = vld [vmem:[%s5573_s28 + $0x30c0] sm:$0xff]  ;;  %v1835_v26 = vld [vmem:[%s5573_s28 + $0x3138] sm:$0xff] }
 0x351   : > { %4479 = vmatpush.msrb.mxu0 %v1737_v27  ;;  %4498 = vmatpush.msrb.mxu1 %v1754_v28  ;;  %v1852_v27 = vld [vmem:[%s5573_s28 + $0x31c0] sm:$0xff]  ;;  %v1802_v28 = vld [vmem:[%s5573_s28 + $0x3030] sm:$0xff] }
 0x352   : > { %4519 = vmatpush.msrb.mxu2 %v1769_v29  ;;  %4538 = vmatpush.msrb.mxu3 %v1786_v30  ;;  %v1819_v29 = vld [vmem:[%s5573_s28 + $0x30b8] sm:$0xff]  ;;  %v1834_v30 = vld [vmem:[%s5573_s28 + $0x3130] sm:$0xff] }
 0x353   : > { %4480 = vmatpush.msrb.mxu0 %v1736_v31  ;;  %4499 = vmatpush.msrb.mxu1 %v1753_v32  ;;  %v1851_v31 = vld [vmem:[%s5573_s28 + $0x31b8] sm:$0xff]  ;;  %v1801_v32 = vld [vmem:[%s5573_s28 + $0x3028] sm:$0xff] }
 0x354   : > { %4520 = vmatpush.msrb.mxu2 %v1768_v33  ;;  %4539 = vmatpush.msrb.mxu3 %v1785_v34  ;;  %v1818_v33 = vld [vmem:[%s5573_s28 + $0x30b0] sm:$0xff]  ;;  %v1833_v34 = vld [vmem:[%s5573_s28 + $0x3128] sm:$0xff] }
 0x355   : > { %4481 = vmatpush.msrb.mxu0 %v1735_v35  ;;  %4500 = vmatpush.msrb.mxu1 %v1752_v36  ;;  %v1850_v35 = vld [vmem:[%s5573_s28 + $0x31b0] sm:$0xff]  ;;  %v2666_v36 = vpop.f32.mrf.mxu1 }
 0x356   : > { %4521 = vmatpush.msrb.mxu2 %v1767_v37  ;;  %4540 = vmatpush.msrb.mxu3 %v1784_v38  ;;  %v1800_v37 = vld [vmem:[%s5573_s28 + $0x3020] sm:$0xff]  ;;  %v1817_v38 = vld [vmem:[%s5573_s28 + $0x30a8] sm:$0xff] }
 0x357   : > { %4482 = vmatpush.msrb.mxu0 %v1734_v39  ;;  %4501 = vmatpush.msrb.mxu1 %v1751_v40  ;;  %v1832_v39 = vld [vmem:[%s5573_s28 + $0x3120] sm:$0xff]  ;;  %v1849_v40 = vld [vmem:[%s5573_s28 + $0x31a8] sm:$0xff] }
 0x358   : > { %4522 = vmatpush.msrb.mxu2 %v1766_v41  ;;  %4541 = vmatpush.msrb.mxu3 %v1783_v42  ;;  %v2646_v41 = vpop.f32.mrf.mxu0  ;;  %v1799_v42 = vld [vmem:[%s5573_s28 + $0x3018] sm:$0xff] }
 0x359   : > { %4483 = vmatpush.msrb.mxu0 %v1733_v43  ;;  %4502 = vmatpush.msrb.mxu1 %v1750_v44  ;;  %v1816_v43 = vld [vmem:[%s5573_s28 + $0x30a0] sm:$0xff]  ;;  %v2667_v44 = vadd.f32 %v2666_v36, %v2646_v41  ;;  %v1886_v36 = vld [vmem:[%s5573_s28 + $0x32d0] sm:$0xff]  ;;  %v1885_v41 = vld [vmem:[%s5573_s28 + $0x32c8] sm:$0xff] }
 0x35a   : > { %4523 = vmatpush.msrb.mxu2 %v1765_v46  ;;  %4542 = vmatpush.msrb.mxu3 %v1782_v47  ;;  %v1848_v46 = vld [vmem:[%s5573_s28 + $0x31a0] sm:$0xff]  ;;  %v2686_v47 = vpop.f32.mrf.mxu2 }
 0x35b   : > { %4484 = vmatpush.msrb.mxu0 %v1732_v48  ;;  %4503 = vmatpush.msrb.mxu1 %v1749_v49  ;;  %v1798_v48 = vld [vmem:[%s5573_s28 + $0x3010] sm:$0xff]  ;;  %v1815_v49 = vld [vmem:[%s5573_s28 + $0x3098] sm:$0xff] }
 0x35c   : > { %4524 = vmatpush.msrb.mxu2 %v1764_v50  ;;  %4543 = vmatpush.msrb.mxu3 %v1781_v51  ;;  %v1830_v50 = vld [vmem:[%s5573_s28 + $0x3110] sm:$0xff]  ;;  %v1847_v51 = vld [vmem:[%s5573_s28 + $0x3198] sm:$0xff] }
 0x35d   : > { %4485 = vmatmul.f32.vlgmr.msrb.gmra.mxu0 %v2457_v52  ;;  %4525 = vmatmul.f32.vlgmr.msrb.gmra.mxu2 %v2459_v53  ;;  %v1797_v52 = vld [vmem:[%s5573_s28 + $0x3008] sm:$0xff]  ;;  %v1814_v53 = vld [vmem:[%s5573_s28 + $0x3090] sm:$0xff] }
 0x35e   : > { %4549 = vmatpush.msra.mxu0 %v1811_v54  ;;  %4589 = vmatpush.msra.mxu2 %v1843_v55  ;;  %v253_v54 = vld [vmem:[%s5591_s9 + $0xc8] sm:$0xff]  ;;  %v2687_v55 = vadd.f32 %v2686_v47, %v2667_v44  ;;  %v1917_v44 = vld [vmem:[%s5573_s28 + $0x33c8] sm:$0xff] }
 0x35f   : > { %4504 = vmatpush.msrb.mxu1 %v1748_v56  ;;  %4544 = vmatpush.msrb.mxu3 %v1780_v57  ;;  %v1829_v56 = vld [vmem:[%s5573_s28 + $0x3108] sm:$0xff]  ;;  %v1846_v57 = vld [vmem:[%s5573_s28 + $0x3190] sm:$0xff]  ;;  %2462 = vst [vmem:[#allocation1 + $0x20] ss:$4 sm:$0xff] %v253_v54  ;;  %v1915_v54 = vld [vmem:[%s5573_s28 + $0x33b8] sm:$0xff] }
 0x360   : > { %4505 = vmatmul.f32.vlgmr.msrb.gmra.mxu1 %v2458_v58  ;;  %4545 = vmatmul.f32.vlgmr.msrb.gmra.mxu3 %v2460_v59  ;;  %v2706_v58 = vpop.f32.mrf.mxu3  ;;  %v1796_v59 = vld [vmem:[%s5573_s28 + $0x3000] sm:$0xff] }
 0x361   : > { %4550 = vmatpush.msra.mxu0 %v1810_v60  ;;  %4569 = vmatpush.msra.mxu1 %v1827_v61  ;;  %v1813_v60 = vld [vmem:[%s5573_s28 + $0x3088] sm:$0xff]  ;;  %v1828_v61 = vld [vmem:[%s5573_s28 + $0x3100] sm:$0xff] }
 0x362   : > { %4590 = vmatpush.msra.mxu2 %v1842_v62  ;;  %4609 = vmatpush.msra.mxu3 %v1859_v63  ;;  %v1845_v62 = vld [vmem:[%s5573_s28 + $0x3188] sm:$0xff]  ;;  %v2463_v63 = vld.sshfl [vmem:[#allocation1] sm:$0xff pattern:$0x73625140] }
 0x363   : > { %4551 = vmatpush.msra.mxu0 %v1809_v0  ;;  %4570 = vmatpush.msra.mxu1 %v1826_v1  ;;  %v2465_v0 = vld.sshfl [vmem:[#allocation1 + $0x10] sm:$0xff pattern:$0x73625140]  ;;  %v2707_v1 = vadd.f32 %v2706_v58, %v2687_v55 }
 0x364   : > { %4591 = vmatpush.msra.mxu2 %v1841_v2  ;;  %4610 = vmatpush.msra.mxu3 %v1858_v3  ;;  %v1875_v2 = vld [vmem:[%s5573_s28 + $0x3278] sm:$0xff] }
 0x365   : > { %4552 = vmatpush.msra.mxu0 %v1808_v4  ;;  %4571 = vmatpush.msra.mxu1 %v1825_v5  ;;  %v1907_v3 = vld [vmem:[%s5573_s28 + $0x3378] sm:$0xff]  ;;  %v2726_v4 = vpop.f32.mrf.mxu0  ;;  %v1812_v5 = vld [vmem:[%s5573_s28 + $0x3080] sm:$0xff] }
 0x366   : > { %4592 = vmatpush.msra.mxu2 %v1840_v6  ;;  %4611 = vmatpush.msra.mxu3 %v1857_v7  ;;  %v1844_v6 = vld [vmem:[%s5573_s28 + $0x3180] sm:$0xff] }
 0x367   : > { %4553 = vmatpush.msra.mxu0 %v1807_v8  ;;  %4572 = vmatpush.msra.mxu1 %v1824_v9  ;;  %v2464_v7 = vld.sshfl [vmem:[#allocation1 + $0x8] sm:$0xff pattern:$0x73625140]  ;;  %v2466_v8 = vld.sshfl [vmem:[#allocation1 + $0x18] sm:$0xff pattern:$0x73625140] }
 0x368   : > { %4593 = vmatpush.msra.mxu2 %v1839_v10  ;;  %4612 = vmatpush.msra.mxu3 %v1856_v11  ;;  %v1874_v9 = vld [vmem:[%s5573_s28 + $0x3270] sm:$0xff]  ;;  %v1891_v10 = vld [vmem:[%s5573_s28 + $0x32f8] sm:$0xff]  ;;  %v2727_v11 = vadd.f32 %v2726_v4, %v2707_v1  ;;  %v1913_v1 = vld [vmem:[%s5573_s28 + $0x33a8] sm:$0xff] }
 0x369   : > { %4554 = vmatpush.msra.mxu0 %v1806_v12  ;;  %4573 = vmatpush.msra.mxu1 %v1823_v13  ;;  %v1906_v12 = vld [vmem:[%s5573_s28 + $0x3370] sm:$0xff]  ;;  %v1923_v13 = vld [vmem:[%s5573_s28 + $0x33f8] sm:$0xff]  ;;  %v1880_v4 = vld [vmem:[%s5573_s28 + $0x32a0] sm:$0xff] }
 0x36a   : > { %4594 = vmatpush.msra.mxu2 %v1838_v14  ;;  %4613 = vmatpush.msra.mxu3 %v1855_v15  ;;  %v2746_v14 = vpop.f32.mrf.mxu1  ;;  %v1873_v15 = vld [vmem:[%s5573_s28 + $0x3268] sm:$0xff] }
 0x36b   : > { %4555 = vmatpush.msra.mxu0 %v1805_v16  ;;  %4574 = vmatpush.msra.mxu1 %v1822_v17  ;;  %v1890_v16 = vld [vmem:[%s5573_s28 + $0x32f0] sm:$0xff]  ;;  %v1905_v17 = vld [vmem:[%s5573_s28 + $0x3368] sm:$0xff] }
 0x36c   : > { %4595 = vmatpush.msra.mxu2 %v1837_v18  ;;  %4614 = vmatpush.msra.mxu3 %v1854_v19  ;;  %v1922_v18 = vld [vmem:[%s5573_s28 + $0x33f0] sm:$0xff]  ;;  %v1872_v19 = vld [vmem:[%s5573_s28 + $0x3260] sm:$0xff] }
 0x36d   : > { %4556 = vmatpush.msra.mxu0 %v1804_v20  ;;  %4575 = vmatpush.msra.mxu1 %v1821_v21  ;;  %v1889_v20 = vld [vmem:[%s5573_s28 + $0x32e8] sm:$0xff]  ;;  %v2747_v21 = vadd.f32 %v2746_v14, %v2727_v11  ;;  %v1894_v11 = vld [vmem:[%s5573_s28 + $0x3310] sm:$0xff] }
 0x36e   : > { %4596 = vmatpush.msra.mxu2 %v1836_v22  ;;  %4615 = vmatpush.msra.mxu3 %v1853_v23  ;;  %v1904_v22 = vld [vmem:[%s5573_s28 + $0x3360] sm:$0xff]  ;;  %v1921_v23 = vld [vmem:[%s5573_s28 + $0x33e8] sm:$0xff]  ;;  %v1878_v14 = vld [vmem:[%s5573_s28 + $0x3290] sm:$0xff] }
 0x36f   : > { %4557 = vmatpush.msra.mxu0 %v1803_v24  ;;  %4576 = vmatpush.msra.mxu1 %v1820_v25  ;;  %v2766_v24 = vpop.f32.mrf.mxu2  ;;  %v1871_v25 = vld [vmem:[%s5573_s28 + $0x3258] sm:$0xff] }
 0x370   : > { %4597 = vmatpush.msra.mxu2 %v1835_v26  ;;  %4616 = vmatpush.msra.mxu3 %v1852_v27  ;;  %v1888_v26 = vld [vmem:[%s5573_s28 + $0x32e0] sm:$0xff]  ;;  %v1903_v27 = vld [vmem:[%s5573_s28 + $0x3358] sm:$0xff] }
 0x371   : > { %4558 = vmatpush.msra.mxu0 %v1802_v28  ;;  %4577 = vmatpush.msra.mxu1 %v1819_v29  ;;  %v1920_v28 = vld [vmem:[%s5573_s28 + $0x33e0] sm:$0xff]  ;;  %v1870_v29 = vld [vmem:[%s5573_s28 + $0x3250] sm:$0xff] }
 0x372   : > { %4598 = vmatpush.msra.mxu2 %v1834_v30  ;;  %4617 = vmatpush.msra.mxu3 %v1851_v31  ;;  %v1887_v30 = vld [vmem:[%s5573_s28 + $0x32d8] sm:$0xff]  ;;  %v2767_v31 = vadd.f32 %v2766_v24, %v2747_v21  ;;  %v1877_v21 = vld [vmem:[%s5573_s28 + $0x3288] sm:$0xff] }
 0x373   : > { %4559 = vmatpush.msra.mxu0 %v1801_v32  ;;  %4578 = vmatpush.msra.mxu1 %v1818_v33  ;;  %v1902_v32 = vld [vmem:[%s5573_s28 + $0x3350] sm:$0xff]  ;;  %v1919_v33 = vld [vmem:[%s5573_s28 + $0x33d8] sm:$0xff] }
 0x374   : > { %4599 = vmatpush.msra.mxu2 %v1833_v34  ;;  %4618 = vmatpush.msra.mxu3 %v1850_v35  ;;  %v2786_v34 = vpop.f32.mrf.mxu3  ;;  %v1869_v35 = vld [vmem:[%s5573_s28 + $0x3248] sm:$0xff] }
 0x375   : > { %4560 = vmatpush.msra.mxu0 %v1800_v37  ;;  %4579 = vmatpush.msra.mxu1 %v1817_v38  ;;  %v1901_v37 = vld [vmem:[%s5573_s28 + $0x3348] sm:$0xff]  ;;  %v1918_v38 = vld [vmem:[%s5573_s28 + $0x33d0] sm:$0xff] }
 0x376   : > { %4600 = vmatpush.msra.mxu2 %v1832_v39  ;;  %4619 = vmatpush.msra.mxu3 %v1849_v40  ;;  %v2806_v39 = vpop.f32.mrf.mxu0  ;;  %v1868_v40 = vld [vmem:[%s5573_s28 + $0x3240] sm:$0xff] }
 0x377   : > { %4561 = vmatpush.msra.mxu0 %v1799_v42  ;;  %4580 = vmatpush.msra.mxu1 %v1816_v43  ;;  %v2787_v42 = vadd.f32 %v2786_v34, %v2767_v31  ;;  %v1900_v43 = vld [vmem:[%s5573_s28 + $0x3340] sm:$0xff]  ;;  %v2846_v55 = vpop.f32.mrf.mxu2  ;;  %v2470_v34 = vld.sshfl [vmem:[#allocation1 + $0x38] sm:$0xff pattern:$0x73625140] }
 0x378   : > { %4601 = vmatpush.msra.mxu2 %v1831_v45  ;;  %4620 = vmatpush.msra.mxu3 %v1848_v46  ;;  %v1867_v45 = vld [vmem:[%s5573_s28 + $0x3238] sm:$0xff]  ;;  %v1884_v46 = vld [vmem:[%s5573_s28 + $0x32c0] sm:$0xff] }
 0x379   : > { %4562 = vmatpush.msra.mxu0 %v1798_v48  ;;  %4581 = vmatpush.msra.mxu1 %v1815_v49  ;;  %v2807_v47 = vadd.f32 %v2806_v39, %v2787_v42  ;;  %v1899_v48 = vld [vmem:[%s5573_s28 + $0x3338] sm:$0xff]  ;;  %v1916_v49 = vld [vmem:[%s5573_s28 + $0x33c0] sm:$0xff]  ;;  %v1954_v42 = vld [vmem:[%s5573_s28 + $0x34f0] sm:$0xff] }
 0x37a   : > { %4602 = vmatpush.msra.mxu2 %v1830_v50  ;;  %4621 = vmatpush.msra.mxu3 %v1847_v51  ;;  %v2826_v50 = vpop.f32.mrf.mxu1  ;;  %v1866_v51 = vld [vmem:[%s5573_s28 + $0x3230] sm:$0xff]  ;;  %v1908_v31 = vld [vmem:[%s5573_s28 + $0x3380] sm:$0xff]  ;;  %v1987_v39 = vld [vmem:[%s5573_s28 + $0x35f8] sm:$0xff] }
 0x37b   : > { %4563 = vmatpush.msra.mxu0 %v1797_v52  ;;  %4582 = vmatpush.msra.mxu1 %v1814_v53  ;;  %v1883_v52 = vld [vmem:[%s5573_s28 + $0x32b8] sm:$0xff]  ;;  %v1898_v53 = vld [vmem:[%s5573_s28 + $0x3330] sm:$0xff]  ;;  %v2827_v58 = vadd.f32 %v2826_v50, %v2807_v47  ;;  %v1953_v47 = vld [vmem:[%s5573_s28 + $0x34e8] sm:$0xff] }
 0x37c   : > { %4603 = vmatpush.msra.mxu2 %v1829_v56  ;;  %4622 = vmatpush.msra.mxu3 %v1846_v57  ;;  %v1865_v56 = vld [vmem:[%s5573_s28 + $0x3228] sm:$0xff]  ;;  %v1882_v57 = vld [vmem:[%s5573_s28 + $0x32b0] sm:$0xff] }
 0x37d   : > { %4564 = vmatpush.msra.mxu0 %v1796_v59  ;;  %4583 = vmatpush.msra.mxu1 %v1813_v60  ;;  %v1897_v59 = vld [vmem:[%s5573_s28 + $0x3328] sm:$0xff]  ;;  %v1914_v60 = vld [vmem:[%s5573_s28 + $0x33b0] sm:$0xff] }
 0x37e   : > { %4604 = vmatpush.msra.mxu2 %v1828_v61  ;;  %4623 = vmatpush.msra.mxu3 %v1845_v62  ;;  %v1864_v61 = vld [vmem:[%s5573_s28 + $0x3220] sm:$0xff]  ;;  %v1881_v62 = vld [vmem:[%s5573_s28 + $0x32a8] sm:$0xff] }
 0x37f   : > { %4565 = vmatmul.f32.vlgmr.msra.gmra.mxu0 %v2463_v63  ;;  %4605 = vmatmul.f32.vlgmr.msra.gmra.mxu2 %v2465_v0  ;;  %v2847_v63 = vadd.f32 %v2846_v55, %v2827_v58  ;;  %v1896_v0 = vld [vmem:[%s5573_s28 + $0x3320] sm:$0xff]  ;;  %v2926_v24 = vpop.f32.mrf.mxu2  ;;  %v1985_v50 = vld [vmem:[%s5573_s28 + $0x35e8] sm:$0xff]  ;;  %v1951_v58 = vld [vmem:[%s5573_s28 + $0x34d8] sm:$0xff] }
 0x380   : > { %4629 = vmatpush.msrb.mxu0 %v1875_v2  ;;  %4669 = vmatpush.msrb.mxu2 %v1907_v3  ;;  %v2866_v2 = vpop.f32.mrf.mxu3  ;;  %v1863_v3 = vld [vmem:[%s5573_s28 + $0x3218] sm:$0xff]  ;;  %v1984_v55 = vld [vmem:[%s5573_s28 + $0x35e0] sm:$0xff] }
 0x381   : > { %4584 = vmatpush.msra.mxu1 %v1812_v5  ;;  %4624 = vmatpush.msra.mxu3 %v1844_v6  ;;  %v1895_v5 = vld [vmem:[%s5573_s28 + $0x3318] sm:$0xff]  ;;  %v1912_v6 = vld [vmem:[%s5573_s28 + $0x33a0] sm:$0xff] }
 0x382   : > { %4585 = vmatmul.f32.vlgmr.msra.gmra.mxu1 %v2464_v7  ;;  %4625 = vmatmul.f32.vlgmr.msra.gmra.mxu3 %v2466_v8  ;;  %v2886_v7 = vpop.f32.mrf.mxu0  ;;  %v1862_v8 = vld [vmem:[%s5573_s28 + $0x3210] sm:$0xff] }
 0x383   : > { %4630 = vmatpush.msrb.mxu0 %v1874_v9  ;;  %4649 = vmatpush.msrb.mxu1 %v1891_v10  ;;  %v1879_v9 = vld [vmem:[%s5573_s28 + $0x3298] sm:$0xff]  ;;  %v2867_v10 = vadd.f32 %v2866_v2, %v2847_v63  ;;  %v1950_v63 = vld [vmem:[%s5573_s28 + $0x34d0] sm:$0xff] }
 0x384   : > { %4670 = vmatpush.msrb.mxu2 %v1906_v12  ;;  %4689 = vmatpush.msrb.mxu3 %v1923_v13  ;;  %v1911_v12 = vld [vmem:[%s5573_s28 + $0x3398] sm:$0xff]  ;;  %v1861_v13 = vld [vmem:[%s5573_s28 + $0x3208] sm:$0xff]  ;;  %v1982_v2 = vld [vmem:[%s5573_s28 + $0x35d0] sm:$0xff] }
 0x385   : > { %4631 = vmatpush.msrb.mxu0 %v1873_v15  ;;  %4650 = vmatpush.msrb.mxu1 %v1890_v16  ;;  %v254_v15 = vld [vmem:[%s5591_s9 + $0xd0] sm:$0xff]  ;;  %v2887_v16 = vadd.f32 %v2886_v7, %v2867_v10 }
 0x386   : > { %4671 = vmatpush.msrb.mxu2 %v1905_v17  ;;  %4690 = vmatpush.msrb.mxu3 %v1922_v18  ;;  %v1893_v17 = vld [vmem:[%s5573_s28 + $0x3308] sm:$0xff]  ;;  %v1910_v18 = vld [vmem:[%s5573_s28 + $0x3390] sm:$0xff]  ;;  %2471 = vst [vmem:[#allocation1] ss:$4 sm:$0xff] %v254_v15  ;;  %v1948_v10 = vld [vmem:[%s5573_s28 + $0x34c0] sm:$0xff] }
 0x387   : > { %4632 = vmatpush.msrb.mxu0 %v1872_v19  ;;  %4651 = vmatpush.msrb.mxu1 %v1889_v20  ;;  %v2906_v19 = vpop.f32.mrf.mxu1  ;;  %v1860_v20 = vld [vmem:[%s5573_s28 + $0x3200] sm:$0xff]  ;;  %v1981_v7 = vld [vmem:[%s5573_s28 + $0x35c8] sm:$0xff]  ;;  %v1947_v15 = vld [vmem:[%s5573_s28 + $0x34b8] sm:$0xff] }
 0x388   : > { %4672 = vmatpush.msrb.mxu2 %v1904_v22  ;;  %4691 = vmatpush.msrb.mxu3 %v1921_v23  ;;  %v1892_v22 = vld [vmem:[%s5573_s28 + $0x3300] sm:$0xff]  ;;  %v1909_v23 = vld [vmem:[%s5573_s28 + $0x3388] sm:$0xff] }
 0x389   : > { %4633 = vmatpush.msrb.mxu0 %v1871_v25  ;;  %4652 = vmatpush.msrb.mxu1 %v1888_v26  ;;  %v2467_v25 = vld.sshfl [vmem:[#allocation1 + $0x20] sm:$0xff pattern:$0x73625140]  ;;  %v2469_v26 = vld.sshfl [vmem:[#allocation1 + $0x30] sm:$0xff pattern:$0x73625140] }
 0x38a   : > { %4673 = vmatpush.msrb.mxu2 %v1903_v27  ;;  %4692 = vmatpush.msrb.mxu3 %v1920_v28  ;;  %v2907_v27 = vadd.f32 %v2906_v19, %v2887_v16  ;;  %v1939_v28 = vld [vmem:[%s5573_s28 + $0x3478] sm:$0xff] }
 0x38b   : > { %4634 = vmatpush.msrb.mxu0 %v1870_v29  ;;  %4653 = vmatpush.msrb.mxu1 %v1887_v30  ;;  %v1971_v29 = vld [vmem:[%s5573_s28 + $0x3578] sm:$0xff]  ;;  %v1876_v30 = vld [vmem:[%s5573_s28 + $0x3280] sm:$0xff] }
 0x38c   : > { %4674 = vmatpush.msrb.mxu2 %v1902_v32  ;;  %4693 = vmatpush.msrb.mxu3 %v1919_v33  ;;  %v2927_v32 = vadd.f32 %v2926_v24, %v2907_v27  ;;  %v2468_v33 = vld.sshfl [vmem:[#allocation1 + $0x28] sm:$0xff pattern:$0x73625140] }
 0x38d   : > { %4635 = vmatpush.msrb.mxu0 %v1869_v35  ;;  %4654 = vmatpush.msrb.mxu1 %v1886_v36  ;;  %v2946_v35 = vpop.f32.mrf.mxu3  ;;  %v1938_v36 = vld [vmem:[%s5573_s28 + $0x3470] sm:$0xff] }
 0x38e   : > { %4675 = vmatpush.msrb.mxu2 %v1901_v37  ;;  %4694 = vmatpush.msrb.mxu3 %v1918_v38  ;;  %v1955_v37 = vld [vmem:[%s5573_s28 + $0x34f8] sm:$0xff]  ;;  %v1970_v38 = vld [vmem:[%s5573_s28 + $0x3570] sm:$0xff] }
 0x38f   : > { %4636 = vmatpush.msrb.mxu0 %v1868_v40  ;;  %4655 = vmatpush.msrb.mxu1 %v1885_v41  ;;  %v2966_v40 = vpop.f32.mrf.mxu0  ;;  %v1937_v41 = vld [vmem:[%s5573_s28 + $0x3468] sm:$0xff] }
 0x390   : > { %4676 = vmatpush.msrb.mxu2 %v1900_v43  ;;  %4695 = vmatpush.msrb.mxu3 %v1917_v44  ;;  %v2947_v43 = vadd.f32 %v2946_v35, %v2927_v32  ;;  %v1969_v44 = vld [vmem:[%s5573_s28 + $0x3568] sm:$0xff] }
 0x391   : > { %4637 = vmatpush.msrb.mxu0 %v1867_v45  ;;  %4656 = vmatpush.msrb.mxu1 %v1884_v46  ;;  %v1986_v45 = vld [vmem:[%s5573_s28 + $0x35f0] sm:$0xff]  ;;  %v1936_v46 = vld [vmem:[%s5573_s28 + $0x3460] sm:$0xff] }
 0x392   : > { %4677 = vmatpush.msrb.mxu2 %v1899_v48  ;;  %4696 = vmatpush.msrb.mxu3 %v1916_v49  ;;  %v2967_v48 = vadd.f32 %v2966_v40, %v2947_v43  ;;  %v1968_v49 = vld [vmem:[%s5573_s28 + $0x3560] sm:$0xff]  ;;  %v255_v43 = vld [vmem:[%s5591_s9 + $0xd8] sm:$0xff] }
 0x393   : > { %4638 = vmatpush.msrb.mxu0 %v1866_v51  ;;  %4657 = vmatpush.msrb.mxu1 %v1883_v52  ;;  %v2986_v51 = vpop.f32.mrf.mxu1  ;;  %v1935_v52 = vld [vmem:[%s5573_s28 + $0x3458] sm:$0xff]  ;;  %2472 = vst [vmem:[#allocation1 + $0x20] ss:$4 sm:$0xff] %v255_v43 }
 0x394   : > { %4678 = vmatpush.msrb.mxu2 %v1898_v53  ;;  %4697 = vmatpush.msrb.mxu3 %v1915_v54  ;;  %v1952_v53 = vld [vmem:[%s5573_s28 + $0x34e0] sm:$0xff]  ;;  %v1967_v54 = vld [vmem:[%s5573_s28 + $0x3558] sm:$0xff] }
 0x395   : > { %4639 = vmatpush.msrb.mxu0 %v1865_v56  ;;  %4658 = vmatpush.msrb.mxu1 %v1882_v57  ;;  %v3006_v56 = vpop.f32.mrf.mxu2  ;;  %v1934_v57 = vld [vmem:[%s5573_s28 + $0x3450] sm:$0xff]  ;;  %v2011_v43 = vld [vmem:[%s5573_s28 + $0x36b8] sm:$0xff] }
 0x396   : > { %4679 = vmatpush.msrb.mxu2 %v1897_v59  ;;  %4698 = vmatpush.msrb.mxu3 %v1914_v60  ;;  %v2987_v59 = vadd.f32 %v2986_v51, %v2967_v48  ;;  %v1966_v60 = vld [vmem:[%s5573_s28 + $0x3550] sm:$0xff]  ;;  %v1941_v48 = vld [vmem:[%s5573_s28 + $0x3488] sm:$0xff] }
 0x397   : > { %4640 = vmatpush.msrb.mxu0 %v1864_v61  ;;  %4659 = vmatpush.msrb.mxu1 %v1881_v62  ;;  %v1983_v61 = vld [vmem:[%s5573_s28 + $0x35d8] sm:$0xff]  ;;  %v1933_v62 = vld [vmem:[%s5573_s28 + $0x3448] sm:$0xff] }
 0x398   : > { %4680 = vmatpush.msrb.mxu2 %v1896_v0  ;;  %4699 = vmatpush.msrb.mxu3 %v1913_v1  ;;  %v3007_v0 = vadd.f32 %v3006_v56, %v2987_v59  ;;  %v1965_v1 = vld [vmem:[%s5573_s28 + $0x3548] sm:$0xff]  ;;  %v2035_v56 = vld [vmem:[%s5573_s28 + $0x3778] sm:$0xff]  ;;  %v1972_v59 = vld [vmem:[%s5573_s28 + $0x3580] sm:$0xff] }
 0x399   : > { %4641 = vmatpush.msrb.mxu0 %v1863_v3  ;;  %4660 = vmatpush.msrb.mxu1 %v1880_v4  ;;  %v3026_v3 = vpop.f32.mrf.mxu3  ;;  %v1932_v4 = vld [vmem:[%s5573_s28 + $0x3440] sm:$0xff]  ;;  %v1973_v51 = vld [vmem:[%s5573_s28 + $0x3588] sm:$0xff] }
 0x39a   : > { %4681 = vmatpush.msrb.mxu2 %v1895_v5  ;;  %4700 = vmatpush.msrb.mxu3 %v1912_v6  ;;  %v1949_v5 = vld [vmem:[%s5573_s28 + $0x34c8] sm:$0xff]  ;;  %v1964_v6 = vld [vmem:[%s5573_s28 + $0x3540] sm:$0xff] }
 0x39b   : > { %4642 = vmatpush.msrb.mxu0 %v1862_v8  ;;  %4661 = vmatpush.msrb.mxu1 %v1879_v9  ;;  %v3046_v8 = vpop.f32.mrf.mxu0  ;;  %v1931_v9 = vld [vmem:[%s5573_s28 + $0x3438] sm:$0xff]  ;;  %v3066_v19 = vpop.f32.mrf.mxu1 }
 0x39c   : > { %4682 = vmatpush.msrb.mxu2 %v1894_v11  ;;  %4701 = vmatpush.msrb.mxu3 %v1911_v12  ;;  %v3027_v11 = vadd.f32 %v3026_v3, %v3007_v0  ;;  %v1963_v12 = vld [vmem:[%s5573_s28 + $0x3538] sm:$0xff] }
 0x39d   : > { %4643 = vmatpush.msrb.mxu0 %v1861_v13  ;;  %4662 = vmatpush.msrb.mxu1 %v1878_v14  ;;  %v1980_v13 = vld [vmem:[%s5573_s28 + $0x35c0] sm:$0xff]  ;;  %v1930_v14 = vld [vmem:[%s5573_s28 + $0x3430] sm:$0xff]  ;;  %v3086_v24 = vpop.f32.mrf.mxu2  ;;  %v2019_v0 = vld [vmem:[%s5573_s28 + $0x36f8] sm:$0xff] }
 0x39e   : > { %4683 = vmatpush.msrb.mxu2 %v1893_v17  ;;  %4702 = vmatpush.msrb.mxu3 %v1910_v18  ;;  %v3047_v16 = vadd.f32 %v3046_v8, %v3027_v11  ;;  %v1962_v17 = vld [vmem:[%s5573_s28 + $0x3530] sm:$0xff]  ;;  %v1979_v18 = vld [vmem:[%s5573_s28 + $0x35b8] sm:$0xff]  ;;  %v2017_v11 = vld [vmem:[%s5573_s28 + $0x36e8] sm:$0xff] }
 0x39f   : > { %4644 = vmatpush.msrb.mxu0 %v1860_v20  ;;  %4663 = vmatpush.msrb.mxu1 %v1877_v21  ;;  %v1929_v20 = vld [vmem:[%s5573_s28 + $0x3428] sm:$0xff]  ;;  %v1946_v21 = vld [vmem:[%s5573_s28 + $0x34b0] sm:$0xff]  ;;  %v2051_v3 = vld [vmem:[%s5573_s28 + $0x37f8] sm:$0xff] }
 0x3a0   : > { %4684 = vmatpush.msrb.mxu2 %v1892_v22  ;;  %4703 = vmatpush.msrb.mxu3 %v1909_v23  ;;  %v1961_v22 = vld [vmem:[%s5573_s28 + $0x3528] sm:$0xff]  ;;  %v1978_v23 = vld [vmem:[%s5573_s28 + $0x35b0] sm:$0xff]  ;;  %v3067_v27 = vadd.f32 %v3066_v19, %v3047_v16  ;;  %v2016_v16 = vld [vmem:[%s5573_s28 + $0x36e0] sm:$0xff] }
 0x3a1   : > { %4645 = vmatmul.f32.vlgmr.msrb.gmra.mxu0 %v2467_v25  ;;  %4685 = vmatmul.f32.vlgmr.msrb.gmra.mxu2 %v2469_v26  ;;  %v1928_v25 = vld [vmem:[%s5573_s28 + $0x3420] sm:$0xff]  ;;  %v1945_v26 = vld [vmem:[%s5573_s28 + $0x34a8] sm:$0xff]  ;;  %v3106_v35 = vpop.f32.mrf.mxu3  ;;  %v2050_v8 = vld [vmem:[%s5573_s28 + $0x37f0] sm:$0xff] }
 0x3a2   : > { %4709 = vmatpush.msra.mxu0 %v1939_v28  ;;  %4749 = vmatpush.msra.mxu2 %v1971_v29  ;;  %v1960_v28 = vld [vmem:[%s5573_s28 + $0x3520] sm:$0xff]  ;;  %v1977_v29 = vld [vmem:[%s5573_s28 + $0x35a8] sm:$0xff]  ;;  %v3087_v32 = vadd.f32 %v3086_v24, %v3067_v27  ;;  %v2047_v24 = vld [vmem:[%s5573_s28 + $0x37d8] sm:$0xff] }
 0x3a3   : > { %4664 = vmatpush.msrb.mxu1 %v1876_v30  ;;  %4704 = vmatpush.msrb.mxu3 %v1908_v31  ;;  %v1927_v30 = vld [vmem:[%s5573_s28 + $0x3418] sm:$0xff]  ;;  %v1944_v31 = vld [vmem:[%s5573_s28 + $0x34a0] sm:$0xff]  ;;  %v3126_v40 = vpop.f32.mrf.mxu0  ;;  %v2014_v27 = vld [vmem:[%s5573_s28 + $0x36d0] sm:$0xff] }
 0x3a4   : > { %4665 = vmatmul.f32.vlgmr.msrb.gmra.mxu1 %v2468_v33  ;;  %4705 = vmatmul.f32.vlgmr.msrb.gmra.mxu3 %v2470_v34  ;;  %v1959_v33 = vld [vmem:[%s5573_s28 + $0x3518] sm:$0xff]  ;;  %v1976_v34 = vld [vmem:[%s5573_s28 + $0x35a0] sm:$0xff] }
 0x3a5   : > { %4710 = vmatpush.msra.mxu0 %v1938_v36  ;;  %4729 = vmatpush.msra.mxu1 %v1955_v37  ;;  %v1926_v36 = vld [vmem:[%s5573_s28 + $0x3410] sm:$0xff]  ;;  %v1943_v37 = vld [vmem:[%s5573_s28 + $0x3498] sm:$0xff]  ;;  %v2048_v19 = vld [vmem:[%s5573_s28 + $0x37e0] sm:$0xff] }
 0x3a6   : > { %4750 = vmatpush.msra.mxu2 %v1970_v38  ;;  %4769 = vmatpush.msra.mxu3 %v1987_v39  ;;  %v1958_v38 = vld [vmem:[%s5573_s28 + $0x3510] sm:$0xff]  ;;  %v1975_v39 = vld [vmem:[%s5573_s28 + $0x3598] sm:$0xff] }
 0x3a7   : > { %4711 = vmatpush.msra.mxu0 %v1937_v41  ;;  %4730 = vmatpush.msra.mxu1 %v1954_v42  ;;  %v1925_v41 = vld [vmem:[%s5573_s28 + $0x3408] sm:$0xff]  ;;  %v1942_v42 = vld [vmem:[%s5573_s28 + $0x3490] sm:$0xff] }
 0x3a8   : > { %4751 = vmatpush.msra.mxu2 %v1969_v44  ;;  %4770 = vmatpush.msra.mxu3 %v1986_v45  ;;  %v3107_v44 = vadd.f32 %v3106_v35, %v3087_v32  ;;  %v1957_v45 = vld [vmem:[%s5573_s28 + $0x3508] sm:$0xff] }
 0x3a9   : > { %4712 = vmatpush.msra.mxu0 %v1936_v46  ;;  %4731 = vmatpush.msra.mxu1 %v1953_v47  ;;  %v1974_v46 = vld [vmem:[%s5573_s28 + $0x3590] sm:$0xff]  ;;  %v1924_v47 = vld [vmem:[%s5573_s28 + $0x3400] sm:$0xff]  ;;  %v2013_v32 = vld [vmem:[%s5573_s28 + $0x36c8] sm:$0xff] }
 0x3aa   : > { %4752 = vmatpush.msra.mxu2 %v1968_v49  ;;  %4771 = vmatpush.msra.mxu3 %v1985_v50  ;;  %v3127_v49 = vadd.f32 %v3126_v40, %v3107_v44  ;;  %v1956_v50 = vld [vmem:[%s5573_s28 + $0x3500] sm:$0xff]  ;;  %v2045_v35 = vld [vmem:[%s5573_s28 + $0x37c8] sm:$0xff] }
 0x3ab   : > { %4713 = vmatpush.msra.mxu0 %v1935_v52  ;;  %4732 = vmatpush.msra.mxu1 %v1952_v53  ;;  %v3146_v52 = vpop.f32.mrf.mxu1  ;;  %v2473_v53 = vld.sshfl [vmem:[#allocation1] sm:$0xff pattern:$0x73625140]  ;;  %v2044_v40 = vld [vmem:[%s5573_s28 + $0x37c0] sm:$0xff] }
 0x3ac   : > { %4753 = vmatpush.msra.mxu2 %v1967_v54  ;;  %4772 = vmatpush.msra.mxu3 %v1984_v55  ;;  %v2475_v54 = vld.sshfl [vmem:[#allocation1 + $0x10] sm:$0xff pattern:$0x73625140]  ;;  %v2003_v55 = vld [vmem:[%s5573_s28 + $0x3678] sm:$0xff] }
 0x3ad   : > { %4714 = vmatpush.msra.mxu0 %v1934_v57  ;;  %4733 = vmatpush.msra.mxu1 %v1951_v58  ;;  %v3166_v57 = vpop.f32.mrf.mxu2  ;;  %v1940_v58 = vld [vmem:[%s5573_s28 + $0x3480] sm:$0xff] }
 0x3ae   : > { %4754 = vmatpush.msra.mxu2 %v1966_v60  ;;  %4773 = vmatpush.msra.mxu3 %v1983_v61  ;;  %v3147_v60 = vadd.f32 %v3146_v52, %v3127_v49  ;;  %v2474_v61 = vld.sshfl [vmem:[#allocation1 + $0x8] sm:$0xff pattern:$0x73625140] }
 0x3af   : > { %4715 = vmatpush.msra.mxu0 %v1933_v62  ;;  %4734 = vmatpush.msra.mxu1 %v1950_v63  ;;  %v2476_v62 = vld.sshfl [vmem:[#allocation1 + $0x18] sm:$0xff pattern:$0x73625140] }
 0x3b0   : > { %4755 = vmatpush.msra.mxu2 %v1965_v1  ;;  %4774 = vmatpush.msra.mxu3 %v1982_v2  ;;  %v2002_v63 = vld [vmem:[%s5573_s28 + $0x3670] sm:$0xff]  ;;  %v3167_v1 = vadd.f32 %v3166_v57, %v3147_v60 }
 0x3b1   : > { %4716 = vmatpush.msra.mxu0 %v1932_v4  ;;  %4735 = vmatpush.msra.mxu1 %v1949_v5  ;;  %v2034_v2 = vld [vmem:[%s5573_s28 + $0x3770] sm:$0xff]  ;;  %v3186_v4 = vpop.f32.mrf.mxu3  ;;  %v2001_v5 = vld [vmem:[%s5573_s28 + $0x3668] sm:$0xff] }
 0x3b2   : > { %4756 = vmatpush.msra.mxu2 %v1964_v6  ;;  %4775 = vmatpush.msra.mxu3 %v1981_v7  ;;  %v2018_v6 = vld [vmem:[%s5573_s28 + $0x36f0] sm:$0xff]  ;;  %v2033_v7 = vld [vmem:[%s5573_s28 + $0x3768] sm:$0xff] }
 0x3b3   : > { %4717 = vmatpush.msra.mxu0 %v1931_v9  ;;  %4736 = vmatpush.msra.mxu1 %v1948_v10  ;;  %v3206_v9 = vpop.f32.mrf.mxu0  ;;  %v2000_v10 = vld [vmem:[%s5573_s28 + $0x3660] sm:$0xff] }
 0x3b4   : > { %4757 = vmatpush.msra.mxu2 %v1963_v12  ;;  %4776 = vmatpush.msra.mxu3 %v1980_v13  ;;  %v3187_v12 = vadd.f32 %v3186_v4, %v3167_v1  ;;  %v2032_v13 = vld [vmem:[%s5573_s28 + $0x3760] sm:$0xff] }
 0x3b5   : > { %4718 = vmatpush.msra.mxu0 %v1930_v14  ;;  %4737 = vmatpush.msra.mxu1 %v1947_v15  ;;  %v2049_v14 = vld [vmem:[%s5573_s28 + $0x37e8] sm:$0xff]  ;;  %v1999_v15 = vld [vmem:[%s5573_s28 + $0x3658] sm:$0xff] }
 0x3b6   : > { %4758 = vmatpush.msra.mxu2 %v1962_v17  ;;  %4777 = vmatpush.msra.mxu3 %v1979_v18  ;;  %v3207_v17 = vadd.f32 %v3206_v9, %v3187_v12  ;;  %v2031_v18 = vld [vmem:[%s5573_s28 + $0x3758] sm:$0xff]  ;;  %v2038_v9 = vld [vmem:[%s5573_s28 + $0x3790] sm:$0xff]  ;;  %v2005_v12 = vld [vmem:[%s5573_s28 + $0x3688] sm:$0xff] }
 0x3b7   : > { %4719 = vmatpush.msra.mxu0 %v1929_v20  ;;  %4738 = vmatpush.msra.mxu1 %v1946_v21  ;;  %v3226_v20 = vpop.f32.mrf.mxu1  ;;  %v1998_v21 = vld [vmem:[%s5573_s28 + $0x3650] sm:$0xff] }
 0x3b8   : > { %4759 = vmatpush.msra.mxu2 %v1961_v22  ;;  %4778 = vmatpush.msra.mxu3 %v1978_v23  ;;  %v2015_v22 = vld [vmem:[%s5573_s28 + $0x36d8] sm:$0xff]  ;;  %v2030_v23 = vld [vmem:[%s5573_s28 + $0x3750] sm:$0xff] }
 0x3b9   : > { %4720 = vmatpush.msra.mxu0 %v1928_v25  ;;  %4739 = vmatpush.msra.mxu1 %v1945_v26  ;;  %v3246_v25 = vpop.f32.mrf.mxu2  ;;  %v1997_v26 = vld [vmem:[%s5573_s28 + $0x3648] sm:$0xff] }
 0x3ba   : > { %4760 = vmatpush.msra.mxu2 %v1960_v28  ;;  %4779 = vmatpush.msra.mxu3 %v1977_v29  ;;  %v3227_v28 = vadd.f32 %v3226_v20, %v3207_v17  ;;  %v2029_v29 = vld [vmem:[%s5573_s28 + $0x3748] sm:$0xff]  ;;  %v2099_v20 = vld [vmem:[%s5573_s28 + $0x3978] sm:$0xff] }
 0x3bb   : > { %4721 = vmatpush.msra.mxu0 %v1927_v30  ;;  %4740 = vmatpush.msra.mxu1 %v1944_v31  ;;  %v2046_v30 = vld [vmem:[%s5573_s28 + $0x37d0] sm:$0xff]  ;;  %v1996_v31 = vld [vmem:[%s5573_s28 + $0x3640] sm:$0xff] }
 0x3bc   : > { %4761 = vmatpush.msra.mxu2 %v1959_v33  ;;  %4780 = vmatpush.msra.mxu3 %v1976_v34  ;;  %v3247_v33 = vadd.f32 %v3246_v25, %v3227_v28  ;;  %v2028_v34 = vld [vmem:[%s5573_s28 + $0x3740] sm:$0xff]  ;;  %v2480_v25 = vld.sshfl [vmem:[#allocation1 + $0x38] sm:$0xff pattern:$0x73625140]  ;;  %v2083_v28 = vld [vmem:[%s5573_s28 + $0x38f8] sm:$0xff] }
 0x3bd   : > { %4722 = vmatpush.msra.mxu0 %v1926_v36  ;;  %4741 = vmatpush.msra.mxu1 %v1943_v37  ;;  %v3266_v36 = vpop.f32.mrf.mxu3  ;;  %v1995_v37 = vld [vmem:[%s5573_s28 + $0x3638] sm:$0xff]  ;;  %v2479_v17 = vld.sshfl [vmem:[#allocation1 + $0x30] sm:$0xff pattern:$0x73625140] }
 0x3be   : > { %4762 = vmatpush.msra.mxu2 %v1958_v38  ;;  %4781 = vmatpush.msra.mxu3 %v1975_v39  ;;  %v2012_v38 = vld [vmem:[%s5573_s28 + $0x36c0] sm:$0xff]  ;;  %v2027_v39 = vld [vmem:[%s5573_s28 + $0x3738] sm:$0xff]  ;;  %v3267_v44 = vadd.f32 %v3266_v36, %v3247_v33  ;;  %v2082_v33 = vld [vmem:[%s5573_s28 + $0x38f0] sm:$0xff] }
 0x3bf   : > { %4723 = vmatpush.msra.mxu0 %v1925_v41  ;;  %4742 = vmatpush.msra.mxu1 %v1942_v42  ;;  %v3286_v41 = vpop.f32.mrf.mxu0  ;;  %v1994_v42 = vld [vmem:[%s5573_s28 + $0x3630] sm:$0xff]  ;;  %v3306_v52 = vpop.f32.mrf.mxu1 }
 0x3c0   : > { %4763 = vmatpush.msra.mxu2 %v1957_v45  ;;  %4782 = vmatpush.msra.mxu3 %v1974_v46  ;;  %v2026_v45 = vld [vmem:[%s5573_s28 + $0x3730] sm:$0xff]  ;;  %v2043_v46 = vld [vmem:[%s5573_s28 + $0x37b8] sm:$0xff]  ;;  %v3287_v49 = vadd.f32 %v3286_v41, %v3267_v44  ;;  %v2113_v41 = vld [vmem:[%s5573_s28 + $0x39e8] sm:$0xff] }
 0x3c1   : > { %4724 = vmatpush.msra.mxu0 %v1924_v47  ;;  %4743 = vmatpush.msra.mxu1 %v1941_v48  ;;  %v1993_v47 = vld [vmem:[%s5573_s28 + $0x3628] sm:$0xff]  ;;  %v2010_v48 = vld [vmem:[%s5573_s28 + $0x36b0] sm:$0xff]  ;;  %v3326_v57 = vpop.f32.mrf.mxu2  ;;  %v2080_v44 = vld [vmem:[%s5573_s28 + $0x38e0] sm:$0xff] }
 0x3c2   : > { %4764 = vmatpush.msra.mxu2 %v1956_v50  ;;  %4783 = vmatpush.msra.mxu3 %v1973_v51  ;;  %v2025_v50 = vld [vmem:[%s5573_s28 + $0x3728] sm:$0xff]  ;;  %v2042_v51 = vld [vmem:[%s5573_s28 + $0x37b0] sm:$0xff]  ;;  %v3307_v60 = vadd.f32 %v3306_v52, %v3287_v49  ;;  %v2079_v49 = vld [vmem:[%s5573_s28 + $0x38d8] sm:$0xff] }
 0x3c3   : > { %4725 = vmatmul.f32.vlgmr.msra.gmra.mxu0 %v2473_v53  ;;  %4765 = vmatmul.f32.vlgmr.msra.gmra.mxu2 %v2475_v54  ;;  %v1992_v53 = vld [vmem:[%s5573_s28 + $0x3620] sm:$0xff]  ;;  %v2009_v54 = vld [vmem:[%s5573_s28 + $0x36a8] sm:$0xff]  ;;  %v2114_v36 = vld [vmem:[%s5573_s28 + $0x39f0] sm:$0xff] }
 0x3c4   : > { %4789 = vmatpush.msrb.mxu0 %v2003_v55  ;;  %4829 = vmatpush.msrb.mxu2 %v2035_v56  ;;  %v2024_v55 = vld [vmem:[%s5573_s28 + $0x3720] sm:$0xff]  ;;  %v2041_v56 = vld [vmem:[%s5573_s28 + $0x37a8] sm:$0xff]  ;;  %v3327_v1 = vadd.f32 %v3326_v57, %v3307_v60  ;;  %v2111_v52 = vld [vmem:[%s5573_s28 + $0x39d8] sm:$0xff] }
 0x3c5   : > { %4744 = vmatpush.msra.mxu1 %v1940_v58  ;;  %4784 = vmatpush.msra.mxu3 %v1972_v59  ;;  %v1991_v58 = vld [vmem:[%s5573_s28 + $0x3618] sm:$0xff]  ;;  %v2008_v59 = vld [vmem:[%s5573_s28 + $0x36a0] sm:$0xff]  ;;  %v3346_v4 = vpop.f32.mrf.mxu3  ;;  %v2110_v57 = vld [vmem:[%s5573_s28 + $0x39d0] sm:$0xff] }
 0x3c6   : > { %4745 = vmatmul.f32.vlgmr.msra.gmra.mxu1 %v2474_v61  ;;  %4785 = vmatmul.f32.vlgmr.msra.gmra.mxu3 %v2476_v62  ;;  %v2023_v61 = vld [vmem:[%s5573_s28 + $0x3718] sm:$0xff]  ;;  %v2040_v62 = vld [vmem:[%s5573_s28 + $0x37a0] sm:$0xff]  ;;  %v2077_v60 = vld [vmem:[%s5573_s28 + $0x38c8] sm:$0xff] }
 0x3c7   : > { %4790 = vmatpush.msrb.mxu0 %v2002_v63  ;;  %4809 = vmatpush.msrb.mxu1 %v2019_v0  ;;  %v1990_v63 = vld [vmem:[%s5573_s28 + $0x3610] sm:$0xff]  ;;  %v2007_v0 = vld [vmem:[%s5573_s28 + $0x3698] sm:$0xff] }
 0x3c8   : > { %4830 = vmatpush.msrb.mxu2 %v2034_v2  ;;  %4849 = vmatpush.msrb.mxu3 %v2051_v3  ;;  %v2022_v2 = vld [vmem:[%s5573_s28 + $0x3710] sm:$0xff]  ;;  %v2039_v3 = vld [vmem:[%s5573_s28 + $0x3798] sm:$0xff] }
 0x3c9   : > { %4791 = vmatpush.msrb.mxu0 %v2001_v5  ;;  %4810 = vmatpush.msrb.mxu1 %v2018_v6  ;;  %v1989_v5 = vld [vmem:[%s5573_s28 + $0x3608] sm:$0xff]  ;;  %v2006_v6 = vld [vmem:[%s5573_s28 + $0x3690] sm:$0xff] }
 0x3ca   : > { %4831 = vmatpush.msrb.mxu2 %v2033_v7  ;;  %4850 = vmatpush.msrb.mxu3 %v2050_v8  ;;  %v256_v7 = vld [vmem:[%s5591_s9 + $0xe0] sm:$0xff]  ;;  %v2021_v8 = vld [vmem:[%s5573_s28 + $0x3708] sm:$0xff] }
 0x3cb   : > { %4792 = vmatpush.msrb.mxu0 %v2000_v10  ;;  %4811 = vmatpush.msrb.mxu1 %v2017_v11  ;;  %2481 = vst [vmem:[#allocation1] ss:$4 sm:$0xff] %v256_v7  ;;  %v3366_v10 = vpop.f32.mrf.mxu0  ;;  %v1988_v11 = vld [vmem:[%s5573_s28 + $0x3600] sm:$0xff]  ;;  %v2075_v7 = vld [vmem:[%s5573_s28 + $0x38b8] sm:$0xff] }
 0x3cc   : > { %4832 = vmatpush.msrb.mxu2 %v2032_v13  ;;  %4851 = vmatpush.msrb.mxu3 %v2049_v14  ;;  %v3347_v13 = vadd.f32 %v3346_v4, %v3327_v1  ;;  %v2020_v14 = vld [vmem:[%s5573_s28 + $0x3700] sm:$0xff] }
 0x3cd   : > { %4793 = vmatpush.msrb.mxu0 %v1999_v15  ;;  %4812 = vmatpush.msrb.mxu1 %v2016_v16  ;;  %v2037_v15 = vld [vmem:[%s5573_s28 + $0x3788] sm:$0xff]  ;;  %v2477_v16 = vld.sshfl [vmem:[#allocation1 + $0x20] sm:$0xff pattern:$0x73625140]  ;;  %v2076_v1 = vld [vmem:[%s5573_s28 + $0x38c0] sm:$0xff] }
 0x3ce   : > { %4833 = vmatpush.msrb.mxu2 %v2031_v18  ;;  %4852 = vmatpush.msrb.mxu3 %v2048_v19  ;;  %v3367_v18 = vadd.f32 %v3366_v10, %v3347_v13  ;;  %v2067_v19 = vld [vmem:[%s5573_s28 + $0x3878] sm:$0xff]  ;;  %v2108_v4 = vld [vmem:[%s5573_s28 + $0x39c0] sm:$0xff] }
 0x3cf   : > { %4794 = vmatpush.msrb.mxu0 %v1998_v21  ;;  %4813 = vmatpush.msrb.mxu1 %v2015_v22  ;;  %v3386_v21 = vpop.f32.mrf.mxu1  ;;  %v2004_v22 = vld [vmem:[%s5573_s28 + $0x3680] sm:$0xff] }
 0x3d0   : > { %4834 = vmatpush.msrb.mxu2 %v2030_v23  ;;  %4853 = vmatpush.msrb.mxu3 %v2047_v24  ;;  %v2036_v23 = vld [vmem:[%s5573_s28 + $0x3780] sm:$0xff] }
 0x3d1   : > { %4795 = vmatpush.msrb.mxu0 %v1997_v26  ;;  %4814 = vmatpush.msrb.mxu1 %v2014_v27  ;;  %v2478_v24 = vld.sshfl [vmem:[#allocation1 + $0x28] sm:$0xff pattern:$0x73625140]  ;;  %v3406_v26 = vpop.f32.mrf.mxu2  ;;  %v2066_v27 = vld [vmem:[%s5573_s28 + $0x3870] sm:$0xff] }
 0x3d2   : > { %4835 = vmatpush.msrb.mxu2 %v2029_v29  ;;  %4854 = vmatpush.msrb.mxu3 %v2046_v30  ;;  %v3387_v29 = vadd.f32 %v3386_v21, %v3367_v18  ;;  %v2098_v30 = vld [vmem:[%s5573_s28 + $0x3970] sm:$0xff] }
 0x3d3   : > { %4796 = vmatpush.msrb.mxu0 %v1996_v31  ;;  %4815 = vmatpush.msrb.mxu1 %v2013_v32  ;;  %v2115_v31 = vld [vmem:[%s5573_s28 + $0x39f8] sm:$0xff]  ;;  %v2065_v32 = vld [vmem:[%s5573_s28 + $0x3868] sm:$0xff] }
 0x3d4   : > { %4836 = vmatpush.msrb.mxu2 %v2028_v34  ;;  %4855 = vmatpush.msrb.mxu3 %v2045_v35  ;;  %v3407_v34 = vadd.f32 %v3406_v26, %v3387_v29  ;;  %v2097_v35 = vld [vmem:[%s5573_s28 + $0x3968] sm:$0xff] }
 0x3d5   : > { %4797 = vmatpush.msrb.mxu0 %v1995_v37  ;;  %4816 = vmatpush.msrb.mxu1 %v2012_v38  ;;  %v3426_v37 = vpop.f32.mrf.mxu3  ;;  %v2064_v38 = vld [vmem:[%s5573_s28 + $0x3860] sm:$0xff] }
 0x3d6   : > { %4837 = vmatpush.msrb.mxu2 %v2027_v39  ;;  %4856 = vmatpush.msrb.mxu3 %v2044_v40  ;;  %v2081_v39 = vld [vmem:[%s5573_s28 + $0x38e8] sm:$0xff]  ;;  %v2096_v40 = vld [vmem:[%s5573_s28 + $0x3960] sm:$0xff] }
 0x3d7   : > { %4798 = vmatpush.msrb.mxu0 %v1994_v42  ;;  %4817 = vmatpush.msrb.mxu1 %v2011_v43  ;;  %v3446_v42 = vpop.f32.mrf.mxu0  ;;  %v2063_v43 = vld [vmem:[%s5573_s28 + $0x3858] sm:$0xff] }
 0x3d8   : > { %4838 = vmatpush.msrb.mxu2 %v2026_v45  ;;  %4857 = vmatpush.msrb.mxu3 %v2043_v46  ;;  %v3427_v45 = vadd.f32 %v3426_v37, %v3407_v34  ;;  %v2095_v46 = vld [vmem:[%s5573_s28 + $0x3958] sm:$0xff]  ;;  %v2102_v37 = vld [vmem:[%s5573_s28 + $0x3990] sm:$0xff] }
 0x3d9   : > { %4799 = vmatpush.msrb.mxu0 %v1993_v47  ;;  %4818 = vmatpush.msrb.mxu1 %v2010_v48  ;;  %v2112_v47 = vld [vmem:[%s5573_s28 + $0x39e0] sm:$0xff]  ;;  %v2062_v48 = vld [vmem:[%s5573_s28 + $0x3850] sm:$0xff] }
 0x3da   : > { %4839 = vmatpush.msrb.mxu2 %v2025_v50  ;;  %4858 = vmatpush.msrb.mxu3 %v2042_v51  ;;  %v3447_v50 = vadd.f32 %v3446_v42, %v3427_v45  ;;  %v2094_v51 = vld [vmem:[%s5573_s28 + $0x3950] sm:$0xff]  ;;  %v257_v34 = vld [vmem:[%s5591_s9 + $0xe8] sm:$0xff]  ;;  %v2101_v42 = vld [vmem:[%s5573_s28 + $0x3988] sm:$0xff] }
 0x3db   : > { %4800 = vmatpush.msrb.mxu0 %v1992_v53  ;;  %4819 = vmatpush.msrb.mxu1 %v2009_v54  ;;  %v3466_v53 = vpop.f32.mrf.mxu1  ;;  %v2061_v54 = vld [vmem:[%s5573_s28 + $0x3848] sm:$0xff]  ;;  %2482 = vst [vmem:[#allocation1 + $0x20] ss:$4 sm:$0xff] %v257_v34  ;;  %v2139_v34 = vld [vmem:[%s5573_s28 + $0x3ab8] sm:$0xff] }
 0x3dc   : > { %4840 = vmatpush.msrb.mxu2 %v2024_v55  ;;  %4859 = vmatpush.msrb.mxu3 %v2041_v56  ;;  %v2078_v55 = vld [vmem:[%s5573_s28 + $0x38d0] sm:$0xff]  ;;  %v2093_v56 = vld [vmem:[%s5573_s28 + $0x3948] sm:$0xff] }
 0x3dd   : > { %4801 = vmatpush.msrb.mxu0 %v1991_v58  ;;  %4820 = vmatpush.msrb.mxu1 %v2008_v59  ;;  %v3486_v58 = vpop.f32.mrf.mxu2  ;;  %v2060_v59 = vld [vmem:[%s5573_s28 + $0x3840] sm:$0xff] }
 0x3de   : > { %4841 = vmatpush.msrb.mxu2 %v2023_v61  ;;  %4860 = vmatpush.msrb.mxu3 %v2040_v62  ;;  %v3467_v61 = vadd.f32 %v3466_v53, %v3447_v50  ;;  %v2092_v62 = vld [vmem:[%s5573_s28 + $0x3940] sm:$0xff]  ;;  %v2486_v53 = vld.sshfl [vmem:[#allocation1 + $0x18] sm:$0xff pattern:$0x73625140] }
 0x3df   : > { %4802 = vmatpush.msrb.mxu0 %v1990_v63  ;;  %4821 = vmatpush.msrb.mxu1 %v2007_v0  ;;  %v2109_v63 = vld [vmem:[%s5573_s28 + $0x39c8] sm:$0xff]  ;;  %v2059_v0 = vld [vmem:[%s5573_s28 + $0x3838] sm:$0xff]  ;;  %v3526_v10 = vpop.f32.mrf.mxu0  ;;  %v2100_v50 = vld [vmem:[%s5573_s28 + $0x3980] sm:$0xff] }
 0x3e0   : > { %4842 = vmatpush.msrb.mxu2 %v2022_v2  ;;  %4861 = vmatpush.msrb.mxu3 %v2039_v3  ;;  %v3487_v2 = vadd.f32 %v3486_v58, %v3467_v61  ;;  %v2091_v3 = vld [vmem:[%s5573_s28 + $0x3938] sm:$0xff]  ;;  %v2485_v45 = vld.sshfl [vmem:[#allocation1 + $0x10] sm:$0xff pattern:$0x73625140]  ;;  %v2146_v61 = vld [vmem:[%s5573_s28 + $0x3af0] sm:$0xff] }
 0x3e1   : > { %4803 = vmatpush.msrb.mxu0 %v1989_v5  ;;  %4822 = vmatpush.msrb.mxu1 %v2006_v6  ;;  %v3506_v5 = vpop.f32.mrf.mxu3  ;;  %v2058_v6 = vld [vmem:[%s5573_s28 + $0x3830] sm:$0xff]  ;;  %v2179_v58 = vld [vmem:[%s5573_s28 + $0x3bf8] sm:$0xff] }
 0x3e2   : > { %4843 = vmatpush.msrb.mxu2 %v2021_v8  ;;  %4862 = vmatpush.msrb.mxu3 %v2038_v9  ;;  %v2090_v8 = vld [vmem:[%s5573_s28 + $0x3930] sm:$0xff]  ;;  %v2107_v9 = vld [vmem:[%s5573_s28 + $0x39b8] sm:$0xff]  ;;  %v3507_v13 = vadd.f32 %v3506_v5, %v3487_v2  ;;  %v2145_v2 = vld [vmem:[%s5573_s28 + $0x3ae8] sm:$0xff] }
 0x3e3   : > { %4804 = vmatpush.msrb.mxu0 %v1988_v11  ;;  %4823 = vmatpush.msrb.mxu1 %v2005_v12  ;;  %v2057_v11 = vld [vmem:[%s5573_s28 + $0x3828] sm:$0xff]  ;;  %v2074_v12 = vld [vmem:[%s5573_s28 + $0x38b0] sm:$0xff]  ;;  %v3546_v21 = vpop.f32.mrf.mxu1 }
 0x3e4   : > { %4844 = vmatpush.msrb.mxu2 %v2020_v14  ;;  %4863 = vmatpush.msrb.mxu3 %v2037_v15  ;;  %v2089_v14 = vld [vmem:[%s5573_s28 + $0x3928] sm:$0xff]  ;;  %v2106_v15 = vld [vmem:[%s5573_s28 + $0x39b0] sm:$0xff]  ;;  %v3527_v18 = vadd.f32 %v3526_v10, %v3507_v13  ;;  %v2176_v10 = vld [vmem:[%s5573_s28 + $0x3be0] sm:$0xff] }
 0x3e5   : > { %4805 = vmatmul.f32.vlgmr.msrb.gmra.mxu0 %v2477_v16  ;;  %4845 = vmatmul.f32.vlgmr.msrb.gmra.mxu2 %v2479_v17  ;;  %v2056_v16 = vld [vmem:[%s5573_s28 + $0x3820] sm:$0xff]  ;;  %v2073_v17 = vld [vmem:[%s5573_s28 + $0x38a8] sm:$0xff]  ;;  %v3566_v26 = vpop.f32.mrf.mxu2  ;;  %v2143_v13 = vld [vmem:[%s5573_s28 + $0x3ad8] sm:$0xff] }
 0x3e6   : > { %4869 = vmatpush.msra.mxu0 %v2067_v19  ;;  %4909 = vmatpush.msra.mxu2 %v2099_v20  ;;  %v2088_v19 = vld [vmem:[%s5573_s28 + $0x3920] sm:$0xff]  ;;  %v2105_v20 = vld [vmem:[%s5573_s28 + $0x39a8] sm:$0xff]  ;;  %v3547_v29 = vadd.f32 %v3546_v21, %v3527_v18  ;;  %v2142_v18 = vld [vmem:[%s5573_s28 + $0x3ad0] sm:$0xff] }
 0x3e7   : > { %4824 = vmatpush.msrb.mxu1 %v2004_v22  ;;  %4864 = vmatpush.msrb.mxu3 %v2036_v23  ;;  %v2055_v22 = vld [vmem:[%s5573_s28 + $0x3818] sm:$0xff]  ;;  %v2072_v23 = vld [vmem:[%s5573_s28 + $0x38a0] sm:$0xff]  ;;  %v2177_v5 = vld [vmem:[%s5573_s28 + $0x3be8] sm:$0xff] }
 0x3e8   : > { %4825 = vmatmul.f32.vlgmr.msrb.gmra.mxu1 %v2478_v24  ;;  %4865 = vmatmul.f32.vlgmr.msrb.gmra.mxu3 %v2480_v25  ;;  %v2087_v24 = vld [vmem:[%s5573_s28 + $0x3918] sm:$0xff]  ;;  %v2104_v25 = vld [vmem:[%s5573_s28 + $0x39a0] sm:$0xff]  ;;  %v2174_v21 = vld [vmem:[%s5573_s28 + $0x3bd0] sm:$0xff] }
 0x3e9   : > { %4870 = vmatpush.msra.mxu0 %v2066_v27  ;;  %4889 = vmatpush.msra.mxu1 %v2083_v28  ;;  %v2054_v27 = vld [vmem:[%s5573_s28 + $0x3810] sm:$0xff]  ;;  %v2071_v28 = vld [vmem:[%s5573_s28 + $0x3898] sm:$0xff] }
 0x3ea   : > { %4910 = vmatpush.msra.mxu2 %v2098_v30  ;;  %4929 = vmatpush.msra.mxu3 %v2115_v31  ;;  %v2086_v30 = vld [vmem:[%s5573_s28 + $0x3910] sm:$0xff]  ;;  %v2103_v31 = vld [vmem:[%s5573_s28 + $0x3998] sm:$0xff] }
 0x3eb   : > { %4871 = vmatpush.msra.mxu0 %v2065_v32  ;;  %4890 = vmatpush.msra.mxu1 %v2082_v33  ;;  %v2053_v32 = vld [vmem:[%s5573_s28 + $0x3808] sm:$0xff]  ;;  %v2070_v33 = vld [vmem:[%s5573_s28 + $0x3890] sm:$0xff] }
 0x3ec   : > { %4911 = vmatpush.msra.mxu2 %v2097_v35  ;;  %4930 = vmatpush.msra.mxu3 %v2114_v36  ;;  %v3567_v35 = vadd.f32 %v3566_v26, %v3547_v29  ;;  %v2085_v36 = vld [vmem:[%s5573_s28 + $0x3908] sm:$0xff]  ;;  %v2140_v29 = vld [vmem:[%s5573_s28 + $0x3ac0] sm:$0xff] }
 0x3ed   : > { %4872 = vmatpush.msra.mxu0 %v2064_v38  ;;  %4891 = vmatpush.msra.mxu1 %v2081_v39  ;;  %v3586_v38 = vpop.f32.mrf.mxu3  ;;  %v2052_v39 = vld [vmem:[%s5573_s28 + $0x3800] sm:$0xff]  ;;  %v2173_v26 = vld [vmem:[%s5573_s28 + $0x3bc8] sm:$0xff] }
 0x3ee   : > { %4912 = vmatpush.msra.mxu2 %v2096_v40  ;;  %4931 = vmatpush.msra.mxu3 %v2113_v41  ;;  %v2069_v40 = vld [vmem:[%s5573_s28 + $0x3888] sm:$0xff]  ;;  %v2084_v41 = vld [vmem:[%s5573_s28 + $0x3900] sm:$0xff] }
 0x3ef   : > { %4873 = vmatpush.msra.mxu0 %v2063_v43  ;;  %4892 = vmatpush.msra.mxu1 %v2080_v44  ;;  %v3606_v43 = vpop.f32.mrf.mxu0  ;;  %v2483_v44 = vld.sshfl [vmem:[#allocation1] sm:$0xff pattern:$0x73625140] }
 0x3f0   : > { %4913 = vmatpush.msra.mxu2 %v2095_v46  ;;  %4932 = vmatpush.msra.mxu3 %v2112_v47  ;;  %v3587_v46 = vadd.f32 %v3586_v38, %v3567_v35  ;;  %v2131_v47 = vld [vmem:[%s5573_s28 + $0x3a78] sm:$0xff] }
 0x3f1   : > { %4874 = vmatpush.msra.mxu0 %v2062_v48  ;;  %4893 = vmatpush.msra.mxu1 %v2079_v49  ;;  %v2163_v48 = vld [vmem:[%s5573_s28 + $0x3b78] sm:$0xff]  ;;  %v2068_v49 = vld [vmem:[%s5573_s28 + $0x3880] sm:$0xff] }
 0x3f2   : > { %4914 = vmatpush.msra.mxu2 %v2094_v51  ;;  %4933 = vmatpush.msra.mxu3 %v2111_v52  ;;  %v3607_v51 = vadd.f32 %v3606_v43, %v3587_v46  ;;  %v2484_v52 = vld.sshfl [vmem:[#allocation1 + $0x8] sm:$0xff pattern:$0x73625140] }
 0x3f3   : > { %4875 = vmatpush.msra.mxu0 %v2061_v54  ;;  %4894 = vmatpush.msra.mxu1 %v2078_v55  ;;  %v3626_v54 = vpop.f32.mrf.mxu1  ;;  %v2130_v55 = vld [vmem:[%s5573_s28 + $0x3a70] sm:$0xff] }
 0x3f4   : > { %4915 = vmatpush.msra.mxu2 %v2093_v56  ;;  %4934 = vmatpush.msra.mxu3 %v2110_v57  ;;  %v2147_v56 = vld [vmem:[%s5573_s28 + $0x3af8] sm:$0xff]  ;;  %v2162_v57 = vld [vmem:[%s5573_s28 + $0x3b70] sm:$0xff] }
 0x3f5   : > { %4876 = vmatpush.msra.mxu0 %v2060_v59  ;;  %4895 = vmatpush.msra.mxu1 %v2077_v60  ;;  %v3646_v59 = vpop.f32.mrf.mxu2  ;;  %v2129_v60 = vld [vmem:[%s5573_s28 + $0x3a68] sm:$0xff] }
 0x3f6   : > { %4916 = vmatpush.msra.mxu2 %v2092_v62  ;;  %4935 = vmatpush.msra.mxu3 %v2109_v63  ;;  %v3627_v62 = vadd.f32 %v3626_v54, %v3607_v51  ;;  %v2161_v63 = vld [vmem:[%s5573_s28 + $0x3b68] sm:$0xff] }
 0x3f7   : > { %4877 = vmatpush.msra.mxu0 %v2059_v0  ;;  %4896 = vmatpush.msra.mxu1 %v2076_v1  ;;  %v2178_v0 = vld [vmem:[%s5573_s28 + $0x3bf0] sm:$0xff]  ;;  %v2128_v1 = vld [vmem:[%s5573_s28 + $0x3a60] sm:$0xff] }
 0x3f8   : > { %4917 = vmatpush.msra.mxu2 %v2091_v3  ;;  %4936 = vmatpush.msra.mxu3 %v2108_v4  ;;  %v3647_v3 = vadd.f32 %v3646_v59, %v3627_v62  ;;  %v2160_v4 = vld [vmem:[%s5573_s28 + $0x3b60] sm:$0xff] }
 0x3f9   : > { %4878 = vmatpush.msra.mxu0 %v2058_v6  ;;  %4897 = vmatpush.msra.mxu1 %v2075_v7  ;;  %v3666_v6 = vpop.f32.mrf.mxu3  ;;  %v2127_v7 = vld [vmem:[%s5573_s28 + $0x3a58] sm:$0xff]  ;;  %v258_v62 = vld [vmem:[%s5591_s9 + $0xf0] sm:$0xff] }
 0x3fa   : > { %4918 = vmatpush.msra.mxu2 %v2090_v8  ;;  %4937 = vmatpush.msra.mxu3 %v2107_v9  ;;  %v2144_v8 = vld [vmem:[%s5573_s28 + $0x3ae0] sm:$0xff]  ;;  %v2159_v9 = vld [vmem:[%s5573_s28 + $0x3b58] sm:$0xff]  ;;  %2491 = vst [vmem:[#allocation1] ss:$4 sm:$0xff] %v258_v62 }
 0x3fb   : > { %4879 = vmatpush.msra.mxu0 %v2057_v11  ;;  %4898 = vmatpush.msra.mxu1 %v2074_v12  ;;  %v3686_v11 = vpop.f32.mrf.mxu0  ;;  %v2126_v12 = vld [vmem:[%s5573_s28 + $0x3a50] sm:$0xff]  ;;  %v2203_v62 = vld [vmem:[%s5573_s28 + $0x3cb8] sm:$0xff] }
 0x3fc   : > { %4919 = vmatpush.msra.mxu2 %v2089_v14  ;;  %4938 = vmatpush.msra.mxu3 %v2106_v15  ;;  %v3667_v14 = vadd.f32 %v3666_v6, %v3647_v3  ;;  %v2158_v15 = vld [vmem:[%s5573_s28 + $0x3b50] sm:$0xff]  ;;  %v2133_v3 = vld [vmem:[%s5573_s28 + $0x3a88] sm:$0xff] }
 0x3fd   : > { %4880 = vmatpush.msra.mxu0 %v2056_v16  ;;  %4899 = vmatpush.msra.mxu1 %v2073_v17  ;;  %v2175_v16 = vld [vmem:[%s5573_s28 + $0x3bd8] sm:$0xff]  ;;  %v2125_v17 = vld [vmem:[%s5573_s28 + $0x3a48] sm:$0xff] }
 0x3fe   : > { %4920 = vmatpush.msra.mxu2 %v2088_v19  ;;  %4939 = vmatpush.msra.mxu3 %v2105_v20  ;;  %v3687_v19 = vadd.f32 %v3686_v11, %v3667_v14  ;;  %v2157_v20 = vld [vmem:[%s5573_s28 + $0x3b48] sm:$0xff]  ;;  %v2227_v11 = vld [vmem:[%s5573_s28 + $0x3d78] sm:$0xff]  ;;  %v2164_v14 = vld [vmem:[%s5573_s28 + $0x3b80] sm:$0xff] }
 0x3ff   : > { %4881 = vmatpush.msra.mxu0 %v2055_v22  ;;  %4900 = vmatpush.msra.mxu1 %v2072_v23  ;;  %v3706_v22 = vpop.f32.mrf.mxu1  ;;  %v2124_v23 = vld [vmem:[%s5573_s28 + $0x3a40] sm:$0xff]  ;;  %v2165_v6 = vld [vmem:[%s5573_s28 + $0x3b88] sm:$0xff] }
 0x400   : > { %4921 = vmatpush.msra.mxu2 %v2087_v24  ;;  %4940 = vmatpush.msra.mxu3 %v2104_v25  ;;  %v2141_v24 = vld [vmem:[%s5573_s28 + $0x3ac8] sm:$0xff]  ;;  %v2156_v25 = vld [vmem:[%s5573_s28 + $0x3b40] sm:$0xff] }
 0x401   : > { %4882 = vmatpush.msra.mxu0 %v2054_v27  ;;  %4901 = vmatpush.msra.mxu1 %v2071_v28  ;;  %v3726_v27 = vpop.f32.mrf.mxu2  ;;  %v2123_v28 = vld [vmem:[%s5573_s28 + $0x3a38] sm:$0xff]  ;;  %v3746_v38 = vpop.f32.mrf.mxu3 }
 0x402   : > { %4922 = vmatpush.msra.mxu2 %v2086_v30  ;;  %4941 = vmatpush.msra.mxu3 %v2103_v31  ;;  %v3707_v30 = vadd.f32 %v3706_v22, %v3687_v19  ;;  %v2155_v31 = vld [vmem:[%s5573_s28 + $0x3b38] sm:$0xff] }
 0x403   : > { %4883 = vmatpush.msra.mxu0 %v2053_v32  ;;  %4902 = vmatpush.msra.mxu1 %v2070_v33  ;;  %v2172_v32 = vld [vmem:[%s5573_s28 + $0x3bc0] sm:$0xff]  ;;  %v2122_v33 = vld [vmem:[%s5573_s28 + $0x3a30] sm:$0xff]  ;;  %v3766_v43 = vpop.f32.mrf.mxu0  ;;  %v2211_v19 = vld [vmem:[%s5573_s28 + $0x3cf8] sm:$0xff] }
 0x404   : > { %4923 = vmatpush.msra.mxu2 %v2085_v36  ;;  %4942 = vmatpush.msra.mxu3 %v2102_v37  ;;  %v3727_v35 = vadd.f32 %v3726_v27, %v3707_v30  ;;  %v2154_v36 = vld [vmem:[%s5573_s28 + $0x3b30] sm:$0xff]  ;;  %v2171_v37 = vld [vmem:[%s5573_s28 + $0x3bb8] sm:$0xff]  ;;  %v2209_v30 = vld [vmem:[%s5573_s28 + $0x3ce8] sm:$0xff] }
 0x405   : > { %4884 = vmatpush.msra.mxu0 %v2052_v39  ;;  %4903 = vmatpush.msra.mxu1 %v2069_v40  ;;  %v2121_v39 = vld [vmem:[%s5573_s28 + $0x3a28] sm:$0xff]  ;;  %v2138_v40 = vld [vmem:[%s5573_s28 + $0x3ab0] sm:$0xff]  ;;  %v2243_v22 = vld [vmem:[%s5573_s28 + $0x3df8] sm:$0xff] }
 0x406   : > { %4924 = vmatpush.msra.mxu2 %v2084_v41  ;;  %4943 = vmatpush.msra.mxu3 %v2101_v42  ;;  %v2153_v41 = vld [vmem:[%s5573_s28 + $0x3b28] sm:$0xff]  ;;  %v2170_v42 = vld [vmem:[%s5573_s28 + $0x3bb0] sm:$0xff]  ;;  %v3747_v46 = vadd.f32 %v3746_v38, %v3727_v35  ;;  %v2208_v35 = vld [vmem:[%s5573_s28 + $0x3ce0] sm:$0xff] }
 0x407   : > { %4885 = vmatmul.f32.vlgmr.msra.gmra.mxu0 %v2483_v44  ;;  %4925 = vmatmul.f32.vlgmr.msra.gmra.mxu2 %v2485_v45  ;;  %v2120_v44 = vld [vmem:[%s5573_s28 + $0x3a20] sm:$0xff]  ;;  %v2137_v45 = vld [vmem:[%s5573_s28 + $0x3aa8] sm:$0xff]  ;;  %v3786_v54 = vpop.f32.mrf.mxu1  ;;  %v2242_v27 = vld [vmem:[%s5573_s28 + $0x3df0] sm:$0xff] }
 0x408   : > { %4949 = vmatpush.msrb.mxu0 %v2131_v47  ;;  %4989 = vmatpush.msrb.mxu2 %v2163_v48  ;;  %v2152_v47 = vld [vmem:[%s5573_s28 + $0x3b20] sm:$0xff]  ;;  %v2169_v48 = vld [vmem:[%s5573_s28 + $0x3ba8] sm:$0xff]  ;;  %v3767_v51 = vadd.f32 %v3766_v43, %v3747_v46  ;;  %v2239_v43 = vld [vmem:[%s5573_s28 + $0x3dd8] sm:$0xff] }
 0x409   : > { %4904 = vmatpush.msra.mxu1 %v2068_v49  ;;  %4944 = vmatpush.msra.mxu3 %v2100_v50  ;;  %v2119_v49 = vld [vmem:[%s5573_s28 + $0x3a18] sm:$0xff]  ;;  %v2136_v50 = vld [vmem:[%s5573_s28 + $0x3aa0] sm:$0xff]  ;;  %v3806_v59 = vpop.f32.mrf.mxu2  ;;  %v2206_v46 = vld [vmem:[%s5573_s28 + $0x3cd0] sm:$0xff] }
 0x40a   : > { %4905 = vmatmul.f32.vlgmr.msra.gmra.mxu1 %v2484_v52  ;;  %4945 = vmatmul.f32.vlgmr.msra.gmra.mxu3 %v2486_v53  ;;  %v2151_v52 = vld [vmem:[%s5573_s28 + $0x3b18] sm:$0xff]  ;;  %v2168_v53 = vld [vmem:[%s5573_s28 + $0x3ba0] sm:$0xff] }
 0x40b   : > { %4950 = vmatpush.msrb.mxu0 %v2130_v55  ;;  %4969 = vmatpush.msrb.mxu1 %v2147_v56  ;;  %v2118_v55 = vld [vmem:[%s5573_s28 + $0x3a10] sm:$0xff]  ;;  %v2135_v56 = vld [vmem:[%s5573_s28 + $0x3a98] sm:$0xff]  ;;  %v2240_v38 = vld [vmem:[%s5573_s28 + $0x3de0] sm:$0xff] }
 0x40c   : > { %4990 = vmatpush.msrb.mxu2 %v2162_v57  ;;  %5009 = vmatpush.msrb.mxu3 %v2179_v58  ;;  %v2150_v57 = vld [vmem:[%s5573_s28 + $0x3b10] sm:$0xff]  ;;  %v2167_v58 = vld [vmem:[%s5573_s28 + $0x3b98] sm:$0xff] }
 0x40d   : > { %4951 = vmatpush.msrb.mxu0 %v2129_v60  ;;  %4970 = vmatpush.msrb.mxu1 %v2146_v61  ;;  %v2117_v60 = vld [vmem:[%s5573_s28 + $0x3a08] sm:$0xff]  ;;  %v2134_v61 = vld [vmem:[%s5573_s28 + $0x3a90] sm:$0xff] }
 0x40e   : > { %4991 = vmatpush.msrb.mxu2 %v2161_v63  ;;  %5010 = vmatpush.msrb.mxu3 %v2178_v0  ;;  %v3787_v63 = vadd.f32 %v3786_v54, %v3767_v51  ;;  %v2149_v0 = vld [vmem:[%s5573_s28 + $0x3b08] sm:$0xff] }
 0x40f   : > { %4952 = vmatpush.msrb.mxu0 %v2128_v1  ;;  %4971 = vmatpush.msrb.mxu1 %v2145_v2  ;;  %v2166_v1 = vld [vmem:[%s5573_s28 + $0x3b90] sm:$0xff]  ;;  %v2116_v2 = vld [vmem:[%s5573_s28 + $0x3a00] sm:$0xff]  ;;  %v2205_v51 = vld [vmem:[%s5573_s28 + $0x3cc8] sm:$0xff] }
 0x410   : > { %4992 = vmatpush.msrb.mxu2 %v2160_v4  ;;  %5011 = vmatpush.msrb.mxu3 %v2177_v5  ;;  %v3807_v4 = vadd.f32 %v3806_v59, %v3787_v63  ;;  %v2148_v5 = vld [vmem:[%s5573_s28 + $0x3b00] sm:$0xff]  ;;  %v2237_v54 = vld [vmem:[%s5573_s28 + $0x3dc8] sm:$0xff] }
 0x411   : > { %4953 = vmatpush.msrb.mxu0 %v2127_v7  ;;  %4972 = vmatpush.msrb.mxu1 %v2144_v8  ;;  %v3826_v7 = vpop.f32.mrf.mxu3  ;;  %v2487_v8 = vld.sshfl [vmem:[#allocation1 + $0x20] sm:$0xff pattern:$0x73625140]  ;;  %v2236_v59 = vld [vmem:[%s5573_s28 + $0x3dc0] sm:$0xff] }
 0x412   : > { %4993 = vmatpush.msrb.mxu2 %v2159_v9  ;;  %5012 = vmatpush.msrb.mxu3 %v2176_v10  ;;  %v2489_v9 = vld.sshfl [vmem:[#allocation1 + $0x30] sm:$0xff pattern:$0x73625140]  ;;  %v2195_v10 = vld [vmem:[%s5573_s28 + $0x3c78] sm:$0xff] }
 0x413   : > { %4954 = vmatpush.msrb.mxu0 %v2126_v12  ;;  %4973 = vmatpush.msrb.mxu1 %v2143_v13  ;;  %v3846_v12 = vpop.f32.mrf.mxu0  ;;  %v2132_v13 = vld [vmem:[%s5573_s28 + $0x3a80] sm:$0xff] }
 0x414   : > { %4994 = vmatpush.msrb.mxu2 %v2158_v15  ;;  %5013 = vmatpush.msrb.mxu3 %v2175_v16  ;;  %v3827_v15 = vadd.f32 %v3826_v7, %v3807_v4  ;;  %v2488_v16 = vld.sshfl [vmem:[#allocation1 + $0x28] sm:$0xff pattern:$0x73625140] }
 0x415   : > { %4955 = vmatpush.msrb.mxu0 %v2125_v17  ;;  %4974 = vmatpush.msrb.mxu1 %v2142_v18  ;;  %v2490_v17 = vld.sshfl [vmem:[#allocation1 + $0x38] sm:$0xff pattern:$0x73625140] }
 0x416   : > { %4995 = vmatpush.msrb.mxu2 %v2157_v20  ;;  %5014 = vmatpush.msrb.mxu3 %v2174_v21  ;;  %v2194_v18 = vld [vmem:[%s5573_s28 + $0x3c70] sm:$0xff]  ;;  %v3847_v20 = vadd.f32 %v3846_v12, %v3827_v15 }
 0x417   : > { %4956 = vmatpush.msrb.mxu0 %v2124_v23  ;;  %4975 = vmatpush.msrb.mxu1 %v2141_v24  ;;  %v2226_v21 = vld [vmem:[%s5573_s28 + $0x3d70] sm:$0xff]  ;;  %v3866_v23 = vpop.f32.mrf.mxu1  ;;  %v2193_v24 = vld [vmem:[%s5573_s28 + $0x3c68] sm:$0xff] }
 0x418   : > { %4996 = vmatpush.msrb.mxu2 %v2156_v25  ;;  %5015 = vmatpush.msrb.mxu3 %v2173_v26  ;;  %v2210_v25 = vld [vmem:[%s5573_s28 + $0x3cf0] sm:$0xff]  ;;  %v2225_v26 = vld [vmem:[%s5573_s28 + $0x3d68] sm:$0xff] }
 0x419   : > { %4957 = vmatpush.msrb.mxu0 %v2123_v28  ;;  %4976 = vmatpush.msrb.mxu1 %v2140_v29  ;;  %v3886_v28 = vpop.f32.mrf.mxu2  ;;  %v2192_v29 = vld [vmem:[%s5573_s28 + $0x3c60] sm:$0xff] }
 0x41a   : > { %4997 = vmatpush.msrb.mxu2 %v2155_v31  ;;  %5016 = vmatpush.msrb.mxu3 %v2172_v32  ;;  %v3867_v31 = vadd.f32 %v3866_v23, %v3847_v20  ;;  %v2224_v32 = vld [vmem:[%s5573_s28 + $0x3d60] sm:$0xff] }
 0x41b   : > { %4958 = vmatpush.msrb.mxu0 %v2122_v33  ;;  %4977 = vmatpush.msrb.mxu1 %v2139_v34  ;;  %v2241_v33 = vld [vmem:[%s5573_s28 + $0x3de8] sm:$0xff]  ;;  %v2191_v34 = vld [vmem:[%s5573_s28 + $0x3c58] sm:$0xff] }
 0x41c   : > { %4998 = vmatpush.msrb.mxu2 %v2154_v36  ;;  %5017 = vmatpush.msrb.mxu3 %v2171_v37  ;;  %v3887_v36 = vadd.f32 %v3886_v28, %v3867_v31  ;;  %v2223_v37 = vld [vmem:[%s5573_s28 + $0x3d58] sm:$0xff]  ;;  %v2230_v28 = vld [vmem:[%s5573_s28 + $0x3d90] sm:$0xff]  ;;  %v2197_v31 = vld [vmem:[%s5573_s28 + $0x3c88] sm:$0xff] }
 0x41d   : > { %4959 = vmatpush.msrb.mxu0 %v2121_v39  ;;  %4978 = vmatpush.msrb.mxu1 %v2138_v40  ;;  %v3906_v39 = vpop.f32.mrf.mxu3  ;;  %v2190_v40 = vld [vmem:[%s5573_s28 + $0x3c50] sm:$0xff] }
 0x41e   : > { %4999 = vmatpush.msrb.mxu2 %v2153_v41  ;;  %5018 = vmatpush.msrb.mxu3 %v2170_v42  ;;  %v2207_v41 = vld [vmem:[%s5573_s28 + $0x3cd8] sm:$0xff]  ;;  %v2222_v42 = vld [vmem:[%s5573_s28 + $0x3d50] sm:$0xff] }
 0x41f   : > { %4960 = vmatpush.msrb.mxu0 %v2120_v44  ;;  %4979 = vmatpush.msrb.mxu1 %v2137_v45  ;;  %v3926_v44 = vpop.f32.mrf.mxu0  ;;  %v2189_v45 = vld [vmem:[%s5573_s28 + $0x3c48] sm:$0xff] }
 0x420   : > { %5000 = vmatpush.msrb.mxu2 %v2152_v47  ;;  %5019 = vmatpush.msrb.mxu3 %v2169_v48  ;;  %v3907_v47 = vadd.f32 %v3906_v39, %v3887_v36  ;;  %v2221_v48 = vld [vmem:[%s5573_s28 + $0x3d48] sm:$0xff]  ;;  %v2291_v39 = vld [vmem:[%s5573_s28 + $0x3f78] sm:$0xff] }
 0x421   : > { %4961 = vmatpush.msrb.mxu0 %v2119_v49  ;;  %4980 = vmatpush.msrb.mxu1 %v2136_v50  ;;  %v2238_v49 = vld [vmem:[%s5573_s28 + $0x3dd0] sm:$0xff]  ;;  %v2188_v50 = vld [vmem:[%s5573_s28 + $0x3c40] sm:$0xff] }
 0x422   : > { %5001 = vmatpush.msrb.mxu2 %v2151_v52  ;;  %5020 = vmatpush.msrb.mxu3 %v2168_v53  ;;  %v3927_v52 = vadd.f32 %v3926_v44, %v3907_v47  ;;  %v2220_v53 = vld [vmem:[%s5573_s28 + $0x3d40] sm:$0xff]  ;;  %v2496_v44 = vld.sshfl [vmem:[#allocation1 + $0x18] sm:$0xff pattern:$0x73625140]  ;;  %v2275_v47 = vld [vmem:[%s5573_s28 + $0x3ef8] sm:$0xff] }
 0x423   : > { %4962 = vmatpush.msrb.mxu0 %v2118_v55  ;;  %4981 = vmatpush.msrb.mxu1 %v2135_v56  ;;  %v3946_v55 = vpop.f32.mrf.mxu1  ;;  %v2187_v56 = vld [vmem:[%s5573_s28 + $0x3c38] sm:$0xff]  ;;  %v2495_v36 = vld.sshfl [vmem:[#allocation1 + $0x10] sm:$0xff pattern:$0x73625140] }
 0x424   : > { %5002 = vmatpush.msrb.mxu2 %v2150_v57  ;;  %5021 = vmatpush.msrb.mxu3 %v2167_v58  ;;  %v2204_v57 = vld [vmem:[%s5573_s28 + $0x3cc0] sm:$0xff]  ;;  %v2219_v58 = vld [vmem:[%s5573_s28 + $0x3d38] sm:$0xff]  ;;  %v3947_v63 = vadd.f32 %v3946_v55, %v3927_v52  ;;  %v2274_v52 = vld [vmem:[%s5573_s28 + $0x3ef0] sm:$0xff] }
 0x425   : > { %4963 = vmatpush.msrb.mxu0 %v2117_v60  ;;  %4982 = vmatpush.msrb.mxu1 %v2134_v61  ;;  %v3966_v60 = vpop.f32.mrf.mxu2  ;;  %v2186_v61 = vld [vmem:[%s5573_s28 + $0x3c30] sm:$0xff]  ;;  %v3986_v7 = vpop.f32.mrf.mxu3 }
 0x426   : > { %5003 = vmatpush.msrb.mxu2 %v2149_v0  ;;  %5022 = vmatpush.msrb.mxu3 %v2166_v1  ;;  %v2218_v0 = vld [vmem:[%s5573_s28 + $0x3d30] sm:$0xff]  ;;  %v2235_v1 = vld [vmem:[%s5573_s28 + $0x3db8] sm:$0xff]  ;;  %v3967_v4 = vadd.f32 %v3966_v60, %v3947_v63  ;;  %v2305_v60 = vld [vmem:[%s5573_s28 + $0x3fe8] sm:$0xff] }
 0x427   : > { %4964 = vmatpush.msrb.mxu0 %v2116_v2  ;;  %4983 = vmatpush.msrb.mxu1 %v2133_v3  ;;  %v2185_v2 = vld [vmem:[%s5573_s28 + $0x3c28] sm:$0xff]  ;;  %v2202_v3 = vld [vmem:[%s5573_s28 + $0x3cb0] sm:$0xff]  ;;  %v4006_v12 = vpop.f32.mrf.mxu0  ;;  %v2272_v63 = vld [vmem:[%s5573_s28 + $0x3ee0] sm:$0xff] }
 0x428   : > { %5004 = vmatpush.msrb.mxu2 %v2148_v5  ;;  %5023 = vmatpush.msrb.mxu3 %v2165_v6  ;;  %v2217_v5 = vld [vmem:[%s5573_s28 + $0x3d28] sm:$0xff]  ;;  %v2234_v6 = vld [vmem:[%s5573_s28 + $0x3db0] sm:$0xff]  ;;  %v3987_v15 = vadd.f32 %v3986_v7, %v3967_v4  ;;  %v2271_v4 = vld [vmem:[%s5573_s28 + $0x3ed8] sm:$0xff] }
 0x429   : > { %4965 = vmatmul.f32.vlgmr.msrb.gmra.mxu0 %v2487_v8  ;;  %5005 = vmatmul.f32.vlgmr.msrb.gmra.mxu2 %v2489_v9  ;;  %v2184_v8 = vld [vmem:[%s5573_s28 + $0x3c20] sm:$0xff]  ;;  %v2201_v9 = vld [vmem:[%s5573_s28 + $0x3ca8] sm:$0xff]  ;;  %v2306_v55 = vld [vmem:[%s5573_s28 + $0x3ff0] sm:$0xff] }
 0x42a   : > { %5029 = vmatpush.msra.mxu0 %v2195_v10  ;;  %5069 = vmatpush.msra.mxu2 %v2227_v11  ;;  %v2216_v10 = vld [vmem:[%s5573_s28 + $0x3d20] sm:$0xff]  ;;  %v2233_v11 = vld [vmem:[%s5573_s28 + $0x3da8] sm:$0xff]  ;;  %v4007_v20 = vadd.f32 %v4006_v12, %v3987_v15  ;;  %v2303_v7 = vld [vmem:[%s5573_s28 + $0x3fd8] sm:$0xff] }
 0x42b   : > { %4984 = vmatpush.msrb.mxu1 %v2132_v13  ;;  %5024 = vmatpush.msrb.mxu3 %v2164_v14  ;;  %v2183_v13 = vld [vmem:[%s5573_s28 + $0x3c18] sm:$0xff]  ;;  %v2200_v14 = vld [vmem:[%s5573_s28 + $0x3ca0] sm:$0xff]  ;;  %v4026_v23 = vpop.f32.mrf.mxu1  ;;  %v2302_v12 = vld [vmem:[%s5573_s28 + $0x3fd0] sm:$0xff] }
 0x42c   : > { %4985 = vmatmul.f32.vlgmr.msrb.gmra.mxu1 %v2488_v16  ;;  %5025 = vmatmul.f32.vlgmr.msrb.gmra.mxu3 %v2490_v17  ;;  %v2215_v16 = vld [vmem:[%s5573_s28 + $0x3d18] sm:$0xff]  ;;  %v2232_v17 = vld [vmem:[%s5573_s28 + $0x3da0] sm:$0xff]  ;;  %v2269_v15 = vld [vmem:[%s5573_s28 + $0x3ec8] sm:$0xff] }
 0x42d   : > { %5030 = vmatpush.msra.mxu0 %v2194_v18  ;;  %5049 = vmatpush.msra.mxu1 %v2211_v19  ;;  %v2182_v18 = vld [vmem:[%s5573_s28 + $0x3c10] sm:$0xff]  ;;  %v2199_v19 = vld [vmem:[%s5573_s28 + $0x3c98] sm:$0xff] }
 0x42e   : > { %5070 = vmatpush.msra.mxu2 %v2226_v21  ;;  %5089 = vmatpush.msra.mxu3 %v2243_v22  ;;  %v2214_v21 = vld [vmem:[%s5573_s28 + $0x3d10] sm:$0xff]  ;;  %v2231_v22 = vld [vmem:[%s5573_s28 + $0x3d98] sm:$0xff] }
 0x42f   : > { %5031 = vmatpush.msra.mxu0 %v2193_v24  ;;  %5050 = vmatpush.msra.mxu1 %v2210_v25  ;;  %v2181_v24 = vld [vmem:[%s5573_s28 + $0x3c08] sm:$0xff]  ;;  %v2198_v25 = vld [vmem:[%s5573_s28 + $0x3c90] sm:$0xff] }
 0x430   : > { %5071 = vmatpush.msra.mxu2 %v2225_v26  ;;  %5090 = vmatpush.msra.mxu3 %v2242_v27  ;;  %v259_v26 = vld [vmem:[%s5591_s9 + $0xf8] sm:$0xff] }
 0x431   : > { %5032 = vmatpush.msra.mxu0 %v2192_v29  ;;  %5051 = vmatpush.msra.mxu1 %v2209_v30  ;;  %v2213_v27 = vld [vmem:[%s5573_s28 + $0x3d08] sm:$0xff]  ;;  %2492 = vst [vmem:[#allocation1 + $0x20] ss:$4 sm:$0xff] %v259_v26  ;;  %v4046_v29 = vpop.f32.mrf.mxu2  ;;  %v2180_v30 = vld [vmem:[%s5573_s28 + $0x3c00] sm:$0xff]  ;;  %v2267_v26 = vld [vmem:[%s5573_s28 + $0x3eb8] sm:$0xff] }
 0x432   : > { %5072 = vmatpush.msra.mxu2 %v2224_v32  ;;  %5091 = vmatpush.msra.mxu3 %v2241_v33  ;;  %v4027_v32 = vadd.f32 %v4026_v23, %v4007_v20  ;;  %v2212_v33 = vld [vmem:[%s5573_s28 + $0x3d00] sm:$0xff] }
 0x433   : > { %5033 = vmatpush.msra.mxu0 %v2191_v34  ;;  %5052 = vmatpush.msra.mxu1 %v2208_v35  ;;  %v2229_v34 = vld [vmem:[%s5573_s28 + $0x3d88] sm:$0xff]  ;;  %v2493_v35 = vld.sshfl [vmem:[#allocation1] sm:$0xff pattern:$0x73625140]  ;;  %v2268_v20 = vld [vmem:[%s5573_s28 + $0x3ec0] sm:$0xff] }
 0x434   : > { %5073 = vmatpush.msra.mxu2 %v2223_v37  ;;  %5092 = vmatpush.msra.mxu3 %v2240_v38  ;;  %v4047_v37 = vadd.f32 %v4046_v29, %v4027_v32  ;;  %v2259_v38 = vld [vmem:[%s5573_s28 + $0x3e78] sm:$0xff]  ;;  %v2300_v23 = vld [vmem:[%s5573_s28 + $0x3fc0] sm:$0xff] }
 0x435   : > { %5034 = vmatpush.msra.mxu0 %v2190_v40  ;;  %5053 = vmatpush.msra.mxu1 %v2207_v41  ;;  %v4066_v40 = vpop.f32.mrf.mxu3  ;;  %v2196_v41 = vld [vmem:[%s5573_s28 + $0x3c80] sm:$0xff] }
 0x436   : > { %5074 = vmatpush.msra.mxu2 %v2222_v42  ;;  %5093 = vmatpush.msra.mxu3 %v2239_v43  ;;  %v2228_v42 = vld [vmem:[%s5573_s28 + $0x3d80] sm:$0xff] }
 0x437   : > { %5035 = vmatpush.msra.mxu0 %v2189_v45  ;;  %5054 = vmatpush.msra.mxu1 %v2206_v46  ;;  %v2494_v43 = vld.sshfl [vmem:[#allocation1 + $0x8] sm:$0xff pattern:$0x73625140]  ;;  %v4086_v45 = vpop.f32.mrf.mxu0  ;;  %v2258_v46 = vld [vmem:[%s5573_s28 + $0x3e70] sm:$0xff] }
 0x438   : > { %5075 = vmatpush.msra.mxu2 %v2221_v48  ;;  %5094 = vmatpush.msra.mxu3 %v2238_v49  ;;  %v4067_v48 = vadd.f32 %v4066_v40, %v4047_v37  ;;  %v2290_v49 = vld [vmem:[%s5573_s28 + $0x3f70] sm:$0xff] }
 0x439   : > { %5036 = vmatpush.msra.mxu0 %v2188_v50  ;;  %5055 = vmatpush.msra.mxu1 %v2205_v51  ;;  %v2307_v50 = vld [vmem:[%s5573_s28 + $0x3ff8] sm:$0xff]  ;;  %v2257_v51 = vld [vmem:[%s5573_s28 + $0x3e68] sm:$0xff] }
 0x43a   : > { %5076 = vmatpush.msra.mxu2 %v2220_v53  ;;  %5095 = vmatpush.msra.mxu3 %v2237_v54  ;;  %v4087_v53 = vadd.f32 %v4086_v45, %v4067_v48  ;;  %v2289_v54 = vld [vmem:[%s5573_s28 + $0x3f68] sm:$0xff] }
 0x43b   : > { %5037 = vmatpush.msra.mxu0 %v2187_v56  ;;  %5056 = vmatpush.msra.mxu1 %v2204_v57  ;;  %v4106_v56 = vpop.f32.mrf.mxu1  ;;  %v2256_v57 = vld [vmem:[%s5573_s28 + $0x3e60] sm:$0xff] }
 0x43c   : > { %5077 = vmatpush.msra.mxu2 %v2219_v58  ;;  %5096 = vmatpush.msra.mxu3 %v2236_v59  ;;  %v2273_v58 = vld [vmem:[%s5573_s28 + $0x3ee8] sm:$0xff]  ;;  %v2288_v59 = vld [vmem:[%s5573_s28 + $0x3f60] sm:$0xff] }
 0x43d   : > { %5038 = vmatpush.msra.mxu0 %v2186_v61  ;;  %5057 = vmatpush.msra.mxu1 %v2203_v62  ;;  %v4126_v61 = vpop.f32.mrf.mxu2  ;;  %v2255_v62 = vld [vmem:[%s5573_s28 + $0x3e58] sm:$0xff] }
 0x43e   : > { %5078 = vmatpush.msra.mxu2 %v2218_v0  ;;  %5097 = vmatpush.msra.mxu3 %v2235_v1  ;;  %v4107_v0 = vadd.f32 %v4106_v56, %v4087_v53  ;;  %v2287_v1 = vld [vmem:[%s5573_s28 + $0x3f58] sm:$0xff] }
 0x43f   : > { %5039 = vmatpush.msra.mxu0 %v2185_v2  ;;  %5058 = vmatpush.msra.mxu1 %v2202_v3  ;;  %v2304_v2 = vld [vmem:[%s5573_s28 + $0x3fe0] sm:$0xff]  ;;  %v2254_v3 = vld [vmem:[%s5573_s28 + $0x3e50] sm:$0xff] }
 0x440   : > { %5079 = vmatpush.msra.mxu2 %v2217_v5  ;;  %5098 = vmatpush.msra.mxu3 %v2234_v6  ;;  %v4127_v5 = vadd.f32 %v4126_v61, %v4107_v0  ;;  %v2286_v6 = vld [vmem:[%s5573_s28 + $0x3f50] sm:$0xff] }
 0x441   : > { %5040 = vmatpush.msra.mxu0 %v2184_v8  ;;  %5059 = vmatpush.msra.mxu1 %v2201_v9  ;;  %v4146_v8 = vpop.f32.mrf.mxu3  ;;  %v2253_v9 = vld [vmem:[%s5573_s28 + $0x3e48] sm:$0xff] }
 0x442   : > { %5080 = vmatpush.msra.mxu2 %v2216_v10  ;;  %5099 = vmatpush.msra.mxu3 %v2233_v11  ;;  %v2270_v10 = vld [vmem:[%s5573_s28 + $0x3ed0] sm:$0xff]  ;;  %v2285_v11 = vld [vmem:[%s5573_s28 + $0x3f48] sm:$0xff] }
 0x443   : > { %5041 = vmatpush.msra.mxu0 %v2183_v13  ;;  %5060 = vmatpush.msra.mxu1 %v2200_v14  ;;  %v4166_v13 = vpop.f32.mrf.mxu0  ;;  %v2252_v14 = vld [vmem:[%s5573_s28 + $0x3e40] sm:$0xff] }
 0x444   : > { %5081 = vmatpush.msra.mxu2 %v2215_v16  ;;  %5100 = vmatpush.msra.mxu3 %v2232_v17  ;;  %v4147_v16 = vadd.f32 %v4146_v8, %v4127_v5  ;;  %v2284_v17 = vld [vmem:[%s5573_s28 + $0x3f40] sm:$0xff] }
 0x445   : > { %5042 = vmatpush.msra.mxu0 %v2182_v18  ;;  %5061 = vmatpush.msra.mxu1 %v2199_v19  ;;  %v2301_v18 = vld [vmem:[%s5573_s28 + $0x3fc8] sm:$0xff]  ;;  %v2251_v19 = vld [vmem:[%s5573_s28 + $0x3e38] sm:$0xff]  ;;  %v4206_v29 = vpop.f32.mrf.mxu2 }
 0x446   : > { %5082 = vmatpush.msra.mxu2 %v2214_v21  ;;  %5101 = vmatpush.msra.mxu3 %v2231_v22  ;;  %v4167_v21 = vadd.f32 %v4166_v13, %v4147_v16  ;;  %v2283_v22 = vld [vmem:[%s5573_s28 + $0x3f38] sm:$0xff] }
 0x447   : > { %5043 = vmatpush.msra.mxu0 %v2181_v24  ;;  %5062 = vmatpush.msra.mxu1 %v2198_v25  ;;  %v4186_v24 = vpop.f32.mrf.mxu1  ;;  %v2250_v25 = vld [vmem:[%s5573_s28 + $0x3e30] sm:$0xff] }
 0x448   : > { %5083 = vmatpush.msra.mxu2 %v2213_v27  ;;  %5102 = vmatpush.msra.mxu3 %v2230_v28  ;;  %v2282_v27 = vld [vmem:[%s5573_s28 + $0x3f30] sm:$0xff]  ;;  %v2299_v28 = vld [vmem:[%s5573_s28 + $0x3fb8] sm:$0xff]  ;;  %v4187_v32 = vadd.f32 %v4186_v24, %v4167_v21 }
 0x449   : > { %5044 = vmatpush.msra.mxu0 %v2180_v30  ;;  %5063 = vmatpush.msra.mxu1 %v2197_v31  ;;  %v2249_v30 = vld [vmem:[%s5573_s28 + $0x3e28] sm:$0xff]  ;;  %v2266_v31 = vld [vmem:[%s5573_s28 + $0x3eb0] sm:$0xff]  ;;  %v4226_v40 = vpop.f32.mrf.mxu3 }
 0x44a   : > { %5084 = vmatpush.msra.mxu2 %v2212_v33  ;;  %5103 = vmatpush.msra.mxu3 %v2229_v34  ;;  %v2281_v33 = vld [vmem:[%s5573_s28 + $0x3f28] sm:$0xff]  ;;  %v2298_v34 = vld [vmem:[%s5573_s28 + $0x3fb0] sm:$0xff]  ;;  %v4207_v37 = vadd.f32 %v4206_v29, %v4187_v32 }
 0x44b   : > { %5045 = vmatmul.f32.vlgmr.msra.gmra.mxu0 %v2493_v35  ;;  %5085 = vmatmul.f32.vlgmr.msra.gmra.mxu2 %v2495_v36  ;;  %v2248_v35 = vld [vmem:[%s5573_s28 + $0x3e20] sm:$0xff]  ;;  %v2265_v36 = vld [vmem:[%s5573_s28 + $0x3ea8] sm:$0xff]  ;;  %v4246_v45 = vpop.f32.mrf.mxu0 }
 0x44c   : > { %5109 = vmatpush.msrb.mxu0 %v2259_v38  ;;  %5149 = vmatpush.msrb.mxu2 %v2291_v39  ;;  %v2280_v38 = vld [vmem:[%s5573_s28 + $0x3f20] sm:$0xff]  ;;  %v2297_v39 = vld [vmem:[%s5573_s28 + $0x3fa8] sm:$0xff]  ;;  %v4227_v48 = vadd.f32 %v4226_v40, %v4207_v37 }
 0x44d   : > { %5064 = vmatpush.msra.mxu1 %v2196_v41  ;;  %5104 = vmatpush.msra.mxu3 %v2228_v42  ;;  %v2247_v41 = vld [vmem:[%s5573_s28 + $0x3e18] sm:$0xff]  ;;  %v2264_v42 = vld [vmem:[%s5573_s28 + $0x3ea0] sm:$0xff]  ;;  %v4286_v61 = vpop.f32.mrf.mxu2 }
 0x44e   : > { %5065 = vmatmul.f32.vlgmr.msra.gmra.mxu1 %v2494_v43  ;;  %5105 = vmatmul.f32.vlgmr.msra.gmra.mxu3 %v2496_v44  ;;  %v2279_v43 = vld [vmem:[%s5573_s28 + $0x3f18] sm:$0xff]  ;;  %v2296_v44 = vld [vmem:[%s5573_s28 + $0x3fa0] sm:$0xff]  ;;  %v4247_v53 = vadd.f32 %v4246_v45, %v4227_v48 }
 0x44f   : > { %5110 = vmatpush.msrb.mxu0 %v2258_v46  ;;  %5129 = vmatpush.msrb.mxu1 %v2275_v47  ;;  %v2246_v46 = vld [vmem:[%s5573_s28 + $0x3e10] sm:$0xff]  ;;  %v2263_v47 = vld [vmem:[%s5573_s28 + $0x3e98] sm:$0xff]  ;;  %v4266_v56 = vpop.f32.mrf.mxu1 }
 0x450   : > { %5150 = vmatpush.msrb.mxu2 %v2290_v49  ;;  %5169 = vmatpush.msrb.mxu3 %v2307_v50  ;;  %v2278_v49 = vld [vmem:[%s5573_s28 + $0x3f10] sm:$0xff]  ;;  %v2295_v50 = vld [vmem:[%s5573_s28 + $0x3f98] sm:$0xff]  ;;  %v4267_v0 = vadd.f32 %v4266_v56, %v4247_v53 }
 0x451   : > { %5111 = vmatpush.msrb.mxu0 %v2257_v51  ;;  %5130 = vmatpush.msrb.mxu1 %v2274_v52  ;;  %v2245_v51 = vld [vmem:[%s5573_s28 + $0x3e08] sm:$0xff]  ;;  %v2262_v52 = vld [vmem:[%s5573_s28 + $0x3e90] sm:$0xff] }
 0x452   : > { %5151 = vmatpush.msrb.mxu2 %v2289_v54  ;;  %5170 = vmatpush.msrb.mxu3 %v2306_v55  ;;  %v2277_v54 = vld [vmem:[%s5573_s28 + $0x3f08] sm:$0xff]  ;;  %v2294_v55 = vld [vmem:[%s5573_s28 + $0x3f90] sm:$0xff]  ;;  %v4287_v5 = vadd.f32 %v4286_v61, %v4267_v0 }
 0x453   : > { %5112 = vmatpush.msrb.mxu0 %v2256_v57  ;;  %5131 = vmatpush.msrb.mxu1 %v2273_v58  ;;  %v2244_v57 = vld [vmem:[%s5573_s28 + $0x3e00] sm:$0xff]  ;;  %v2261_v58 = vld [vmem:[%s5573_s28 + $0x3e88] sm:$0xff] }
 0x454   : > { %5152 = vmatpush.msrb.mxu2 %v2288_v59  ;;  %5171 = vmatpush.msrb.mxu3 %v2305_v60  ;;  %v2276_v59 = vld [vmem:[%s5573_s28 + $0x3f00] sm:$0xff]  ;;  %v2293_v60 = vld [vmem:[%s5573_s28 + $0x3f88] sm:$0xff] }
 0x455   : > { %5113 = vmatpush.msrb.mxu0 %v2255_v62  ;;  %5132 = vmatpush.msrb.mxu1 %v2272_v63  ;;  %v2497_v62 = vld.sshfl [vmem:[#allocation1 + $0x20] sm:$0xff pattern:$0x73625140]  ;;  %v2499_v63 = vld.sshfl [vmem:[#allocation1 + $0x30] sm:$0xff pattern:$0x73625140] }
 0x456   : > { %5153 = vmatpush.msrb.mxu2 %v2287_v1  ;;  %5172 = vmatpush.msrb.mxu3 %v2304_v2  ;;  %v2260_v1 = vld [vmem:[%s5573_s28 + $0x3e80] sm:$0xff] }
 0x457   : > { %5114 = vmatpush.msrb.mxu0 %v2254_v3  ;;  %5133 = vmatpush.msrb.mxu1 %v2271_v4  ;;  %v2292_v2 = vld [vmem:[%s5573_s28 + $0x3f80] sm:$0xff]  ;;  %v2500_v4 = vld.sshfl [vmem:[#allocation1 + $0x38] sm:$0xff pattern:$0x73625140] }
 0x458   : > { %5154 = vmatpush.msrb.mxu2 %v2286_v6  ;;  %5173 = vmatpush.msrb.mxu3 %v2303_v7  ;;  %v2498_v3 = vld.sshfl [vmem:[#allocation1 + $0x28] sm:$0xff pattern:$0x73625140]  ;;  %v4306_v6 = vpop.f32.mrf.mxu3  ;;  %v4326_v7 = vpop.f32.mrf.mxu0 }
 0x459   : > { %5115 = vmatpush.msrb.mxu0 %v2253_v9  ;;  %5134 = vmatpush.msrb.mxu1 %v2270_v10  ;;  %v4307_v8 = vadd.f32 %v4306_v6, %v4287_v5  ;;  %v4346_v10 = vpop.f32.mrf.mxu1 }
 0x45a   : > { %5155 = vmatpush.msrb.mxu2 %v2285_v11  ;;  %5174 = vmatpush.msrb.mxu3 %v2302_v12  ;;  %v4366_v11 = vpop.f32.mrf.mxu2 }
 0x45b   : > { %5116 = vmatpush.msrb.mxu0 %v2252_v14  ;;  %5135 = vmatpush.msrb.mxu1 %v2269_v15  ;;  %v4327_v9 = vadd.f32 %v4326_v7, %v4307_v8 }
 0x45c   : > { %5156 = vmatpush.msrb.mxu2 %v2284_v17  ;;  %5175 = vmatpush.msrb.mxu3 %v2301_v18 }
 0x45d   : > { %5117 = vmatpush.msrb.mxu0 %v2251_v19  ;;  %5136 = vmatpush.msrb.mxu1 %v2268_v20  ;;  %v4347_v12 = vadd.f32 %v4346_v10, %v4327_v9 }
 0x45e   : > { %5157 = vmatpush.msrb.mxu2 %v2283_v22  ;;  %5176 = vmatpush.msrb.mxu3 %v2300_v23 }
 0x45f   : > { %5118 = vmatpush.msrb.mxu0 %v2250_v25  ;;  %5137 = vmatpush.msrb.mxu1 %v2267_v26  ;;  %v4367_v13 = vadd.f32 %v4366_v11, %v4347_v12 }
 0x460   : > { %5158 = vmatpush.msrb.mxu2 %v2282_v27  ;;  %5177 = vmatpush.msrb.mxu3 %v2299_v28  ;;  %v4386_v14 = vpop.f32.mrf.mxu3  ;;  %v4406_v15 = vpop.f32.mrf.mxu0 }
 0x461   : > { %5119 = vmatpush.msrb.mxu0 %v2249_v30  ;;  %5138 = vmatpush.msrb.mxu1 %v2266_v31  ;;  %v4387_v16 = vadd.f32 %v4386_v14, %v4367_v13  ;;  %v4426_v18 = vpop.f32.mrf.mxu1 }
 0x462   : > { %5159 = vmatpush.msrb.mxu2 %v2281_v33  ;;  %5178 = vmatpush.msrb.mxu3 %v2298_v34  ;;  %v4446_v19 = vpop.f32.mrf.mxu2 }
 0x463   : > { %5120 = vmatpush.msrb.mxu0 %v2248_v35  ;;  %5139 = vmatpush.msrb.mxu1 %v2265_v36  ;;  %v4407_v17 = vadd.f32 %v4406_v15, %v4387_v16 }
 0x464   : > { %5160 = vmatpush.msrb.mxu2 %v2280_v38  ;;  %5179 = vmatpush.msrb.mxu3 %v2297_v39 }
 0x465   : > { %5121 = vmatpush.msrb.mxu0 %v2247_v41  ;;  %5140 = vmatpush.msrb.mxu1 %v2264_v42  ;;  %v4427_v20 = vadd.f32 %v4426_v18, %v4407_v17 }
 0x466   : > { %5161 = vmatpush.msrb.mxu2 %v2279_v43  ;;  %5180 = vmatpush.msrb.mxu3 %v2296_v44 }
 0x467   : > { %5122 = vmatpush.msrb.mxu0 %v2246_v46  ;;  %5141 = vmatpush.msrb.mxu1 %v2263_v47  ;;  %v4447_v21 = vadd.f32 %v4446_v19, %v4427_v20 }
 0x468   : > { %5162 = vmatpush.msrb.mxu2 %v2278_v49  ;;  %5181 = vmatpush.msrb.mxu3 %v2295_v50  ;;  %v4466_v22 = vpop.f32.mrf.mxu3  ;;  %v4486_v23 = vpop.f32.mrf.mxu0 }
 0x469   : > { %5123 = vmatpush.msrb.mxu0 %v2245_v51  ;;  %5142 = vmatpush.msrb.mxu1 %v2262_v52  ;;  %v4467_v24 = vadd.f32 %v4466_v22, %v4447_v21  ;;  %v4506_v26 = vpop.f32.mrf.mxu1 }
 0x46a   : > { %5163 = vmatpush.msrb.mxu2 %v2277_v54  ;;  %5182 = vmatpush.msrb.mxu3 %v2294_v55  ;;  %v4526_v27 = vpop.f32.mrf.mxu2 }
 0x46b   : > { %5124 = vmatpush.msrb.mxu0 %v2244_v57  ;;  %5143 = vmatpush.msrb.mxu1 %v2261_v58  ;;  %v4487_v25 = vadd.f32 %v4486_v23, %v4467_v24 }
 0x46c   : > { %5164 = vmatpush.msrb.mxu2 %v2276_v59  ;;  %5183 = vmatpush.msrb.mxu3 %v2293_v60 }
 0x46d   : > { %5125 = vmatmul.f32.vlgmr.msrb.gmra.mxu0 %v2497_v62  ;;  %5165 = vmatmul.f32.vlgmr.msrb.gmra.mxu2 %v2499_v63  ;;  %v4507_v28 = vadd.f32 %v4506_v26, %v4487_v25 }
 0x46e   : > { %5144 = vmatpush.msrb.mxu1 %v2260_v1  ;;  %5184 = vmatpush.msrb.mxu3 %v2292_v2 }
 0x46f   : > { %5145 = vmatmul.f32.vlgmr.msrb.gmra.mxu1 %v2498_v3  ;;  %5185 = vmatmul.f32.vlgmr.msrb.gmra.mxu3 %v2500_v4  ;;  %v4527_v29 = vadd.f32 %v4526_v27, %v4507_v28 }
 0x470   : > { %v4546_v30 = vpop.f32.mrf.mxu3  ;;  %v4566_v31 = vpop.f32.mrf.mxu0 }
 0x471   : > { %v4547_v32 = vadd.f32 %v4546_v30, %v4527_v29  ;;  %v4586_v34 = vpop.f32.mrf.mxu1  ;;  %v227_v30 = vld [vmem:[#allocation2] sm:$0x3] }
 0x472   : > { %v4606_v35 = vpop.f32.mrf.mxu2 }
 0x473   : > { %v4567_v33 = vadd.f32 %v4566_v31, %v4547_v32 }
 0x475   : > { %v4587_v36 = vadd.f32 %v4586_v34, %v4567_v33 }
 0x477   : > { %v4607_v37 = vadd.f32 %v4606_v35, %v4587_v36 }
 0x478   : > { %v4626_v38 = vpop.f32.mrf.mxu3  ;;  %v4646_v39 = vpop.f32.mrf.mxu0 }
 0x479   : > { %v4627_v40 = vadd.f32 %v4626_v38, %v4607_v37  ;;  %v4666_v42 = vpop.f32.mrf.mxu1 }
 0x47a   : > { %v4686_v43 = vpop.f32.mrf.mxu2 }
 0x47b   : > { %v4647_v41 = vadd.f32 %v4646_v39, %v4627_v40 }
 0x47d   : > { %v4667_v44 = vadd.f32 %v4666_v42, %v4647_v41 }
 0x47f   : > { %v4687_v45 = vadd.f32 %v4686_v43, %v4667_v44 }
 0x480   : > { %v4706_v46 = vpop.f32.mrf.mxu3  ;;  %v4726_v47 = vpop.f32.mrf.mxu0 }
 0x481   : > { %v4707_v48 = vadd.f32 %v4706_v46, %v4687_v45  ;;  %v4746_v50 = vpop.f32.mrf.mxu1 }
 0x482   : > { %v4766_v51 = vpop.f32.mrf.mxu2 }
 0x483   : > { %v4727_v49 = vadd.f32 %v4726_v47, %v4707_v48 }
 0x485   : > { %v4747_v52 = vadd.f32 %v4746_v50, %v4727_v49 }
 0x487   : > { %v4767_v53 = vadd.f32 %v4766_v51, %v4747_v52 }
 0x488   : > { %v4786_v54 = vpop.f32.mrf.mxu3  ;;  %v4806_v55 = vpop.f32.mrf.mxu0 }
 0x489   : > { %v4787_v56 = vadd.f32 %v4786_v54, %v4767_v53  ;;  %v4826_v58 = vpop.f32.mrf.mxu1 }
 0x48a   : > { %v4846_v59 = vpop.f32.mrf.mxu2 }
 0x48b   : > { %v4807_v57 = vadd.f32 %v4806_v55, %v4787_v56 }
 0x48d   : > { %v4827_v60 = vadd.f32 %v4826_v58, %v4807_v57 }
 0x48f   : > { %v4847_v61 = vadd.f32 %v4846_v59, %v4827_v60 }
 0x490   : > { %v4866_v62 = vpop.f32.mrf.mxu3  ;;  %v4886_v63 = vpop.f32.mrf.mxu0 }
 0x491   : > { %v4867_v0 = vadd.f32 %v4866_v62, %v4847_v61  ;;  %v4906_v2 = vpop.f32.mrf.mxu1 }
 0x492   : > { %v4926_v3 = vpop.f32.mrf.mxu2 }
 0x493   : > { %v4887_v1 = vadd.f32 %v4886_v63, %v4867_v0 }
 0x495   : > { %v4907_v4 = vadd.f32 %v4906_v2, %v4887_v1 }
 0x497   : > { %v4927_v5 = vadd.f32 %v4926_v3, %v4907_v4 }
 0x498   : > { %v4946_v6 = vpop.f32.mrf.mxu3 }
 0x499   : > { %v4947_v8 = vadd.f32 %v4946_v6, %v4927_v5 }
 0x4a6   : > { %v4966_v7 = vpop.f32.mrf.mxu0 }
 0x4a7   : > { %v4967_v9 = vadd.f32 %v4966_v7, %v4947_v8 }
 0x4a9   : > { %v4986_v10 = vpop.f32.mrf.mxu1 }
 0x4aa   : > { %v4987_v12 = vadd.f32 %v4986_v10, %v4967_v9 }
 0x4ac   : > { %v5006_v11 = vpop.f32.mrf.mxu2 }
 0x4ad   : > { %v5007_v13 = vadd.f32 %v5006_v11, %v4987_v12 }
 0x4af   : > { %v5026_v14 = vpop.f32.mrf.mxu3 }
 0x4b0   : > { %v5027_v16 = vadd.f32 %v5026_v14, %v5007_v13 }
 0x4c8   : > { %v5046_v15 = vpop.f32.mrf.mxu0 }
 0x4c9   : > { %v5047_v17 = vadd.f32 %v5046_v15, %v5027_v16 }
 0x4cb   : > { %v5066_v18 = vpop.f32.mrf.mxu1 }
 0x4cc   : > { %v5067_v20 = vadd.f32 %v5066_v18, %v5047_v17 }
 0x4ce   : > { %v5086_v19 = vpop.f32.mrf.mxu2 }
 0x4cf   : > { %v5087_v21 = vadd.f32 %v5086_v19, %v5067_v20 }
 0x4d1   : > { %v5106_v22 = vpop.f32.mrf.mxu3 }
 0x4d2   : > { %v5107_v23 = vadd.f32 %v5106_v22, %v5087_v21 }
 0x4ea   : > { %v5126_v24 = vpop.f32.mrf.mxu0 }
 0x4eb   : > { %v5127_v25 = vadd.f32 %v5126_v24, %v5107_v23 }
 0x4ec   : > { %v5146_v26 = vpop.f32.mrf.mxu1 }
 0x4ed   : > { %v5147_v27 = vadd.f32 %v5146_v26, %v5127_v25 }
 0x4f0   : > { %v5166_v28 = vpop.f32.mrf.mxu2 }
 0x4f1   : > { %v5167_v29 = vadd.f32 %v5166_v28, %v5147_v27 }
 0x4f2   : > { %v5186_v31 = vpop.f32.mrf.mxu3 }
 0x4f3   : > { %v5187_v32 = vadd.f32 %v5186_v31, %v5167_v29  ;;  %5195 = sbr.rel (%p5301_p3) target bundleno = 1280 (0x500), region = 40 }
 0x4f5   : > { %v5189_v33 = vadd.f32 %v5187_v32, %v227_v30 }
 0x4f7   : > { %5191 = vst.msk [vmem:[#allocation2] sm:$0x3] %vm5190_vm1, %v5189_v33 }
 0x4fe   : > { %v5196_v34 = vld [vmem:[#allocation2] sm:$0x3] }
 0x4ff   : > { %5197 = vst.msk [vmem:[%s5586_s7] sm:$0x3] %vm5190_vm1, %v5196_v34 }
 0x500 PF: > { %s15_s16 = sadd.s32 1, %s5475_s16   ;;  %s7705_s9 = smov %s5451_s10 }
 0x501   : > { %p12_p4 = scmp.ge.s32.totalorder %s15_s16, 14   ;;  %s7706_s10 = smov %s5455_s11 }
 0x502   : > { %s7707_s11 = smov %s5561_s5  ;;  %s7708_s12 = smov %s5467_s14 }
 0x503   : > { %s7709_s13 = smov %s5471_s15  ;;  %s7710_s14 = smov %s7713_s18 }
 0x504   : > { %s7711_s15 = smov %s7717_s19  ;;  %14 = sbr.rel (!%p12_p4) target bundleno = 5 (0x5), region = 80 }
 0x509   :  { %5217 = vsyncpa [#allocation4], 1 }
 0x50a   :  { %5219 = vsyncpa [#allocation4 + $0x1], 1 }

</bundles_post_ra>
